<compile_context>
chip_gen: v6e
topology: v6e:2x2x1
jax: 0.10.0
libtpu: 0.0.40
codegen_flags: <defaults>
</compile_context>

<pallas_src>
import functools

import jax
import jax.numpy as jnp
from jax.experimental import pallas as pl
from jax.experimental.pallas import tpu as pltpu

F32 = jnp.float32

# ---- fixed channel sizes of the module -------------------------------------
N_INPT = 3
N_EMBED_HIDDEN = 30
N_EMBED = 10          # node / mask embedding width
N_MASK = 10
N_GLOBAL = 3
N_MSG = 15            # message / fedges hidden width
N_HIDDEN = 20         # SpatialAggregation output width
N_LAYERS = 10

# ---- packed concat-scratch layout (64 rows, 8-aligned sub-block offsets) ----
CIN = 20              # node-feature rows (layer 0 only uses rows 0:10)
CATROWS = 64
OFF_X = 0             # x / x_j            rows  0:20
OFF_MASK = 24         # mask / mask_j      rows 24:34
OFF_AGG = 40          # aggregated msgs    rows 40:55   (node concat)
OFF_GPRJ = 40         # global-pool @ src  rows 40:43   (edge concat)
OFF_E = 48            # PReLU(fedges(dpos))rows 48:63   (edge concat)
OFF_GPR = 56          # global-pool repeat rows 56:59   (node concat)
OFF_ONE = 63          # constant ones row (bias folded into weight col 63)


# =============================================================================
# Fused kernel: embed + embed_mask + 10x SpatialAggregation + pool + PredictNorm
# =============================================================================
def gnn_fused_kernel(
    xT_ref, mT_ref, dposT_ref, gatherT_ref, smeanT_ref, poolT_ref, repT_ref,
    ew1_ref, eb1_ref, ew2_ref, eb2_ref,          # embed
    mw1_ref, mb1_ref, mw2_ref, mb2_ref,          # embed_mask
    wg_ref, bg_ref, we_ref, be_ref, w1_ref, w2_ref,   # 10 stacked SA layers
    pw1_ref, pb1_ref, pw2_ref, pb2_ref,          # PredictNorm
    alphas_ref,                                  # SMEM: all PReLU alphas
    out_ref,                                     # [1, B]
    cat_n, cat_e,                                # VMEM scratch: [64, NP], [64, EP]
):
    dot = functools.partial(jnp.dot, preferred_element_type=jnp.float32)

    def prelu(y, a):                 # a: scalar read from SMEM
        return jnp.where(y >= 0.0, y, a * y)

    np_pad = cat_n.shape[1]
    ep_pad = cat_e.shape[1]

    # ---- node / mask embeddings: Linear -> PReLU -> Linear -> PReLU --------
    xe = prelu(dot(ew1_ref[...], xT_ref[...]) + eb1_ref[...], alphas_ref[0])
    xe = prelu(dot(ew2_ref[...], xe) + eb2_ref[...], alphas_ref[1])      # [10, NP]
    me = prelu(dot(mw1_ref[...], mT_ref[...]) + mb1_ref[...], alphas_ref[2])
    me = prelu(dot(mw2_ref[...], me) + mb2_ref[...], alphas_ref[3])      # [10, NP]

    # ---- initialize concat scratch buffers (layer-invariant rows once) -----
    cat_n[...] = jnp.zeros(cat_n.shape, F32)
    cat_e[...] = jnp.zeros(cat_e.shape, F32)
    cat_n[OFF_MASK:OFF_MASK + N_MASK, :] = me
    cat_e[OFF_MASK:OFF_MASK + N_MASK, :] = dot(me, gatherT_ref[...])     # mask_j
    cat_n[OFF_ONE:OFF_ONE + 1, :] = jnp.ones((1, np_pad), F32)
    cat_e[OFF_ONE:OFF_ONE + 1, :] = jnp.ones((1, ep_pad), F32)

    # seed layer-0 node features (10 real channels; rows 10:20 stay zero)
    cat_n[OFF_X:OFF_X + N_EMBED, :] = xe
    x0 = cat_n[OFF_X:OFF_X + CIN, :]                                      # [20, NP]

    def sa_layer(l, x_val):
        a1 = alphas_ref[4 + 4 * l + 0]      # activate1 (fc1 / message)
        a2 = alphas_ref[4 + 4 * l + 1]      # activate2 (fc2 / output)
        a3 = alphas_ref[4 + 4 * l + 2]      # activate3 (fglobal)
        a4 = alphas_ref[4 + 4 * l + 3]      # activate4 (fedges)

        # global branch: fglobal -> PReLU -> global mean pool -> broadcast back
        g = prelu(dot(wg_ref[l], x_val) + bg_ref[l], a3)                  # [3, NP]
        gp = dot(g, poolT_ref[...])                                       # [3, B]
        gpr = dot(gp, repT_ref[...])                                      # [3, NP]

        # edge concat: [x_j ; mask_j ; gp_j ; PReLU(fedges(pos_i - pos_j)) ; 1]
        cat_e[OFF_X:OFF_X + CIN, :] = dot(x_val, gatherT_ref[...])        # x_j
        cat_e[OFF_GPRJ:OFF_GPRJ + N_GLOBAL, :] = dot(gpr, gatherT_ref[...])
        cat_e[OFF_E:OFF_E + N_MSG, :] = prelu(
            dot(we_ref[l], dposT_ref[...]) + be_ref[l], a4)
        msg = prelu(dot(w1_ref[l], cat_e[...]), a1)                       # [15, EP]

        # mean aggregation of messages onto target nodes
        agg = dot(msg, smeanT_ref[...])                                   # [15, NP]

        # node concat: [x ; mask ; agg ; gp_repeat ; 1] -> fc2 -> PReLU
        cat_n[OFF_X:OFF_X + CIN, :] = x_val
        cat_n[OFF_AGG:OFF_AGG + N_MSG, :] = agg
        cat_n[OFF_GPR:OFF_GPR + N_GLOBAL, :] = gpr
        return prelu(dot(w2_ref[l], cat_n[...]), a2)                      # [20, NP]

    out_1 = sa_layer(0, x0)
    out = sa_layer(1, out_1)
    out = sa_layer(2, out) + out_1
    out_2 = sa_layer(3, out)
    out = sa_layer(4, out_2)
    out = sa_layer(5, out) + out_2
    out_3 = sa_layer(6, out)
    out = sa_layer(7, out_3)
    out = sa_layer(8, out) + out_3
    out = sa_layer(9, out)

    # ---- global mean pool + PredictNorm (Linear -> PReLU -> Linear) * 5 ----
    gpf = dot(out, poolT_ref[...])                                        # [20, B]
    hid = prelu(dot(pw1_ref[...], gpf) + pb1_ref[...], alphas_ref[44])
    out_ref[...] = 5.0 * (dot(pw2_ref[...], hid) + pb2_ref[...])          # [1, B]


# =============================================================================
# Wrapper: one pallas_call for the whole network
# =============================================================================
def gnn_forward(xT, mT, dposT, gatherT, smeanT, poolT, repT, p):
    num_graphs = poolT.shape[1]
    np_pad = xT.shape[1]
    ep_pad = dposT.shape[1]

    vmem = pl.BlockSpec(memory_space=pltpu.MemorySpace.VMEM)
    smem = pl.BlockSpec(memory_space=pltpu.MemorySpace.SMEM)

    operands = [
        xT, mT, dposT, gatherT, smeanT, poolT, repT,
        p["ew1"], p["eb1"], p["ew2"], p["eb2"],
        p["mw1"], p["mb1"], p["mw2"], p["mb2"],
        p["wg"], p["bg"], p["we"], p["be"], p["w1"], p["w2"],
        p["pw1"], p["pb1"], p["pw2"], p["pb2"],
    ]

    pred = pl.pallas_call(
        gnn_fused_kernel,
        out_shape=jax.ShapeDtypeStruct((1, num_graphs), F32),
        in_specs=[vmem] * len(operands) + [smem],
        out_specs=vmem,
        scratch_shapes=[
            pltpu.VMEM((CATROWS, np_pad), F32),   # node concat buffer
            pltpu.VMEM((CATROWS, ep_pad), F32),   # edge concat buffer
        ],
        compiler_params=pltpu.CompilerParams(vmem_limit_bytes=32 * 1024 * 1024),
    )(*operands, p["alphas"])
    return pred.T                                                         # [B, 1]


# =============================================================================
# Graph-structure operators (built ONCE per batch topology, outside forward)
# =============================================================================
def build_graph_operators(src, dst, batch, num_graphs, n_nodes, np_pad, ep_pad):
    e = src.shape[0]
    eidx = jnp.arange(e, dtype=jnp.int32)
    # gatherT[n, e] = 1 iff src[e] == n   -> x_j = x @ gatherT
    gatherT = jnp.zeros((np_pad, ep_pad), F32).at[src, eidx].set(1.0)
    # smeanT[e, n] = 1/deg(n) iff dst[e] == n  (mean aggr; isolated nodes -> 0)
    onehot_dst = jax.nn.one_hot(dst, np_pad, dtype=F32)                   # [E, NP]
    deg = jnp.maximum(onehot_dst.sum(axis=0), 1.0)
    smeanT = jnp.zeros((ep_pad, np_pad), F32).at[:e, :].set(onehot_dst / deg[None, :])
    # poolT[n, b] = 1/count(b) iff batch[n] == b  (global mean pool)
    onehot_b = jax.nn.one_hot(batch, num_graphs, dtype=F32)               # [N, B]
    counts = jnp.maximum(onehot_b.sum(axis=0), 1.0)
    poolT = jnp.zeros((np_pad, num_graphs), F32).at[:n_nodes, :].set(onehot_b / counts[None, :])
    # repT[b, n] = 1 iff batch[n] == b  (repeat_interleave back to nodes)
    repT = jnp.zeros((num_graphs, np_pad), F32).at[:, :n_nodes].set(onehot_b.T)
    return gatherT, smeanT, poolT, repT


def prepare_inputs(x_raw, mask_raw, merged_nodes, src, dst, np_pad, ep_pad,
                   scale_rel=1.0):
    n = x_raw.shape[0]
    e = src.shape[0]
    xT = jnp.zeros((x_raw.shape[1], np_pad), F32).at[:, :n].set(x_raw.T)
    mT = jnp.zeros((mask_raw.shape[1], np_pad), F32).at[:, :n].set(mask_raw.T)
    pos = merged_nodes / scale_rel
    dpos = pos[dst] - pos[src]                                            # [E, 3]
    dposT = jnp.zeros((3, ep_pad), F32).at[:, :e].set(dpos.T)
    return xT, mT, dposT


# =============================================================================
# Deterministic parameter init + packing into the fused-kernel layout
# =============================================================================
def _linear(key, d_out, d_in, scale=0.1):
    kw, kb = jax.random.split(key)
    w = jax.random.normal(kw, (d_out, d_in), F32) * scale
    b = jax.random.normal(kb, (d_out, 1), F32) * scale
    return w, b


def _init_embed(key, d_in, d_hidden, d_out):
    k1, k2 = jax.random.split(key)
    w1, b1 = _linear(k1, d_hidden, d_in)
    w2, b2 = _linear(k2, d_out, d_hidden)
    return w1, b1, w2, b2


def _init_sa_layer(key, c_in):
    kg, ke, k1, k2 = jax.random.split(key, 4)
    wg, bg = _linear(kg, N_GLOBAL, c_in)
    we, be = _linear(ke, N_MSG, N_INPT)
    w1, b1 = _linear(k1, N_MSG, c_in + N_MASK + N_GLOBAL + N_MSG)
    w2, b2 = _linear(k2, N_HIDDEN, c_in + N_MASK + N_MSG + N_GLOBAL)
    return wg, bg, we, be, w1, b1, w2, b2


def _pack_sa_layer(wg, bg, we, be, w1, b1, w2, b2, c_in):
    # fglobal weight padded to CIN input columns (layer 0 extra cols are zero)
    wg_p = jnp.zeros((N_GLOBAL, CIN), F32).at[:, :c_in].set(wg)
    # fc1: input order [x_j(c_in), mask_j(10), gp_j(3), edge(15)]; bias -> ones col
    w1_p = jnp.zeros((N_MSG, CATROWS), F32)
    w1_p = w1_p.at[:, OFF_X:OFF_X + c_in].set(w1[:, 0:c_in])
    w1_p = w1_p.at[:, OFF_MASK:OFF_MASK + N_MASK].set(w1[:, c_in:c_in + N_MASK])
    w1_p = w1_p.at[:, OFF_GPRJ:OFF_GPRJ + N_GLOBAL].set(
        w1[:, c_in + N_MASK:c_in + N_MASK + N_GLOBAL])
    w1_p = w1_p.at[:, OFF_E:OFF_E + N_MSG].set(w1[:, c_in + N_MASK + N_GLOBAL:])
    w1_p = w1_p.at[:, OFF_ONE].set(b1[:, 0])
    # fc2: input order [x(c_in), mask(10), agg(15), gp_repeat(3)]; bias -> ones col
    w2_p = jnp.zeros((N_HIDDEN, CATROWS), F32)
    w2_p = w2_p.at[:, OFF_X:OFF_X + c_in].set(w2[:, 0:c_in])
    w2_p = w2_p.at[:, OFF_MASK:OFF_MASK + N_MASK].set(w2[:, c_in:c_in + N_MASK])
    w2_p = w2_p.at[:, OFF_AGG:OFF_AGG + N_MSG].set(
        w2[:, c_in + N_MASK:c_in + N_MASK + N_MSG])
    w2_p = w2_p.at[:, OFF_GPR:OFF_GPR + N_GLOBAL].set(w2[:, c_in + N_MASK + N_MSG:])
    w2_p = w2_p.at[:, OFF_ONE].set(b2[:, 0])
    return wg_p, bg, we, be, w1_p, w2_p


def init_params(key):
    keys = jax.random.split(key, 13)
    ew1, eb1, ew2, eb2 = _init_embed(keys[0], N_INPT, N_EMBED_HIDDEN, N_EMBED)
    mw1, mb1, mw2, mb2 = _init_embed(keys[1], N_INPT, N_EMBED_HIDDEN, N_EMBED)

    c_ins = [N_EMBED] + [N_HIDDEN] * (N_LAYERS - 1)
    packed = [_pack_sa_layer(*_init_sa_layer(keys[2 + i], c), c)
              for i, c in enumerate(c_ins)]
    wg = jnp.stack([p[0] for p in packed])        # [10, 3, 20]
    bg = jnp.stack([p[1] for p in packed])        # [10, 3, 1]
    we = jnp.stack([p[2] for p in packed])        # [10, 15, 3]
    be = jnp.stack([p[3] for p in packed])        # [10, 15, 1]
    w1 = jnp.stack([p[4] for p in packed])        # [10, 15, 64]
    w2 = jnp.stack([p[5] for p in packed])        # [10, 20, 64]

    pw1, pb1 = _linear(jax.random.fold_in(keys[12], 0), N_HIDDEN, N_HIDDEN)
    pw2, pb2 = _linear(jax.random.fold_in(keys[12], 1), 1, N_HIDDEN)

    # PReLU alphas (nn.PReLU default 0.25):
    #   [0:2] embed, [2:4] embed_mask, [4 + 4*l + (a1,a2,a3,a4)] per SA, [44] predict
    alphas = jnp.full((45,), 0.25, F32)

    return dict(ew1=ew1, eb1=eb1, ew2=ew2, eb2=eb2,
                mw1=mw1, mb1=mb1, mw2=mw2, mb2=mb2,
                wg=wg, bg=bg, we=we, be=be, w1=w1, w2=w2,
                pw1=pw1, pb1=pb1, pw2=pw2, pb2=pb2,
                alphas=alphas)


# =============================================================================
if __name__ == "__main__":
    key = jax.random.PRNGKey(0)

    # small batch: 2 graphs x 32 nodes, 64 edges per graph
    NUM_GRAPHS = 2
    NODES_PER_GRAPH = 32
    EDGES_PER_GRAPH = 64
    N = NUM_GRAPHS * NODES_PER_GRAPH
    E = NUM_GRAPHS * EDGES_PER_GRAPH
    NP_PAD = -(-N // 128) * 128
    EP_PAD = -(-E // 128) * 128

    kx, km, kp, ke1, ke2, kparam = jax.random.split(key, 6)
    x_raw = jax.random.normal(kx, (N, N_INPT), F32)
    mask_raw = jax.random.normal(km, (N, N_INPT), F32)
    merged_nodes = jax.random.normal(kp, (N, 3), F32)          # node positions
    batch = jnp.repeat(jnp.arange(NUM_GRAPHS, dtype=jnp.int32), NODES_PER_GRAPH)

    # edges confined to their own graph
    src0 = jax.random.randint(ke1, (NUM_GRAPHS, EDGES_PER_GRAPH), 0, NODES_PER_GRAPH)
    dst0 = jax.random.randint(ke2, (NUM_GRAPHS, EDGES_PER_GRAPH), 0, NODES_PER_GRAPH)
    offset = (jnp.arange(NUM_GRAPHS, dtype=jnp.int32) * NODES_PER_GRAPH)[:, None]
    src = (src0 + offset).reshape(-1).astype(jnp.int32)        # source node j
    dst = (dst0 + offset).reshape(-1).astype(jnp.int32)        # target node i

    params = init_params(kparam)

    # graph-structure operators: built once per batch topology (hoisted)
    gatherT, smeanT, poolT, repT = build_graph_operators(
        src, dst, batch, NUM_GRAPHS, N, NP_PAD, EP_PAD)

    @jax.jit
    def forward(x_in, mask_in, pos_in):
        xT, mT, dposT = prepare_inputs(x_in, mask_in, pos_in, src, dst,
                                       NP_PAD, EP_PAD, scale_rel=1.0)
        return gnn_forward(xT, mT, dposT, gatherT, smeanT, poolT, repT, params)

    pred = jax.block_until_ready(forward(x_raw, mask_raw, merged_nodes))

    assert pred.shape == (NUM_GRAPHS, 1)
    assert bool(jnp.all(jnp.isfinite(pred)))
    print("KERNEL_OK")
</pallas_src>

<mosaic_0001>
module attributes {stable_mosaic.version = 11 : i64} {
  func.func @gnn_fused_kernel(%arg0: memref<3x128xf32, #tpu.memory_space<vmem>>, %arg1: memref<3x128xf32, #tpu.memory_space<vmem>>, %arg2: memref<3x128xf32, #tpu.memory_space<vmem>>, %arg3: memref<128x128xf32, #tpu.memory_space<vmem>>, %arg4: memref<128x128xf32, #tpu.memory_space<vmem>>, %arg5: memref<128x2xf32, #tpu.memory_space<vmem>>, %arg6: memref<2x128xf32, #tpu.memory_space<vmem>>, %arg7: memref<30x3xf32, #tpu.memory_space<vmem>>, %arg8: memref<30x1xf32, #tpu.memory_space<vmem>>, %arg9: memref<10x30xf32, #tpu.memory_space<vmem>>, %arg10: memref<10x1xf32, #tpu.memory_space<vmem>>, %arg11: memref<30x3xf32, #tpu.memory_space<vmem>>, %arg12: memref<30x1xf32, #tpu.memory_space<vmem>>, %arg13: memref<10x30xf32, #tpu.memory_space<vmem>>, %arg14: memref<10x1xf32, #tpu.memory_space<vmem>>, %arg15: memref<10x3x20xf32, #tpu.memory_space<vmem>>, %arg16: memref<10x3x1xf32, #tpu.memory_space<vmem>>, %arg17: memref<10x15x3xf32, #tpu.memory_space<vmem>>, %arg18: memref<10x15x1xf32, #tpu.memory_space<vmem>>, %arg19: memref<10x15x64xf32, #tpu.memory_space<vmem>>, %arg20: memref<10x20x64xf32, #tpu.memory_space<vmem>>, %arg21: memref<20x20xf32, #tpu.memory_space<vmem>>, %arg22: memref<20x1xf32, #tpu.memory_space<vmem>>, %arg23: memref<1x20xf32, #tpu.memory_space<vmem>>, %arg24: memref<1x1xf32, #tpu.memory_space<vmem>>, %arg25: memref<45xf32, #tpu.memory_space<smem>>, %arg26: memref<1x2xf32, #tpu.memory_space<vmem>>, %arg27: memref<64x128xf32, #tpu.memory_space<vmem>>, %arg28: memref<64x128xf32, #tpu.memory_space<vmem>>) attributes {dimension_semantics = [], scalar_prefetch = 0 : i64, scratch_operands = 2 : i64, tpu.core_type = #tpu.core_type<tc>} {
    %c0 = arith.constant 0 : index
    %c0_0 = arith.constant 0 : index
    %0 = vector.load %arg7[%c0, %c0_0] : memref<30x3xf32, #tpu.memory_space<vmem>>, vector<30x3xf32>
    %c0_1 = arith.constant 0 : index
    %c0_2 = arith.constant 0 : index
    %1 = vector.load %arg0[%c0_1, %c0_2] : memref<3x128xf32, #tpu.memory_space<vmem>>, vector<3x128xf32>
    %cst = arith.constant dense<0.000000e+00> : vector<30x128xf32>
    %2 = tpu.matmul %0, %1, %cst {dimension_numbers = #tpu.dot_dimension_numbers<[1], [0], [0], [1], [0, 0, 1, 1], [], []>} : vector<30x3xf32>, vector<3x128xf32>, vector<30x128xf32> -> vector<30x128xf32>
    %c0_3 = arith.constant 0 : index
    %c0_4 = arith.constant 0 : index
    %3 = vector.load %arg8[%c0_3, %c0_4] : memref<30x1xf32, #tpu.memory_space<vmem>>, vector<30x1xf32>
    %4 = vector.broadcast %3 : vector<30x1xf32> to vector<30x128xf32>
    %5 = arith.addf %2, %4 : vector<30x128xf32>
    %c0_5 = arith.constant 0 : index
    %6 = memref.load %arg25[%c0_5] : memref<45xf32, #tpu.memory_space<smem>>
    %cst_6 = arith.constant 0.000000e+00 : f32
    %7 = vector.broadcast %cst_6 : f32 to vector<30x128xf32>
    %8 = arith.cmpf oge, %5, %7 : vector<30x128xf32>
    %9 = vector.broadcast %6 : f32 to vector<30x128xf32>
    %10 = arith.mulf %9, %5 : vector<30x128xf32>
    %11 = arith.select %8, %5, %10 : vector<30x128xi1>, vector<30x128xf32>
    %c0_7 = arith.constant 0 : index
    %c0_8 = arith.constant 0 : index
    %12 = vector.load %arg9[%c0_7, %c0_8] : memref<10x30xf32, #tpu.memory_space<vmem>>, vector<10x30xf32>
    %cst_9 = arith.constant dense<0.000000e+00> : vector<10x128xf32>
    %13 = tpu.matmul %12, %11, %cst_9 {dimension_numbers = #tpu.dot_dimension_numbers<[1], [0], [0], [1], [0, 0, 1, 1], [], []>} : vector<10x30xf32>, vector<30x128xf32>, vector<10x128xf32> -> vector<10x128xf32>
    %c0_10 = arith.constant 0 : index
    %c0_11 = arith.constant 0 : index
    %14 = vector.load %arg10[%c0_10, %c0_11] : memref<10x1xf32, #tpu.memory_space<vmem>>, vector<10x1xf32>
    %15 = vector.broadcast %14 : vector<10x1xf32> to vector<10x128xf32>
    %16 = arith.addf %13, %15 : vector<10x128xf32>
    %c1 = arith.constant 1 : index
    %17 = memref.load %arg25[%c1] : memref<45xf32, #tpu.memory_space<smem>>
    %cst_12 = arith.constant 0.000000e+00 : f32
    %18 = vector.broadcast %cst_12 : f32 to vector<10x128xf32>
    %19 = arith.cmpf oge, %16, %18 : vector<10x128xf32>
    %20 = vector.broadcast %17 : f32 to vector<10x128xf32>
    %21 = arith.mulf %20, %16 : vector<10x128xf32>
    %22 = arith.select %19, %16, %21 : vector<10x128xi1>, vector<10x128xf32>
    %c0_13 = arith.constant 0 : index
    %c0_14 = arith.constant 0 : index
    %23 = vector.load %arg11[%c0_13, %c0_14] : memref<30x3xf32, #tpu.memory_space<vmem>>, vector<30x3xf32>
    %c0_15 = arith.constant 0 : index
    %c0_16 = arith.constant 0 : index
    %24 = vector.load %arg1[%c0_15, %c0_16] : memref<3x128xf32, #tpu.memory_space<vmem>>, vector<3x128xf32>
    %cst_17 = arith.constant dense<0.000000e+00> : vector<30x128xf32>
    %25 = tpu.matmul %23, %24, %cst_17 {dimension_numbers = #tpu.dot_dimension_numbers<[1], [0], [0], [1], [0, 0, 1, 1], [], []>} : vector<30x3xf32>, vector<3x128xf32>, vector<30x128xf32> -> vector<30x128xf32>
    %c0_18 = arith.constant 0 : index
    %c0_19 = arith.constant 0 : index
    %26 = vector.load %arg12[%c0_18, %c0_19] : memref<30x1xf32, #tpu.memory_space<vmem>>, vector<30x1xf32>
    %27 = vector.broadcast %26 : vector<30x1xf32> to vector<30x128xf32>
    %28 = arith.addf %25, %27 : vector<30x128xf32>
    %c2 = arith.constant 2 : index
    %29 = memref.load %arg25[%c2] : memref<45xf32, #tpu.memory_space<smem>>
    %cst_20 = arith.constant 0.000000e+00 : f32
    %30 = vector.broadcast %cst_20 : f32 to vector<30x128xf32>
    %31 = arith.cmpf oge, %28, %30 : vector<30x128xf32>
    %32 = vector.broadcast %29 : f32 to vector<30x128xf32>
    %33 = arith.mulf %32, %28 : vector<30x128xf32>
    %34 = arith.select %31, %28, %33 : vector<30x128xi1>, vector<30x128xf32>
    %c0_21 = arith.constant 0 : index
    %c0_22 = arith.constant 0 : index
    %35 = vector.load %arg13[%c0_21, %c0_22] : memref<10x30xf32, #tpu.memory_space<vmem>>, vector<10x30xf32>
    %cst_23 = arith.constant dense<0.000000e+00> : vector<10x128xf32>
    %36 = tpu.matmul %35, %34, %cst_23 {dimension_numbers = #tpu.dot_dimension_numbers<[1], [0], [0], [1], [0, 0, 1, 1], [], []>} : vector<10x30xf32>, vector<30x128xf32>, vector<10x128xf32> -> vector<10x128xf32>
    %c0_24 = arith.constant 0 : index
    %c0_25 = arith.constant 0 : index
    %37 = vector.load %arg14[%c0_24, %c0_25] : memref<10x1xf32, #tpu.memory_space<vmem>>, vector<10x1xf32>
    %38 = vector.broadcast %37 : vector<10x1xf32> to vector<10x128xf32>
    %39 = arith.addf %36, %38 : vector<10x128xf32>
    %c3 = arith.constant 3 : index
    %40 = memref.load %arg25[%c3] : memref<45xf32, #tpu.memory_space<smem>>
    %cst_26 = arith.constant 0.000000e+00 : f32
    %41 = vector.broadcast %cst_26 : f32 to vector<10x128xf32>
    %42 = arith.cmpf oge, %39, %41 : vector<10x128xf32>
    %43 = vector.broadcast %40 : f32 to vector<10x128xf32>
    %44 = arith.mulf %43, %39 : vector<10x128xf32>
    %45 = arith.select %42, %39, %44 : vector<10x128xi1>, vector<10x128xf32>
    %cst_27 = arith.constant 0.000000e+00 : f32
    %46 = vector.broadcast %cst_27 : f32 to vector<64x128xf32>
    %c0_28 = arith.constant 0 : index
    %c0_29 = arith.constant 0 : index
    %47 = vector.load %arg27[%c0_28, %c0_29] : memref<64x128xf32, #tpu.memory_space<vmem>>, vector<64x128xf32>
    tpu.vector_store %arg27[%c0_28, %c0_29], %46 {strides = array<i32>} : memref<64x128xf32, #tpu.memory_space<vmem>>, vector<64x128xf32>,
    %cst_30 = arith.constant 0.000000e+00 : f32
    %48 = vector.broadcast %cst_30 : f32 to vector<64x128xf32>
    %c0_31 = arith.constant 0 : index
    %c0_32 = arith.constant 0 : index
    %49 = vector.load %arg28[%c0_31, %c0_32] : memref<64x128xf32, #tpu.memory_space<vmem>>, vector<64x128xf32>
    tpu.vector_store %arg28[%c0_31, %c0_32], %48 {strides = array<i32>} : memref<64x128xf32, #tpu.memory_space<vmem>>, vector<64x128xf32>,
    %c24 = arith.constant 24 : index
    %c0_33 = arith.constant 0 : index
    %50 = vector.load %arg27[%c24, %c0_33] : memref<64x128xf32, #tpu.memory_space<vmem>>, vector<10x128xf32>
    tpu.vector_store %arg27[%c24, %c0_33], %45 {strides = array<i32>} : memref<64x128xf32, #tpu.memory_space<vmem>>, vector<10x128xf32>,
    %c0_34 = arith.constant 0 : index
    %c0_35 = arith.constant 0 : index
    %51 = vector.load %arg3[%c0_34, %c0_35] : memref<128x128xf32, #tpu.memory_space<vmem>>, vector<128x128xf32>
    %cst_36 = arith.constant dense<0.000000e+00> : vector<10x128xf32>
    %52 = tpu.matmul %45, %51, %cst_36 {dimension_numbers = #tpu.dot_dimension_numbers<[1], [0], [0], [1], [0, 0, 1, 1], [], []>} : vector<10x128xf32>, vector<128x128xf32>, vector<10x128xf32> -> vector<10x128xf32>
    %c24_37 = arith.constant 24 : index
    %c0_38 = arith.constant 0 : index
    %53 = vector.load %arg28[%c24_37, %c0_38] : memref<64x128xf32, #tpu.memory_space<vmem>>, vector<10x128xf32>
    tpu.vector_store %arg28[%c24_37, %c0_38], %52 {strides = array<i32>} : memref<64x128xf32, #tpu.memory_space<vmem>>, vector<10x128xf32>,
    %cst_39 = arith.constant 1.000000e+00 : f32
    %54 = vector.broadcast %cst_39 : f32 to vector<1x128xf32>
    %c63 = arith.constant 63 : index
    %c0_40 = arith.constant 0 : index
    %55 = vector.load %arg27[%c63, %c0_40] : memref<64x128xf32, #tpu.memory_space<vmem>>, vector<1x128xf32>
    tpu.vector_store %arg27[%c63, %c0_40], %54 {strides = array<i32>} : memref<64x128xf32, #tpu.memory_space<vmem>>, vector<1x128xf32>,
    %cst_41 = arith.constant 1.000000e+00 : f32
    %56 = vector.broadcast %cst_41 : f32 to vector<1x128xf32>
    %c63_42 = arith.constant 63 : index
    %c0_43 = arith.constant 0 : index
    %57 = vector.load %arg28[%c63_42, %c0_43] : memref<64x128xf32, #tpu.memory_space<vmem>>, vector<1x128xf32>
    tpu.vector_store %arg28[%c63_42, %c0_43], %56 {strides = array<i32>} : memref<64x128xf32, #tpu.memory_space<vmem>>, vector<1x128xf32>,
    %c0_44 = arith.constant 0 : index
    %c0_45 = arith.constant 0 : index
    %58 = vector.load %arg27[%c0_44, %c0_45] : memref<64x128xf32, #tpu.memory_space<vmem>>, vector<10x128xf32>
    tpu.vector_store %arg27[%c0_44, %c0_45], %22 {strides = array<i32>} : memref<64x128xf32, #tpu.memory_space<vmem>>, vector<10x128xf32>,
    %c0_46 = arith.constant 0 : index
    %c0_47 = arith.constant 0 : index
    %59 = vector.load %arg27[%c0_46, %c0_47] : memref<64x128xf32, #tpu.memory_space<vmem>>, vector<20x128xf32>
    %c4 = arith.constant 4 : index
    %60 = memref.load %arg25[%c4] : memref<45xf32, #tpu.memory_space<smem>>
    %c5 = arith.constant 5 : index
    %61 = memref.load %arg25[%c5] : memref<45xf32, #tpu.memory_space<smem>>
    %c6 = arith.constant 6 : index
    %62 = memref.load %arg25[%c6] : memref<45xf32, #tpu.memory_space<smem>>
    %c7 = arith.constant 7 : index
    %63 = memref.load %arg25[%c7] : memref<45xf32, #tpu.memory_space<smem>>
    %c0_48 = arith.constant 0 : index
    %c0_49 = arith.constant 0 : index
    %c0_50 = arith.constant 0 : index
    %64 = vector.load %arg15[%c0_48, %c0_49, %c0_50] : memref<10x3x20xf32, #tpu.memory_space<vmem>>, vector<1x3x20xf32>
    %65 = vector.shape_cast %64 : vector<1x3x20xf32> to vector<3x20xf32>
    %cst_51 = arith.constant dense<0.000000e+00> : vector<3x128xf32>
    %66 = tpu.matmul %65, %59, %cst_51 {dimension_numbers = #tpu.dot_dimension_numbers<[1], [0], [0], [1], [0, 0, 1, 1], [], []>} : vector<3x20xf32>, vector<20x128xf32>, vector<3x128xf32> -> vector<3x128xf32>
    %c0_52 = arith.constant 0 : index
    %c0_53 = arith.constant 0 : index
    %c0_54 = arith.constant 0 : index
    %67 = vector.load %arg16[%c0_52, %c0_53, %c0_54] : memref<10x3x1xf32, #tpu.memory_space<vmem>>, vector<1x3x1xf32>
    %68 = vector.shape_cast %67 : vector<1x3x1xf32> to vector<3x1xf32>
    %69 = vector.broadcast %68 : vector<3x1xf32> to vector<3x128xf32>
    %70 = arith.addf %66, %69 : vector<3x128xf32>
    %cst_55 = arith.constant 0.000000e+00 : f32
    %71 = vector.broadcast %cst_55 : f32 to vector<3x128xf32>
    %72 = arith.cmpf oge, %70, %71 : vector<3x128xf32>
    %73 = vector.broadcast %62 : f32 to vector<3x128xf32>
    %74 = arith.mulf %73, %70 : vector<3x128xf32>
    %75 = arith.select %72, %70, %74 : vector<3x128xi1>, vector<3x128xf32>
    %c0_56 = arith.constant 0 : index
    %c0_57 = arith.constant 0 : index
    %76 = vector.load %arg5[%c0_56, %c0_57] : memref<128x2xf32, #tpu.memory_space<vmem>>, vector<128x2xf32>
    %cst_58 = arith.constant dense<0.000000e+00> : vector<3x2xf32>
    %77 = tpu.matmul %75, %76, %cst_58 {dimension_numbers = #tpu.dot_dimension_numbers<[1], [0], [0], [1], [0, 0, 1, 1], [], []>} : vector<3x128xf32>, vector<128x2xf32>, vector<3x2xf32> -> vector<3x2xf32>
    %c0_59 = arith.constant 0 : index
    %c0_60 = arith.constant 0 : index
    %78 = vector.load %arg6[%c0_59, %c0_60] : memref<2x128xf32, #tpu.memory_space<vmem>>, vector<2x128xf32>
    %cst_61 = arith.constant dense<0.000000e+00> : vector<3x128xf32>
    %79 = tpu.matmul %77, %78, %cst_61 {dimension_numbers = #tpu.dot_dimension_numbers<[1], [0], [0], [1], [0, 0, 1, 1], [], []>} : vector<3x2xf32>, vector<2x128xf32>, vector<3x128xf32> -> vector<3x128xf32>
    %c0_62 = arith.constant 0 : index
    %c0_63 = arith.constant 0 : index
    %80 = vector.load %arg3[%c0_62, %c0_63] : memref<128x128xf32, #tpu.memory_space<vmem>>, vector<128x128xf32>
    %cst_64 = arith.constant dense<0.000000e+00> : vector<20x128xf32>
    %81 = tpu.matmul %59, %80, %cst_64 {dimension_numbers = #tpu.dot_dimension_numbers<[1], [0], [0], [1], [0, 0, 1, 1], [], []>} : vector<20x128xf32>, vector<128x128xf32>, vector<20x128xf32> -> vector<20x128xf32>
    %c0_65 = arith.constant 0 : index
    %c0_66 = arith.constant 0 : index
    %82 = vector.load %arg28[%c0_65, %c0_66] : memref<64x128xf32, #tpu.memory_space<vmem>>, vector<20x128xf32>
    tpu.vector_store %arg28[%c0_65, %c0_66], %81 {strides = array<i32>} : memref<64x128xf32, #tpu.memory_space<vmem>>, vector<20x128xf32>,
    %c0_67 = arith.constant 0 : index
    %c0_68 = arith.constant 0 : index
    %83 = vector.load %arg3[%c0_67, %c0_68] : memref<128x128xf32, #tpu.memory_space<vmem>>, vector<128x128xf32>
    %cst_69 = arith.constant dense<0.000000e+00> : vector<3x128xf32>
    %84 = tpu.matmul %79, %83, %cst_69 {dimension_numbers = #tpu.dot_dimension_numbers<[1], [0], [0], [1], [0, 0, 1, 1], [], []>} : vector<3x128xf32>, vector<128x128xf32>, vector<3x128xf32> -> vector<3x128xf32>
    %c40 = arith.constant 40 : index
    %c0_70 = arith.constant 0 : index
    %85 = vector.load %arg28[%c40, %c0_70] : memref<64x128xf32, #tpu.memory_space<vmem>>, vector<3x128xf32>
    tpu.vector_store %arg28[%c40, %c0_70], %84 {strides = array<i32>} : memref<64x128xf32, #tpu.memory_space<vmem>>, vector<3x128xf32>,
    %c0_71 = arith.constant 0 : index
    %c0_72 = arith.constant 0 : index
    %c0_73 = arith.constant 0 : index
    %86 = vector.load %arg17[%c0_71, %c0_72, %c0_73] : memref<10x15x3xf32, #tpu.memory_space<vmem>>, vector<1x15x3xf32>
    %87 = vector.shape_cast %86 : vector<1x15x3xf32> to vector<15x3xf32>
    %c0_74 = arith.constant 0 : index
    %c0_75 = arith.constant 0 : index
    %88 = vector.load %arg2[%c0_74, %c0_75] : memref<3x128xf32, #tpu.memory_space<vmem>>, vector<3x128xf32>
    %cst_76 = arith.constant dense<0.000000e+00> : vector<15x128xf32>
    %89 = tpu.matmul %87, %88, %cst_76 {dimension_numbers = #tpu.dot_dimension_numbers<[1], [0], [0], [1], [0, 0, 1, 1], [], []>} : vector<15x3xf32>, vector<3x128xf32>, vector<15x128xf32> -> vector<15x128xf32>
    %c0_77 = arith.constant 0 : index
    %c0_78 = arith.constant 0 : index
    %c0_79 = arith.constant 0 : index
    %90 = vector.load %arg18[%c0_77, %c0_78, %c0_79] : memref<10x15x1xf32, #tpu.memory_space<vmem>>, vector<1x15x1xf32>
    %91 = vector.shape_cast %90 : vector<1x15x1xf32> to vector<15x1xf32>
    %92 = vector.broadcast %91 : vector<15x1xf32> to vector<15x128xf32>
    %93 = arith.addf %89, %92 : vector<15x128xf32>
    %cst_80 = arith.constant 0.000000e+00 : f32
    %94 = vector.broadcast %cst_80 : f32 to vector<15x128xf32>
    %95 = arith.cmpf oge, %93, %94 : vector<15x128xf32>
    %96 = vector.broadcast %63 : f32 to vector<15x128xf32>
    %97 = arith.mulf %96, %93 : vector<15x128xf32>
    %98 = arith.select %95, %93, %97 : vector<15x128xi1>, vector<15x128xf32>
    %c48 = arith.constant 48 : index
    %c0_81 = arith.constant 0 : index
    %99 = vector.load %arg28[%c48, %c0_81] : memref<64x128xf32, #tpu.memory_space<vmem>>, vector<15x128xf32>
    tpu.vector_store %arg28[%c48, %c0_81], %98 {strides = array<i32>} : memref<64x128xf32, #tpu.memory_space<vmem>>, vector<15x128xf32>,
    %c0_82 = arith.constant 0 : index
    %c0_83 = arith.constant 0 : index
    %c0_84 = arith.constant 0 : index
    %100 = vector.load %arg19[%c0_82, %c0_83, %c0_84] : memref<10x15x64xf32, #tpu.memory_space<vmem>>, vector<1x15x64xf32>
    %101 = vector.shape_cast %100 : vector<1x15x64xf32> to vector<15x64xf32>
    %c0_85 = arith.constant 0 : index
    %c0_86 = arith.constant 0 : index
    %102 = vector.load %arg28[%c0_85, %c0_86] : memref<64x128xf32, #tpu.memory_space<vmem>>, vector<64x128xf32>
    %cst_87 = arith.constant dense<0.000000e+00> : vector<15x128xf32>
    %103 = tpu.matmul %101, %102, %cst_87 {dimension_numbers = #tpu.dot_dimension_numbers<[1], [0], [0], [1], [0, 0, 1, 1], [], []>} : vector<15x64xf32>, vector<64x128xf32>, vector<15x128xf32> -> vector<15x128xf32>
    %cst_88 = arith.constant 0.000000e+00 : f32
    %104 = vector.broadcast %cst_88 : f32 to vector<15x128xf32>
    %105 = arith.cmpf oge, %103, %104 : vector<15x128xf32>
    %106 = vector.broadcast %60 : f32 to vector<15x128xf32>
    %107 = arith.mulf %106, %103 : vector<15x128xf32>
    %108 = arith.select %105, %103, %107 : vector<15x128xi1>, vector<15x128xf32>
    %c0_89 = arith.constant 0 : index
    %c0_90 = arith.constant 0 : index
    %109 = vector.load %arg4[%c0_89, %c0_90] : memref<128x128xf32, #tpu.memory_space<vmem>>, vector<128x128xf32>
    %cst_91 = arith.constant dense<0.000000e+00> : vector<15x128xf32>
    %110 = tpu.matmul %108, %109, %cst_91 {dimension_numbers = #tpu.dot_dimension_numbers<[1], [0], [0], [1], [0, 0, 1, 1], [], []>} : vector<15x128xf32>, vector<128x128xf32>, vector<15x128xf32> -> vector<15x128xf32>
    %c0_92 = arith.constant 0 : index
    %c0_93 = arith.constant 0 : index
    %111 = vector.load %arg27[%c0_92, %c0_93] : memref<64x128xf32, #tpu.memory_space<vmem>>, vector<20x128xf32>
    tpu.vector_store %arg27[%c0_92, %c0_93], %59 {strides = array<i32>} : memref<64x128xf32, #tpu.memory_space<vmem>>, vector<20x128xf32>,
    %c40_94 = arith.constant 40 : index
    %c0_95 = arith.constant 0 : index
    %112 = vector.load %arg27[%c40_94, %c0_95] : memref<64x128xf32, #tpu.memory_space<vmem>>, vector<15x128xf32>
    tpu.vector_store %arg27[%c40_94, %c0_95], %110 {strides = array<i32>} : memref<64x128xf32, #tpu.memory_space<vmem>>, vector<15x128xf32>,
    %c56 = arith.constant 56 : index
    %c0_96 = arith.constant 0 : index
    %113 = vector.load %arg27[%c56, %c0_96] : memref<64x128xf32, #tpu.memory_space<vmem>>, vector<3x128xf32>
    tpu.vector_store %arg27[%c56, %c0_96], %79 {strides = array<i32>} : memref<64x128xf32, #tpu.memory_space<vmem>>, vector<3x128xf32>,
    %c0_97 = arith.constant 0 : index
    %c0_98 = arith.constant 0 : index
    %c0_99 = arith.constant 0 : index
    %114 = vector.load %arg20[%c0_97, %c0_98, %c0_99] : memref<10x20x64xf32, #tpu.memory_space<vmem>>, vector<1x20x64xf32>
    %115 = vector.shape_cast %114 : vector<1x20x64xf32> to vector<20x64xf32>
    %c0_100 = arith.constant 0 : index
    %c0_101 = arith.constant 0 : index
    %116 = vector.load %arg27[%c0_100, %c0_101] : memref<64x128xf32, #tpu.memory_space<vmem>>, vector<64x128xf32>
    %cst_102 = arith.constant dense<0.000000e+00> : vector<20x128xf32>
    %117 = tpu.matmul %115, %116, %cst_102 {dimension_numbers = #tpu.dot_dimension_numbers<[1], [0], [0], [1], [0, 0, 1, 1], [], []>} : vector<20x64xf32>, vector<64x128xf32>, vector<20x128xf32> -> vector<20x128xf32>
    %cst_103 = arith.constant 0.000000e+00 : f32
    %118 = vector.broadcast %cst_103 : f32 to vector<20x128xf32>
    %119 = arith.cmpf oge, %117, %118 : vector<20x128xf32>
    %120 = vector.broadcast %61 : f32 to vector<20x128xf32>
    %121 = arith.mulf %120, %117 : vector<20x128xf32>
    %122 = arith.select %119, %117, %121 : vector<20x128xi1>, vector<20x128xf32>
    %c8 = arith.constant 8 : index
    %123 = memref.load %arg25[%c8] : memref<45xf32, #tpu.memory_space<smem>>
    %c9 = arith.constant 9 : index
    %124 = memref.load %arg25[%c9] : memref<45xf32, #tpu.memory_space<smem>>
    %c10 = arith.constant 10 : index
    %125 = memref.load %arg25[%c10] : memref<45xf32, #tpu.memory_space<smem>>
    %c11 = arith.constant 11 : index
    %126 = memref.load %arg25[%c11] : memref<45xf32, #tpu.memory_space<smem>>
    %c1_104 = arith.constant 1 : index
    %c0_105 = arith.constant 0 : index
    %c0_106 = arith.constant 0 : index
    %127 = vector.load %arg15[%c1_104, %c0_105, %c0_106] : memref<10x3x20xf32, #tpu.memory_space<vmem>>, vector<1x3x20xf32>
    %128 = vector.shape_cast %127 : vector<1x3x20xf32> to vector<3x20xf32>
    %cst_107 = arith.constant dense<0.000000e+00> : vector<3x128xf32>
    %129 = tpu.matmul %128, %122, %cst_107 {dimension_numbers = #tpu.dot_dimension_numbers<[1], [0], [0], [1], [0, 0, 1, 1], [], []>} : vector<3x20xf32>, vector<20x128xf32>, vector<3x128xf32> -> vector<3x128xf32>
    %c1_108 = arith.constant 1 : index
    %c0_109 = arith.constant 0 : index
    %c0_110 = arith.constant 0 : index
    %130 = vector.load %arg16[%c1_108, %c0_109, %c0_110] : memref<10x3x1xf32, #tpu.memory_space<vmem>>, vector<1x3x1xf32>
    %131 = vector.shape_cast %130 : vector<1x3x1xf32> to vector<3x1xf32>
    %132 = vector.broadcast %131 : vector<3x1xf32> to vector<3x128xf32>
    %133 = arith.addf %129, %132 : vector<3x128xf32>
    %cst_111 = arith.constant 0.000000e+00 : f32
    %134 = vector.broadcast %cst_111 : f32 to vector<3x128xf32>
    %135 = arith.cmpf oge, %133, %134 : vector<3x128xf32>
    %136 = vector.broadcast %125 : f32 to vector<3x128xf32>
    %137 = arith.mulf %136, %133 : vector<3x128xf32>
    %138 = arith.select %135, %133, %137 : vector<3x128xi1>, vector<3x128xf32>
    %c0_112 = arith.constant 0 : index
    %c0_113 = arith.constant 0 : index
    %139 = vector.load %arg5[%c0_112, %c0_113] : memref<128x2xf32, #tpu.memory_space<vmem>>, vector<128x2xf32>
    %cst_114 = arith.constant dense<0.000000e+00> : vector<3x2xf32>
    %140 = tpu.matmul %138, %139, %cst_114 {dimension_numbers = #tpu.dot_dimension_numbers<[1], [0], [0], [1], [0, 0, 1, 1], [], []>} : vector<3x128xf32>, vector<128x2xf32>, vector<3x2xf32> -> vector<3x2xf32>
    %c0_115 = arith.constant 0 : index
    %c0_116 = arith.constant 0 : index
    %141 = vector.load %arg6[%c0_115, %c0_116] : memref<2x128xf32, #tpu.memory_space<vmem>>, vector<2x128xf32>
    %cst_117 = arith.constant dense<0.000000e+00> : vector<3x128xf32>
    %142 = tpu.matmul %140, %141, %cst_117 {dimension_numbers = #tpu.dot_dimension_numbers<[1], [0], [0], [1], [0, 0, 1, 1], [], []>} : vector<3x2xf32>, vector<2x128xf32>, vector<3x128xf32> -> vector<3x128xf32>
    %c0_118 = arith.constant 0 : index
    %c0_119 = arith.constant 0 : index
    %143 = vector.load %arg3[%c0_118, %c0_119] : memref<128x128xf32, #tpu.memory_space<vmem>>, vector<128x128xf32>
    %cst_120 = arith.constant dense<0.000000e+00> : vector<20x128xf32>
    %144 = tpu.matmul %122, %143, %cst_120 {dimension_numbers = #tpu.dot_dimension_numbers<[1], [0], [0], [1], [0, 0, 1, 1], [], []>} : vector<20x128xf32>, vector<128x128xf32>, vector<20x128xf32> -> vector<20x128xf32>
    %c0_121 = arith.constant 0 : index
    %c0_122 = arith.constant 0 : index
    %145 = vector.load %arg28[%c0_121, %c0_122] : memref<64x128xf32, #tpu.memory_space<vmem>>, vector<20x128xf32>
    tpu.vector_store %arg28[%c0_121, %c0_122], %144 {strides = array<i32>} : memref<64x128xf32, #tpu.memory_space<vmem>>, vector<20x128xf32>,
    %c0_123 = arith.constant 0 : index
    %c0_124 = arith.constant 0 : index
    %146 = vector.load %arg3[%c0_123, %c0_124] : memref<128x128xf32, #tpu.memory_space<vmem>>, vector<128x128xf32>
    %cst_125 = arith.constant dense<0.000000e+00> : vector<3x128xf32>
    %147 = tpu.matmul %142, %146, %cst_125 {dimension_numbers = #tpu.dot_dimension_numbers<[1], [0], [0], [1], [0, 0, 1, 1], [], []>} : vector<3x128xf32>, vector<128x128xf32>, vector<3x128xf32> -> vector<3x128xf32>
    %c40_126 = arith.constant 40 : index
    %c0_127 = arith.constant 0 : index
    %148 = vector.load %arg28[%c40_126, %c0_127] : memref<64x128xf32, #tpu.memory_space<vmem>>, vector<3x128xf32>
    tpu.vector_store %arg28[%c40_126, %c0_127], %147 {strides = array<i32>} : memref<64x128xf32, #tpu.memory_space<vmem>>, vector<3x128xf32>,
    %c1_128 = arith.constant 1 : index
    %c0_129 = arith.constant 0 : index
    %c0_130 = arith.constant 0 : index
    %149 = vector.load %arg17[%c1_128, %c0_129, %c0_130] : memref<10x15x3xf32, #tpu.memory_space<vmem>>, vector<1x15x3xf32>
    %150 = vector.shape_cast %149 : vector<1x15x3xf32> to vector<15x3xf32>
    %c0_131 = arith.constant 0 : index
    %c0_132 = arith.constant 0 : index
    %151 = vector.load %arg2[%c0_131, %c0_132] : memref<3x128xf32, #tpu.memory_space<vmem>>, vector<3x128xf32>
    %cst_133 = arith.constant dense<0.000000e+00> : vector<15x128xf32>
    %152 = tpu.matmul %150, %151, %cst_133 {dimension_numbers = #tpu.dot_dimension_numbers<[1], [0], [0], [1], [0, 0, 1, 1], [], []>} : vector<15x3xf32>, vector<3x128xf32>, vector<15x128xf32> -> vector<15x128xf32>
    %c1_134 = arith.constant 1 : index
    %c0_135 = arith.constant 0 : index
    %c0_136 = arith.constant 0 : index
    %153 = vector.load %arg18[%c1_134, %c0_135, %c0_136] : memref<10x15x1xf32, #tpu.memory_space<vmem>>, vector<1x15x1xf32>
    %154 = vector.shape_cast %153 : vector<1x15x1xf32> to vector<15x1xf32>
    %155 = vector.broadcast %154 : vector<15x1xf32> to vector<15x128xf32>
    %156 = arith.addf %152, %155 : vector<15x128xf32>
    %cst_137 = arith.constant 0.000000e+00 : f32
    %157 = vector.broadcast %cst_137 : f32 to vector<15x128xf32>
    %158 = arith.cmpf oge, %156, %157 : vector<15x128xf32>
    %159 = vector.broadcast %126 : f32 to vector<15x128xf32>
    %160 = arith.mulf %159, %156 : vector<15x128xf32>
    %161 = arith.select %158, %156, %160 : vector<15x128xi1>, vector<15x128xf32>
    %c48_138 = arith.constant 48 : index
    %c0_139 = arith.constant 0 : index
    %162 = vector.load %arg28[%c48_138, %c0_139] : memref<64x128xf32, #tpu.memory_space<vmem>>, vector<15x128xf32>
    tpu.vector_store %arg28[%c48_138, %c0_139], %161 {strides = array<i32>} : memref<64x128xf32, #tpu.memory_space<vmem>>, vector<15x128xf32>,
    %c1_140 = arith.constant 1 : index
    %c0_141 = arith.constant 0 : index
    %c0_142 = arith.constant 0 : index
    %163 = vector.load %arg19[%c1_140, %c0_141, %c0_142] : memref<10x15x64xf32, #tpu.memory_space<vmem>>, vector<1x15x64xf32>
    %164 = vector.shape_cast %163 : vector<1x15x64xf32> to vector<15x64xf32>
    %c0_143 = arith.constant 0 : index
    %c0_144 = arith.constant 0 : index
    %165 = vector.load %arg28[%c0_143, %c0_144] : memref<64x128xf32, #tpu.memory_space<vmem>>, vector<64x128xf32>
    %cst_145 = arith.constant dense<0.000000e+00> : vector<15x128xf32>
    %166 = tpu.matmul %164, %165, %cst_145 {dimension_numbers = #tpu.dot_dimension_numbers<[1], [0], [0], [1], [0, 0, 1, 1], [], []>} : vector<15x64xf32>, vector<64x128xf32>, vector<15x128xf32> -> vector<15x128xf32>
    %cst_146 = arith.constant 0.000000e+00 : f32
    %167 = vector.broadcast %cst_146 : f32 to vector<15x128xf32>
    %168 = arith.cmpf oge, %166, %167 : vector<15x128xf32>
    %169 = vector.broadcast %123 : f32 to vector<15x128xf32>
    %170 = arith.mulf %169, %166 : vector<15x128xf32>
    %171 = arith.select %168, %166, %170 : vector<15x128xi1>, vector<15x128xf32>
    %c0_147 = arith.constant 0 : index
    %c0_148 = arith.constant 0 : index
    %172 = vector.load %arg4[%c0_147, %c0_148] : memref<128x128xf32, #tpu.memory_space<vmem>>, vector<128x128xf32>
    %cst_149 = arith.constant dense<0.000000e+00> : vector<15x128xf32>
    %173 = tpu.matmul %171, %172, %cst_149 {dimension_numbers = #tpu.dot_dimension_numbers<[1], [0], [0], [1], [0, 0, 1, 1], [], []>} : vector<15x128xf32>, vector<128x128xf32>, vector<15x128xf32> -> vector<15x128xf32>
    %c0_150 = arith.constant 0 : index
    %c0_151 = arith.constant 0 : index
    %174 = vector.load %arg27[%c0_150, %c0_151] : memref<64x128xf32, #tpu.memory_space<vmem>>, vector<20x128xf32>
    tpu.vector_store %arg27[%c0_150, %c0_151], %122 {strides = array<i32>} : memref<64x128xf32, #tpu.memory_space<vmem>>, vector<20x128xf32>,
    %c40_152 = arith.constant 40 : index
    %c0_153 = arith.constant 0 : index
    %175 = vector.load %arg27[%c40_152, %c0_153] : memref<64x128xf32, #tpu.memory_space<vmem>>, vector<15x128xf32>
    tpu.vector_store %arg27[%c40_152, %c0_153], %173 {strides = array<i32>} : memref<64x128xf32, #tpu.memory_space<vmem>>, vector<15x128xf32>,
    %c56_154 = arith.constant 56 : index
    %c0_155 = arith.constant 0 : index
    %176 = vector.load %arg27[%c56_154, %c0_155] : memref<64x128xf32, #tpu.memory_space<vmem>>, vector<3x128xf32>
    tpu.vector_store %arg27[%c56_154, %c0_155], %142 {strides = array<i32>} : memref<64x128xf32, #tpu.memory_space<vmem>>, vector<3x128xf32>,
    %c1_156 = arith.constant 1 : index
    %c0_157 = arith.constant 0 : index
    %c0_158 = arith.constant 0 : index
    %177 = vector.load %arg20[%c1_156, %c0_157, %c0_158] : memref<10x20x64xf32, #tpu.memory_space<vmem>>, vector<1x20x64xf32>
    %178 = vector.shape_cast %177 : vector<1x20x64xf32> to vector<20x64xf32>
    %c0_159 = arith.constant 0 : index
    %c0_160 = arith.constant 0 : index
    %179 = vector.load %arg27[%c0_159, %c0_160] : memref<64x128xf32, #tpu.memory_space<vmem>>, vector<64x128xf32>
    %cst_161 = arith.constant dense<0.000000e+00> : vector<20x128xf32>
    %180 = tpu.matmul %178, %179, %cst_161 {dimension_numbers = #tpu.dot_dimension_numbers<[1], [0], [0], [1], [0, 0, 1, 1], [], []>} : vector<20x64xf32>, vector<64x128xf32>, vector<20x128xf32> -> vector<20x128xf32>
    %cst_162 = arith.constant 0.000000e+00 : f32
    %181 = vector.broadcast %cst_162 : f32 to vector<20x128xf32>
    %182 = arith.cmpf oge, %180, %181 : vector<20x128xf32>
    %183 = vector.broadcast %124 : f32 to vector<20x128xf32>
    %184 = arith.mulf %183, %180 : vector<20x128xf32>
    %185 = arith.select %182, %180, %184 : vector<20x128xi1>, vector<20x128xf32>
    %c12 = arith.constant 12 : index
    %186 = memref.load %arg25[%c12] : memref<45xf32, #tpu.memory_space<smem>>
    %c13 = arith.constant 13 : index
    %187 = memref.load %arg25[%c13] : memref<45xf32, #tpu.memory_space<smem>>
    %c14 = arith.constant 14 : index
    %188 = memref.load %arg25[%c14] : memref<45xf32, #tpu.memory_space<smem>>
    %c15 = arith.constant 15 : index
    %189 = memref.load %arg25[%c15] : memref<45xf32, #tpu.memory_space<smem>>
    %c2_163 = arith.constant 2 : index
    %c0_164 = arith.constant 0 : index
    %c0_165 = arith.constant 0 : index
    %190 = vector.load %arg15[%c2_163, %c0_164, %c0_165] : memref<10x3x20xf32, #tpu.memory_space<vmem>>, vector<1x3x20xf32>
    %191 = vector.shape_cast %190 : vector<1x3x20xf32> to vector<3x20xf32>
    %cst_166 = arith.constant dense<0.000000e+00> : vector<3x128xf32>
    %192 = tpu.matmul %191, %185, %cst_166 {dimension_numbers = #tpu.dot_dimension_numbers<[1], [0], [0], [1], [0, 0, 1, 1], [], []>} : vector<3x20xf32>, vector<20x128xf32>, vector<3x128xf32> -> vector<3x128xf32>
    %c2_167 = arith.constant 2 : index
    %c0_168 = arith.constant 0 : index
    %c0_169 = arith.constant 0 : index
    %193 = vector.load %arg16[%c2_167, %c0_168, %c0_169] : memref<10x3x1xf32, #tpu.memory_space<vmem>>, vector<1x3x1xf32>
    %194 = vector.shape_cast %193 : vector<1x3x1xf32> to vector<3x1xf32>
    %195 = vector.broadcast %194 : vector<3x1xf32> to vector<3x128xf32>
    %196 = arith.addf %192, %195 : vector<3x128xf32>
    %cst_170 = arith.constant 0.000000e+00 : f32
    %197 = vector.broadcast %cst_170 : f32 to vector<3x128xf32>
    %198 = arith.cmpf oge, %196, %197 : vector<3x128xf32>
    %199 = vector.broadcast %188 : f32 to vector<3x128xf32>
    %200 = arith.mulf %199, %196 : vector<3x128xf32>
    %201 = arith.select %198, %196, %200 : vector<3x128xi1>, vector<3x128xf32>
    %c0_171 = arith.constant 0 : index
    %c0_172 = arith.constant 0 : index
    %202 = vector.load %arg5[%c0_171, %c0_172] : memref<128x2xf32, #tpu.memory_space<vmem>>, vector<128x2xf32>
    %cst_173 = arith.constant dense<0.000000e+00> : vector<3x2xf32>
    %203 = tpu.matmul %201, %202, %cst_173 {dimension_numbers = #tpu.dot_dimension_numbers<[1], [0], [0], [1], [0, 0, 1, 1], [], []>} : vector<3x128xf32>, vector<128x2xf32>, vector<3x2xf32> -> vector<3x2xf32>
    %c0_174 = arith.constant 0 : index
    %c0_175 = arith.constant 0 : index
    %204 = vector.load %arg6[%c0_174, %c0_175] : memref<2x128xf32, #tpu.memory_space<vmem>>, vector<2x128xf32>
    %cst_176 = arith.constant dense<0.000000e+00> : vector<3x128xf32>
    %205 = tpu.matmul %203, %204, %cst_176 {dimension_numbers = #tpu.dot_dimension_numbers<[1], [0], [0], [1], [0, 0, 1, 1], [], []>} : vector<3x2xf32>, vector<2x128xf32>, vector<3x128xf32> -> vector<3x128xf32>
    %c0_177 = arith.constant 0 : index
    %c0_178 = arith.constant 0 : index
    %206 = vector.load %arg3[%c0_177, %c0_178] : memref<128x128xf32, #tpu.memory_space<vmem>>, vector<128x128xf32>
    %cst_179 = arith.constant dense<0.000000e+00> : vector<20x128xf32>
    %207 = tpu.matmul %185, %206, %cst_179 {dimension_numbers = #tpu.dot_dimension_numbers<[1], [0], [0], [1], [0, 0, 1, 1], [], []>} : vector<20x128xf32>, vector<128x128xf32>, vector<20x128xf32> -> vector<20x128xf32>
    %c0_180 = arith.constant 0 : index
    %c0_181 = arith.constant 0 : index
    %208 = vector.load %arg28[%c0_180, %c0_181] : memref<64x128xf32, #tpu.memory_space<vmem>>, vector<20x128xf32>
    tpu.vector_store %arg28[%c0_180, %c0_181], %207 {strides = array<i32>} : memref<64x128xf32, #tpu.memory_space<vmem>>, vector<20x128xf32>,
    %c0_182 = arith.constant 0 : index
    %c0_183 = arith.constant 0 : index
    %209 = vector.load %arg3[%c0_182, %c0_183] : memref<128x128xf32, #tpu.memory_space<vmem>>, vector<128x128xf32>
    %cst_184 = arith.constant dense<0.000000e+00> : vector<3x128xf32>
    %210 = tpu.matmul %205, %209, %cst_184 {dimension_numbers = #tpu.dot_dimension_numbers<[1], [0], [0], [1], [0, 0, 1, 1], [], []>} : vector<3x128xf32>, vector<128x128xf32>, vector<3x128xf32> -> vector<3x128xf32>
    %c40_185 = arith.constant 40 : index
    %c0_186 = arith.constant 0 : index
    %211 = vector.load %arg28[%c40_185, %c0_186] : memref<64x128xf32, #tpu.memory_space<vmem>>, vector<3x128xf32>
    tpu.vector_store %arg28[%c40_185, %c0_186], %210 {strides = array<i32>} : memref<64x128xf32, #tpu.memory_space<vmem>>, vector<3x128xf32>,
    %c2_187 = arith.constant 2 : index
    %c0_188 = arith.constant 0 : index
    %c0_189 = arith.constant 0 : index
    %212 = vector.load %arg17[%c2_187, %c0_188, %c0_189] : memref<10x15x3xf32, #tpu.memory_space<vmem>>, vector<1x15x3xf32>
    %213 = vector.shape_cast %212 : vector<1x15x3xf32> to vector<15x3xf32>
    %c0_190 = arith.constant 0 : index
    %c0_191 = arith.constant 0 : index
    %214 = vector.load %arg2[%c0_190, %c0_191] : memref<3x128xf32, #tpu.memory_space<vmem>>, vector<3x128xf32>
    %cst_192 = arith.constant dense<0.000000e+00> : vector<15x128xf32>
    %215 = tpu.matmul %213, %214, %cst_192 {dimension_numbers = #tpu.dot_dimension_numbers<[1], [0], [0], [1], [0, 0, 1, 1], [], []>} : vector<15x3xf32>, vector<3x128xf32>, vector<15x128xf32> -> vector<15x128xf32>
    %c2_193 = arith.constant 2 : index
    %c0_194 = arith.constant 0 : index
    %c0_195 = arith.constant 0 : index
    %216 = vector.load %arg18[%c2_193, %c0_194, %c0_195] : memref<10x15x1xf32, #tpu.memory_space<vmem>>, vector<1x15x1xf32>
    %217 = vector.shape_cast %216 : vector<1x15x1xf32> to vector<15x1xf32>
    %218 = vector.broadcast %217 : vector<15x1xf32> to vector<15x128xf32>
    %219 = arith.addf %215, %218 : vector<15x128xf32>
    %cst_196 = arith.constant 0.000000e+00 : f32
    %220 = vector.broadcast %cst_196 : f32 to vector<15x128xf32>
    %221 = arith.cmpf oge, %219, %220 : vector<15x128xf32>
    %222 = vector.broadcast %189 : f32 to vector<15x128xf32>
    %223 = arith.mulf %222, %219 : vector<15x128xf32>
    %224 = arith.select %221, %219, %223 : vector<15x128xi1>, vector<15x128xf32>
    %c48_197 = arith.constant 48 : index
    %c0_198 = arith.constant 0 : index
    %225 = vector.load %arg28[%c48_197, %c0_198] : memref<64x128xf32, #tpu.memory_space<vmem>>, vector<15x128xf32>
    tpu.vector_store %arg28[%c48_197, %c0_198], %224 {strides = array<i32>} : memref<64x128xf32, #tpu.memory_space<vmem>>, vector<15x128xf32>,
    %c2_199 = arith.constant 2 : index
    %c0_200 = arith.constant 0 : index
    %c0_201 = arith.constant 0 : index
    %226 = vector.load %arg19[%c2_199, %c0_200, %c0_201] : memref<10x15x64xf32, #tpu.memory_space<vmem>>, vector<1x15x64xf32>
    %227 = vector.shape_cast %226 : vector<1x15x64xf32> to vector<15x64xf32>
    %c0_202 = arith.constant 0 : index
    %c0_203 = arith.constant 0 : index
    %228 = vector.load %arg28[%c0_202, %c0_203] : memref<64x128xf32, #tpu.memory_space<vmem>>, vector<64x128xf32>
    %cst_204 = arith.constant dense<0.000000e+00> : vector<15x128xf32>
    %229 = tpu.matmul %227, %228, %cst_204 {dimension_numbers = #tpu.dot_dimension_numbers<[1], [0], [0], [1], [0, 0, 1, 1], [], []>} : vector<15x64xf32>, vector<64x128xf32>, vector<15x128xf32> -> vector<15x128xf32>
    %cst_205 = arith.constant 0.000000e+00 : f32
    %230 = vector.broadcast %cst_205 : f32 to vector<15x128xf32>
    %231 = arith.cmpf oge, %229, %230 : vector<15x128xf32>
    %232 = vector.broadcast %186 : f32 to vector<15x128xf32>
    %233 = arith.mulf %232, %229 : vector<15x128xf32>
    %234 = arith.select %231, %229, %233 : vector<15x128xi1>, vector<15x128xf32>
    %c0_206 = arith.constant 0 : index
    %c0_207 = arith.constant 0 : index
    %235 = vector.load %arg4[%c0_206, %c0_207] : memref<128x128xf32, #tpu.memory_space<vmem>>, vector<128x128xf32>
    %cst_208 = arith.constant dense<0.000000e+00> : vector<15x128xf32>
    %236 = tpu.matmul %234, %235, %cst_208 {dimension_numbers = #tpu.dot_dimension_numbers<[1], [0], [0], [1], [0, 0, 1, 1], [], []>} : vector<15x128xf32>, vector<128x128xf32>, vector<15x128xf32> -> vector<15x128xf32>
    %c0_209 = arith.constant 0 : index
    %c0_210 = arith.constant 0 : index
    %237 = vector.load %arg27[%c0_209, %c0_210] : memref<64x128xf32, #tpu.memory_space<vmem>>, vector<20x128xf32>
    tpu.vector_store %arg27[%c0_209, %c0_210], %185 {strides = array<i32>} : memref<64x128xf32, #tpu.memory_space<vmem>>, vector<20x128xf32>,
    %c40_211 = arith.constant 40 : index
    %c0_212 = arith.constant 0 : index
    %238 = vector.load %arg27[%c40_211, %c0_212] : memref<64x128xf32, #tpu.memory_space<vmem>>, vector<15x128xf32>
    tpu.vector_store %arg27[%c40_211, %c0_212], %236 {strides = array<i32>} : memref<64x128xf32, #tpu.memory_space<vmem>>, vector<15x128xf32>,
    %c56_213 = arith.constant 56 : index
    %c0_214 = arith.constant 0 : index
    %239 = vector.load %arg27[%c56_213, %c0_214] : memref<64x128xf32, #tpu.memory_space<vmem>>, vector<3x128xf32>
    tpu.vector_store %arg27[%c56_213, %c0_214], %205 {strides = array<i32>} : memref<64x128xf32, #tpu.memory_space<vmem>>, vector<3x128xf32>,
    %c2_215 = arith.constant 2 : index
    %c0_216 = arith.constant 0 : index
    %c0_217 = arith.constant 0 : index
    %240 = vector.load %arg20[%c2_215, %c0_216, %c0_217] : memref<10x20x64xf32, #tpu.memory_space<vmem>>, vector<1x20x64xf32>
    %241 = vector.shape_cast %240 : vector<1x20x64xf32> to vector<20x64xf32>
    %c0_218 = arith.constant 0 : index
    %c0_219 = arith.constant 0 : index
    %242 = vector.load %arg27[%c0_218, %c0_219] : memref<64x128xf32, #tpu.memory_space<vmem>>, vector<64x128xf32>
    %cst_220 = arith.constant dense<0.000000e+00> : vector<20x128xf32>
    %243 = tpu.matmul %241, %242, %cst_220 {dimension_numbers = #tpu.dot_dimension_numbers<[1], [0], [0], [1], [0, 0, 1, 1], [], []>} : vector<20x64xf32>, vector<64x128xf32>, vector<20x128xf32> -> vector<20x128xf32>
    %cst_221 = arith.constant 0.000000e+00 : f32
    %244 = vector.broadcast %cst_221 : f32 to vector<20x128xf32>
    %245 = arith.cmpf oge, %243, %244 : vector<20x128xf32>
    %246 = vector.broadcast %187 : f32 to vector<20x128xf32>
    %247 = arith.mulf %246, %243 : vector<20x128xf32>
    %248 = arith.select %245, %243, %247 : vector<20x128xi1>, vector<20x128xf32>
    %249 = arith.addf %248, %122 : vector<20x128xf32>
    %c16 = arith.constant 16 : index
    %250 = memref.load %arg25[%c16] : memref<45xf32, #tpu.memory_space<smem>>
    %c17 = arith.constant 17 : index
    %251 = memref.load %arg25[%c17] : memref<45xf32, #tpu.memory_space<smem>>
    %c18 = arith.constant 18 : index
    %252 = memref.load %arg25[%c18] : memref<45xf32, #tpu.memory_space<smem>>
    %c19 = arith.constant 19 : index
    %253 = memref.load %arg25[%c19] : memref<45xf32, #tpu.memory_space<smem>>
    %c3_222 = arith.constant 3 : index
    %c0_223 = arith.constant 0 : index
    %c0_224 = arith.constant 0 : index
    %254 = vector.load %arg15[%c3_222, %c0_223, %c0_224] : memref<10x3x20xf32, #tpu.memory_space<vmem>>, vector<1x3x20xf32>
    %255 = vector.shape_cast %254 : vector<1x3x20xf32> to vector<3x20xf32>
    %cst_225 = arith.constant dense<0.000000e+00> : vector<3x128xf32>
    %256 = tpu.matmul %255, %249, %cst_225 {dimension_numbers = #tpu.dot_dimension_numbers<[1], [0], [0], [1], [0, 0, 1, 1], [], []>} : vector<3x20xf32>, vector<20x128xf32>, vector<3x128xf32> -> vector<3x128xf32>
    %c3_226 = arith.constant 3 : index
    %c0_227 = arith.constant 0 : index
    %c0_228 = arith.constant 0 : index
    %257 = vector.load %arg16[%c3_226, %c0_227, %c0_228] : memref<10x3x1xf32, #tpu.memory_space<vmem>>, vector<1x3x1xf32>
    %258 = vector.shape_cast %257 : vector<1x3x1xf32> to vector<3x1xf32>
    %259 = vector.broadcast %258 : vector<3x1xf32> to vector<3x128xf32>
    %260 = arith.addf %256, %259 : vector<3x128xf32>
    %cst_229 = arith.constant 0.000000e+00 : f32
    %261 = vector.broadcast %cst_229 : f32 to vector<3x128xf32>
    %262 = arith.cmpf oge, %260, %261 : vector<3x128xf32>
    %263 = vector.broadcast %252 : f32 to vector<3x128xf32>
    %264 = arith.mulf %263, %260 : vector<3x128xf32>
    %265 = arith.select %262, %260, %264 : vector<3x128xi1>, vector<3x128xf32>
    %c0_230 = arith.constant 0 : index
    %c0_231 = arith.constant 0 : index
    %266 = vector.load %arg5[%c0_230, %c0_231] : memref<128x2xf32, #tpu.memory_space<vmem>>, vector<128x2xf32>
    %cst_232 = arith.constant dense<0.000000e+00> : vector<3x2xf32>
    %267 = tpu.matmul %265, %266, %cst_232 {dimension_numbers = #tpu.dot_dimension_numbers<[1], [0], [0], [1], [0, 0, 1, 1], [], []>} : vector<3x128xf32>, vector<128x2xf32>, vector<3x2xf32> -> vector<3x2xf32>
    %c0_233 = arith.constant 0 : index
    %c0_234 = arith.constant 0 : index
    %268 = vector.load %arg6[%c0_233, %c0_234] : memref<2x128xf32, #tpu.memory_space<vmem>>, vector<2x128xf32>
    %cst_235 = arith.constant dense<0.000000e+00> : vector<3x128xf32>
    %269 = tpu.matmul %267, %268, %cst_235 {dimension_numbers = #tpu.dot_dimension_numbers<[1], [0], [0], [1], [0, 0, 1, 1], [], []>} : vector<3x2xf32>, vector<2x128xf32>, vector<3x128xf32> -> vector<3x128xf32>
    %c0_236 = arith.constant 0 : index
    %c0_237 = arith.constant 0 : index
    %270 = vector.load %arg3[%c0_236, %c0_237] : memref<128x128xf32, #tpu.memory_space<vmem>>, vector<128x128xf32>
    %cst_238 = arith.constant dense<0.000000e+00> : vector<20x128xf32>
    %271 = tpu.matmul %249, %270, %cst_238 {dimension_numbers = #tpu.dot_dimension_numbers<[1], [0], [0], [1], [0, 0, 1, 1], [], []>} : vector<20x128xf32>, vector<128x128xf32>, vector<20x128xf32> -> vector<20x128xf32>
    %c0_239 = arith.constant 0 : index
    %c0_240 = arith.constant 0 : index
    %272 = vector.load %arg28[%c0_239, %c0_240] : memref<64x128xf32, #tpu.memory_space<vmem>>, vector<20x128xf32>
    tpu.vector_store %arg28[%c0_239, %c0_240], %271 {strides = array<i32>} : memref<64x128xf32, #tpu.memory_space<vmem>>, vector<20x128xf32>,
    %c0_241 = arith.constant 0 : index
    %c0_242 = arith.constant 0 : index
    %273 = vector.load %arg3[%c0_241, %c0_242] : memref<128x128xf32, #tpu.memory_space<vmem>>, vector<128x128xf32>
    %cst_243 = arith.constant dense<0.000000e+00> : vector<3x128xf32>
    %274 = tpu.matmul %269, %273, %cst_243 {dimension_numbers = #tpu.dot_dimension_numbers<[1], [0], [0], [1], [0, 0, 1, 1], [], []>} : vector<3x128xf32>, vector<128x128xf32>, vector<3x128xf32> -> vector<3x128xf32>
    %c40_244 = arith.constant 40 : index
    %c0_245 = arith.constant 0 : index
    %275 = vector.load %arg28[%c40_244, %c0_245] : memref<64x128xf32, #tpu.memory_space<vmem>>, vector<3x128xf32>
    tpu.vector_store %arg28[%c40_244, %c0_245], %274 {strides = array<i32>} : memref<64x128xf32, #tpu.memory_space<vmem>>, vector<3x128xf32>,
    %c3_246 = arith.constant 3 : index
    %c0_247 = arith.constant 0 : index
    %c0_248 = arith.constant 0 : index
    %276 = vector.load %arg17[%c3_246, %c0_247, %c0_248] : memref<10x15x3xf32, #tpu.memory_space<vmem>>, vector<1x15x3xf32>
    %277 = vector.shape_cast %276 : vector<1x15x3xf32> to vector<15x3xf32>
    %c0_249 = arith.constant 0 : index
    %c0_250 = arith.constant 0 : index
    %278 = vector.load %arg2[%c0_249, %c0_250] : memref<3x128xf32, #tpu.memory_space<vmem>>, vector<3x128xf32>
    %cst_251 = arith.constant dense<0.000000e+00> : vector<15x128xf32>
    %279 = tpu.matmul %277, %278, %cst_251 {dimension_numbers = #tpu.dot_dimension_numbers<[1], [0], [0], [1], [0, 0, 1, 1], [], []>} : vector<15x3xf32>, vector<3x128xf32>, vector<15x128xf32> -> vector<15x128xf32>
    %c3_252 = arith.constant 3 : index
    %c0_253 = arith.constant 0 : index
    %c0_254 = arith.constant 0 : index
    %280 = vector.load %arg18[%c3_252, %c0_253, %c0_254] : memref<10x15x1xf32, #tpu.memory_space<vmem>>, vector<1x15x1xf32>
    %281 = vector.shape_cast %280 : vector<1x15x1xf32> to vector<15x1xf32>
    %282 = vector.broadcast %281 : vector<15x1xf32> to vector<15x128xf32>
    %283 = arith.addf %279, %282 : vector<15x128xf32>
    %cst_255 = arith.constant 0.000000e+00 : f32
    %284 = vector.broadcast %cst_255 : f32 to vector<15x128xf32>
    %285 = arith.cmpf oge, %283, %284 : vector<15x128xf32>
    %286 = vector.broadcast %253 : f32 to vector<15x128xf32>
    %287 = arith.mulf %286, %283 : vector<15x128xf32>
    %288 = arith.select %285, %283, %287 : vector<15x128xi1>, vector<15x128xf32>
    %c48_256 = arith.constant 48 : index
    %c0_257 = arith.constant 0 : index
    %289 = vector.load %arg28[%c48_256, %c0_257] : memref<64x128xf32, #tpu.memory_space<vmem>>, vector<15x128xf32>
    tpu.vector_store %arg28[%c48_256, %c0_257], %288 {strides = array<i32>} : memref<64x128xf32, #tpu.memory_space<vmem>>, vector<15x128xf32>,
    %c3_258 = arith.constant 3 : index
    %c0_259 = arith.constant 0 : index
    %c0_260 = arith.constant 0 : index
    %290 = vector.load %arg19[%c3_258, %c0_259, %c0_260] : memref<10x15x64xf32, #tpu.memory_space<vmem>>, vector<1x15x64xf32>
    %291 = vector.shape_cast %290 : vector<1x15x64xf32> to vector<15x64xf32>
    %c0_261 = arith.constant 0 : index
    %c0_262 = arith.constant 0 : index
    %292 = vector.load %arg28[%c0_261, %c0_262] : memref<64x128xf32, #tpu.memory_space<vmem>>, vector<64x128xf32>
    %cst_263 = arith.constant dense<0.000000e+00> : vector<15x128xf32>
    %293 = tpu.matmul %291, %292, %cst_263 {dimension_numbers = #tpu.dot_dimension_numbers<[1], [0], [0], [1], [0, 0, 1, 1], [], []>} : vector<15x64xf32>, vector<64x128xf32>, vector<15x128xf32> -> vector<15x128xf32>
    %cst_264 = arith.constant 0.000000e+00 : f32
    %294 = vector.broadcast %cst_264 : f32 to vector<15x128xf32>
    %295 = arith.cmpf oge, %293, %294 : vector<15x128xf32>
    %296 = vector.broadcast %250 : f32 to vector<15x128xf32>
    %297 = arith.mulf %296, %293 : vector<15x128xf32>
    %298 = arith.select %295, %293, %297 : vector<15x128xi1>, vector<15x128xf32>
    %c0_265 = arith.constant 0 : index
    %c0_266 = arith.constant 0 : index
    %299 = vector.load %arg4[%c0_265, %c0_266] : memref<128x128xf32, #tpu.memory_space<vmem>>, vector<128x128xf32>
    %cst_267 = arith.constant dense<0.000000e+00> : vector<15x128xf32>
    %300 = tpu.matmul %298, %299, %cst_267 {dimension_numbers = #tpu.dot_dimension_numbers<[1], [0], [0], [1], [0, 0, 1, 1], [], []>} : vector<15x128xf32>, vector<128x128xf32>, vector<15x128xf32> -> vector<15x128xf32>
    %c0_268 = arith.constant 0 : index
    %c0_269 = arith.constant 0 : index
    %301 = vector.load %arg27[%c0_268, %c0_269] : memref<64x128xf32, #tpu.memory_space<vmem>>, vector<20x128xf32>
    tpu.vector_store %arg27[%c0_268, %c0_269], %249 {strides = array<i32>} : memref<64x128xf32, #tpu.memory_space<vmem>>, vector<20x128xf32>,
    %c40_270 = arith.constant 40 : index
    %c0_271 = arith.constant 0 : index
    %302 = vector.load %arg27[%c40_270, %c0_271] : memref<64x128xf32, #tpu.memory_space<vmem>>, vector<15x128xf32>
    tpu.vector_store %arg27[%c40_270, %c0_271], %300 {strides = array<i32>} : memref<64x128xf32, #tpu.memory_space<vmem>>, vector<15x128xf32>,
    %c56_272 = arith.constant 56 : index
    %c0_273 = arith.constant 0 : index
    %303 = vector.load %arg27[%c56_272, %c0_273] : memref<64x128xf32, #tpu.memory_space<vmem>>, vector<3x128xf32>
    tpu.vector_store %arg27[%c56_272, %c0_273], %269 {strides = array<i32>} : memref<64x128xf32, #tpu.memory_space<vmem>>, vector<3x128xf32>,
    %c3_274 = arith.constant 3 : index
    %c0_275 = arith.constant 0 : index
    %c0_276 = arith.constant 0 : index
    %304 = vector.load %arg20[%c3_274, %c0_275, %c0_276] : memref<10x20x64xf32, #tpu.memory_space<vmem>>, vector<1x20x64xf32>
    %305 = vector.shape_cast %304 : vector<1x20x64xf32> to vector<20x64xf32>
    %c0_277 = arith.constant 0 : index
    %c0_278 = arith.constant 0 : index
    %306 = vector.load %arg27[%c0_277, %c0_278] : memref<64x128xf32, #tpu.memory_space<vmem>>, vector<64x128xf32>
    %cst_279 = arith.constant dense<0.000000e+00> : vector<20x128xf32>
    %307 = tpu.matmul %305, %306, %cst_279 {dimension_numbers = #tpu.dot_dimension_numbers<[1], [0], [0], [1], [0, 0, 1, 1], [], []>} : vector<20x64xf32>, vector<64x128xf32>, vector<20x128xf32> -> vector<20x128xf32>
    %cst_280 = arith.constant 0.000000e+00 : f32
    %308 = vector.broadcast %cst_280 : f32 to vector<20x128xf32>
    %309 = arith.cmpf oge, %307, %308 : vector<20x128xf32>
    %310 = vector.broadcast %251 : f32 to vector<20x128xf32>
    %311 = arith.mulf %310, %307 : vector<20x128xf32>
    %312 = arith.select %309, %307, %311 : vector<20x128xi1>, vector<20x128xf32>
    %c20 = arith.constant 20 : index
    %313 = memref.load %arg25[%c20] : memref<45xf32, #tpu.memory_space<smem>>
    %c21 = arith.constant 21 : index
    %314 = memref.load %arg25[%c21] : memref<45xf32, #tpu.memory_space<smem>>
    %c22 = arith.constant 22 : index
    %315 = memref.load %arg25[%c22] : memref<45xf32, #tpu.memory_space<smem>>
    %c23 = arith.constant 23 : index
    %316 = memref.load %arg25[%c23] : memref<45xf32, #tpu.memory_space<smem>>
    %c4_281 = arith.constant 4 : index
    %c0_282 = arith.constant 0 : index
    %c0_283 = arith.constant 0 : index
    %317 = vector.load %arg15[%c4_281, %c0_282, %c0_283] : memref<10x3x20xf32, #tpu.memory_space<vmem>>, vector<1x3x20xf32>
    %318 = vector.shape_cast %317 : vector<1x3x20xf32> to vector<3x20xf32>
    %cst_284 = arith.constant dense<0.000000e+00> : vector<3x128xf32>
    %319 = tpu.matmul %318, %312, %cst_284 {dimension_numbers = #tpu.dot_dimension_numbers<[1], [0], [0], [1], [0, 0, 1, 1], [], []>} : vector<3x20xf32>, vector<20x128xf32>, vector<3x128xf32> -> vector<3x128xf32>
    %c4_285 = arith.constant 4 : index
    %c0_286 = arith.constant 0 : index
    %c0_287 = arith.constant 0 : index
    %320 = vector.load %arg16[%c4_285, %c0_286, %c0_287] : memref<10x3x1xf32, #tpu.memory_space<vmem>>, vector<1x3x1xf32>
    %321 = vector.shape_cast %320 : vector<1x3x1xf32> to vector<3x1xf32>
    %322 = vector.broadcast %321 : vector<3x1xf32> to vector<3x128xf32>
    %323 = arith.addf %319, %322 : vector<3x128xf32>
    %cst_288 = arith.constant 0.000000e+00 : f32
    %324 = vector.broadcast %cst_288 : f32 to vector<3x128xf32>
    %325 = arith.cmpf oge, %323, %324 : vector<3x128xf32>
    %326 = vector.broadcast %315 : f32 to vector<3x128xf32>
    %327 = arith.mulf %326, %323 : vector<3x128xf32>
    %328 = arith.select %325, %323, %327 : vector<3x128xi1>, vector<3x128xf32>
    %c0_289 = arith.constant 0 : index
    %c0_290 = arith.constant 0 : index
    %329 = vector.load %arg5[%c0_289, %c0_290] : memref<128x2xf32, #tpu.memory_space<vmem>>, vector<128x2xf32>
    %cst_291 = arith.constant dense<0.000000e+00> : vector<3x2xf32>
    %330 = tpu.matmul %328, %329, %cst_291 {dimension_numbers = #tpu.dot_dimension_numbers<[1], [0], [0], [1], [0, 0, 1, 1], [], []>} : vector<3x128xf32>, vector<128x2xf32>, vector<3x2xf32> -> vector<3x2xf32>
    %c0_292 = arith.constant 0 : index
    %c0_293 = arith.constant 0 : index
    %331 = vector.load %arg6[%c0_292, %c0_293] : memref<2x128xf32, #tpu.memory_space<vmem>>, vector<2x128xf32>
    %cst_294 = arith.constant dense<0.000000e+00> : vector<3x128xf32>
    %332 = tpu.matmul %330, %331, %cst_294 {dimension_numbers = #tpu.dot_dimension_numbers<[1], [0], [0], [1], [0, 0, 1, 1], [], []>} : vector<3x2xf32>, vector<2x128xf32>, vector<3x128xf32> -> vector<3x128xf32>
    %c0_295 = arith.constant 0 : index
    %c0_296 = arith.constant 0 : index
    %333 = vector.load %arg3[%c0_295, %c0_296] : memref<128x128xf32, #tpu.memory_space<vmem>>, vector<128x128xf32>
    %cst_297 = arith.constant dense<0.000000e+00> : vector<20x128xf32>
    %334 = tpu.matmul %312, %333, %cst_297 {dimension_numbers = #tpu.dot_dimension_numbers<[1], [0], [0], [1], [0, 0, 1, 1], [], []>} : vector<20x128xf32>, vector<128x128xf32>, vector<20x128xf32> -> vector<20x128xf32>
    %c0_298 = arith.constant 0 : index
    %c0_299 = arith.constant 0 : index
    %335 = vector.load %arg28[%c0_298, %c0_299] : memref<64x128xf32, #tpu.memory_space<vmem>>, vector<20x128xf32>
    tpu.vector_store %arg28[%c0_298, %c0_299], %334 {strides = array<i32>} : memref<64x128xf32, #tpu.memory_space<vmem>>, vector<20x128xf32>,
    %c0_300 = arith.constant 0 : index
    %c0_301 = arith.constant 0 : index
    %336 = vector.load %arg3[%c0_300, %c0_301] : memref<128x128xf32, #tpu.memory_space<vmem>>, vector<128x128xf32>
    %cst_302 = arith.constant dense<0.000000e+00> : vector<3x128xf32>
    %337 = tpu.matmul %332, %336, %cst_302 {dimension_numbers = #tpu.dot_dimension_numbers<[1], [0], [0], [1], [0, 0, 1, 1], [], []>} : vector<3x128xf32>, vector<128x128xf32>, vector<3x128xf32> -> vector<3x128xf32>
    %c40_303 = arith.constant 40 : index
    %c0_304 = arith.constant 0 : index
    %338 = vector.load %arg28[%c40_303, %c0_304] : memref<64x128xf32, #tpu.memory_space<vmem>>, vector<3x128xf32>
    tpu.vector_store %arg28[%c40_303, %c0_304], %337 {strides = array<i32>} : memref<64x128xf32, #tpu.memory_space<vmem>>, vector<3x128xf32>,
    %c4_305 = arith.constant 4 : index
    %c0_306 = arith.constant 0 : index
    %c0_307 = arith.constant 0 : index
    %339 = vector.load %arg17[%c4_305, %c0_306, %c0_307] : memref<10x15x3xf32, #tpu.memory_space<vmem>>, vector<1x15x3xf32>
    %340 = vector.shape_cast %339 : vector<1x15x3xf32> to vector<15x3xf32>
    %c0_308 = arith.constant 0 : index
    %c0_309 = arith.constant 0 : index
    %341 = vector.load %arg2[%c0_308, %c0_309] : memref<3x128xf32, #tpu.memory_space<vmem>>, vector<3x128xf32>
    %cst_310 = arith.constant dense<0.000000e+00> : vector<15x128xf32>
    %342 = tpu.matmul %340, %341, %cst_310 {dimension_numbers = #tpu.dot_dimension_numbers<[1], [0], [0], [1], [0, 0, 1, 1], [], []>} : vector<15x3xf32>, vector<3x128xf32>, vector<15x128xf32> -> vector<15x128xf32>
    %c4_311 = arith.constant 4 : index
    %c0_312 = arith.constant 0 : index
    %c0_313 = arith.constant 0 : index
    %343 = vector.load %arg18[%c4_311, %c0_312, %c0_313] : memref<10x15x1xf32, #tpu.memory_space<vmem>>, vector<1x15x1xf32>
    %344 = vector.shape_cast %343 : vector<1x15x1xf32> to vector<15x1xf32>
    %345 = vector.broadcast %344 : vector<15x1xf32> to vector<15x128xf32>
    %346 = arith.addf %342, %345 : vector<15x128xf32>
    %cst_314 = arith.constant 0.000000e+00 : f32
    %347 = vector.broadcast %cst_314 : f32 to vector<15x128xf32>
    %348 = arith.cmpf oge, %346, %347 : vector<15x128xf32>
    %349 = vector.broadcast %316 : f32 to vector<15x128xf32>
    %350 = arith.mulf %349, %346 : vector<15x128xf32>
    %351 = arith.select %348, %346, %350 : vector<15x128xi1>, vector<15x128xf32>
    %c48_315 = arith.constant 48 : index
    %c0_316 = arith.constant 0 : index
    %352 = vector.load %arg28[%c48_315, %c0_316] : memref<64x128xf32, #tpu.memory_space<vmem>>, vector<15x128xf32>
    tpu.vector_store %arg28[%c48_315, %c0_316], %351 {strides = array<i32>} : memref<64x128xf32, #tpu.memory_space<vmem>>, vector<15x128xf32>,
    %c4_317 = arith.constant 4 : index
    %c0_318 = arith.constant 0 : index
    %c0_319 = arith.constant 0 : index
    %353 = vector.load %arg19[%c4_317, %c0_318, %c0_319] : memref<10x15x64xf32, #tpu.memory_space<vmem>>, vector<1x15x64xf32>
    %354 = vector.shape_cast %353 : vector<1x15x64xf32> to vector<15x64xf32>
    %c0_320 = arith.constant 0 : index
    %c0_321 = arith.constant 0 : index
    %355 = vector.load %arg28[%c0_320, %c0_321] : memref<64x128xf32, #tpu.memory_space<vmem>>, vector<64x128xf32>
    %cst_322 = arith.constant dense<0.000000e+00> : vector<15x128xf32>
    %356 = tpu.matmul %354, %355, %cst_322 {dimension_numbers = #tpu.dot_dimension_numbers<[1], [0], [0], [1], [0, 0, 1, 1], [], []>} : vector<15x64xf32>, vector<64x128xf32>, vector<15x128xf32> -> vector<15x128xf32>
    %cst_323 = arith.constant 0.000000e+00 : f32
    %357 = vector.broadcast %cst_323 : f32 to vector<15x128xf32>
    %358 = arith.cmpf oge, %356, %357 : vector<15x128xf32>
    %359 = vector.broadcast %313 : f32 to vector<15x128xf32>
    %360 = arith.mulf %359, %356 : vector<15x128xf32>
    %361 = arith.select %358, %356, %360 : vector<15x128xi1>, vector<15x128xf32>
    %c0_324 = arith.constant 0 : index
    %c0_325 = arith.constant 0 : index
    %362 = vector.load %arg4[%c0_324, %c0_325] : memref<128x128xf32, #tpu.memory_space<vmem>>, vector<128x128xf32>
    %cst_326 = arith.constant dense<0.000000e+00> : vector<15x128xf32>
    %363 = tpu.matmul %361, %362, %cst_326 {dimension_numbers = #tpu.dot_dimension_numbers<[1], [0], [0], [1], [0, 0, 1, 1], [], []>} : vector<15x128xf32>, vector<128x128xf32>, vector<15x128xf32> -> vector<15x128xf32>
    %c0_327 = arith.constant 0 : index
    %c0_328 = arith.constant 0 : index
    %364 = vector.load %arg27[%c0_327, %c0_328] : memref<64x128xf32, #tpu.memory_space<vmem>>, vector<20x128xf32>
    tpu.vector_store %arg27[%c0_327, %c0_328], %312 {strides = array<i32>} : memref<64x128xf32, #tpu.memory_space<vmem>>, vector<20x128xf32>,
    %c40_329 = arith.constant 40 : index
    %c0_330 = arith.constant 0 : index
    %365 = vector.load %arg27[%c40_329, %c0_330] : memref<64x128xf32, #tpu.memory_space<vmem>>, vector<15x128xf32>
    tpu.vector_store %arg27[%c40_329, %c0_330], %363 {strides = array<i32>} : memref<64x128xf32, #tpu.memory_space<vmem>>, vector<15x128xf32>,
    %c56_331 = arith.constant 56 : index
    %c0_332 = arith.constant 0 : index
    %366 = vector.load %arg27[%c56_331, %c0_332] : memref<64x128xf32, #tpu.memory_space<vmem>>, vector<3x128xf32>
    tpu.vector_store %arg27[%c56_331, %c0_332], %332 {strides = array<i32>} : memref<64x128xf32, #tpu.memory_space<vmem>>, vector<3x128xf32>,
    %c4_333 = arith.constant 4 : index
    %c0_334 = arith.constant 0 : index
    %c0_335 = arith.constant 0 : index
    %367 = vector.load %arg20[%c4_333, %c0_334, %c0_335] : memref<10x20x64xf32, #tpu.memory_space<vmem>>, vector<1x20x64xf32>
    %368 = vector.shape_cast %367 : vector<1x20x64xf32> to vector<20x64xf32>
    %c0_336 = arith.constant 0 : index
    %c0_337 = arith.constant 0 : index
    %369 = vector.load %arg27[%c0_336, %c0_337] : memref<64x128xf32, #tpu.memory_space<vmem>>, vector<64x128xf32>
    %cst_338 = arith.constant dense<0.000000e+00> : vector<20x128xf32>
    %370 = tpu.matmul %368, %369, %cst_338 {dimension_numbers = #tpu.dot_dimension_numbers<[1], [0], [0], [1], [0, 0, 1, 1], [], []>} : vector<20x64xf32>, vector<64x128xf32>, vector<20x128xf32> -> vector<20x128xf32>
    %cst_339 = arith.constant 0.000000e+00 : f32
    %371 = vector.broadcast %cst_339 : f32 to vector<20x128xf32>
    %372 = arith.cmpf oge, %370, %371 : vector<20x128xf32>
    %373 = vector.broadcast %314 : f32 to vector<20x128xf32>
    %374 = arith.mulf %373, %370 : vector<20x128xf32>
    %375 = arith.select %372, %370, %374 : vector<20x128xi1>, vector<20x128xf32>
    %c24_340 = arith.constant 24 : index
    %376 = memref.load %arg25[%c24_340] : memref<45xf32, #tpu.memory_space<smem>>
    %c25 = arith.constant 25 : index
    %377 = memref.load %arg25[%c25] : memref<45xf32, #tpu.memory_space<smem>>
    %c26 = arith.constant 26 : index
    %378 = memref.load %arg25[%c26] : memref<45xf32, #tpu.memory_space<smem>>
    %c27 = arith.constant 27 : index
    %379 = memref.load %arg25[%c27] : memref<45xf32, #tpu.memory_space<smem>>
    %c5_341 = arith.constant 5 : index
    %c0_342 = arith.constant 0 : index
    %c0_343 = arith.constant 0 : index
    %380 = vector.load %arg15[%c5_341, %c0_342, %c0_343] : memref<10x3x20xf32, #tpu.memory_space<vmem>>, vector<1x3x20xf32>
    %381 = vector.shape_cast %380 : vector<1x3x20xf32> to vector<3x20xf32>
    %cst_344 = arith.constant dense<0.000000e+00> : vector<3x128xf32>
    %382 = tpu.matmul %381, %375, %cst_344 {dimension_numbers = #tpu.dot_dimension_numbers<[1], [0], [0], [1], [0, 0, 1, 1], [], []>} : vector<3x20xf32>, vector<20x128xf32>, vector<3x128xf32> -> vector<3x128xf32>
    %c5_345 = arith.constant 5 : index
    %c0_346 = arith.constant 0 : index
    %c0_347 = arith.constant 0 : index
    %383 = vector.load %arg16[%c5_345, %c0_346, %c0_347] : memref<10x3x1xf32, #tpu.memory_space<vmem>>, vector<1x3x1xf32>
    %384 = vector.shape_cast %383 : vector<1x3x1xf32> to vector<3x1xf32>
    %385 = vector.broadcast %384 : vector<3x1xf32> to vector<3x128xf32>
    %386 = arith.addf %382, %385 : vector<3x128xf32>
    %cst_348 = arith.constant 0.000000e+00 : f32
    %387 = vector.broadcast %cst_348 : f32 to vector<3x128xf32>
    %388 = arith.cmpf oge, %386, %387 : vector<3x128xf32>
    %389 = vector.broadcast %378 : f32 to vector<3x128xf32>
    %390 = arith.mulf %389, %386 : vector<3x128xf32>
    %391 = arith.select %388, %386, %390 : vector<3x128xi1>, vector<3x128xf32>
    %c0_349 = arith.constant 0 : index
    %c0_350 = arith.constant 0 : index
    %392 = vector.load %arg5[%c0_349, %c0_350] : memref<128x2xf32, #tpu.memory_space<vmem>>, vector<128x2xf32>
    %cst_351 = arith.constant dense<0.000000e+00> : vector<3x2xf32>
    %393 = tpu.matmul %391, %392, %cst_351 {dimension_numbers = #tpu.dot_dimension_numbers<[1], [0], [0], [1], [0, 0, 1, 1], [], []>} : vector<3x128xf32>, vector<128x2xf32>, vector<3x2xf32> -> vector<3x2xf32>
    %c0_352 = arith.constant 0 : index
    %c0_353 = arith.constant 0 : index
    %394 = vector.load %arg6[%c0_352, %c0_353] : memref<2x128xf32, #tpu.memory_space<vmem>>, vector<2x128xf32>
    %cst_354 = arith.constant dense<0.000000e+00> : vector<3x128xf32>
    %395 = tpu.matmul %393, %394, %cst_354 {dimension_numbers = #tpu.dot_dimension_numbers<[1], [0], [0], [1], [0, 0, 1, 1], [], []>} : vector<3x2xf32>, vector<2x128xf32>, vector<3x128xf32> -> vector<3x128xf32>
    %c0_355 = arith.constant 0 : index
    %c0_356 = arith.constant 0 : index
    %396 = vector.load %arg3[%c0_355, %c0_356] : memref<128x128xf32, #tpu.memory_space<vmem>>, vector<128x128xf32>
    %cst_357 = arith.constant dense<0.000000e+00> : vector<20x128xf32>
    %397 = tpu.matmul %375, %396, %cst_357 {dimension_numbers = #tpu.dot_dimension_numbers<[1], [0], [0], [1], [0, 0, 1, 1], [], []>} : vector<20x128xf32>, vector<128x128xf32>, vector<20x128xf32> -> vector<20x128xf32>
    %c0_358 = arith.constant 0 : index
    %c0_359 = arith.constant 0 : index
    %398 = vector.load %arg28[%c0_358, %c0_359] : memref<64x128xf32, #tpu.memory_space<vmem>>, vector<20x128xf32>
    tpu.vector_store %arg28[%c0_358, %c0_359], %397 {strides = array<i32>} : memref<64x128xf32, #tpu.memory_space<vmem>>, vector<20x128xf32>,
    %c0_360 = arith.constant 0 : index
    %c0_361 = arith.constant 0 : index
    %399 = vector.load %arg3[%c0_360, %c0_361] : memref<128x128xf32, #tpu.memory_space<vmem>>, vector<128x128xf32>
    %cst_362 = arith.constant dense<0.000000e+00> : vector<3x128xf32>
    %400 = tpu.matmul %395, %399, %cst_362 {dimension_numbers = #tpu.dot_dimension_numbers<[1], [0], [0], [1], [0, 0, 1, 1], [], []>} : vector<3x128xf32>, vector<128x128xf32>, vector<3x128xf32> -> vector<3x128xf32>
    %c40_363 = arith.constant 40 : index
    %c0_364 = arith.constant 0 : index
    %401 = vector.load %arg28[%c40_363, %c0_364] : memref<64x128xf32, #tpu.memory_space<vmem>>, vector<3x128xf32>
    tpu.vector_store %arg28[%c40_363, %c0_364], %400 {strides = array<i32>} : memref<64x128xf32, #tpu.memory_space<vmem>>, vector<3x128xf32>,
    %c5_365 = arith.constant 5 : index
    %c0_366 = arith.constant 0 : index
    %c0_367 = arith.constant 0 : index
    %402 = vector.load %arg17[%c5_365, %c0_366, %c0_367] : memref<10x15x3xf32, #tpu.memory_space<vmem>>, vector<1x15x3xf32>
    %403 = vector.shape_cast %402 : vector<1x15x3xf32> to vector<15x3xf32>
    %c0_368 = arith.constant 0 : index
    %c0_369 = arith.constant 0 : index
    %404 = vector.load %arg2[%c0_368, %c0_369] : memref<3x128xf32, #tpu.memory_space<vmem>>, vector<3x128xf32>
    %cst_370 = arith.constant dense<0.000000e+00> : vector<15x128xf32>
    %405 = tpu.matmul %403, %404, %cst_370 {dimension_numbers = #tpu.dot_dimension_numbers<[1], [0], [0], [1], [0, 0, 1, 1], [], []>} : vector<15x3xf32>, vector<3x128xf32>, vector<15x128xf32> -> vector<15x128xf32>
    %c5_371 = arith.constant 5 : index
    %c0_372 = arith.constant 0 : index
    %c0_373 = arith.constant 0 : index
    %406 = vector.load %arg18[%c5_371, %c0_372, %c0_373] : memref<10x15x1xf32, #tpu.memory_space<vmem>>, vector<1x15x1xf32>
    %407 = vector.shape_cast %406 : vector<1x15x1xf32> to vector<15x1xf32>
    %408 = vector.broadcast %407 : vector<15x1xf32> to vector<15x128xf32>
    %409 = arith.addf %405, %408 : vector<15x128xf32>
    %cst_374 = arith.constant 0.000000e+00 : f32
    %410 = vector.broadcast %cst_374 : f32 to vector<15x128xf32>
    %411 = arith.cmpf oge, %409, %410 : vector<15x128xf32>
    %412 = vector.broadcast %379 : f32 to vector<15x128xf32>
    %413 = arith.mulf %412, %409 : vector<15x128xf32>
    %414 = arith.select %411, %409, %413 : vector<15x128xi1>, vector<15x128xf32>
    %c48_375 = arith.constant 48 : index
    %c0_376 = arith.constant 0 : index
    %415 = vector.load %arg28[%c48_375, %c0_376] : memref<64x128xf32, #tpu.memory_space<vmem>>, vector<15x128xf32>
    tpu.vector_store %arg28[%c48_375, %c0_376], %414 {strides = array<i32>} : memref<64x128xf32, #tpu.memory_space<vmem>>, vector<15x128xf32>,
    %c5_377 = arith.constant 5 : index
    %c0_378 = arith.constant 0 : index
    %c0_379 = arith.constant 0 : index
    %416 = vector.load %arg19[%c5_377, %c0_378, %c0_379] : memref<10x15x64xf32, #tpu.memory_space<vmem>>, vector<1x15x64xf32>
    %417 = vector.shape_cast %416 : vector<1x15x64xf32> to vector<15x64xf32>
    %c0_380 = arith.constant 0 : index
    %c0_381 = arith.constant 0 : index
    %418 = vector.load %arg28[%c0_380, %c0_381] : memref<64x128xf32, #tpu.memory_space<vmem>>, vector<64x128xf32>
    %cst_382 = arith.constant dense<0.000000e+00> : vector<15x128xf32>
    %419 = tpu.matmul %417, %418, %cst_382 {dimension_numbers = #tpu.dot_dimension_numbers<[1], [0], [0], [1], [0, 0, 1, 1], [], []>} : vector<15x64xf32>, vector<64x128xf32>, vector<15x128xf32> -> vector<15x128xf32>
    %cst_383 = arith.constant 0.000000e+00 : f32
    %420 = vector.broadcast %cst_383 : f32 to vector<15x128xf32>
    %421 = arith.cmpf oge, %419, %420 : vector<15x128xf32>
    %422 = vector.broadcast %376 : f32 to vector<15x128xf32>
    %423 = arith.mulf %422, %419 : vector<15x128xf32>
    %424 = arith.select %421, %419, %423 : vector<15x128xi1>, vector<15x128xf32>
    %c0_384 = arith.constant 0 : index
    %c0_385 = arith.constant 0 : index
    %425 = vector.load %arg4[%c0_384, %c0_385] : memref<128x128xf32, #tpu.memory_space<vmem>>, vector<128x128xf32>
    %cst_386 = arith.constant dense<0.000000e+00> : vector<15x128xf32>
    %426 = tpu.matmul %424, %425, %cst_386 {dimension_numbers = #tpu.dot_dimension_numbers<[1], [0], [0], [1], [0, 0, 1, 1], [], []>} : vector<15x128xf32>, vector<128x128xf32>, vector<15x128xf32> -> vector<15x128xf32>
    %c0_387 = arith.constant 0 : index
    %c0_388 = arith.constant 0 : index
    %427 = vector.load %arg27[%c0_387, %c0_388] : memref<64x128xf32, #tpu.memory_space<vmem>>, vector<20x128xf32>
    tpu.vector_store %arg27[%c0_387, %c0_388], %375 {strides = array<i32>} : memref<64x128xf32, #tpu.memory_space<vmem>>, vector<20x128xf32>,
    %c40_389 = arith.constant 40 : index
    %c0_390 = arith.constant 0 : index
    %428 = vector.load %arg27[%c40_389, %c0_390] : memref<64x128xf32, #tpu.memory_space<vmem>>, vector<15x128xf32>
    tpu.vector_store %arg27[%c40_389, %c0_390], %426 {strides = array<i32>} : memref<64x128xf32, #tpu.memory_space<vmem>>, vector<15x128xf32>,
    %c56_391 = arith.constant 56 : index
    %c0_392 = arith.constant 0 : index
    %429 = vector.load %arg27[%c56_391, %c0_392] : memref<64x128xf32, #tpu.memory_space<vmem>>, vector<3x128xf32>
    tpu.vector_store %arg27[%c56_391, %c0_392], %395 {strides = array<i32>} : memref<64x128xf32, #tpu.memory_space<vmem>>, vector<3x128xf32>,
    %c5_393 = arith.constant 5 : index
    %c0_394 = arith.constant 0 : index
    %c0_395 = arith.constant 0 : index
    %430 = vector.load %arg20[%c5_393, %c0_394, %c0_395] : memref<10x20x64xf32, #tpu.memory_space<vmem>>, vector<1x20x64xf32>
    %431 = vector.shape_cast %430 : vector<1x20x64xf32> to vector<20x64xf32>
    %c0_396 = arith.constant 0 : index
    %c0_397 = arith.constant 0 : index
    %432 = vector.load %arg27[%c0_396, %c0_397] : memref<64x128xf32, #tpu.memory_space<vmem>>, vector<64x128xf32>
    %cst_398 = arith.constant dense<0.000000e+00> : vector<20x128xf32>
    %433 = tpu.matmul %431, %432, %cst_398 {dimension_numbers = #tpu.dot_dimension_numbers<[1], [0], [0], [1], [0, 0, 1, 1], [], []>} : vector<20x64xf32>, vector<64x128xf32>, vector<20x128xf32> -> vector<20x128xf32>
    %cst_399 = arith.constant 0.000000e+00 : f32
    %434 = vector.broadcast %cst_399 : f32 to vector<20x128xf32>
    %435 = arith.cmpf oge, %433, %434 : vector<20x128xf32>
    %436 = vector.broadcast %377 : f32 to vector<20x128xf32>
    %437 = arith.mulf %436, %433 : vector<20x128xf32>
    %438 = arith.select %435, %433, %437 : vector<20x128xi1>, vector<20x128xf32>
    %439 = arith.addf %438, %312 : vector<20x128xf32>
    %c28 = arith.constant 28 : index
    %440 = memref.load %arg25[%c28] : memref<45xf32, #tpu.memory_space<smem>>
    %c29 = arith.constant 29 : index
    %441 = memref.load %arg25[%c29] : memref<45xf32, #tpu.memory_space<smem>>
    %c30 = arith.constant 30 : index
    %442 = memref.load %arg25[%c30] : memref<45xf32, #tpu.memory_space<smem>>
    %c31 = arith.constant 31 : index
    %443 = memref.load %arg25[%c31] : memref<45xf32, #tpu.memory_space<smem>>
    %c6_400 = arith.constant 6 : index
    %c0_401 = arith.constant 0 : index
    %c0_402 = arith.constant 0 : index
    %444 = vector.load %arg15[%c6_400, %c0_401, %c0_402] : memref<10x3x20xf32, #tpu.memory_space<vmem>>, vector<1x3x20xf32>
    %445 = vector.shape_cast %444 : vector<1x3x20xf32> to vector<3x20xf32>
    %cst_403 = arith.constant dense<0.000000e+00> : vector<3x128xf32>
    %446 = tpu.matmul %445, %439, %cst_403 {dimension_numbers = #tpu.dot_dimension_numbers<[1], [0], [0], [1], [0, 0, 1, 1], [], []>} : vector<3x20xf32>, vector<20x128xf32>, vector<3x128xf32> -> vector<3x128xf32>
    %c6_404 = arith.constant 6 : index
    %c0_405 = arith.constant 0 : index
    %c0_406 = arith.constant 0 : index
    %447 = vector.load %arg16[%c6_404, %c0_405, %c0_406] : memref<10x3x1xf32, #tpu.memory_space<vmem>>, vector<1x3x1xf32>
    %448 = vector.shape_cast %447 : vector<1x3x1xf32> to vector<3x1xf32>
    %449 = vector.broadcast %448 : vector<3x1xf32> to vector<3x128xf32>
    %450 = arith.addf %446, %449 : vector<3x128xf32>
    %cst_407 = arith.constant 0.000000e+00 : f32
    %451 = vector.broadcast %cst_407 : f32 to vector<3x128xf32>
    %452 = arith.cmpf oge, %450, %451 : vector<3x128xf32>
    %453 = vector.broadcast %442 : f32 to vector<3x128xf32>
    %454 = arith.mulf %453, %450 : vector<3x128xf32>
    %455 = arith.select %452, %450, %454 : vector<3x128xi1>, vector<3x128xf32>
    %c0_408 = arith.constant 0 : index
    %c0_409 = arith.constant 0 : index
    %456 = vector.load %arg5[%c0_408, %c0_409] : memref<128x2xf32, #tpu.memory_space<vmem>>, vector<128x2xf32>
    %cst_410 = arith.constant dense<0.000000e+00> : vector<3x2xf32>
    %457 = tpu.matmul %455, %456, %cst_410 {dimension_numbers = #tpu.dot_dimension_numbers<[1], [0], [0], [1], [0, 0, 1, 1], [], []>} : vector<3x128xf32>, vector<128x2xf32>, vector<3x2xf32> -> vector<3x2xf32>
    %c0_411 = arith.constant 0 : index
    %c0_412 = arith.constant 0 : index
    %458 = vector.load %arg6[%c0_411, %c0_412] : memref<2x128xf32, #tpu.memory_space<vmem>>, vector<2x128xf32>
    %cst_413 = arith.constant dense<0.000000e+00> : vector<3x128xf32>
    %459 = tpu.matmul %457, %458, %cst_413 {dimension_numbers = #tpu.dot_dimension_numbers<[1], [0], [0], [1], [0, 0, 1, 1], [], []>} : vector<3x2xf32>, vector<2x128xf32>, vector<3x128xf32> -> vector<3x128xf32>
    %c0_414 = arith.constant 0 : index
    %c0_415 = arith.constant 0 : index
    %460 = vector.load %arg3[%c0_414, %c0_415] : memref<128x128xf32, #tpu.memory_space<vmem>>, vector<128x128xf32>
    %cst_416 = arith.constant dense<0.000000e+00> : vector<20x128xf32>
    %461 = tpu.matmul %439, %460, %cst_416 {dimension_numbers = #tpu.dot_dimension_numbers<[1], [0], [0], [1], [0, 0, 1, 1], [], []>} : vector<20x128xf32>, vector<128x128xf32>, vector<20x128xf32> -> vector<20x128xf32>
    %c0_417 = arith.constant 0 : index
    %c0_418 = arith.constant 0 : index
    %462 = vector.load %arg28[%c0_417, %c0_418] : memref<64x128xf32, #tpu.memory_space<vmem>>, vector<20x128xf32>
    tpu.vector_store %arg28[%c0_417, %c0_418], %461 {strides = array<i32>} : memref<64x128xf32, #tpu.memory_space<vmem>>, vector<20x128xf32>,
    %c0_419 = arith.constant 0 : index
    %c0_420 = arith.constant 0 : index
    %463 = vector.load %arg3[%c0_419, %c0_420] : memref<128x128xf32, #tpu.memory_space<vmem>>, vector<128x128xf32>
    %cst_421 = arith.constant dense<0.000000e+00> : vector<3x128xf32>
    %464 = tpu.matmul %459, %463, %cst_421 {dimension_numbers = #tpu.dot_dimension_numbers<[1], [0], [0], [1], [0, 0, 1, 1], [], []>} : vector<3x128xf32>, vector<128x128xf32>, vector<3x128xf32> -> vector<3x128xf32>
    %c40_422 = arith.constant 40 : index
    %c0_423 = arith.constant 0 : index
    %465 = vector.load %arg28[%c40_422, %c0_423] : memref<64x128xf32, #tpu.memory_space<vmem>>, vector<3x128xf32>
    tpu.vector_store %arg28[%c40_422, %c0_423], %464 {strides = array<i32>} : memref<64x128xf32, #tpu.memory_space<vmem>>, vector<3x128xf32>,
    %c6_424 = arith.constant 6 : index
    %c0_425 = arith.constant 0 : index
    %c0_426 = arith.constant 0 : index
    %466 = vector.load %arg17[%c6_424, %c0_425, %c0_426] : memref<10x15x3xf32, #tpu.memory_space<vmem>>, vector<1x15x3xf32>
    %467 = vector.shape_cast %466 : vector<1x15x3xf32> to vector<15x3xf32>
    %c0_427 = arith.constant 0 : index
    %c0_428 = arith.constant 0 : index
    %468 = vector.load %arg2[%c0_427, %c0_428] : memref<3x128xf32, #tpu.memory_space<vmem>>, vector<3x128xf32>
    %cst_429 = arith.constant dense<0.000000e+00> : vector<15x128xf32>
    %469 = tpu.matmul %467, %468, %cst_429 {dimension_numbers = #tpu.dot_dimension_numbers<[1], [0], [0], [1], [0, 0, 1, 1], [], []>} : vector<15x3xf32>, vector<3x128xf32>, vector<15x128xf32> -> vector<15x128xf32>
    %c6_430 = arith.constant 6 : index
    %c0_431 = arith.constant 0 : index
    %c0_432 = arith.constant 0 : index
    %470 = vector.load %arg18[%c6_430, %c0_431, %c0_432] : memref<10x15x1xf32, #tpu.memory_space<vmem>>, vector<1x15x1xf32>
    %471 = vector.shape_cast %470 : vector<1x15x1xf32> to vector<15x1xf32>
    %472 = vector.broadcast %471 : vector<15x1xf32> to vector<15x128xf32>
    %473 = arith.addf %469, %472 : vector<15x128xf32>
    %cst_433 = arith.constant 0.000000e+00 : f32
    %474 = vector.broadcast %cst_433 : f32 to vector<15x128xf32>
    %475 = arith.cmpf oge, %473, %474 : vector<15x128xf32>
    %476 = vector.broadcast %443 : f32 to vector<15x128xf32>
    %477 = arith.mulf %476, %473 : vector<15x128xf32>
    %478 = arith.select %475, %473, %477 : vector<15x128xi1>, vector<15x128xf32>
    %c48_434 = arith.constant 48 : index
    %c0_435 = arith.constant 0 : index
    %479 = vector.load %arg28[%c48_434, %c0_435] : memref<64x128xf32, #tpu.memory_space<vmem>>, vector<15x128xf32>
    tpu.vector_store %arg28[%c48_434, %c0_435], %478 {strides = array<i32>} : memref<64x128xf32, #tpu.memory_space<vmem>>, vector<15x128xf32>,
    %c6_436 = arith.constant 6 : index
    %c0_437 = arith.constant 0 : index
    %c0_438 = arith.constant 0 : index
    %480 = vector.load %arg19[%c6_436, %c0_437, %c0_438] : memref<10x15x64xf32, #tpu.memory_space<vmem>>, vector<1x15x64xf32>
    %481 = vector.shape_cast %480 : vector<1x15x64xf32> to vector<15x64xf32>
    %c0_439 = arith.constant 0 : index
    %c0_440 = arith.constant 0 : index
    %482 = vector.load %arg28[%c0_439, %c0_440] : memref<64x128xf32, #tpu.memory_space<vmem>>, vector<64x128xf32>
    %cst_441 = arith.constant dense<0.000000e+00> : vector<15x128xf32>
    %483 = tpu.matmul %481, %482, %cst_441 {dimension_numbers = #tpu.dot_dimension_numbers<[1], [0], [0], [1], [0, 0, 1, 1], [], []>} : vector<15x64xf32>, vector<64x128xf32>, vector<15x128xf32> -> vector<15x128xf32>
    %cst_442 = arith.constant 0.000000e+00 : f32
    %484 = vector.broadcast %cst_442 : f32 to vector<15x128xf32>
    %485 = arith.cmpf oge, %483, %484 : vector<15x128xf32>
    %486 = vector.broadcast %440 : f32 to vector<15x128xf32>
    %487 = arith.mulf %486, %483 : vector<15x128xf32>
    %488 = arith.select %485, %483, %487 : vector<15x128xi1>, vector<15x128xf32>
    %c0_443 = arith.constant 0 : index
    %c0_444 = arith.constant 0 : index
    %489 = vector.load %arg4[%c0_443, %c0_444] : memref<128x128xf32, #tpu.memory_space<vmem>>, vector<128x128xf32>
    %cst_445 = arith.constant dense<0.000000e+00> : vector<15x128xf32>
    %490 = tpu.matmul %488, %489, %cst_445 {dimension_numbers = #tpu.dot_dimension_numbers<[1], [0], [0], [1], [0, 0, 1, 1], [], []>} : vector<15x128xf32>, vector<128x128xf32>, vector<15x128xf32> -> vector<15x128xf32>
    %c0_446 = arith.constant 0 : index
    %c0_447 = arith.constant 0 : index
    %491 = vector.load %arg27[%c0_446, %c0_447] : memref<64x128xf32, #tpu.memory_space<vmem>>, vector<20x128xf32>
    tpu.vector_store %arg27[%c0_446, %c0_447], %439 {strides = array<i32>} : memref<64x128xf32, #tpu.memory_space<vmem>>, vector<20x128xf32>,
    %c40_448 = arith.constant 40 : index
    %c0_449 = arith.constant 0 : index
    %492 = vector.load %arg27[%c40_448, %c0_449] : memref<64x128xf32, #tpu.memory_space<vmem>>, vector<15x128xf32>
    tpu.vector_store %arg27[%c40_448, %c0_449], %490 {strides = array<i32>} : memref<64x128xf32, #tpu.memory_space<vmem>>, vector<15x128xf32>,
    %c56_450 = arith.constant 56 : index
    %c0_451 = arith.constant 0 : index
    %493 = vector.load %arg27[%c56_450, %c0_451] : memref<64x128xf32, #tpu.memory_space<vmem>>, vector<3x128xf32>
    tpu.vector_store %arg27[%c56_450, %c0_451], %459 {strides = array<i32>} : memref<64x128xf32, #tpu.memory_space<vmem>>, vector<3x128xf32>,
    %c6_452 = arith.constant 6 : index
    %c0_453 = arith.constant 0 : index
    %c0_454 = arith.constant 0 : index
    %494 = vector.load %arg20[%c6_452, %c0_453, %c0_454] : memref<10x20x64xf32, #tpu.memory_space<vmem>>, vector<1x20x64xf32>
    %495 = vector.shape_cast %494 : vector<1x20x64xf32> to vector<20x64xf32>
    %c0_455 = arith.constant 0 : index
    %c0_456 = arith.constant 0 : index
    %496 = vector.load %arg27[%c0_455, %c0_456] : memref<64x128xf32, #tpu.memory_space<vmem>>, vector<64x128xf32>
    %cst_457 = arith.constant dense<0.000000e+00> : vector<20x128xf32>
    %497 = tpu.matmul %495, %496, %cst_457 {dimension_numbers = #tpu.dot_dimension_numbers<[1], [0], [0], [1], [0, 0, 1, 1], [], []>} : vector<20x64xf32>, vector<64x128xf32>, vector<20x128xf32> -> vector<20x128xf32>
    %cst_458 = arith.constant 0.000000e+00 : f32
    %498 = vector.broadcast %cst_458 : f32 to vector<20x128xf32>
    %499 = arith.cmpf oge, %497, %498 : vector<20x128xf32>
    %500 = vector.broadcast %441 : f32 to vector<20x128xf32>
    %501 = arith.mulf %500, %497 : vector<20x128xf32>
    %502 = arith.select %499, %497, %501 : vector<20x128xi1>, vector<20x128xf32>
    %c32 = arith.constant 32 : index
    %503 = memref.load %arg25[%c32] : memref<45xf32, #tpu.memory_space<smem>>
    %c33 = arith.constant 33 : index
    %504 = memref.load %arg25[%c33] : memref<45xf32, #tpu.memory_space<smem>>
    %c34 = arith.constant 34 : index
    %505 = memref.load %arg25[%c34] : memref<45xf32, #tpu.memory_space<smem>>
    %c35 = arith.constant 35 : index
    %506 = memref.load %arg25[%c35] : memref<45xf32, #tpu.memory_space<smem>>
    %c7_459 = arith.constant 7 : index
    %c0_460 = arith.constant 0 : index
    %c0_461 = arith.constant 0 : index
    %507 = vector.load %arg15[%c7_459, %c0_460, %c0_461] : memref<10x3x20xf32, #tpu.memory_space<vmem>>, vector<1x3x20xf32>
    %508 = vector.shape_cast %507 : vector<1x3x20xf32> to vector<3x20xf32>
    %cst_462 = arith.constant dense<0.000000e+00> : vector<3x128xf32>
    %509 = tpu.matmul %508, %502, %cst_462 {dimension_numbers = #tpu.dot_dimension_numbers<[1], [0], [0], [1], [0, 0, 1, 1], [], []>} : vector<3x20xf32>, vector<20x128xf32>, vector<3x128xf32> -> vector<3x128xf32>
    %c7_463 = arith.constant 7 : index
    %c0_464 = arith.constant 0 : index
    %c0_465 = arith.constant 0 : index
    %510 = vector.load %arg16[%c7_463, %c0_464, %c0_465] : memref<10x3x1xf32, #tpu.memory_space<vmem>>, vector<1x3x1xf32>
    %511 = vector.shape_cast %510 : vector<1x3x1xf32> to vector<3x1xf32>
    %512 = vector.broadcast %511 : vector<3x1xf32> to vector<3x128xf32>
    %513 = arith.addf %509, %512 : vector<3x128xf32>
    %cst_466 = arith.constant 0.000000e+00 : f32
    %514 = vector.broadcast %cst_466 : f32 to vector<3x128xf32>
    %515 = arith.cmpf oge, %513, %514 : vector<3x128xf32>
    %516 = vector.broadcast %505 : f32 to vector<3x128xf32>
    %517 = arith.mulf %516, %513 : vector<3x128xf32>
    %518 = arith.select %515, %513, %517 : vector<3x128xi1>, vector<3x128xf32>
    %c0_467 = arith.constant 0 : index
    %c0_468 = arith.constant 0 : index
    %519 = vector.load %arg5[%c0_467, %c0_468] : memref<128x2xf32, #tpu.memory_space<vmem>>, vector<128x2xf32>
    %cst_469 = arith.constant dense<0.000000e+00> : vector<3x2xf32>
    %520 = tpu.matmul %518, %519, %cst_469 {dimension_numbers = #tpu.dot_dimension_numbers<[1], [0], [0], [1], [0, 0, 1, 1], [], []>} : vector<3x128xf32>, vector<128x2xf32>, vector<3x2xf32> -> vector<3x2xf32>
    %c0_470 = arith.constant 0 : index
    %c0_471 = arith.constant 0 : index
    %521 = vector.load %arg6[%c0_470, %c0_471] : memref<2x128xf32, #tpu.memory_space<vmem>>, vector<2x128xf32>
    %cst_472 = arith.constant dense<0.000000e+00> : vector<3x128xf32>
    %522 = tpu.matmul %520, %521, %cst_472 {dimension_numbers = #tpu.dot_dimension_numbers<[1], [0], [0], [1], [0, 0, 1, 1], [], []>} : vector<3x2xf32>, vector<2x128xf32>, vector<3x128xf32> -> vector<3x128xf32>
    %c0_473 = arith.constant 0 : index
    %c0_474 = arith.constant 0 : index
    %523 = vector.load %arg3[%c0_473, %c0_474] : memref<128x128xf32, #tpu.memory_space<vmem>>, vector<128x128xf32>
    %cst_475 = arith.constant dense<0.000000e+00> : vector<20x128xf32>
    %524 = tpu.matmul %502, %523, %cst_475 {dimension_numbers = #tpu.dot_dimension_numbers<[1], [0], [0], [1], [0, 0, 1, 1], [], []>} : vector<20x128xf32>, vector<128x128xf32>, vector<20x128xf32> -> vector<20x128xf32>
    %c0_476 = arith.constant 0 : index
    %c0_477 = arith.constant 0 : index
    %525 = vector.load %arg28[%c0_476, %c0_477] : memref<64x128xf32, #tpu.memory_space<vmem>>, vector<20x128xf32>
    tpu.vector_store %arg28[%c0_476, %c0_477], %524 {strides = array<i32>} : memref<64x128xf32, #tpu.memory_space<vmem>>, vector<20x128xf32>,
    %c0_478 = arith.constant 0 : index
    %c0_479 = arith.constant 0 : index
    %526 = vector.load %arg3[%c0_478, %c0_479] : memref<128x128xf32, #tpu.memory_space<vmem>>, vector<128x128xf32>
    %cst_480 = arith.constant dense<0.000000e+00> : vector<3x128xf32>
    %527 = tpu.matmul %522, %526, %cst_480 {dimension_numbers = #tpu.dot_dimension_numbers<[1], [0], [0], [1], [0, 0, 1, 1], [], []>} : vector<3x128xf32>, vector<128x128xf32>, vector<3x128xf32> -> vector<3x128xf32>
    %c40_481 = arith.constant 40 : index
    %c0_482 = arith.constant 0 : index
    %528 = vector.load %arg28[%c40_481, %c0_482] : memref<64x128xf32, #tpu.memory_space<vmem>>, vector<3x128xf32>
    tpu.vector_store %arg28[%c40_481, %c0_482], %527 {strides = array<i32>} : memref<64x128xf32, #tpu.memory_space<vmem>>, vector<3x128xf32>,
    %c7_483 = arith.constant 7 : index
    %c0_484 = arith.constant 0 : index
    %c0_485 = arith.constant 0 : index
    %529 = vector.load %arg17[%c7_483, %c0_484, %c0_485] : memref<10x15x3xf32, #tpu.memory_space<vmem>>, vector<1x15x3xf32>
    %530 = vector.shape_cast %529 : vector<1x15x3xf32> to vector<15x3xf32>
    %c0_486 = arith.constant 0 : index
    %c0_487 = arith.constant 0 : index
    %531 = vector.load %arg2[%c0_486, %c0_487] : memref<3x128xf32, #tpu.memory_space<vmem>>, vector<3x128xf32>
    %cst_488 = arith.constant dense<0.000000e+00> : vector<15x128xf32>
    %532 = tpu.matmul %530, %531, %cst_488 {dimension_numbers = #tpu.dot_dimension_numbers<[1], [0], [0], [1], [0, 0, 1, 1], [], []>} : vector<15x3xf32>, vector<3x128xf32>, vector<15x128xf32> -> vector<15x128xf32>
    %c7_489 = arith.constant 7 : index
    %c0_490 = arith.constant 0 : index
    %c0_491 = arith.constant 0 : index
    %533 = vector.load %arg18[%c7_489, %c0_490, %c0_491] : memref<10x15x1xf32, #tpu.memory_space<vmem>>, vector<1x15x1xf32>
    %534 = vector.shape_cast %533 : vector<1x15x1xf32> to vector<15x1xf32>
    %535 = vector.broadcast %534 : vector<15x1xf32> to vector<15x128xf32>
    %536 = arith.addf %532, %535 : vector<15x128xf32>
    %cst_492 = arith.constant 0.000000e+00 : f32
    %537 = vector.broadcast %cst_492 : f32 to vector<15x128xf32>
    %538 = arith.cmpf oge, %536, %537 : vector<15x128xf32>
    %539 = vector.broadcast %506 : f32 to vector<15x128xf32>
    %540 = arith.mulf %539, %536 : vector<15x128xf32>
    %541 = arith.select %538, %536, %540 : vector<15x128xi1>, vector<15x128xf32>
    %c48_493 = arith.constant 48 : index
    %c0_494 = arith.constant 0 : index
    %542 = vector.load %arg28[%c48_493, %c0_494] : memref<64x128xf32, #tpu.memory_space<vmem>>, vector<15x128xf32>
    tpu.vector_store %arg28[%c48_493, %c0_494], %541 {strides = array<i32>} : memref<64x128xf32, #tpu.memory_space<vmem>>, vector<15x128xf32>,
    %c7_495 = arith.constant 7 : index
    %c0_496 = arith.constant 0 : index
    %c0_497 = arith.constant 0 : index
    %543 = vector.load %arg19[%c7_495, %c0_496, %c0_497] : memref<10x15x64xf32, #tpu.memory_space<vmem>>, vector<1x15x64xf32>
    %544 = vector.shape_cast %543 : vector<1x15x64xf32> to vector<15x64xf32>
    %c0_498 = arith.constant 0 : index
    %c0_499 = arith.constant 0 : index
    %545 = vector.load %arg28[%c0_498, %c0_499] : memref<64x128xf32, #tpu.memory_space<vmem>>, vector<64x128xf32>
    %cst_500 = arith.constant dense<0.000000e+00> : vector<15x128xf32>
    %546 = tpu.matmul %544, %545, %cst_500 {dimension_numbers = #tpu.dot_dimension_numbers<[1], [0], [0], [1], [0, 0, 1, 1], [], []>} : vector<15x64xf32>, vector<64x128xf32>, vector<15x128xf32> -> vector<15x128xf32>
    %cst_501 = arith.constant 0.000000e+00 : f32
    %547 = vector.broadcast %cst_501 : f32 to vector<15x128xf32>
    %548 = arith.cmpf oge, %546, %547 : vector<15x128xf32>
    %549 = vector.broadcast %503 : f32 to vector<15x128xf32>
    %550 = arith.mulf %549, %546 : vector<15x128xf32>
    %551 = arith.select %548, %546, %550 : vector<15x128xi1>, vector<15x128xf32>
    %c0_502 = arith.constant 0 : index
    %c0_503 = arith.constant 0 : index
    %552 = vector.load %arg4[%c0_502, %c0_503] : memref<128x128xf32, #tpu.memory_space<vmem>>, vector<128x128xf32>
    %cst_504 = arith.constant dense<0.000000e+00> : vector<15x128xf32>
    %553 = tpu.matmul %551, %552, %cst_504 {dimension_numbers = #tpu.dot_dimension_numbers<[1], [0], [0], [1], [0, 0, 1, 1], [], []>} : vector<15x128xf32>, vector<128x128xf32>, vector<15x128xf32> -> vector<15x128xf32>
    %c0_505 = arith.constant 0 : index
    %c0_506 = arith.constant 0 : index
    %554 = vector.load %arg27[%c0_505, %c0_506] : memref<64x128xf32, #tpu.memory_space<vmem>>, vector<20x128xf32>
    tpu.vector_store %arg27[%c0_505, %c0_506], %502 {strides = array<i32>} : memref<64x128xf32, #tpu.memory_space<vmem>>, vector<20x128xf32>,
    %c40_507 = arith.constant 40 : index
    %c0_508 = arith.constant 0 : index
    %555 = vector.load %arg27[%c40_507, %c0_508] : memref<64x128xf32, #tpu.memory_space<vmem>>, vector<15x128xf32>
    tpu.vector_store %arg27[%c40_507, %c0_508], %553 {strides = array<i32>} : memref<64x128xf32, #tpu.memory_space<vmem>>, vector<15x128xf32>,
    %c56_509 = arith.constant 56 : index
    %c0_510 = arith.constant 0 : index
    %556 = vector.load %arg27[%c56_509, %c0_510] : memref<64x128xf32, #tpu.memory_space<vmem>>, vector<3x128xf32>
    tpu.vector_store %arg27[%c56_509, %c0_510], %522 {strides = array<i32>} : memref<64x128xf32, #tpu.memory_space<vmem>>, vector<3x128xf32>,
    %c7_511 = arith.constant 7 : index
    %c0_512 = arith.constant 0 : index
    %c0_513 = arith.constant 0 : index
    %557 = vector.load %arg20[%c7_511, %c0_512, %c0_513] : memref<10x20x64xf32, #tpu.memory_space<vmem>>, vector<1x20x64xf32>
    %558 = vector.shape_cast %557 : vector<1x20x64xf32> to vector<20x64xf32>
    %c0_514 = arith.constant 0 : index
    %c0_515 = arith.constant 0 : index
    %559 = vector.load %arg27[%c0_514, %c0_515] : memref<64x128xf32, #tpu.memory_space<vmem>>, vector<64x128xf32>
    %cst_516 = arith.constant dense<0.000000e+00> : vector<20x128xf32>
    %560 = tpu.matmul %558, %559, %cst_516 {dimension_numbers = #tpu.dot_dimension_numbers<[1], [0], [0], [1], [0, 0, 1, 1], [], []>} : vector<20x64xf32>, vector<64x128xf32>, vector<20x128xf32> -> vector<20x128xf32>
    %cst_517 = arith.constant 0.000000e+00 : f32
    %561 = vector.broadcast %cst_517 : f32 to vector<20x128xf32>
    %562 = arith.cmpf oge, %560, %561 : vector<20x128xf32>
    %563 = vector.broadcast %504 : f32 to vector<20x128xf32>
    %564 = arith.mulf %563, %560 : vector<20x128xf32>
    %565 = arith.select %562, %560, %564 : vector<20x128xi1>, vector<20x128xf32>
    %c36 = arith.constant 36 : index
    %566 = memref.load %arg25[%c36] : memref<45xf32, #tpu.memory_space<smem>>
    %c37 = arith.constant 37 : index
    %567 = memref.load %arg25[%c37] : memref<45xf32, #tpu.memory_space<smem>>
    %c38 = arith.constant 38 : index
    %568 = memref.load %arg25[%c38] : memref<45xf32, #tpu.memory_space<smem>>
    %c39 = arith.constant 39 : index
    %569 = memref.load %arg25[%c39] : memref<45xf32, #tpu.memory_space<smem>>
    %c8_518 = arith.constant 8 : index
    %c0_519 = arith.constant 0 : index
    %c0_520 = arith.constant 0 : index
    %570 = vector.load %arg15[%c8_518, %c0_519, %c0_520] : memref<10x3x20xf32, #tpu.memory_space<vmem>>, vector<1x3x20xf32>
    %571 = vector.shape_cast %570 : vector<1x3x20xf32> to vector<3x20xf32>
    %cst_521 = arith.constant dense<0.000000e+00> : vector<3x128xf32>
    %572 = tpu.matmul %571, %565, %cst_521 {dimension_numbers = #tpu.dot_dimension_numbers<[1], [0], [0], [1], [0, 0, 1, 1], [], []>} : vector<3x20xf32>, vector<20x128xf32>, vector<3x128xf32> -> vector<3x128xf32>
    %c8_522 = arith.constant 8 : index
    %c0_523 = arith.constant 0 : index
    %c0_524 = arith.constant 0 : index
    %573 = vector.load %arg16[%c8_522, %c0_523, %c0_524] : memref<10x3x1xf32, #tpu.memory_space<vmem>>, vector<1x3x1xf32>
    %574 = vector.shape_cast %573 : vector<1x3x1xf32> to vector<3x1xf32>
    %575 = vector.broadcast %574 : vector<3x1xf32> to vector<3x128xf32>
    %576 = arith.addf %572, %575 : vector<3x128xf32>
    %cst_525 = arith.constant 0.000000e+00 : f32
    %577 = vector.broadcast %cst_525 : f32 to vector<3x128xf32>
    %578 = arith.cmpf oge, %576, %577 : vector<3x128xf32>
    %579 = vector.broadcast %568 : f32 to vector<3x128xf32>
    %580 = arith.mulf %579, %576 : vector<3x128xf32>
    %581 = arith.select %578, %576, %580 : vector<3x128xi1>, vector<3x128xf32>
    %c0_526 = arith.constant 0 : index
    %c0_527 = arith.constant 0 : index
    %582 = vector.load %arg5[%c0_526, %c0_527] : memref<128x2xf32, #tpu.memory_space<vmem>>, vector<128x2xf32>
    %cst_528 = arith.constant dense<0.000000e+00> : vector<3x2xf32>
    %583 = tpu.matmul %581, %582, %cst_528 {dimension_numbers = #tpu.dot_dimension_numbers<[1], [0], [0], [1], [0, 0, 1, 1], [], []>} : vector<3x128xf32>, vector<128x2xf32>, vector<3x2xf32> -> vector<3x2xf32>
    %c0_529 = arith.constant 0 : index
    %c0_530 = arith.constant 0 : index
    %584 = vector.load %arg6[%c0_529, %c0_530] : memref<2x128xf32, #tpu.memory_space<vmem>>, vector<2x128xf32>
    %cst_531 = arith.constant dense<0.000000e+00> : vector<3x128xf32>
    %585 = tpu.matmul %583, %584, %cst_531 {dimension_numbers = #tpu.dot_dimension_numbers<[1], [0], [0], [1], [0, 0, 1, 1], [], []>} : vector<3x2xf32>, vector<2x128xf32>, vector<3x128xf32> -> vector<3x128xf32>
    %c0_532 = arith.constant 0 : index
    %c0_533 = arith.constant 0 : index
    %586 = vector.load %arg3[%c0_532, %c0_533] : memref<128x128xf32, #tpu.memory_space<vmem>>, vector<128x128xf32>
    %cst_534 = arith.constant dense<0.000000e+00> : vector<20x128xf32>
    %587 = tpu.matmul %565, %586, %cst_534 {dimension_numbers = #tpu.dot_dimension_numbers<[1], [0], [0], [1], [0, 0, 1, 1], [], []>} : vector<20x128xf32>, vector<128x128xf32>, vector<20x128xf32> -> vector<20x128xf32>
    %c0_535 = arith.constant 0 : index
    %c0_536 = arith.constant 0 : index
    %588 = vector.load %arg28[%c0_535, %c0_536] : memref<64x128xf32, #tpu.memory_space<vmem>>, vector<20x128xf32>
    tpu.vector_store %arg28[%c0_535, %c0_536], %587 {strides = array<i32>} : memref<64x128xf32, #tpu.memory_space<vmem>>, vector<20x128xf32>,
    %c0_537 = arith.constant 0 : index
    %c0_538 = arith.constant 0 : index
    %589 = vector.load %arg3[%c0_537, %c0_538] : memref<128x128xf32, #tpu.memory_space<vmem>>, vector<128x128xf32>
    %cst_539 = arith.constant dense<0.000000e+00> : vector<3x128xf32>
    %590 = tpu.matmul %585, %589, %cst_539 {dimension_numbers = #tpu.dot_dimension_numbers<[1], [0], [0], [1], [0, 0, 1, 1], [], []>} : vector<3x128xf32>, vector<128x128xf32>, vector<3x128xf32> -> vector<3x128xf32>
    %c40_540 = arith.constant 40 : index
    %c0_541 = arith.constant 0 : index
    %591 = vector.load %arg28[%c40_540, %c0_541] : memref<64x128xf32, #tpu.memory_space<vmem>>, vector<3x128xf32>
    tpu.vector_store %arg28[%c40_540, %c0_541], %590 {strides = array<i32>} : memref<64x128xf32, #tpu.memory_space<vmem>>, vector<3x128xf32>,
    %c8_542 = arith.constant 8 : index
    %c0_543 = arith.constant 0 : index
    %c0_544 = arith.constant 0 : index
    %592 = vector.load %arg17[%c8_542, %c0_543, %c0_544] : memref<10x15x3xf32, #tpu.memory_space<vmem>>, vector<1x15x3xf32>
    %593 = vector.shape_cast %592 : vector<1x15x3xf32> to vector<15x3xf32>
    %c0_545 = arith.constant 0 : index
    %c0_546 = arith.constant 0 : index
    %594 = vector.load %arg2[%c0_545, %c0_546] : memref<3x128xf32, #tpu.memory_space<vmem>>, vector<3x128xf32>
    %cst_547 = arith.constant dense<0.000000e+00> : vector<15x128xf32>
    %595 = tpu.matmul %593, %594, %cst_547 {dimension_numbers = #tpu.dot_dimension_numbers<[1], [0], [0], [1], [0, 0, 1, 1], [], []>} : vector<15x3xf32>, vector<3x128xf32>, vector<15x128xf32> -> vector<15x128xf32>
    %c8_548 = arith.constant 8 : index
    %c0_549 = arith.constant 0 : index
    %c0_550 = arith.constant 0 : index
    %596 = vector.load %arg18[%c8_548, %c0_549, %c0_550] : memref<10x15x1xf32, #tpu.memory_space<vmem>>, vector<1x15x1xf32>
    %597 = vector.shape_cast %596 : vector<1x15x1xf32> to vector<15x1xf32>
    %598 = vector.broadcast %597 : vector<15x1xf32> to vector<15x128xf32>
    %599 = arith.addf %595, %598 : vector<15x128xf32>
    %cst_551 = arith.constant 0.000000e+00 : f32
    %600 = vector.broadcast %cst_551 : f32 to vector<15x128xf32>
    %601 = arith.cmpf oge, %599, %600 : vector<15x128xf32>
    %602 = vector.broadcast %569 : f32 to vector<15x128xf32>
    %603 = arith.mulf %602, %599 : vector<15x128xf32>
    %604 = arith.select %601, %599, %603 : vector<15x128xi1>, vector<15x128xf32>
    %c48_552 = arith.constant 48 : index
    %c0_553 = arith.constant 0 : index
    %605 = vector.load %arg28[%c48_552, %c0_553] : memref<64x128xf32, #tpu.memory_space<vmem>>, vector<15x128xf32>
    tpu.vector_store %arg28[%c48_552, %c0_553], %604 {strides = array<i32>} : memref<64x128xf32, #tpu.memory_space<vmem>>, vector<15x128xf32>,
    %c8_554 = arith.constant 8 : index
    %c0_555 = arith.constant 0 : index
    %c0_556 = arith.constant 0 : index
    %606 = vector.load %arg19[%c8_554, %c0_555, %c0_556] : memref<10x15x64xf32, #tpu.memory_space<vmem>>, vector<1x15x64xf32>
    %607 = vector.shape_cast %606 : vector<1x15x64xf32> to vector<15x64xf32>
    %c0_557 = arith.constant 0 : index
    %c0_558 = arith.constant 0 : index
    %608 = vector.load %arg28[%c0_557, %c0_558] : memref<64x128xf32, #tpu.memory_space<vmem>>, vector<64x128xf32>
    %cst_559 = arith.constant dense<0.000000e+00> : vector<15x128xf32>
    %609 = tpu.matmul %607, %608, %cst_559 {dimension_numbers = #tpu.dot_dimension_numbers<[1], [0], [0], [1], [0, 0, 1, 1], [], []>} : vector<15x64xf32>, vector<64x128xf32>, vector<15x128xf32> -> vector<15x128xf32>
    %cst_560 = arith.constant 0.000000e+00 : f32
    %610 = vector.broadcast %cst_560 : f32 to vector<15x128xf32>
    %611 = arith.cmpf oge, %609, %610 : vector<15x128xf32>
    %612 = vector.broadcast %566 : f32 to vector<15x128xf32>
    %613 = arith.mulf %612, %609 : vector<15x128xf32>
    %614 = arith.select %611, %609, %613 : vector<15x128xi1>, vector<15x128xf32>
    %c0_561 = arith.constant 0 : index
    %c0_562 = arith.constant 0 : index
    %615 = vector.load %arg4[%c0_561, %c0_562] : memref<128x128xf32, #tpu.memory_space<vmem>>, vector<128x128xf32>
    %cst_563 = arith.constant dense<0.000000e+00> : vector<15x128xf32>
    %616 = tpu.matmul %614, %615, %cst_563 {dimension_numbers = #tpu.dot_dimension_numbers<[1], [0], [0], [1], [0, 0, 1, 1], [], []>} : vector<15x128xf32>, vector<128x128xf32>, vector<15x128xf32> -> vector<15x128xf32>
    %c0_564 = arith.constant 0 : index
    %c0_565 = arith.constant 0 : index
    %617 = vector.load %arg27[%c0_564, %c0_565] : memref<64x128xf32, #tpu.memory_space<vmem>>, vector<20x128xf32>
    tpu.vector_store %arg27[%c0_564, %c0_565], %565 {strides = array<i32>} : memref<64x128xf32, #tpu.memory_space<vmem>>, vector<20x128xf32>,
    %c40_566 = arith.constant 40 : index
    %c0_567 = arith.constant 0 : index
    %618 = vector.load %arg27[%c40_566, %c0_567] : memref<64x128xf32, #tpu.memory_space<vmem>>, vector<15x128xf32>
    tpu.vector_store %arg27[%c40_566, %c0_567], %616 {strides = array<i32>} : memref<64x128xf32, #tpu.memory_space<vmem>>, vector<15x128xf32>,
    %c56_568 = arith.constant 56 : index
    %c0_569 = arith.constant 0 : index
    %619 = vector.load %arg27[%c56_568, %c0_569] : memref<64x128xf32, #tpu.memory_space<vmem>>, vector<3x128xf32>
    tpu.vector_store %arg27[%c56_568, %c0_569], %585 {strides = array<i32>} : memref<64x128xf32, #tpu.memory_space<vmem>>, vector<3x128xf32>,
    %c8_570 = arith.constant 8 : index
    %c0_571 = arith.constant 0 : index
    %c0_572 = arith.constant 0 : index
    %620 = vector.load %arg20[%c8_570, %c0_571, %c0_572] : memref<10x20x64xf32, #tpu.memory_space<vmem>>, vector<1x20x64xf32>
    %621 = vector.shape_cast %620 : vector<1x20x64xf32> to vector<20x64xf32>
    %c0_573 = arith.constant 0 : index
    %c0_574 = arith.constant 0 : index
    %622 = vector.load %arg27[%c0_573, %c0_574] : memref<64x128xf32, #tpu.memory_space<vmem>>, vector<64x128xf32>
    %cst_575 = arith.constant dense<0.000000e+00> : vector<20x128xf32>
    %623 = tpu.matmul %621, %622, %cst_575 {dimension_numbers = #tpu.dot_dimension_numbers<[1], [0], [0], [1], [0, 0, 1, 1], [], []>} : vector<20x64xf32>, vector<64x128xf32>, vector<20x128xf32> -> vector<20x128xf32>
    %cst_576 = arith.constant 0.000000e+00 : f32
    %624 = vector.broadcast %cst_576 : f32 to vector<20x128xf32>
    %625 = arith.cmpf oge, %623, %624 : vector<20x128xf32>
    %626 = vector.broadcast %567 : f32 to vector<20x128xf32>
    %627 = arith.mulf %626, %623 : vector<20x128xf32>
    %628 = arith.select %625, %623, %627 : vector<20x128xi1>, vector<20x128xf32>
    %629 = arith.addf %628, %502 : vector<20x128xf32>
    %c40_577 = arith.constant 40 : index
    %630 = memref.load %arg25[%c40_577] : memref<45xf32, #tpu.memory_space<smem>>
    %c41 = arith.constant 41 : index
    %631 = memref.load %arg25[%c41] : memref<45xf32, #tpu.memory_space<smem>>
    %c42 = arith.constant 42 : index
    %632 = memref.load %arg25[%c42] : memref<45xf32, #tpu.memory_space<smem>>
    %c43 = arith.constant 43 : index
    %633 = memref.load %arg25[%c43] : memref<45xf32, #tpu.memory_space<smem>>
    %c9_578 = arith.constant 9 : index
    %c0_579 = arith.constant 0 : index
    %c0_580 = arith.constant 0 : index
    %634 = vector.load %arg15[%c9_578, %c0_579, %c0_580] : memref<10x3x20xf32, #tpu.memory_space<vmem>>, vector<1x3x20xf32>
    %635 = vector.shape_cast %634 : vector<1x3x20xf32> to vector<3x20xf32>
    %cst_581 = arith.constant dense<0.000000e+00> : vector<3x128xf32>
    %636 = tpu.matmul %635, %629, %cst_581 {dimension_numbers = #tpu.dot_dimension_numbers<[1], [0], [0], [1], [0, 0, 1, 1], [], []>} : vector<3x20xf32>, vector<20x128xf32>, vector<3x128xf32> -> vector<3x128xf32>
    %c9_582 = arith.constant 9 : index
    %c0_583 = arith.constant 0 : index
    %c0_584 = arith.constant 0 : index
    %637 = vector.load %arg16[%c9_582, %c0_583, %c0_584] : memref<10x3x1xf32, #tpu.memory_space<vmem>>, vector<1x3x1xf32>
    %638 = vector.shape_cast %637 : vector<1x3x1xf32> to vector<3x1xf32>
    %639 = vector.broadcast %638 : vector<3x1xf32> to vector<3x128xf32>
    %640 = arith.addf %636, %639 : vector<3x128xf32>
    %cst_585 = arith.constant 0.000000e+00 : f32
    %641 = vector.broadcast %cst_585 : f32 to vector<3x128xf32>
    %642 = arith.cmpf oge, %640, %641 : vector<3x128xf32>
    %643 = vector.broadcast %632 : f32 to vector<3x128xf32>
    %644 = arith.mulf %643, %640 : vector<3x128xf32>
    %645 = arith.select %642, %640, %644 : vector<3x128xi1>, vector<3x128xf32>
    %c0_586 = arith.constant 0 : index
    %c0_587 = arith.constant 0 : index
    %646 = vector.load %arg5[%c0_586, %c0_587] : memref<128x2xf32, #tpu.memory_space<vmem>>, vector<128x2xf32>
    %cst_588 = arith.constant dense<0.000000e+00> : vector<3x2xf32>
    %647 = tpu.matmul %645, %646, %cst_588 {dimension_numbers = #tpu.dot_dimension_numbers<[1], [0], [0], [1], [0, 0, 1, 1], [], []>} : vector<3x128xf32>, vector<128x2xf32>, vector<3x2xf32> -> vector<3x2xf32>
    %c0_589 = arith.constant 0 : index
    %c0_590 = arith.constant 0 : index
    %648 = vector.load %arg6[%c0_589, %c0_590] : memref<2x128xf32, #tpu.memory_space<vmem>>, vector<2x128xf32>
    %cst_591 = arith.constant dense<0.000000e+00> : vector<3x128xf32>
    %649 = tpu.matmul %647, %648, %cst_591 {dimension_numbers = #tpu.dot_dimension_numbers<[1], [0], [0], [1], [0, 0, 1, 1], [], []>} : vector<3x2xf32>, vector<2x128xf32>, vector<3x128xf32> -> vector<3x128xf32>
    %c0_592 = arith.constant 0 : index
    %c0_593 = arith.constant 0 : index
    %650 = vector.load %arg3[%c0_592, %c0_593] : memref<128x128xf32, #tpu.memory_space<vmem>>, vector<128x128xf32>
    %cst_594 = arith.constant dense<0.000000e+00> : vector<20x128xf32>
    %651 = tpu.matmul %629, %650, %cst_594 {dimension_numbers = #tpu.dot_dimension_numbers<[1], [0], [0], [1], [0, 0, 1, 1], [], []>} : vector<20x128xf32>, vector<128x128xf32>, vector<20x128xf32> -> vector<20x128xf32>
    %c0_595 = arith.constant 0 : index
    %c0_596 = arith.constant 0 : index
    %652 = vector.load %arg28[%c0_595, %c0_596] : memref<64x128xf32, #tpu.memory_space<vmem>>, vector<20x128xf32>
    tpu.vector_store %arg28[%c0_595, %c0_596], %651 {strides = array<i32>} : memref<64x128xf32, #tpu.memory_space<vmem>>, vector<20x128xf32>,
    %c0_597 = arith.constant 0 : index
    %c0_598 = arith.constant 0 : index
    %653 = vector.load %arg3[%c0_597, %c0_598] : memref<128x128xf32, #tpu.memory_space<vmem>>, vector<128x128xf32>
    %cst_599 = arith.constant dense<0.000000e+00> : vector<3x128xf32>
    %654 = tpu.matmul %649, %653, %cst_599 {dimension_numbers = #tpu.dot_dimension_numbers<[1], [0], [0], [1], [0, 0, 1, 1], [], []>} : vector<3x128xf32>, vector<128x128xf32>, vector<3x128xf32> -> vector<3x128xf32>
    %c40_600 = arith.constant 40 : index
    %c0_601 = arith.constant 0 : index
    %655 = vector.load %arg28[%c40_600, %c0_601] : memref<64x128xf32, #tpu.memory_space<vmem>>, vector<3x128xf32>
    tpu.vector_store %arg28[%c40_600, %c0_601], %654 {strides = array<i32>} : memref<64x128xf32, #tpu.memory_space<vmem>>, vector<3x128xf32>,
    %c9_602 = arith.constant 9 : index
    %c0_603 = arith.constant 0 : index
    %c0_604 = arith.constant 0 : index
    %656 = vector.load %arg17[%c9_602, %c0_603, %c0_604] : memref<10x15x3xf32, #tpu.memory_space<vmem>>, vector<1x15x3xf32>
    %657 = vector.shape_cast %656 : vector<1x15x3xf32> to vector<15x3xf32>
    %c0_605 = arith.constant 0 : index
    %c0_606 = arith.constant 0 : index
    %658 = vector.load %arg2[%c0_605, %c0_606] : memref<3x128xf32, #tpu.memory_space<vmem>>, vector<3x128xf32>
    %cst_607 = arith.constant dense<0.000000e+00> : vector<15x128xf32>
    %659 = tpu.matmul %657, %658, %cst_607 {dimension_numbers = #tpu.dot_dimension_numbers<[1], [0], [0], [1], [0, 0, 1, 1], [], []>} : vector<15x3xf32>, vector<3x128xf32>, vector<15x128xf32> -> vector<15x128xf32>
    %c9_608 = arith.constant 9 : index
    %c0_609 = arith.constant 0 : index
    %c0_610 = arith.constant 0 : index
    %660 = vector.load %arg18[%c9_608, %c0_609, %c0_610] : memref<10x15x1xf32, #tpu.memory_space<vmem>>, vector<1x15x1xf32>
    %661 = vector.shape_cast %660 : vector<1x15x1xf32> to vector<15x1xf32>
    %662 = vector.broadcast %661 : vector<15x1xf32> to vector<15x128xf32>
    %663 = arith.addf %659, %662 : vector<15x128xf32>
    %cst_611 = arith.constant 0.000000e+00 : f32
    %664 = vector.broadcast %cst_611 : f32 to vector<15x128xf32>
    %665 = arith.cmpf oge, %663, %664 : vector<15x128xf32>
    %666 = vector.broadcast %633 : f32 to vector<15x128xf32>
    %667 = arith.mulf %666, %663 : vector<15x128xf32>
    %668 = arith.select %665, %663, %667 : vector<15x128xi1>, vector<15x128xf32>
    %c48_612 = arith.constant 48 : index
    %c0_613 = arith.constant 0 : index
    %669 = vector.load %arg28[%c48_612, %c0_613] : memref<64x128xf32, #tpu.memory_space<vmem>>, vector<15x128xf32>
    tpu.vector_store %arg28[%c48_612, %c0_613], %668 {strides = array<i32>} : memref<64x128xf32, #tpu.memory_space<vmem>>, vector<15x128xf32>,
    %c9_614 = arith.constant 9 : index
    %c0_615 = arith.constant 0 : index
    %c0_616 = arith.constant 0 : index
    %670 = vector.load %arg19[%c9_614, %c0_615, %c0_616] : memref<10x15x64xf32, #tpu.memory_space<vmem>>, vector<1x15x64xf32>
    %671 = vector.shape_cast %670 : vector<1x15x64xf32> to vector<15x64xf32>
    %c0_617 = arith.constant 0 : index
    %c0_618 = arith.constant 0 : index
    %672 = vector.load %arg28[%c0_617, %c0_618] : memref<64x128xf32, #tpu.memory_space<vmem>>, vector<64x128xf32>
    %cst_619 = arith.constant dense<0.000000e+00> : vector<15x128xf32>
    %673 = tpu.matmul %671, %672, %cst_619 {dimension_numbers = #tpu.dot_dimension_numbers<[1], [0], [0], [1], [0, 0, 1, 1], [], []>} : vector<15x64xf32>, vector<64x128xf32>, vector<15x128xf32> -> vector<15x128xf32>
    %cst_620 = arith.constant 0.000000e+00 : f32
    %674 = vector.broadcast %cst_620 : f32 to vector<15x128xf32>
    %675 = arith.cmpf oge, %673, %674 : vector<15x128xf32>
    %676 = vector.broadcast %630 : f32 to vector<15x128xf32>
    %677 = arith.mulf %676, %673 : vector<15x128xf32>
    %678 = arith.select %675, %673, %677 : vector<15x128xi1>, vector<15x128xf32>
    %c0_621 = arith.constant 0 : index
    %c0_622 = arith.constant 0 : index
    %679 = vector.load %arg4[%c0_621, %c0_622] : memref<128x128xf32, #tpu.memory_space<vmem>>, vector<128x128xf32>
    %cst_623 = arith.constant dense<0.000000e+00> : vector<15x128xf32>
    %680 = tpu.matmul %678, %679, %cst_623 {dimension_numbers = #tpu.dot_dimension_numbers<[1], [0], [0], [1], [0, 0, 1, 1], [], []>} : vector<15x128xf32>, vector<128x128xf32>, vector<15x128xf32> -> vector<15x128xf32>
    %c0_624 = arith.constant 0 : index
    %c0_625 = arith.constant 0 : index
    %681 = vector.load %arg27[%c0_624, %c0_625] : memref<64x128xf32, #tpu.memory_space<vmem>>, vector<20x128xf32>
    tpu.vector_store %arg27[%c0_624, %c0_625], %629 {strides = array<i32>} : memref<64x128xf32, #tpu.memory_space<vmem>>, vector<20x128xf32>,
    %c40_626 = arith.constant 40 : index
    %c0_627 = arith.constant 0 : index
    %682 = vector.load %arg27[%c40_626, %c0_627] : memref<64x128xf32, #tpu.memory_space<vmem>>, vector<15x128xf32>
    tpu.vector_store %arg27[%c40_626, %c0_627], %680 {strides = array<i32>} : memref<64x128xf32, #tpu.memory_space<vmem>>, vector<15x128xf32>,
    %c56_628 = arith.constant 56 : index
    %c0_629 = arith.constant 0 : index
    %683 = vector.load %arg27[%c56_628, %c0_629] : memref<64x128xf32, #tpu.memory_space<vmem>>, vector<3x128xf32>
    tpu.vector_store %arg27[%c56_628, %c0_629], %649 {strides = array<i32>} : memref<64x128xf32, #tpu.memory_space<vmem>>, vector<3x128xf32>,
    %c9_630 = arith.constant 9 : index
    %c0_631 = arith.constant 0 : index
    %c0_632 = arith.constant 0 : index
    %684 = vector.load %arg20[%c9_630, %c0_631, %c0_632] : memref<10x20x64xf32, #tpu.memory_space<vmem>>, vector<1x20x64xf32>
    %685 = vector.shape_cast %684 : vector<1x20x64xf32> to vector<20x64xf32>
    %c0_633 = arith.constant 0 : index
    %c0_634 = arith.constant 0 : index
    %686 = vector.load %arg27[%c0_633, %c0_634] : memref<64x128xf32, #tpu.memory_space<vmem>>, vector<64x128xf32>
    %cst_635 = arith.constant dense<0.000000e+00> : vector<20x128xf32>
    %687 = tpu.matmul %685, %686, %cst_635 {dimension_numbers = #tpu.dot_dimension_numbers<[1], [0], [0], [1], [0, 0, 1, 1], [], []>} : vector<20x64xf32>, vector<64x128xf32>, vector<20x128xf32> -> vector<20x128xf32>
    %cst_636 = arith.constant 0.000000e+00 : f32
    %688 = vector.broadcast %cst_636 : f32 to vector<20x128xf32>
    %689 = arith.cmpf oge, %687, %688 : vector<20x128xf32>
    %690 = vector.broadcast %631 : f32 to vector<20x128xf32>
    %691 = arith.mulf %690, %687 : vector<20x128xf32>
    %692 = arith.select %689, %687, %691 : vector<20x128xi1>, vector<20x128xf32>
    %c0_637 = arith.constant 0 : index
    %c0_638 = arith.constant 0 : index
    %693 = vector.load %arg5[%c0_637, %c0_638] : memref<128x2xf32, #tpu.memory_space<vmem>>, vector<128x2xf32>
    %cst_639 = arith.constant dense<0.000000e+00> : vector<20x2xf32>
    %694 = tpu.matmul %692, %693, %cst_639 {dimension_numbers = #tpu.dot_dimension_numbers<[1], [0], [0], [1], [0, 0, 1, 1], [], []>} : vector<20x128xf32>, vector<128x2xf32>, vector<20x2xf32> -> vector<20x2xf32>
    %c0_640 = arith.constant 0 : index
    %c0_641 = arith.constant 0 : index
    %695 = vector.load %arg21[%c0_640, %c0_641] : memref<20x20xf32, #tpu.memory_space<vmem>>, vector<20x20xf32>
    %cst_642 = arith.constant dense<0.000000e+00> : vector<20x2xf32>
    %696 = tpu.matmul %695, %694, %cst_642 {dimension_numbers = #tpu.dot_dimension_numbers<[1], [0], [0], [1], [0, 0, 1, 1], [], []>} : vector<20x20xf32>, vector<20x2xf32>, vector<20x2xf32> -> vector<20x2xf32>
    %c0_643 = arith.constant 0 : index
    %c0_644 = arith.constant 0 : index
    %697 = vector.load %arg22[%c0_643, %c0_644] : memref<20x1xf32, #tpu.memory_space<vmem>>, vector<20x1xf32>
    %698 = vector.broadcast %697 : vector<20x1xf32> to vector<20x2xf32>
    %699 = arith.addf %696, %698 : vector<20x2xf32>
    %c44 = arith.constant 44 : index
    %700 = memref.load %arg25[%c44] : memref<45xf32, #tpu.memory_space<smem>>
    %cst_645 = arith.constant 0.000000e+00 : f32
    %701 = vector.broadcast %cst_645 : f32 to vector<20x2xf32>
    %702 = arith.cmpf oge, %699, %701 : vector<20x2xf32>
    %703 = vector.broadcast %700 : f32 to vector<20x2xf32>
    %704 = arith.mulf %703, %699 : vector<20x2xf32>
    %705 = arith.select %702, %699, %704 : vector<20x2xi1>, vector<20x2xf32>
    %c0_646 = arith.constant 0 : index
    %c0_647 = arith.constant 0 : index
    %706 = vector.load %arg23[%c0_646, %c0_647] : memref<1x20xf32, #tpu.memory_space<vmem>>, vector<1x20xf32>
    %cst_648 = arith.constant dense<0.000000e+00> : vector<1x2xf32>
    %707 = tpu.matmul %706, %705, %cst_648 {dimension_numbers = #tpu.dot_dimension_numbers<[1], [0], [0], [1], [0, 0, 1, 1], [], []>} : vector<1x20xf32>, vector<20x2xf32>, vector<1x2xf32> -> vector<1x2xf32>
    %c0_649 = arith.constant 0 : index
    %c0_650 = arith.constant 0 : index
    %708 = vector.load %arg24[%c0_649, %c0_650] : memref<1x1xf32, #tpu.memory_space<vmem>>, vector<1x1xf32>
    %709 = vector.broadcast %708 : vector<1x1xf32> to vector<1x2xf32>
    %710 = arith.addf %707, %709 : vector<1x2xf32>
    %cst_651 = arith.constant 5.000000e+00 : f32
    %711 = vector.broadcast %cst_651 : f32 to vector<1x2xf32>
    %712 = arith.mulf %711, %710 : vector<1x2xf32>
    %c0_652 = arith.constant 0 : index
    %c0_653 = arith.constant 0 : index
    %713 = vector.load %arg26[%c0_652, %c0_653] : memref<1x2xf32, #tpu.memory_space<vmem>>, vector<1x2xf32>
    tpu.vector_store %arg26[%c0_652, %c0_653], %712 {strides = array<i32>} : memref<1x2xf32, #tpu.memory_space<vmem>>, vector<1x2xf32>,
    return
  }
}

</mosaic_0001>

<bundles_post_ra>
// kernel: forward.1
= control target key start
LH: loop header
LB: loop body
LE: loop exit
PB: predicated region body
PF: predicated region fallthrough
CT: control target
= control target key end

     0   :  { %s17317_s0 = inlined_call_operand.vmem [shape: f32[3,128], index: 0, kind: input, shape index: {}]   ;;  %s17318_s1 = inlined_call_operand.vmem [shape: f32[3,128], index: 1, kind: input, shape index: {}]   ;;  %s17319_s2 = inlined_call_operand.vmem [shape: f32[3,128], index: 2, kind: input, shape index: {}]   ;;  %s17320_s3 = inlined_call_operand.vmem [shape: f32[128,128], index: 3, kind: input, shape index: {}]   ;;  %s17321_s4 = inlined_call_operand.vmem [shape: f32[128,128], index: 4, kind: input, shape index: {}]   ;;  %s17322_s5 = inlined_call_operand.vmem [shape: f32[128,2], index: 5, kind: input, shape index: {}]   ;;  %s17323_s6 = inlined_call_operand.vmem [shape: f32[2,128], index: 6, kind: input, shape index: {}]   ;;  %s17324_s7 = inlined_call_operand.vmem [shape: f32[30,3], index: 7, kind: input, shape index: {}]   ;;  %s17325_s8 = inlined_call_operand.vmem [shape: f32[30,1], index: 8, kind: input, shape index: {}]   ;;  %s17326_s9 = inlined_call_operand.vmem [shape: f32[10,30], index: 9, kind: input, shape index: {}]   ;;  %s17327_s10 = inlined_call_operand.vmem [shape: f32[10,1], index: 10, kind: input, shape index: {}]   ;;  %s17328_s11 = inlined_call_operand.vmem [shape: f32[30,3], index: 11, kind: input, shape index: {}]   ;;  %s17329_s12 = inlined_call_operand.vmem [shape: f32[30,1], index: 12, kind: input, shape index: {}]   ;;  %s17330_s13 = inlined_call_operand.vmem [shape: f32[10,30], index: 13, kind: input, shape index: {}]   ;;  %s17331_s14 = inlined_call_operand.vmem [shape: f32[10,1], index: 14, kind: input, shape index: {}]   ;;  %s17332_s15 = inlined_call_operand.vmem [shape: f32[10,3,20], index: 15, kind: input, shape index: {}]   ;;  %s17333_s16 = inlined_call_operand.vmem [shape: f32[10,3,1], index: 16, kind: input, shape index: {}]   ;;  %s17334_s17 = inlined_call_operand.vmem [shape: f32[10,15,3], index: 17, kind: input, shape index: {}]   ;;  %s17335_s18 = inlined_call_operand.vmem [shape: f32[10,15,1], index: 18, kind: input, shape index: {}]   ;;  %s17336_s19 = inlined_call_operand.vmem [shape: f32[10,15,64], index: 19, kind: input, shape index: {}]   ;;  %s17337_s20 = inlined_call_operand.vmem [shape: f32[10,20,64], index: 20, kind: input, shape index: {}]   ;;  %s17338_s21 = inlined_call_operand.vmem [shape: f32[20,20], index: 21, kind: input, shape index: {}]   ;;  %s17339_s22 = inlined_call_operand.vmem [shape: f32[20,1], index: 22, kind: input, shape index: {}]   ;;  %s17340_s23 = inlined_call_operand.vmem [shape: f32[1,20], index: 23, kind: input, shape index: {}]   ;;  %s17341_s24 = inlined_call_operand.<no memory space> [shape: f32[1,1], index: 24, kind: input, shape index: {}]   ;;  %s17342_s25 = inlined_call_operand.vmem [shape: f32[45], index: 25, kind: input, shape index: {}]   ;;  %s17343_s26 = inlined_call_operand.hbm [shape: f32[1,2], index: 26, kind: output, shape index: {}]  }
   0x1   :  { %17353 = sst [smem:[#allocation11_spill]] %s17317_s0  ;;  %v31_v0 = vstv %s17341_s24 }
   0x2   :  { %17354 = sst [smem:[#allocation12_spill]] %s17318_s1  ;;  %32 = vst [vmem:[#allocation4] sm:$0x1] %v31_v0 }
   0x3   :  { %17355 = sst [smem:[#allocation13_spill]] %s17319_s2 }
   0x4   :  { %17356 = sst [smem:[#allocation14_spill]] %s17320_s3 }
   0x5   :  { %17357 = sst [smem:[#allocation15_spill]] %s17321_s4 }
   0x6   :  { %17358 = sst [smem:[#allocation16_spill]] %s17322_s5 }
   0x7   :  { %17359 = sst [smem:[#allocation17_spill]] %s17323_s6 }
   0x8   :  { %17360 = sst [smem:[#allocation18_spill]] %s17324_s7 }
   0x9   :  { %17361 = sst [smem:[#allocation19_spill]] %s17325_s8 }
   0xa   :  { %17362 = sst [smem:[#allocation20_spill]] %s17326_s9 }
   0xb   :  { %17363 = sst [smem:[#allocation21_spill]] %s17327_s10 }
   0xc   :  { %33 = vsyncpa [#allocation7], 0 }
   0xd   :  { %34 = vsyncpa [#allocation6], 0  ;;  %s91_s8 = sshll.u32 %s17342_s25, 4  ;;  %s92_s8 = int_to_ptr.vmem [resolvable:$true] %s91_s8 }
   0xe   :  { %s13242_s4 = scalar_lea.vmem %s92_s8, 16  ;;  %p13247_p1 = scmp.lt.s32.totalorder %s92_s8, %s92_s8 }
   0xf   :  { %p13243_p0 = scmp.ne.s32.totalorder %s92_s8, %s13242_s4  ;;  %p13248_p2 = scmp.lt.s32.totalorder %s13242_s4, %s13242_s4 }
  0x11   :  { %p13249_p3 = por %p13248_p2, %p13247_p1 }
  0x13   :  { %p13250_p4 = pnand %p13249_p3, %p13243_p0 }
  0x15   :  { %13253 = shalt.err (!%p13250_p4)
}
  0x16   :  { %s13278_s29 = smov [#allocation5]  }
  0x17   :  { %94 = dma.vmem_to_smem %s92_s8, 16, %s13278_s29, [#allocation7]  }
  0x18   :  { %13274 = dma.done.wait [#allocation7], 16  }
  0x19   :  { %13275 = vsyncadd [#allocation7], 4294967280 }
  0x1a   :  { %98 = sfence }
  0x1b   :  { %vm141_vm0 = vcmask 1042432   ;;  %s17364_s9 = sld [smem:[#allocation12_spill]]  ;;  %v13279_v3 = vmov 0   ;;  %vm128_vm1 = vcmask 23552   ;;  %v352_v4 = vld [vmem:[%s17328_s11] sm:$0xff]  ;;  %v353_v9 = vld [vmem:[%s17328_s11 + $0x8] sm:$0xff] }
  0x1c   :  { %s17365_s2 = sld [smem:[#allocation11_spill]]  ;;  %13241 = vset.pattern.permute.xlu1 %v13279_v3  ;;  %13240 = vset.pattern.permute.xlu0 %v13279_v3  ;;  %v354_v10 = vld [vmem:[%s17328_s11 + $0x10] sm:$0xff]  ;;  %v355_v15 = vld [vmem:[%s17328_s11 + $0x18] sm:$0x3f]  ;;  %v358_v19 = vld [vmem:[%s17329_s12 + $0x8] sm:$0xff]  ;;  %vm258_vm2 = vcmask 244736  }
  0x1d   :  { %s17366_s27 = sld [smem:[#allocation19_spill]]  ;;  %11027 = vmatprep.mubr.msk.f32.mxu0 %vm128_vm1, %v352_v4  ;;  %v360_v16 = vld [vmem:[%s17329_s12 + $0x18] sm:$0x3f]  ;;  %v359_v17 = vld [vmem:[%s17329_s12 + $0x10] sm:$0xff]  ;;  %v357_v21 = vld [vmem:[%s17329_s12] sm:$0xff]  ;;  %vm265_vm4 = vcmask 1045504  }
  0x1e   :  { %s17367_s4 = sld [smem:[#allocation18_spill]]  ;;  %v724_v22 = vld [vmem:[%s17333_s16] sm:$0x7]  ;;  %v498_v24 = vld [vmem:[%s17331_s14 + $0x8] sm:$0x3]  ;;  %v9689_v29 = vld [vmem:[%s17335_s18 + $0x10] sm:$0xff] }
  0x1f   :  { %s17368_s25 = sld [smem:[#allocation21_spill]]  ;;  %v497_v23 = vld [vmem:[%s17331_s14] sm:$0xff]  ;;  %v1167_v25 = vld [vmem:[%s17335_s18 + $0x8] sm:$0x7f]  ;;  %v9690_v28 = vld [vmem:[%s17335_s18 + $0x18] sm:$0x7f] }
  0x20   :  { %v1166_v26 = vld [vmem:[%s17335_s18] sm:$0xff]  ;;  %v9709_v30 = vld [vmem:[%s17333_s16 + $0x8] sm:$0x7]  ;;  %v9736_v33 = vld [vmem:[%s17333_s16 + $0xc] sm:$0x7]  ;;  %s17370_s11 = sld [smem:[#allocation14_spill]] }
  0x21   :  { %v356_v1 = vld [vmem:[%s17364_s9] sm:$0x7]  ;;  %v9682_v27 = vld [vmem:[%s17333_s16 + $0x4] sm:$0x7]  ;;  %v9717_v31 = vld [vmem:[%s17335_s18 + $0x28] sm:$0x7f] }
  0x22   :  { %v103_v2 = vld [vmem:[%s17365_s2] sm:$0x7]  ;;  %11025 = vmatprep.subr.msk.mxu0 %vm141_vm0, %v356_v1  ;;  %v9744_v34 = vld [vmem:[%s17335_s18 + $0x38] sm:$0x7f]  ;;  %v9743_v35 = vld [vmem:[%s17335_s18 + $0x30] sm:$0xff]  ;;  %s17369_s9 = sld [smem:[#allocation20_spill]] }
  0x23   :  { %v107_v5 = vld [vmem:[%s17366_s27 + $0x18] sm:$0x3f]  ;;  %v105_v6 = vld [vmem:[%s17366_s27 + $0x8] sm:$0xff]  ;;  %11006 = vmatprep.subr.msk.mxu1 %vm141_vm0, %v103_v2  ;;  %11026 = vmatpush3.msk.msra.mxu0 %vm141_vm0, %v356_v1  ;;  %v106_v12 = vld [vmem:[%s17366_s27 + $0x10] sm:$0xff]  ;;  %s230_s0 = sld [smem:[#allocation5]]  ;;  %vm734_vm12 = vcmask 1043456  }
  0x24   :  { %v99_v7 = vld [vmem:[%s17367_s4] sm:$0xff]  ;;  %v100_v8 = vld [vmem:[%s17367_s4 + $0x8] sm:$0xff]  ;;  %125 = vperm.xlu0 %13240, %v107_v5   ;;  %115 = vperm.xlu1 %13241, %v105_v6   ;;  %v101_v11 = vld [vmem:[%s17367_s4 + $0x10] sm:$0xff]  ;;  %vm13281_vm13 = vmmov 0   ;;  %s9660_s12 = sld [smem:[#allocation5 + $0x3]] }
  0x25   :  { %11007 = vmatpush3.msk.msra.mxu1 %vm141_vm0, %v103_v2  ;;  %11008 = vmatprep.mubr.msk.f32.mxu1 %vm128_vm1, %v99_v7  ;;  %v104_v13 = vld [vmem:[%s17366_s27] sm:$0xff]  ;;  %v102_v14 = vld [vmem:[%s17367_s4 + $0x18] sm:$0x3f]  ;;  %v247_v18 = vld [vmem:[%s17368_s25 + $0x8] sm:$0x3]  ;;  %s17372_s28 = sld [smem:[#allocation17_spill]] }
  0x26   :  { %11009 = vmatmul.mubr.msk.f32.vlgmr.msra.gmra.mxu1 %vm128_vm1, %v100_v8  ;;  %11028 = vmatmul.mubr.msk.f32.vlgmr.msra.gmra.mxu0 %vm128_vm1, %v353_v9  ;;  %v246_v20 = vld [vmem:[%s17368_s25] sm:$0xff]  ;;  %v9763_v36 = vld [vmem:[%s17333_s16 + $0x10] sm:$0x7]  ;;  %v9771_v37 = vld [vmem:[%s17335_s18 + $0x48] sm:$0x7f]  ;;  %s17371_s25 = sld [smem:[#allocation16_spill]] }
  0x27   :  { %11030 = vmatprep.mubr.msk.f32.mxu0 %vm128_vm1, %v354_v10  ;;  %11011 = vmatprep.mubr.msk.f32.mxu1 %vm128_vm1, %v101_v11  ;;  %v9716_v32 = vld [vmem:[%s17335_s18 + $0x20] sm:$0xff]  ;;  %v9790_v39 = vld [vmem:[%s17333_s16 + $0x14] sm:$0x7]  ;;  %v9798_v40 = vld [vmem:[%s17335_s18 + $0x58] sm:$0x7f]  ;;  %s9663_s8 = sld [smem:[#allocation5 + $0x6]] }
  0x28   :  { %120 = vperm.xlu0 %13240, %v106_v12   ;;  %110 = vperm.xlu1 %13241, %v104_v13   ;;  %v9770_v38 = vld [vmem:[%s17335_s18 + $0x40] sm:$0xff]  ;;  %v9797_v41 = vld [vmem:[%s17335_s18 + $0x50] sm:$0xff]  ;;  %v9817_v42 = vld [vmem:[%s17333_s16 + $0x18] sm:$0x7]  ;;  %s17373_s27 = sld [smem:[#allocation13_spill]] }
  0x29   :  { %v9825_v43 = vld [vmem:[%s17335_s18 + $0x68] sm:$0x7f]  ;;  %v9824_v44 = vld [vmem:[%s17335_s18 + $0x60] sm:$0xff]  ;;  %v9844_v45 = vld [vmem:[%s17333_s16 + $0x1c] sm:$0x7]  ;;  %s9664_s30 = sld [smem:[#allocation5 + $0x7]] }
  0x2a   :  { %11012 = vmatmul.mubr.msk.f32.gmra.mxu1 %vm128_vm1, %v102_v14  ;;  %11031 = vmatmul.mubr.msk.f32.gmra.mxu0 %vm128_vm1, %v355_v15  ;;  %v9852_v46 = vld [vmem:[%s17335_s18 + $0x78] sm:$0x7f]  ;;  %v9851_v47 = vld [vmem:[%s17335_s18 + $0x70] sm:$0xff]  ;;  %v9871_v48 = vld [vmem:[%s17333_s16 + $0x20] sm:$0x7]  ;;  %s9661_s4 = sld [smem:[#allocation5 + $0x4]] }
  0x2b   :  { %v9879_v49 = vld [vmem:[%s17335_s18 + $0x88] sm:$0x7f]  ;;  %v9878_v50 = vld [vmem:[%s17335_s18 + $0x80] sm:$0xff]  ;;  %v9906_v52 = vld [vmem:[%s17335_s18 + $0x98] sm:$0x7f]  ;;  %s9679_s7 = sld [smem:[#allocation5 + $0xa]] }
  0x2c   :  { %378 = vperm.xlu0 %13240, %v360_v16   ;;  %373 = vperm.xlu1 %13241, %v359_v17   ;;  %v9898_v51 = vld [vmem:[%s17333_s16 + $0x24] sm:$0x7]  ;;  %v9905_v53 = vld [vmem:[%s17335_s18 + $0x90] sm:$0xff]  ;;  %v9417_v55 = vld [vmem:[%s17339_s22 + $0x8] sm:$0xff]  ;;  %s9656_s16 = sld [smem:[#allocation5 + $0x2]]  ;;  %v235_v16 = vstv %s230_s0 }
  0x2d   :  { %v9418_v54 = vld [vmem:[%s17339_s22 + $0x10] sm:$0xf]  ;;  %v244_v56 = vld [vmem:[%s17369_s9] sm:$0xff]  ;;  %v13609_v59 = vld [vmem:[%s17370_s11 + $0x78] sm:$0xff]  ;;  %s9706_s2 = sld [smem:[#allocation5 + $0xe]] }
  0x2e   :  { %v9416_v57 = vld [vmem:[%s17339_s22] sm:$0xff]  ;;  %11022 = vmatprep.mubr.msk.f32.mxu1 %vm258_vm2, %v244_v56  ;;  %v13614_v60 = vld [vmem:[%s17370_s11 + $0x70] sm:$0xff]  ;;  %11044 = vmatprep.subr.mxu0 %v13609_v59  ;;  %v13621_v61 = vld [vmem:[%s17370_s11 + $0x68] sm:$0xff]  ;;  %s17374_s22 = sld [smem:[#allocation15_spill]] }
  0x2f   :  { %v9538_v58 = vld [vmem:[#allocation4] sm:$0x1]  ;;  %11045 = vmatpush3.msra.mxu0 %v13609_v59  ;;  %v13635_v63 = vld [vmem:[%s17370_s11 + $0x58] sm:$0xff]  ;;  %v13642_v0 = vld [vmem:[%s17370_s11 + $0x50] sm:$0xff]  ;;  %s9704_s3 = sld [smem:[#allocation5 + $0xc]] }
  0x30   :  { %255 = vperm.xlu0 %13240, %v247_v18   ;;  %368 = vperm.xlu1 %13241, %v358_v19   ;;  %v13628_v62 = vld [vmem:[%s17370_s11 + $0x60] sm:$0xff]  ;;  %v13649_v1 = vld [vmem:[%s17370_s11 + $0x48] sm:$0xff]  ;;  %s9733_s14 = sld [smem:[#allocation5 + $0x12]] }
  0x31   :  { %11046 = vmatprep.subr.mxu0 %v13614_v60  ;;  %v13656_v2 = vld [vmem:[%s17370_s11 + $0x40] sm:$0xff]  ;;  %v13738_v56 = vld [vmem:[%s17370_s11 + $0x8] sm:$0xff]  ;;  %s9731_s1 = sld [smem:[#allocation5 + $0x10]] }
  0x32   :  { %11047 = vmatpush3.msra.mxu0 %v13614_v60  ;;  %s9760_s0 = sld [smem:[#allocation5 + $0x16]] }
  0x33   :  { %11048 = vmatprep.subr.mxu0 %v13621_v61  ;;  %s9787_s24 = sld [smem:[#allocation5 + $0x1a]] }
  0x34   :  { %250 = vperm.xlu0 %13240, %v246_v20   ;;  %363 = vperm.xlu1 %13241, %v357_v21   ;;  %s9785_s18 = sld [smem:[#allocation5 + $0x18]] }
  0x35   :  { %11049 = vmatpush3.msra.mxu0 %v13621_v61  ;;  %s9786_s6 = sld [smem:[#allocation5 + $0x19]] }
  0x36   :  { %11050 = vmatprep.subr.mxu0 %v13628_v62  ;;  %s9814_s10 = sld [smem:[#allocation5 + $0x1e]] }
  0x37   :  { %11051 = vmatpush3.msra.mxu0 %v13628_v62  ;;  %s9812_s29 = sld [smem:[#allocation5 + $0x1c]] }
  0x38   :  { %727 = vperm.xlu0 %13240, %v724_v22   ;;  %501 = vperm.xlu1 %13241, %v497_v23   ;;  %s9866_s5 = sld [smem:[#allocation5 + $0x24]] }
  0x39   :  { %11052 = vmatprep.subr.mxu0 %v13635_v63 }
  0x3a   :  { %11053 = vmatpush3.msra.mxu0 %v13635_v63 }
  0x3b   :  { %11054 = vmatprep.subr.mxu0 %v13642_v0 }
  0x3c   :  { %506 = vperm.xlu0 %13240, %v498_v24   ;;  %1175 = vperm.xlu1 %13241, %v1167_v25  }
  0x3d   :  { %11055 = vmatpush3.msra.mxu0 %v13642_v0 }
  0x3e   :  { %11056 = vmatprep.subr.mxu0 %v13649_v1 }
  0x3f   :  { %11057 = vmatpush3.msra.mxu0 %v13649_v1 }
  0x40   :  { %1170 = vperm.xlu0 %13240, %v1166_v26   ;;  %1587 = vperm.xlu1 %13241, %v9682_v27  }
  0x41   :  { %11058 = vmatprep.subr.mxu0 %v13656_v2 }
  0x42   :  { %11059 = vmatpush3.msra.mxu0 %v13656_v2 }
  0x44   :  { %2033 = vperm.xlu0 %13240, %v9690_v28   ;;  %2028 = vperm.xlu1 %13241, %v9689_v29   ;;  %v486_v28 = vstv %s9656_s16  ;;  %s9650_s16 = sld [smem:[#allocation5 + $0x1]] }
  0x48   :  { %2446 = vperm.xlu0 %13240, %v9709_v30   ;;  %2892 = vperm.xlu1 %13241, %v9717_v31  }
  0x4c   :  { %2887 = vperm.xlu0 %13240, %v9716_v32   ;;  %3308 = vperm.xlu1 %13241, %v9736_v33  }
  0x50   :  { %3754 = vperm.xlu0 %13240, %v9744_v34   ;;  %3749 = vperm.xlu1 %13241, %v9743_v35  }
  0x54   :  { %4167 = vperm.xlu0 %13240, %v9763_v36   ;;  %4613 = vperm.xlu1 %13241, %v9771_v37  }
  0x58   :  { %4608 = vperm.xlu0 %13240, %v9770_v38   ;;  %5026 = vperm.xlu1 %13241, %v9790_v39   ;;  %v245_v38 = vld [vmem:[%s17369_s9 + $0x8] sm:$0x3]  ;;  %s9758_s9 = sld [smem:[#allocation5 + $0x14]] }
  0x5c   :  { %5472 = vperm.xlu0 %13240, %v9798_v40   ;;  %5467 = vperm.xlu1 %13241, %v9797_v41   ;;  %v495_v40 = vld [vmem:[%s17330_s13] sm:$0xff] }
  0x60   :  { %5888 = vperm.xlu0 %13240, %v9817_v42   ;;  %6334 = vperm.xlu1 %13241, %v9825_v43  }
  0x64   :  { %6329 = vperm.xlu0 %13240, %v9824_v44   ;;  %6747 = vperm.xlu1 %13241, %v9844_v45  }
  0x68   :  { %7193 = vperm.xlu0 %13240, %v9852_v46   ;;  %7188 = vperm.xlu1 %13241, %v9851_v47   ;;  %v496_v47 = vld [vmem:[%s17330_s13 + $0x8] sm:$0x3]  ;;  %s9662_s13 = sld [smem:[#allocation5 + $0x5]] }
  0x6c   :  { %7606 = vperm.xlu0 %13240, %v9871_v48   ;;  %8052 = vperm.xlu1 %13241, %v9879_v49   ;;  %v13681_v48 = vld [vmem:[%s17370_s11 + $0x38] sm:$0xff]  ;;  %v13688_v49 = vld [vmem:[%s17370_s11 + $0x30] sm:$0xff] }
  0x6d   :  { %11060 = vmatprep.subr.mxu0 %v13681_v48 }
  0x6e   :  { %11061 = vmatpush3.msra.mxu0 %v13681_v48 }
  0x6f   :  { %11062 = vmatprep.subr.mxu0 %v13688_v49 }
  0x70   :  { %8047 = vperm.xlu0 %13240, %v9878_v50   ;;  %8468 = vperm.xlu1 %13241, %v9898_v51   ;;  %v13280_v50 = vmov 0.0   ;;  %v13704_v51 = vld [vmem:[%s17370_s11 + $0x28] sm:$0xff] }
  0x71   :  { %602 = vst [vmem:[#allocation2 + $0x8] sm:$0xff] %v13280_v50  ;;  %603 = vst [vmem:[#allocation2 + $0x10] sm:$0xff] %v13280_v50  ;;  %11063 = vmatpush3.msra.mxu0 %v13688_v49 }
  0x72   :  { %605 = vst [vmem:[#allocation2 + $0x20] sm:$0xff] %v13280_v50  ;;  %607 = vst [vmem:[#allocation2 + $0x30] sm:$0xff] %v13280_v50  ;;  %11064 = vmatprep.subr.mxu0 %v13704_v51 }
  0x73   :  { %608 = vst [vmem:[#allocation2 + $0x38] sm:$0xff] %v13280_v50  ;;  %611 = vst [vmem:[#allocation3 + $0x10] sm:$0xff] %v13280_v50  ;;  %11065 = vmatpush3.msra.mxu0 %v13704_v51 }
  0x74   :  { %8914 = vperm.xlu0 %13240, %v9906_v52   ;;  %8909 = vperm.xlu1 %13241, %v9905_v53   ;;  %613 = vst [vmem:[#allocation3 + $0x20] sm:$0xff] %v13280_v50  ;;  %614 = vst [vmem:[#allocation3 + $0x28] sm:$0xff] %v13280_v50  ;;  %v13712_v52 = vld [vmem:[%s17370_s11 + $0x20] sm:$0xff]  ;;  %v13719_v53 = vld [vmem:[%s17370_s11 + $0x18] sm:$0xff] }
  0x75   :  { %616 = vst [vmem:[#allocation3 + $0x38] sm:$0xff] %v13280_v50  ;;  %11066 = vmatprep.subr.mxu0 %v13712_v52 }
  0x76   :  { %11067 = vmatpush3.msra.mxu0 %v13712_v52 }
  0x77   :  { %11068 = vmatprep.subr.mxu0 %v13719_v53 }
  0x78   :  { %9431 = vperm.xlu0 %13240, %v9418_v54   ;;  %9426 = vperm.xlu1 %13241, %v9417_v55   ;;  %v13726_v54 = vld [vmem:[%s17370_s11 + $0x10] sm:$0xff] }
  0x79   :  { %11069 = vmatpush3.msra.mxu0 %v13719_v53  ;;  %v13729_v55 = vld [vmem:[#allocation2 + $0x10] sm:$0xf] }
  0x7a   :  { %11070 = vmatprep.subr.mxu0 %v13726_v54  ;;  %1463 = vst [vmem:[#allocation2 + $0x10] sm:$0xf] %v13729_v55 }
  0x7b   :  { %11071 = vmatpush3.msra.mxu0 %v13726_v54 }
  0x7c   :  { %9421 = vperm.xlu0 %13240, %v9416_v57   ;;  %9541 = vperm.xlu1 %13241, %v9538_v58   ;;  %v13746_v57 = vld [vmem:[%s17370_s11] sm:$0xff] }
  0x7d   :  { %11072 = vmatprep.subr.mxu0 %v13738_v56 }
  0x7e   :  { %11073 = vmatpush3.msra.mxu0 %v13738_v56 }
  0x7f   :  { %11074 = vmatprep.subr.mxu0 %v13746_v57 }
  0x80   :  { %11075 = vmatpush3.msra.mxu0 %v13746_v57 }
  0x81   :  { %11123 = vmatprep.subr.mxu0 %v13280_v50 }
  0x9f   :  { %v116_v3 = vpop.permute.xlu1 %115  ;;  %v126_v4 = vpop.permute.xlu0 %125 }
  0xa3   :  { %v111_v5 = vpop.permute.xlu1 %110  ;;  %v121_v8 = vpop.permute.xlu0 %120 }
  0xa7   :  { %v374_v11 = vpop.permute.xlu1 %373  ;;  %v379_v19 = vpop.permute.xlu0 %378 }
  0xab   :  { %v369_v22 = vpop.permute.xlu1 %368  ;;  %v256_v58 = vpop.permute.xlu0 %255 }
  0xaf   :  { %v364_v35 = vpop.permute.xlu1 %363 }
  0xe6   :  { %v11010_v6 = vpop.f32.mrf.mxu1  ;;  %v11029_v7 = vpop.f32.mrf.mxu0 }
  0xe7   :  { %v217_v15 = vadd.f32 %v11010_v6, %v116_v3  ;;  %v468_v32 = vadd.f32 %v11029_v7, %v369_v22  ;;  %v251_v3 = vpop.permute.xlu0 %250 }
  0xe8   :  { %v462_v9 = vpop.f32.mrf.mxu0  ;;  %v211_v10 = vpop.f32.mrf.mxu1 }
  0xe9   :  { %v212_v20 = vadd.f32 %v211_v10, %v111_v5  ;;  %v237_v25 = vmul.f32 %v235_v16, %v217_v15  ;;  %vm232_vm6 = vcmp.ge.f32.partialorder %v217_v15, 0.0  ;;  %v463_v36 = vadd.f32 %v462_v9, %v364_v35  ;;  %v13832_v35 = vld [vmem:[%s17371_s25 + $0x38] sm:$0xff] }
  0xea   :  { %v11013_v12 = vpop.f32.mrf.mxu1  ;;  %v11032_v14 = vpop.f32.mrf.mxu0  ;;  %v488_v41 = vmul.f32 %v486_v28, %v468_v32  ;;  %vm483_vm10 = vcmp.ge.f32.partialorder %v468_v32, 0.0  ;;  %v347_v5 = vstv %s9650_s16  ;;  %s9732_s16 = sld [smem:[#allocation5 + $0x11]] }
  0xeb   :  { %v227_v13 = vadd.f32 %v11013_v12, %v126_v4  ;;  %v478_v26 = vadd.f32 %v11032_v14, %v379_v19  ;;  %v236_v31 = vmul.f32 %v235_v16, %v212_v20  ;;  %vm231_vm7 = vcmp.ge.f32.partialorder %v212_v20, 0.0  ;;  %v13753_v7 = vpop.permute.xlu0 %727 }
  0xec   :  { %v221_v17 = vpop.f32.mrf.mxu1  ;;  %v472_v23 = vpop.f32.mrf.mxu0  ;;  %v241_v34 = vsel %vm232_vm6, %v217_v15, %v237_v25  ;;  %v487_v44 = vmul.f32 %v486_v28, %v463_v36  ;;  %vm482_vm11 = vcmp.ge.f32.partialorder %v463_v36, 0.0  ;;  %v492_v45 = vsel %vm483_vm10, %v468_v32, %v488_v41  ;;  %v13811_v32 = vld [vmem:[%s17371_s25 + $0x50] sm:$0xff]  ;;  %v13876_v41 = vld [vmem:[%s17371_s25 + $0x8] sm:$0xff] }
  0xed   :  { %vm234_vm3 = vcmp.ge.f32.partialorder %v227_v13, 0.0  ;;  %v239_v18 = vmul.f32 %v235_v16, %v227_v13  ;;  %v222_v21 = vadd.f32 %v221_v17, %v121_v8  ;;  %v473_v29 = vadd.f32 %v472_v23, %v374_v11 }
  0xee   :  { %v490_v33 = vmul.f32 %v486_v28, %v478_v26  ;;  %vm485_vm8 = vcmp.ge.f32.partialorder %v478_v26, 0.0  ;;  %v240_v37 = vsel %vm231_vm7, %v212_v20, %v236_v31  ;;  %v491_v46 = vsel %vm482_vm11, %v463_v36, %v487_v44  ;;  %v13804_v31 = vld [vmem:[%s17371_s25 + $0x58] sm:$0xff]  ;;  %v13839_v36 = vld [vmem:[%s17371_s25 + $0x30] sm:$0xff] }
  0xef   :  { %v243_v24 = vsel %vm234_vm3, %v227_v13, %v239_v18  ;;  %vm233_vm5 = vcmp.ge.f32.partialorder %v222_v21, 0.0  ;;  %v238_v27 = vmul.f32 %v235_v16, %v222_v21  ;;  %v489_v39 = vmul.f32 %v486_v28, %v473_v29  ;;  %v507_v12 = vpop.permute.xlu0 %506  ;;  %v502_v16 = vpop.permute.xlu1 %501  ;;  %v13779_v28 = vld [vmem:[%s17371_s25 + $0x70] sm:$0xff] }
  0xf0   :  { %11014 = vmatprep.subr.msk.mxu1 %vm265_vm4, %v243_v24  ;;  %vm484_vm9 = vcmp.ge.f32.partialorder %v473_v29, 0.0  ;;  %v494_v42 = vsel %vm485_vm8, %v478_v26, %v490_v33  ;;  %v596_v14 = vstv %s9660_s12  ;;  %v13818_v33 = vld [vmem:[%s17371_s25 + $0x48] sm:$0xff]  ;;  %vm899_vm7 = vcmask 15360   ;;  %s9677_s12 = sld [smem:[#allocation5 + $0x8]] }
  0xf1   :  { %11015 = vmatpush3.msk.msra.mxu1 %vm265_vm4, %v243_v24  ;;  %v242_v30 = vsel %vm233_vm5, %v222_v21, %v238_v27  ;;  %v493_v43 = vsel %vm484_vm9, %v473_v29, %v489_v39  ;;  %v723_v24 = vld [vmem:[%s17332_s15] sm:$0x7]  ;;  %v13772_v27 = vld [vmem:[%s17371_s25 + $0x78] sm:$0xff]  ;;  %v13790_v29 = vld [vmem:[%s17371_s25 + $0x68] sm:$0xff]  ;;  %vm903_vm5 = vcmask 1041408   ;;  %vm1281_vm10 = vcmask 523264  }
  0xf2   :  { %11016 = vmatprep.subr.mxu1 %v242_v30  ;;  %v13860_v39 = vld [vmem:[%s17371_s25 + $0x18] sm:$0xff] }
  0xf3   :  { %11017 = vmatpush3.msra.mxu1 %v242_v30  ;;  %v13797_v30 = vld [vmem:[%s17371_s25 + $0x60] sm:$0xff] }
  0xf4   :  { %11018 = vmatprep.subr.mxu1 %v241_v34 }
  0xf5   :  { %11019 = vmatpush3.msra.mxu1 %v241_v34  ;;  %v13825_v34 = vld [vmem:[%s17371_s25 + $0x40] sm:$0xff] }
  0xf6   :  { %11020 = vmatprep.subr.mxu1 %v240_v37 }
  0xf7   :  { %11021 = vmatpush3.msra.mxu1 %v240_v37  ;;  %v13846_v37 = vld [vmem:[%s17371_s25 + $0x28] sm:$0xff] }
  0xf8   :  { %11023 = vmatmul.mubr.msk.f32.vlgmr.msra.gmra.mxu1 %vm258_vm2, %v245_v38  ;;  %11033 = vmatprep.subr.msk.mxu1 %vm265_vm4, %v494_v42  ;;  %v13853_v38 = vld [vmem:[%s17371_s25 + $0x20] sm:$0xff] }
  0xf9   :  { %11034 = vmatpush3.msk.msra.mxu1 %vm265_vm4, %v494_v42  ;;  %11041 = vmatprep.mubr.msk.f32.mxu1 %vm258_vm2, %v495_v40  ;;  %vm730_vm4 = vcmask 162816   ;;  %v13869_v40 = vld [vmem:[%s17371_s25 + $0x10] sm:$0xff]  ;;  %v13882_v42 = vld [vmem:[%s17371_s25] sm:$0xff] }
  0xfa   :  { %11035 = vmatprep.subr.mxu1 %v493_v43 }
  0xfb   :  { %11036 = vmatpush3.msra.mxu1 %v493_v43  ;;  %v898_v43 = vld [vmem:[%s17372_s28] sm:$0x3] }
  0xfc   :  { %11037 = vmatprep.subr.mxu1 %v492_v45 }
  0xfd   :  { %11038 = vmatpush3.msra.mxu1 %v492_v45 }
  0xfe   :  { %11039 = vmatprep.subr.mxu1 %v491_v46 }
  0xff   :  { %11040 = vmatpush3.msra.mxu1 %v491_v46  ;;  %v809_v46 = vstv %s9663_s8  ;;  %s9680_s8 = sld [smem:[#allocation5 + $0xb]] }
 0x100   :  { %11042 = vmatmul.mubr.msk.f32.vlgmr.msra.gmra.mxu1 %vm258_vm2, %v496_v47  ;;  %11079 = vmatprep.subr.mxu1 %v13280_v50 }
 0x101   :  { %11080 = vmatpush3.msk.msra.mxu1 %vm734_vm12, %v13729_v55  ;;  %11085 = vmatprep.mubr.msk.f32.mxu1 %vm13281_vm13, %v13280_v50 }
 0x102   :  { %11081 = vmatprep.subr.mxu1 %v13280_v50 }
 0x1b8   :  { %v11024_v4 = vpop.f32.mrf.mxu1 }
 0x1b9   :  { %v341_v6 = vadd.f32 %v11024_v4, %v256_v58 }
 0x1ba   :  { %v335_v9 = vpop.f32.mrf.mxu1 }
 0x1bb   :  { %vm346_vm14 = vcmp.ge.f32.partialorder %v341_v6, 0.0  ;;  %v349_v8 = vmul.f32 %v347_v5, %v341_v6  ;;  %v336_v11 = vadd.f32 %v335_v9, %v251_v3  ;;  %v1264_v9 = vstv %s9664_s30  ;;  %s9840_s30 = sld [smem:[#allocation5 + $0x21]] }
 0x1bd   :  { %v351_v10 = vsel %vm346_vm14, %v341_v6, %v349_v8  ;;  %v348_v18 = vmul.f32 %v347_v5, %v336_v11  ;;  %vm345_vm2 = vcmp.ge.f32.partialorder %v336_v11, 0.0 }
 0x1be   :  { %715 = vst [vmem:[#allocation2 + $0x8] sm:$0x3] %v351_v10 }
 0x1bf   :  { %v13761_v25 = vsel %vm345_vm2, %v336_v11, %v348_v18 }
 0x1c0   :  { %v11043_v13 = vpop.f32.mrf.mxu1 }
 0x1c1   :  { %v590_v15 = vadd.f32 %v11043_v13, %v507_v12 }
 0x1c2   :  { %v584_v17 = vpop.f32.mrf.mxu1 }
 0x1c3   :  { %vm595_vm15 = vcmp.ge.f32.partialorder %v590_v15, 0.0  ;;  %v598_v19 = vmul.f32 %v596_v14, %v590_v15  ;;  %v585_v20 = vadd.f32 %v584_v17, %v502_v16 }
 0x1c5   :  { %v600_v21 = vsel %vm595_vm15, %v590_v15, %v598_v19  ;;  %v13755_v22 = vld [vmem:[#allocation2 + $0x8] sm:$0xff]  ;;  %vm594_vm3 = vcmp.ge.f32.partialorder %v585_v20, 0.0  ;;  %v597_v23 = vmul.f32 %v596_v14, %v585_v20  ;;  %v1171_v14 = vpop.permute.xlu0 %1170  ;;  %v1271_v19 = vld [vmem:[%s17336_s19] sm:$0xff] }
 0x1c6   :  { %618 = vst [vmem:[#allocation2 + $0x20] sm:$0x3] %v600_v21  ;;  %11082 = vmatpush3.msra.mxu1 %v13755_v22 }
 0x1c7   :  { %11083 = vmatprep.subr.mxu1 %v13280_v50  ;;  %v13764_v26 = vsel %vm594_vm3, %v585_v20, %v597_v23  ;;  %v13994_v20 = vld [vmem:[%s17374_s22 + $0x78] sm:$0xff]  ;;  %v14006_v23 = vld [vmem:[%s17374_s22 + $0x68] sm:$0xff] }
 0x1c8   :  { %617 = vst [vmem:[#allocation2 + $0x18] sm:$0xff] %v13764_v26  ;;  %11076 = vmatprep.mubr.f32.mxu0 %v13764_v26  ;;  %11084 = vmatpush3.msra.mxu1 %v13761_v25 }
 0x1c9   :  { %11077 = vmatmul.mubr.f32.vlgmr.msra.gmra.mxu0 %v600_v21  ;;  %11086 = vmatmul.mubr.msk.f32.vlgmr.msra.gmra.mxu1 %vm730_vm4, %v723_v24  ;;  %v13999_v21 = vld [vmem:[%s17374_s22 + $0x70] sm:$0xff]  ;;  %v14013_v24 = vld [vmem:[%s17374_s22 + $0x60] sm:$0xff] }
 0x1ca   :  { %11088 = vmatprep.subr.mxu1 %v13280_v50  ;;  %11120 = vmatprep.mubr.msk.f32.mxu1 %vm13281_vm13, %v13280_v50 }
 0x1cb   :  { %11089 = vmatpush3.msra.mxu1 %v13772_v27  ;;  %11125 = vmatprep.mubr.msk.f32.mxu0 %vm13281_vm13, %v13280_v50 }
 0x1cc   :  { %11090 = vmatprep.subr.mxu1 %v13280_v50  ;;  %11124 = vmatpush3.msk.msra.mxu0 %vm903_vm5, %v898_v43  ;;  %v14020_v43 = vld [vmem:[%s17374_s22 + $0x58] sm:$0xff] }
 0x1cd   :  { %11091 = vmatpush3.msra.mxu1 %v13779_v28  ;;  %11128 = vmatprep.subr.mxu0 %v13280_v50 }
 0x1ce   :  { %11092 = vmatprep.subr.mxu1 %v13280_v50 }
 0x1cf   :  { %11093 = vmatpush3.msra.mxu1 %v13790_v29 }
 0x1d0   :  { %11094 = vmatprep.subr.mxu1 %v13280_v50 }
 0x1d1   :  { %11095 = vmatpush3.msra.mxu1 %v13797_v30 }
 0x1d2   :  { %11096 = vmatprep.subr.mxu1 %v13280_v50 }
 0x1d3   :  { %11097 = vmatpush3.msra.mxu1 %v13804_v31 }
 0x1d4   :  { %11098 = vmatprep.subr.mxu1 %v13280_v50 }
 0x1d5   :  { %11099 = vmatpush3.msra.mxu1 %v13811_v32 }
 0x1d6   :  { %11100 = vmatprep.subr.mxu1 %v13280_v50 }
 0x1d7   :  { %11101 = vmatpush3.msra.mxu1 %v13818_v33 }
 0x1d8   :  { %11102 = vmatprep.subr.mxu1 %v13280_v50 }
 0x1d9   :  { %11103 = vmatpush3.msra.mxu1 %v13825_v34 }
 0x1da   :  { %11104 = vmatprep.subr.mxu1 %v13280_v50 }
 0x1db   :  { %11105 = vmatpush3.msra.mxu1 %v13832_v35 }
 0x1dc   :  { %11106 = vmatprep.subr.mxu1 %v13280_v50 }
 0x1dd   :  { %11107 = vmatpush3.msra.mxu1 %v13839_v36 }
 0x1de   :  { %11108 = vmatprep.subr.mxu1 %v13280_v50 }
 0x1df   :  { %11109 = vmatpush3.msra.mxu1 %v13846_v37 }
 0x1e0   :  { %11110 = vmatprep.subr.mxu1 %v13280_v50 }
 0x1e1   :  { %11111 = vmatpush3.msra.mxu1 %v13853_v38 }
 0x1e2   :  { %11112 = vmatprep.subr.mxu1 %v13280_v50 }
 0x1e3   :  { %11113 = vmatpush3.msra.mxu1 %v13860_v39 }
 0x1e4   :  { %11114 = vmatprep.subr.mxu1 %v13280_v50 }
 0x1e5   :  { %11115 = vmatpush3.msra.mxu1 %v13869_v40 }
 0x1e6   :  { %11116 = vmatprep.subr.mxu1 %v13280_v50 }
 0x1e7   :  { %11117 = vmatpush3.msra.mxu1 %v13876_v41 }
 0x1e8   :  { %11118 = vmatprep.subr.mxu1 %v13280_v50 }
 0x1e9   :  { %11119 = vmatpush3.msra.mxu1 %v13882_v42 }
 0x1ea   :  { %11169 = vmatprep.subr.mxu1 %v13280_v50 }
 0x289   :  { %v11078_v44 = vpop.f32.mrf.mxu0  ;;  %v804_v45 = vpop.f32.mrf.mxu1 }
 0x28a   :  { %711 = vst [vmem:[#allocation3 + $0x20] sm:$0x3] %v11078_v44  ;;  %v805_v47 = vadd.f32 %v804_v45, %v13753_v7  ;;  %v14027_v44 = vld [vmem:[%s17374_s22 + $0x50] sm:$0xff]  ;;  %v14034_v45 = vld [vmem:[%s17374_s22 + $0x48] sm:$0xff] }
 0x28b   :  { %v13893_v58 = vpop.f32.mrf.mxu0  ;;  %v11087_v3 = vpop.f32.mrf.mxu1 }
 0x28c   :  { %vm808_vm6 = vcmp.ge.f32.partialorder %v805_v47, 0.0  ;;  %v810_v4 = vmul.f32 %v809_v46, %v805_v47  ;;  %710 = vst [vmem:[#allocation3 + $0x18] sm:$0xff] %v13893_v58  ;;  %v14041_v46 = vld [vmem:[%s17374_s22 + $0x40] sm:$0xff]  ;;  %v14055_v3 = vld [vmem:[%s17374_s22 + $0x30] sm:$0xff] }
 0x28e   :  { %v811_v5 = vsel %vm808_vm6, %v805_v47, %v810_v4  ;;  %v14048_v47 = vld [vmem:[%s17374_s22 + $0x38] sm:$0xff]  ;;  %v14062_v4 = vld [vmem:[%s17374_s22 + $0x28] sm:$0xff] }
 0x28f   :  { %11121 = vmatmul.mubr.f32.vlgmr.msra.gmra.mxu1 %v811_v5  ;;  %v14069_v5 = vld [vmem:[%s17374_s22 + $0x20] sm:$0xff] }
 0x290   :  { %11170 = vmatpush3.msra.mxu1 %v13609_v59  ;;  %11201 = vmatprep.mubr.msk.f32.mxu1 %vm13281_vm13, %v13280_v50 }
 0x291   :  { %11171 = vmatprep.subr.mxu1 %v13280_v50 }
 0x292   :  { %11172 = vmatpush3.msra.mxu1 %v13614_v60 }
 0x293   :  { %11173 = vmatprep.subr.mxu1 %v13280_v50 }
 0x294   :  { %11174 = vmatpush3.msra.mxu1 %v13621_v61 }
 0x295   :  { %11175 = vmatprep.subr.mxu1 %v13280_v50 }
 0x296   :  { %11176 = vmatpush3.msra.mxu1 %v13628_v62 }
 0x297   :  { %11177 = vmatprep.subr.mxu1 %v13280_v50 }
 0x298   :  { %11178 = vmatpush3.msra.mxu1 %v13635_v63 }
 0x299   :  { %11179 = vmatprep.subr.mxu1 %v13280_v50 }
 0x29a   :  { %11180 = vmatpush3.msra.mxu1 %v13642_v0 }
 0x29b   :  { %11181 = vmatprep.subr.mxu1 %v13280_v50 }
 0x29c   :  { %11182 = vmatpush3.msra.mxu1 %v13649_v1 }
 0x29d   :  { %11183 = vmatprep.subr.mxu1 %v13280_v50 }
 0x29e   :  { %11184 = vmatpush3.msra.mxu1 %v13656_v2 }
 0x29f   :  { %11185 = vmatprep.subr.mxu1 %v13280_v50 }
 0x2a0   :  { %11186 = vmatpush3.msra.mxu1 %v13681_v48 }
 0x2a1   :  { %11187 = vmatprep.subr.mxu1 %v13280_v50 }
 0x2a2   :  { %11188 = vmatpush3.msra.mxu1 %v13688_v49 }
 0x2a3   :  { %11189 = vmatprep.subr.mxu1 %v13280_v50 }
 0x2a4   :  { %11190 = vmatpush3.msra.mxu1 %v13704_v51 }
 0x2a5   :  { %11191 = vmatprep.subr.mxu1 %v13280_v50 }
 0x2a6   :  { %11192 = vmatpush3.msra.mxu1 %v13712_v52 }
 0x2a7   :  { %11193 = vmatprep.subr.mxu1 %v13280_v50 }
 0x2a8   :  { %11194 = vmatpush3.msra.mxu1 %v13719_v53 }
 0x2a9   :  { %11195 = vmatprep.subr.mxu1 %v13280_v50 }
 0x2aa   :  { %11196 = vmatpush3.msra.mxu1 %v13726_v54 }
 0x2ab   :  { %11197 = vmatprep.subr.mxu1 %v13280_v50 }
 0x2ac   :  { %11198 = vmatpush3.msra.mxu1 %v13738_v56 }
 0x2ad   :  { %11199 = vmatprep.subr.mxu1 %v13280_v50 }
 0x2ae   :  { %11200 = vmatpush3.msra.mxu1 %v13746_v57 }
 0x34f   :  { %v894_v6 = vpop.f32.mrf.mxu1 }
 0x350   :  { %11126 = vmatmul.mubr.msk.f32.vlgmr.msra.gmra.mxu0 %vm899_vm7, %v894_v6  ;;  %v14076_v6 = vld [vmem:[%s17374_s22 + $0x18] sm:$0xff] }
 0x351   :  { %11129 = vmatpush3.msra.mxu0 %v13609_v59  ;;  %v11122_v7 = vpop.f32.mrf.mxu1  ;;  %11160 = vmatprep.mubr.msk.f32.mxu0 %vm13281_vm13, %v13280_v50  ;;  %v1165_v59 = vld [vmem:[%s17373_s27] sm:$0x7] }
 0x352   :  { %11130 = vmatprep.subr.mxu0 %v13280_v50 }
 0x353   :  { %11131 = vmatpush3.msra.mxu0 %v13614_v60  ;;  %v1163_v60 = vld [vmem:[%s17334_s17] sm:$0xff] }
 0x354   :  { %11132 = vmatprep.subr.mxu0 %v13280_v50 }
 0x355   :  { %11133 = vmatpush3.msra.mxu0 %v13621_v61  ;;  %v1164_v61 = vld [vmem:[%s17334_s17 + $0x8] sm:$0x7f] }
 0x356   :  { %11134 = vmatprep.subr.mxu0 %v13280_v50 }
 0x357   :  { %11135 = vmatpush3.msra.mxu0 %v13628_v62  ;;  %v13282_v62 = vmov 1.0  }
 0x358   :  { %11136 = vmatprep.subr.mxu0 %v13280_v50  ;;  %712 = vst [vmem:[#allocation2 + $0x3f] sm:$0x1] %v13282_v62  ;;  %713 = vst [vmem:[#allocation3 + $0x3f] sm:$0x1] %v13282_v62 }
 0x359   :  { %11137 = vmatpush3.msra.mxu0 %v13635_v63 }
 0x35a   :  { %11138 = vmatprep.subr.mxu0 %v13280_v50 }
 0x35b   :  { %11139 = vmatpush3.msra.mxu0 %v13642_v0 }
 0x35c   :  { %11140 = vmatprep.subr.mxu0 %v13280_v50 }
 0x35d   :  { %11141 = vmatpush3.msra.mxu0 %v13649_v1 }
 0x35e   :  { %11142 = vmatprep.subr.mxu0 %v13280_v50 }
 0x35f   :  { %11143 = vmatpush3.msra.mxu0 %v13656_v2 }
 0x360   :  { %11144 = vmatprep.subr.mxu0 %v13280_v50 }
 0x361   :  { %11145 = vmatpush3.msra.mxu0 %v13681_v48 }
 0x362   :  { %11146 = vmatprep.subr.mxu0 %v13280_v50 }
 0x363   :  { %11147 = vmatpush3.msra.mxu0 %v13688_v49 }
 0x364   :  { %11148 = vmatprep.subr.mxu0 %v13280_v50 }
 0x365   :  { %11149 = vmatpush3.msra.mxu0 %v13704_v51 }
 0x366   :  { %11150 = vmatprep.subr.mxu0 %v13280_v50 }
 0x367   :  { %11151 = vmatpush3.msra.mxu0 %v13712_v52 }
 0x368   :  { %11152 = vmatprep.subr.mxu0 %v13280_v50 }
 0x369   :  { %11153 = vmatpush3.msra.mxu0 %v13719_v53 }
 0x36a   :  { %11154 = vmatprep.subr.mxu0 %v13280_v50 }
 0x36b   :  { %11155 = vmatpush3.msra.mxu0 %v13726_v54 }
 0x36c   :  { %11156 = vmatprep.subr.mxu0 %v13280_v50 }
 0x36d   :  { %11157 = vmatpush3.msra.mxu0 %v13738_v56 }
 0x36e   :  { %11158 = vmatprep.subr.mxu0 %v13280_v50 }
 0x36f   :  { %11159 = vmatpush3.msra.mxu0 %v13746_v57 }
 0x370   :  { %11161 = vmatmul.mubr.f32.vlgmr.msra.gmra.mxu0 %v13761_v25  ;;  %11204 = vmatprep.subr.msk.mxu0 %vm141_vm0, %v1165_v59 }
 0x371   :  { %11163 = vmatprep.mubr.msk.f32.mxu0 %vm13281_vm13, %v13280_v50  ;;  %11205 = vmatpush3.msk.msra.mxu0 %vm141_vm0, %v1165_v59 }
 0x372   :  { %11228 = vmatprep.subr.mxu0 %v13994_v20 }
 0x374   :  { %11164 = vmatmul.mubr.f32.gmra.mxu0 %v13755_v22 }
 0x375   :  { %11166 = vmatprep.mubr.msk.f32.mxu0 %vm13281_vm13, %v13280_v50 }
 0x378   :  { %11167 = vmatmul.mubr.f32.gmra.mxu0 %v13729_v55  ;;  %v1176_v55 = vpop.permute.xlu1 %1175 }
 0x379   :  { %11206 = vmatprep.mubr.msk.f32.mxu0 %vm128_vm1, %v1163_v60 }
 0x37c   :  { %11207 = vmatmul.mubr.msk.f32.vlgmr.msra.gmra.mxu0 %vm128_vm1, %v1164_v61  ;;  %v14082_v61 = vld [vmem:[#allocation3 + $0x20] sm:$0xff] }
 0x37d   :  { %11229 = vmatpush3.msra.mxu0 %v13994_v20 }
 0x37e   :  { %11230 = vmatprep.subr.mxu0 %v13999_v21 }
 0x37f   :  { %11231 = vmatpush3.msra.mxu0 %v13999_v21 }
 0x380   :  { %11232 = vmatprep.subr.mxu0 %v14006_v23 }
 0x381   :  { %11233 = vmatpush3.msra.mxu0 %v14006_v23 }
 0x382   :  { %11234 = vmatprep.subr.mxu0 %v14013_v24 }
 0x383   :  { %11235 = vmatpush3.msra.mxu0 %v14013_v24 }
 0x384   :  { %11236 = vmatprep.subr.mxu0 %v14020_v43 }
 0x385   :  { %11237 = vmatpush3.msra.mxu0 %v14020_v43 }
 0x386   :  { %11238 = vmatprep.subr.mxu0 %v14027_v44 }
 0x387   :  { %11239 = vmatpush3.msra.mxu0 %v14027_v44 }
 0x388   :  { %11240 = vmatprep.subr.mxu0 %v14034_v45 }
 0x389   :  { %11241 = vmatpush3.msra.mxu0 %v14034_v45 }
 0x38a   :  { %11242 = vmatprep.subr.mxu0 %v14041_v46 }
 0x38b   :  { %11243 = vmatpush3.msra.mxu0 %v14041_v46 }
 0x38c   :  { %11244 = vmatprep.subr.mxu0 %v14048_v47 }
 0x38d   :  { %11245 = vmatpush3.msra.mxu0 %v14048_v47 }
 0x38e   :  { %11246 = vmatprep.subr.mxu0 %v14055_v3 }
 0x38f   :  { %11247 = vmatpush3.msra.mxu0 %v14055_v3 }
 0x390   :  { %11248 = vmatprep.subr.mxu0 %v14062_v4 }
 0x391   :  { %11249 = vmatpush3.msra.mxu0 %v14062_v4 }
 0x392   :  { %11250 = vmatprep.subr.mxu0 %v14069_v5 }
 0x393   :  { %11251 = vmatpush3.msra.mxu0 %v14069_v5 }
 0x394   :  { %11252 = vmatprep.subr.mxu0 %v14076_v6 }
 0x395   :  { %11253 = vmatpush3.msra.mxu0 %v14076_v6 }
 0x410   :  { %v973_v63 = vpop.f32.mrf.mxu0 }
 0x411   :  { %1466 = vst [vmem:[#allocation2 + $0x38] sm:$0x7] %v973_v63  ;;  %11202 = vmatmul.mubr.f32.vlgmr.msra.gmra.mxu1 %v973_v63  ;;  %v1272_v63 = vld [vmem:[%s17336_s19 + $0x8] sm:$0x7f] }
 0x412   :  { %v11127_v0 = vpop.f32.mrf.mxu0  ;;  %11225 = vmatprep.mubr.msk.f32.mxu1 %vm1281_vm10, %v1271_v19 }
 0x413   :  { %v14103_v0 = vld [vmem:[%s17374_s22 + $0x10] sm:$0xff] }
 0x414   :  { %11254 = vmatprep.subr.mxu0 %v14103_v0 }
 0x415   :  { %11255 = vmatpush3.msra.mxu0 %v14103_v0 }
 0x430   :  { %v13983_v1 = vpop.f32.mrf.mxu0 }
 0x432   :  { %v11162_v2 = vpop.f32.mrf.mxu0 }
 0x433   :  { %v14115_v2 = vld [vmem:[%s17374_s22] sm:$0xff] }
 0x434   :  { %v13985_v48 = vpop.f32.mrf.mxu0 }
 0x436   :  { %v11165_v49 = vpop.f32.mrf.mxu0 }
 0x438   :  { %v1069_v51 = vpop.f32.mrf.mxu0 }
 0x439   :  { %1075 = vst [vmem:[#allocation3 + $0x10] sm:$0xf] %v1069_v51 }
 0x43a   :  { %v11168_v52 = vpop.f32.mrf.mxu0 }
 0x43c   :  { %v11208_v8 = vpop.f32.mrf.mxu0 }
 0x43d   :  { %v1259_v10 = vadd.f32 %v11208_v8, %v1176_v55 }
 0x43e   :  { %v1253_v12 = vpop.f32.mrf.mxu0 }
 0x43f   :  { %vm1263_vm8 = vcmp.ge.f32.partialorder %v1259_v10, 0.0  ;;  %v1266_v11 = vmul.f32 %v1264_v9, %v1259_v10  ;;  %v1254_v15 = vadd.f32 %v1253_v12, %v1171_v14  ;;  %v1472_v14 = vld [vmem:[#allocation2 + $0x10] sm:$0xff] }
 0x440   :  { %v1275_v62 = vld [vmem:[#allocation3 + $0x10] sm:$0xff] }
 0x441   :  { %v1268_v13 = vsel %vm1263_vm8, %v1259_v10, %v1266_v11  ;;  %v1265_v16 = vmul.f32 %v1264_v9, %v1254_v15  ;;  %vm1262_vm9 = vcmp.ge.f32.partialorder %v1254_v15, 0.0 }
 0x442   :  { %1270 = vst [vmem:[#allocation3 + $0x38] sm:$0x7f] %v1268_v13  ;;  %v14126_v13 = vld [vmem:[#allocation2 + $0x20] sm:$0xff] }
 0x443   :  { %v1267_v18 = vsel %vm1262_vm9, %v1254_v15, %v1265_v16  ;;  %v1467_v15 = vld [vmem:[%s17337_s20] sm:$0xff]  ;;  %v1667_v16 = vstv %s9679_s7  ;;  %s9707_s7 = sld [smem:[#allocation5 + $0xf]] }
 0x449   :  { %v1280_v17 = vld [vmem:[#allocation3 + $0x38] sm:$0xff] }
 0x44a   :  { %11209 = vmatprep.subr.mxu1 %v1280_v17 }
 0x44b   :  { %11210 = vmatpush3.msra.mxu1 %v1280_v17 }
 0x44c   :  { %11211 = vmatprep.subr.mxu1 %v1267_v18 }
 0x44d   :  { %11212 = vmatpush3.msra.mxu1 %v1267_v18 }
 0x4d1   :  { %v1158_v7 = vpop.f32.mrf.mxu1 }
 0x4d2   :  { %1162 = vst [vmem:[#allocation3 + $0x28] sm:$0x7] %v1158_v7 }
 0x4d3   :  { %v11203_v59 = vpop.f32.mrf.mxu1 }
 0x4d4   :  { %v14217_v59 = vld [vmem:[%s17370_s11 + $0x78] sm:$0xff] }
 0x4d9   :  { %v1278_v60 = vld [vmem:[#allocation3 + $0x28] sm:$0xff] }
 0x4da   :  { %11213 = vmatprep.subr.mxu1 %v1278_v60 }
 0x4db   :  { %11214 = vmatpush3.msra.mxu1 %v1278_v60  ;;  %v14223_v60 = vld [vmem:[%s17370_s11 + $0x70] sm:$0xff] }
 0x4dc   :  { %11215 = vmatprep.subr.mxu1 %v14082_v61 }
 0x4dd   :  { %11216 = vmatpush3.msra.mxu1 %v14082_v61 }
 0x4de   :  { %11217 = vmatprep.subr.mxu1 %v13893_v58 }
 0x4df   :  { %11218 = vmatpush3.msra.mxu1 %v13893_v58  ;;  %v1477_v58 = vld [vmem:[#allocation2 + $0x38] sm:$0xff] }
 0x4e0   :  { %11219 = vmatprep.subr.mxu1 %v1275_v62 }
 0x4e1   :  { %11220 = vmatpush3.msra.mxu1 %v1275_v62  ;;  %v14230_v62 = vld [vmem:[%s17370_s11 + $0x68] sm:$0xff] }
 0x4e2   :  { %11221 = vmatprep.subr.mxu1 %v13985_v48 }
 0x4e3   :  { %11222 = vmatpush3.msra.mxu1 %v13985_v48  ;;  %v1365_v48 = vstv %s9661_s4  ;;  %s9868_s4 = sld [smem:[#allocation5 + $0x26]] }
 0x4e4   :  { %11223 = vmatprep.subr.mxu1 %v13983_v1 }
 0x4e5   :  { %11224 = vmatpush3.msra.mxu1 %v13983_v1  ;;  %v14110_v1 = vld [vmem:[%s17374_s22 + $0x8] sm:$0xff] }
 0x4e6   :  { %11226 = vmatmul.mubr.msk.f32.vlgmr.msra.gmra.mxu1 %vm1281_vm10, %v1272_v63  ;;  %11263 = vmatprep.subr.mxu1 %v13280_v50  ;;  %v14237_v63 = vld [vmem:[%s17370_s11 + $0x60] sm:$0xff] }
 0x4e7   :  { %11264 = vmatpush3.msra.mxu1 %v1477_v58  ;;  %11279 = vmatprep.mubr.msk.f32.mxu1 %vm13281_vm13, %v13280_v50  ;;  %v14244_v58 = vld [vmem:[%s17370_s11 + $0x58] sm:$0xff] }
 0x4e8   :  { %11265 = vmatprep.subr.mxu1 %v13280_v50  ;;  %11256 = vmatprep.subr.mxu0 %v14110_v1 }
 0x4e9   :  { %11257 = vmatpush3.msra.mxu0 %v14110_v1 }
 0x4ea   :  { %11258 = vmatprep.subr.mxu0 %v14115_v2 }
 0x4eb   :  { %11259 = vmatpush3.msra.mxu0 %v14115_v2 }
 0x4ec   :  { %11288 = vmatprep.subr.mxu0 %v13280_v50 }
 0x5a6   :  { %v11227_v49 = vpop.f32.mrf.mxu1 }
 0x5a7   :  { %v1367_v51 = vmul.f32 %v11227_v49, %v1365_v48  ;;  %vm1364_vm11 = vcmp.ge.f32.partialorder %v11227_v49, 0.0 }
 0x5a8   :  { %v1354_v52 = vpop.f32.mrf.mxu1 }
 0x5a9   :  { %vm1363_vm14 = vcmp.ge.f32.partialorder %v1354_v52, 0.0  ;;  %v1366_v55 = vmul.f32 %v1365_v48, %v1354_v52  ;;  %v1369_v9 = vsel %vm1364_vm11, %v11227_v49, %v1367_v51  ;;  %v14251_v48 = vld [vmem:[%s17370_s11 + $0x50] sm:$0xff]  ;;  %v14258_v49 = vld [vmem:[%s17370_s11 + $0x48] sm:$0xff]  ;;  %v14265_v51 = vld [vmem:[%s17370_s11 + $0x40] sm:$0xff] }
 0x5ab   :  { %v1368_v8 = vsel %vm1363_vm14, %v1354_v52, %v1366_v55  ;;  %v14272_v52 = vld [vmem:[%s17370_s11 + $0x38] sm:$0xff]  ;;  %v14279_v55 = vld [vmem:[%s17370_s11 + $0x30] sm:$0xff] }
 0x5ac   :  { %11260 = vmatprep.mubr.f32.mxu0 %v1368_v8  ;;  %v14286_v8 = vld [vmem:[%s17370_s11 + $0x28] sm:$0xff] }
 0x5ad   :  { %11261 = vmatmul.mubr.f32.vlgmr.msra.gmra.mxu0 %v1369_v9  ;;  %v14293_v9 = vld [vmem:[%s17370_s11 + $0x20] sm:$0xff] }
 0x5ae   :  { %11294 = vmatprep.mubr.msk.f32.mxu0 %vm13281_vm13, %v13280_v50 }
 0x66d   :  { %v11262_v10 = vpop.f32.mrf.mxu0 }
 0x66e   :  { %1465 = vst [vmem:[#allocation2 + $0x30] sm:$0x7f] %v11262_v10  ;;  %v14301_v10 = vld [vmem:[%s17370_s11 + $0x18] sm:$0xff] }
 0x66f   :  { %v1452_v12 = vpop.f32.mrf.mxu0 }
 0x675   :  { %v1476_v11 = vld [vmem:[#allocation2 + $0x30] sm:$0xff] }
 0x676   :  { %11266 = vmatpush3.msra.mxu1 %v1476_v11  ;;  %v14306_v11 = vld [vmem:[%s17370_s11 + $0x10] sm:$0xff] }
 0x677   :  { %11267 = vmatprep.subr.mxu1 %v13280_v50 }
 0x678   :  { %11268 = vmatpush3.msra.mxu1 %v1452_v12  ;;  %v14313_v12 = vld [vmem:[%s17370_s11 + $0x8] sm:$0xff] }
 0x679   :  { %11269 = vmatprep.subr.mxu1 %v13280_v50 }
 0x67a   :  { %11270 = vmatpush3.msra.mxu1 %v14126_v13 }
 0x67b   :  { %11271 = vmatprep.subr.mxu1 %v13280_v50 }
 0x67c   :  { %11272 = vmatpush3.msra.mxu1 %v13764_v26  ;;  %v1468_v26 = vld [vmem:[%s17337_s20 + $0x8] sm:$0xff] }
 0x67d   :  { %11273 = vmatprep.subr.mxu1 %v13280_v50 }
 0x67e   :  { %11274 = vmatpush3.msra.mxu1 %v1472_v14 }
 0x67f   :  { %11275 = vmatprep.subr.mxu1 %v13280_v50 }
 0x680   :  { %11276 = vmatpush3.msra.mxu1 %v13755_v22  ;;  %v1469_v22 = vld [vmem:[%s17337_s20 + $0x10] sm:$0xf] }
 0x681   :  { %11277 = vmatprep.subr.mxu1 %v13280_v50 }
 0x682   :  { %11278 = vmatpush3.msra.mxu1 %v13761_v25 }
 0x683   :  { %11280 = vmatmul.mubr.msk.f32.vlgmr.msra.gmra.mxu1 %vm1281_vm10, %v1467_v15  ;;  %11297 = vmatprep.subr.mxu1 %v13280_v50 }
 0x684   :  { %11282 = vmatprep.mubr.msk.f32.mxu1 %vm13281_vm13, %v13280_v50  ;;  %11298 = vmatpush3.msra.mxu1 %v13772_v27 }
 0x685   :  { %11299 = vmatprep.subr.mxu1 %v13280_v50 }
 0x686   :  { %11300 = vmatpush3.msra.mxu1 %v13779_v28 }
 0x687   :  { %11283 = vmatmul.mubr.msk.f32.gmra.mxu1 %vm1281_vm10, %v1468_v26  ;;  %11301 = vmatprep.subr.mxu1 %v13280_v50  ;;  %v2022_v26 = vld [vmem:[%s17373_s27] sm:$0x7] }
 0x688   :  { %11285 = vmatprep.mubr.msk.f32.mxu1 %vm13281_vm13, %v13280_v50  ;;  %11302 = vmatpush3.msra.mxu1 %v13790_v29 }
 0x689   :  { %11303 = vmatprep.subr.mxu1 %v13280_v50 }
 0x68a   :  { %11304 = vmatpush3.msra.mxu1 %v13797_v30  ;;  %v1570_v30 = vstv %s9662_s13  ;;  %s9841_s13 = sld [smem:[#allocation5 + $0x22]] }
 0x68b   :  { %11286 = vmatmul.mubr.msk.f32.gmra.mxu1 %vm1281_vm10, %v1469_v22  ;;  %11305 = vmatprep.subr.mxu1 %v13280_v50 }
 0x68c   :  { %11306 = vmatpush3.msra.mxu1 %v13804_v31  ;;  %11329 = vmatprep.mubr.msk.f32.mxu1 %vm13281_vm13, %v13280_v50 }
 0x68d   :  { %11307 = vmatprep.subr.mxu1 %v13280_v50 }
 0x68e   :  { %11308 = vmatpush3.msra.mxu1 %v13811_v32 }
 0x68f   :  { %11309 = vmatprep.subr.mxu1 %v13280_v50 }
 0x690   :  { %11310 = vmatpush3.msra.mxu1 %v13818_v33 }
 0x691   :  { %11311 = vmatprep.subr.mxu1 %v13280_v50 }
 0x692   :  { %11312 = vmatpush3.msra.mxu1 %v13825_v34 }
 0x693   :  { %11313 = vmatprep.subr.mxu1 %v13280_v50 }
 0x694   :  { %11314 = vmatpush3.msra.mxu1 %v13832_v35 }
 0x695   :  { %11315 = vmatprep.subr.mxu1 %v13280_v50 }
 0x696   :  { %11316 = vmatpush3.msra.mxu1 %v13839_v36 }
 0x697   :  { %11317 = vmatprep.subr.mxu1 %v13280_v50 }
 0x698   :  { %11318 = vmatpush3.msra.mxu1 %v13846_v37 }
 0x699   :  { %11319 = vmatprep.subr.mxu1 %v13280_v50 }
 0x69a   :  { %11320 = vmatpush3.msra.mxu1 %v13853_v38  ;;  %v9681_v38 = vld [vmem:[%s17332_s15 + $0x4] sm:$0x7] }
 0x69b   :  { %11321 = vmatprep.subr.mxu1 %v13280_v50 }
 0x69c   :  { %11322 = vmatpush3.msra.mxu1 %v13860_v39 }
 0x69d   :  { %11323 = vmatprep.subr.mxu1 %v13280_v50 }
 0x69e   :  { %11324 = vmatpush3.msra.mxu1 %v13869_v40  ;;  %v1756_v40 = vld [vmem:[%s17372_s28] sm:$0x3] }
 0x69f   :  { %11325 = vmatprep.subr.mxu1 %v13280_v50 }
 0x6a0   :  { %11326 = vmatpush3.msra.mxu1 %v13876_v41  ;;  %v1588_v41 = vpop.permute.xlu1 %1587 }
 0x6a1   :  { %11327 = vmatprep.subr.mxu1 %v13280_v50 }
 0x6a2   :  { %11328 = vmatpush3.msra.mxu1 %v13882_v42 }
 0x6a3   :  { %11378 = vmatprep.subr.mxu1 %v13280_v50 }
 0x743   :  { %v1553_v25 = vpop.f32.mrf.mxu1 }
 0x744   :  { %v1571_v35 = vmul.f32 %v1570_v30, %v1553_v25  ;;  %vm1567_vm3 = vcmp.ge.f32.partialorder %v1553_v25, 0.0 }
 0x745   :  { %v11281_v27 = vpop.f32.mrf.mxu1 }
 0x746   :  { %v14200_v39 = vsel %vm1567_vm3, %v1553_v25, %v1571_v35  ;;  %v2223_v35 = vstv %s9677_s12  ;;  %s9705_s12 = sld [smem:[#allocation5 + $0xd]] }
 0x747   :  { %v1558_v28 = vpop.f32.mrf.mxu1 }
 0x748   :  { %v1572_v32 = vmul.f32 %v1570_v30, %v1558_v28  ;;  %vm1568_vm2 = vcmp.ge.f32.partialorder %v1558_v28, 0.0 }
 0x749   :  { %v11284_v29 = vpop.f32.mrf.mxu1 }
 0x74a   :  { %v14193_v37 = vsel %vm1568_vm2, %v1558_v28, %v1572_v32  ;;  %v9694_v28 = vld [vmem:[%s17336_s19 + $0x10] sm:$0xff]  ;;  %v14418_v32 = vld [vmem:[#allocation3 + $0x18] sm:$0xff] }
 0x74b   :  { %v1563_v31 = vpop.f32.mrf.mxu1 }
 0x74c   :  { %vm1569_vm15 = vcmp.ge.f32.partialorder %v1563_v31, 0.0  ;;  %v1573_v33 = vmul.f32 %v1570_v30, %v1563_v31 }
 0x74d   :  { %v11287_v34 = vpop.f32.mrf.mxu1 }
 0x74e   :  { %v14187_v36 = vsel %vm1569_vm15, %v1563_v31, %v1573_v33  ;;  %v9695_v34 = vld [vmem:[%s17336_s19 + $0x18] sm:$0x7f] }
 0x74f   :  { %2321 = vst [vmem:[#allocation2 + $0x10] sm:$0xf] %v14187_v36  ;;  %11289 = vmatpush3.msk.msra.mxu0 %vm734_vm12, %v14187_v36 }
 0x750   :  { %11290 = vmatprep.subr.mxu0 %v13280_v50 }
 0x751   :  { %11291 = vmatpush3.msra.mxu0 %v14193_v37 }
 0x752   :  { %11292 = vmatprep.subr.mxu0 %v13280_v50 }
 0x753   :  { %11293 = vmatpush3.msra.mxu0 %v14200_v39 }
 0x754   :  { %11295 = vmatmul.mubr.msk.f32.vlgmr.msra.gmra.mxu0 %vm730_vm4, %v9681_v38  ;;  %11332 = vmatprep.subr.mxu0 %v13280_v50 }
 0x755   :  { %11334 = vmatprep.mubr.msk.f32.mxu0 %vm13281_vm13, %v13280_v50  ;;  %11333 = vmatpush3.msk.msra.mxu0 %vm903_vm5, %v1756_v40 }
 0x756   :  { %11337 = vmatprep.subr.mxu0 %v13280_v50 }
 0x814   :  { %v1662_v42 = vpop.f32.mrf.mxu0 }
 0x815   :  { %v1663_v17 = vadd.f32 %v1662_v42, %v1588_v41 }
 0x816   :  { %v11296_v18 = vpop.f32.mrf.mxu0 }
 0x817   :  { %vm1666_vm6 = vcmp.ge.f32.partialorder %v1663_v17, 0.0  ;;  %v1668_v19 = vmul.f32 %v1667_v16, %v1663_v17 }
 0x819   :  { %v1669_v7 = vsel %vm1666_vm6, %v1663_v17, %v1668_v19 }
 0x81a   :  { %11330 = vmatmul.mubr.f32.vlgmr.msra.gmra.mxu1 %v1669_v7 }
 0x81b   :  { %11410 = vmatprep.mubr.msk.f32.mxu1 %vm13281_vm13, %v13280_v50  ;;  %11379 = vmatpush3.msra.mxu1 %v14217_v59 }
 0x81c   :  { %11380 = vmatprep.subr.mxu1 %v13280_v50 }
 0x81d   :  { %11381 = vmatpush3.msra.mxu1 %v14223_v60 }
 0x81e   :  { %11382 = vmatprep.subr.mxu1 %v13280_v50 }
 0x81f   :  { %11383 = vmatpush3.msra.mxu1 %v14230_v62 }
 0x820   :  { %11384 = vmatprep.subr.mxu1 %v13280_v50 }
 0x821   :  { %11385 = vmatpush3.msra.mxu1 %v14237_v63 }
 0x822   :  { %11386 = vmatprep.subr.mxu1 %v13280_v50 }
 0x823   :  { %11387 = vmatpush3.msra.mxu1 %v14244_v58 }
 0x824   :  { %11388 = vmatprep.subr.mxu1 %v13280_v50 }
 0x825   :  { %11389 = vmatpush3.msra.mxu1 %v14251_v48 }
 0x826   :  { %11390 = vmatprep.subr.mxu1 %v13280_v50 }
 0x827   :  { %11391 = vmatpush3.msra.mxu1 %v14258_v49 }
 0x828   :  { %11392 = vmatprep.subr.mxu1 %v13280_v50 }
 0x829   :  { %11393 = vmatpush3.msra.mxu1 %v14265_v51 }
 0x82a   :  { %11394 = vmatprep.subr.mxu1 %v13280_v50 }
 0x82b   :  { %11395 = vmatpush3.msra.mxu1 %v14272_v52 }
 0x82c   :  { %11396 = vmatprep.subr.mxu1 %v13280_v50 }
 0x82d   :  { %11397 = vmatpush3.msra.mxu1 %v14279_v55 }
 0x82e   :  { %11398 = vmatprep.subr.mxu1 %v13280_v50 }
 0x82f   :  { %11399 = vmatpush3.msra.mxu1 %v14286_v8 }
 0x830   :  { %11400 = vmatprep.subr.mxu1 %v13280_v50 }
 0x831   :  { %11401 = vmatpush3.msra.mxu1 %v14293_v9 }
 0x832   :  { %11402 = vmatprep.subr.mxu1 %v13280_v50 }
 0x833   :  { %11403 = vmatpush3.msra.mxu1 %v14301_v10 }
 0x834   :  { %11404 = vmatprep.subr.mxu1 %v13280_v50 }
 0x835   :  { %11405 = vmatpush3.msra.mxu1 %v14306_v11 }
 0x836   :  { %11406 = vmatprep.subr.mxu1 %v13280_v50 }
 0x837   :  { %11407 = vmatpush3.msra.mxu1 %v14313_v12 }
 0x838   :  { %11408 = vmatprep.subr.mxu1 %v13280_v50 }
 0x8da   :  { %v1752_v14 = vpop.f32.mrf.mxu1 }
 0x8db   :  { %11335 = vmatmul.mubr.msk.f32.vlgmr.msra.gmra.mxu0 %vm899_vm7, %v1752_v14  ;;  %v14436_v14 = vld [vmem:[#allocation2 + $0x18] sm:$0xff] }
 0x8dc   :  { %11338 = vmatpush3.msra.mxu0 %v14217_v59  ;;  %v11331_v15 = vpop.f32.mrf.mxu1  ;;  %11369 = vmatprep.mubr.msk.f32.mxu0 %vm13281_vm13, %v13280_v50 }
 0x8dd   :  { %11339 = vmatprep.subr.mxu0 %v13280_v50  ;;  %v2331_v15 = vld [vmem:[#allocation2 + $0x10] sm:$0xff] }
 0x8de   :  { %11340 = vmatpush3.msra.mxu0 %v14223_v60 }
 0x8df   :  { %11341 = vmatprep.subr.mxu0 %v13280_v50 }
 0x8e0   :  { %11342 = vmatpush3.msra.mxu0 %v14230_v62 }
 0x8e1   :  { %11343 = vmatprep.subr.mxu0 %v13280_v50 }
 0x8e2   :  { %11344 = vmatpush3.msra.mxu0 %v14237_v63 }
 0x8e3   :  { %11345 = vmatprep.subr.mxu0 %v13280_v50 }
 0x8e4   :  { %11346 = vmatpush3.msra.mxu0 %v14244_v58 }
 0x8e5   :  { %11347 = vmatprep.subr.mxu0 %v13280_v50 }
 0x8e6   :  { %11348 = vmatpush3.msra.mxu0 %v14251_v48 }
 0x8e7   :  { %11349 = vmatprep.subr.mxu0 %v13280_v50 }
 0x8e8   :  { %11350 = vmatpush3.msra.mxu0 %v14258_v49 }
 0x8e9   :  { %11351 = vmatprep.subr.mxu0 %v13280_v50 }
 0x8ea   :  { %11352 = vmatpush3.msra.mxu0 %v14265_v51 }
 0x8eb   :  { %11353 = vmatprep.subr.mxu0 %v13280_v50 }
 0x8ec   :  { %11354 = vmatpush3.msra.mxu0 %v14272_v52 }
 0x8ed   :  { %11355 = vmatprep.subr.mxu0 %v13280_v50 }
 0x8ee   :  { %11356 = vmatpush3.msra.mxu0 %v14279_v55 }
 0x8ef   :  { %11357 = vmatprep.subr.mxu0 %v13280_v50 }
 0x8f0   :  { %11358 = vmatpush3.msra.mxu0 %v14286_v8 }
 0x8f1   :  { %11359 = vmatprep.subr.mxu0 %v13280_v50 }
 0x8f2   :  { %11360 = vmatpush3.msra.mxu0 %v14293_v9 }
 0x8f3   :  { %11361 = vmatprep.subr.mxu0 %v13280_v50 }
 0x8f4   :  { %11362 = vmatpush3.msra.mxu0 %v13719_v53  ;;  %v9687_v53 = vld [vmem:[%s17334_s17 + $0x10] sm:$0xff] }
 0x8f5   :  { %11363 = vmatprep.subr.mxu0 %v13280_v50 }
 0x8f6   :  { %11364 = vmatpush3.msra.mxu0 %v13726_v54  ;;  %v9688_v54 = vld [vmem:[%s17334_s17 + $0x18] sm:$0x7f] }
 0x8f7   :  { %11365 = vmatprep.subr.mxu0 %v13280_v50 }
 0x8f8   :  { %11366 = vmatpush3.msra.mxu0 %v13738_v56  ;;  %v14376_v56 = vld [vmem:[%s17370_s11] sm:$0xff] }
 0x8f9   :  { %11367 = vmatprep.subr.mxu0 %v13280_v50  ;;  %11409 = vmatpush3.msra.mxu1 %v14376_v56 }
 0x8fa   :  { %11368 = vmatpush3.msra.mxu0 %v13746_v57  ;;  %11437 = vmatprep.subr.mxu1 %v13994_v20 }
 0x8fb   :  { %11370 = vmatmul.mubr.f32.vlgmr.msra.gmra.mxu0 %v14200_v39  ;;  %11413 = vmatprep.subr.msk.mxu0 %vm141_vm0, %v2022_v26 }
 0x8fc   :  { %11372 = vmatprep.mubr.msk.f32.mxu0 %vm13281_vm13, %v13280_v50  ;;  %11414 = vmatpush3.msk.msra.mxu0 %vm141_vm0, %v2022_v26  ;;  %v9698_v26 = vld [vmem:[%s17337_s20 + $0x18] sm:$0xff] }
 0x8ff   :  { %11373 = vmatmul.mubr.f32.gmra.mxu0 %v14193_v37 }
 0x900   :  { %11375 = vmatprep.mubr.msk.f32.mxu0 %vm13281_vm13, %v13280_v50 }
 0x903   :  { %11376 = vmatmul.mubr.f32.gmra.mxu0 %v14187_v36 }
 0x904   :  { %11415 = vmatprep.mubr.msk.f32.mxu0 %vm128_vm1, %v9687_v53  ;;  %v9700_v53 = vld [vmem:[%s17337_s20 + $0x28] sm:$0xf] }
 0x907   :  { %11416 = vmatmul.mubr.msk.f32.vlgmr.msra.gmra.mxu0 %vm128_vm1, %v9688_v54  ;;  %v14466_v54 = vld [vmem:[%s17371_s25 + $0x78] sm:$0xff] }
 0x908   :  { %11434 = vmatprep.mubr.msk.f32.mxu0 %vm1281_vm10, %v9694_v28 }
 0x99b   :  { %v1829_v57 = vpop.f32.mrf.mxu0 }
 0x99c   :  { %2324 = vst [vmem:[#allocation2 + $0x38] sm:$0x7] %v1829_v57  ;;  %11411 = vmatmul.mubr.f32.vlgmr.msra.gmra.mxu1 %v1829_v57  ;;  %v14471_v57 = vld [vmem:[%s17371_s25 + $0x70] sm:$0xff] }
 0x99d   :  { %v11336_v22 = vpop.f32.mrf.mxu0  ;;  %11438 = vmatpush3.msra.mxu1 %v13994_v20 }
 0x99e   :  { %11439 = vmatprep.subr.mxu1 %v13999_v21  ;;  %v14478_v22 = vld [vmem:[%s17371_s25 + $0x68] sm:$0xff] }
 0x99f   :  { %11440 = vmatpush3.msra.mxu1 %v13999_v21 }
 0x9a0   :  { %11441 = vmatprep.subr.mxu1 %v14006_v23 }
 0x9a1   :  { %11442 = vmatpush3.msra.mxu1 %v14006_v23 }
 0x9a2   :  { %11443 = vmatprep.subr.mxu1 %v14013_v24 }
 0x9a3   :  { %11444 = vmatpush3.msra.mxu1 %v14013_v24 }
 0x9a4   :  { %11445 = vmatprep.subr.mxu1 %v14020_v43 }
 0x9a5   :  { %11446 = vmatpush3.msra.mxu1 %v14020_v43 }
 0x9a6   :  { %11447 = vmatprep.subr.mxu1 %v14027_v44 }
 0x9a7   :  { %11448 = vmatpush3.msra.mxu1 %v14027_v44 }
 0x9a8   :  { %11449 = vmatprep.subr.mxu1 %v14034_v45 }
 0x9a9   :  { %11450 = vmatpush3.msra.mxu1 %v14034_v45  ;;  %v2034_v45 = vpop.permute.xlu0 %2033 }
 0x9aa   :  { %11451 = vmatprep.subr.mxu1 %v14041_v46 }
 0x9ab   :  { %11452 = vmatpush3.msra.mxu1 %v14041_v46 }
 0x9ac   :  { %11453 = vmatprep.subr.mxu1 %v14048_v47 }
 0x9ad   :  { %11454 = vmatpush3.msra.mxu1 %v14048_v47  ;;  %v2122_v47 = vstv %s9680_s8  ;;  %s9678_s8 = sld [smem:[#allocation5 + $0x9]] }
 0x9ae   :  { %11455 = vmatprep.subr.mxu1 %v14055_v3 }
 0x9af   :  { %11456 = vmatpush3.msra.mxu1 %v14055_v3 }
 0x9b0   :  { %11457 = vmatprep.subr.mxu1 %v14062_v4 }
 0x9b1   :  { %11458 = vmatpush3.msra.mxu1 %v14062_v4 }
 0x9b2   :  { %11459 = vmatprep.subr.mxu1 %v14069_v5 }
 0x9b3   :  { %11460 = vmatpush3.msra.mxu1 %v14069_v5 }
 0x9b4   :  { %11461 = vmatprep.subr.mxu1 %v14076_v6 }
 0x9b5   :  { %11462 = vmatpush3.msra.mxu1 %v14076_v6 }
 0x9b6   :  { %11463 = vmatprep.subr.mxu1 %v14103_v0 }
 0x9b7   :  { %11464 = vmatpush3.msra.mxu1 %v14103_v0  ;;  %v2029_v0 = vpop.permute.xlu1 %2028 }
 0x9b8   :  { %11465 = vmatprep.subr.mxu1 %v14110_v1 }
 0x9b9   :  { %11466 = vmatpush3.msra.mxu1 %v14110_v1 }
 0x9ba   :  { %11467 = vmatprep.subr.mxu1 %v14115_v2 }
 0x9bb   :  { %v1915_v20 = vpop.f32.mrf.mxu0  ;;  %11468 = vmatpush3.msra.mxu1 %v14115_v2 }
 0x9bc   :  { %11506 = vmatprep.subr.mxu1 %v13280_v50 }
 0x9bd   :  { %v11371_v21 = vpop.f32.mrf.mxu0 }
 0x9be   :  { %v14492_v21 = vld [vmem:[%s17371_s25 + $0x58] sm:$0xff] }
 0x9bf   :  { %v1920_v23 = vpop.f32.mrf.mxu0 }
 0x9c1   :  { %v11374_v24 = vpop.f32.mrf.mxu0 }
 0x9c2   :  { %v14506_v24 = vld [vmem:[%s17371_s25 + $0x48] sm:$0xff] }
 0x9c3   :  { %v1925_v43 = vpop.f32.mrf.mxu0 }
 0x9c4   :  { %1931 = vst [vmem:[#allocation3 + $0x10] sm:$0xf] %v1925_v43  ;;  %v14513_v43 = vld [vmem:[%s17371_s25 + $0x40] sm:$0xff] }
 0x9c5   :  { %v11377_v44 = vpop.f32.mrf.mxu0 }
 0x9c6   :  { %v14520_v44 = vld [vmem:[%s17371_s25 + $0x38] sm:$0xff] }
 0x9c7   :  { %v11417_v46 = vpop.f32.mrf.mxu0 }
 0x9c8   :  { %v2117_v3 = vadd.f32 %v11417_v46, %v2034_v45  ;;  %v14527_v45 = vld [vmem:[%s17371_s25 + $0x30] sm:$0xff]  ;;  %v14534_v46 = vld [vmem:[%s17371_s25 + $0x28] sm:$0xff] }
 0x9c9   :  { %v2111_v5 = vpop.f32.mrf.mxu0 }
 0x9ca   :  { %vm2121_vm8 = vcmp.ge.f32.partialorder %v2117_v3, 0.0  ;;  %v2124_v4 = vmul.f32 %v2122_v47, %v2117_v3  ;;  %v2112_v1 = vadd.f32 %v2111_v5, %v2029_v0 }
 0x9cb   :  { %v2134_v33 = vld [vmem:[#allocation3 + $0x10] sm:$0xff] }
 0x9cc   :  { %v2126_v6 = vsel %vm2121_vm8, %v2117_v3, %v2124_v4  ;;  %v2123_v2 = vmul.f32 %v2122_v47, %v2112_v1  ;;  %vm2120_vm9 = vcmp.ge.f32.partialorder %v2112_v1, 0.0  ;;  %v14541_v47 = vld [vmem:[%s17371_s25 + $0x20] sm:$0xff]  ;;  %v14548_v3 = vld [vmem:[%s17371_s25 + $0x18] sm:$0xff] }
 0x9cd   :  { %2128 = vst [vmem:[#allocation3 + $0x38] sm:$0x7f] %v2126_v6 }
 0x9ce   :  { %v2125_v27 = vsel %vm2120_vm9, %v2112_v1, %v2123_v2  ;;  %v2429_v1 = vstv %s9678_s8  ;;  %s9839_s8 = sld [smem:[#allocation5 + $0x20]] }
 0x9d4   :  { %v2139_v25 = vld [vmem:[#allocation3 + $0x38] sm:$0xff] }
 0x9d5   :  { %11418 = vmatprep.subr.mxu0 %v2139_v25 }
 0x9d6   :  { %11419 = vmatpush3.msra.mxu0 %v2139_v25 }
 0x9d7   :  { %11420 = vmatprep.subr.mxu0 %v2125_v27 }
 0x9d8   :  { %11421 = vmatpush3.msra.mxu0 %v2125_v27 }
 0xa5c   :  { %v2014_v29 = vpop.f32.mrf.mxu1 }
 0xa5d   :  { %2018 = vst [vmem:[#allocation3 + $0x28] sm:$0x7] %v2014_v29 }
 0xa5e   :  { %v11412_v30 = vpop.f32.mrf.mxu1 }
 0xa64   :  { %v2137_v31 = vld [vmem:[#allocation3 + $0x28] sm:$0xff] }
 0xa65   :  { %11422 = vmatprep.subr.mxu0 %v2137_v31 }
 0xa66   :  { %11423 = vmatpush3.msra.mxu0 %v2137_v31 }
 0xa67   :  { %11424 = vmatprep.subr.mxu0 %v14082_v61 }
 0xa68   :  { %11425 = vmatpush3.msra.mxu0 %v14082_v61  ;;  %v2336_v61 = vld [vmem:[#allocation2 + $0x38] sm:$0xff] }
 0xa69   :  { %11426 = vmatprep.subr.mxu0 %v14418_v32 }
 0xa6a   :  { %11427 = vmatpush3.msra.mxu0 %v14418_v32 }
 0xa6b   :  { %11428 = vmatprep.subr.mxu0 %v2134_v33 }
 0xa6c   :  { %11429 = vmatpush3.msra.mxu0 %v2134_v33  ;;  %v9708_v33 = vld [vmem:[%s17332_s15 + $0x8] sm:$0x7] }
 0xa6d   :  { %11430 = vmatprep.subr.mxu0 %v1920_v23 }
 0xa6e   :  { %11431 = vmatpush3.msra.mxu0 %v1920_v23  ;;  %v14499_v23 = vld [vmem:[%s17371_s25 + $0x50] sm:$0xff] }
 0xa6f   :  { %11432 = vmatprep.subr.mxu0 %v1915_v20 }
 0xa70   :  { %11433 = vmatpush3.msra.mxu0 %v1915_v20  ;;  %v14485_v20 = vld [vmem:[%s17371_s25 + $0x60] sm:$0xff] }
 0xa71   :  { %11435 = vmatmul.mubr.msk.f32.vlgmr.msra.gmra.mxu0 %vm1281_vm10, %v9695_v34  ;;  %11472 = vmatprep.subr.mxu0 %v13280_v50 }
 0xa72   :  { %11473 = vmatpush3.msra.mxu0 %v2336_v61  ;;  %11488 = vmatprep.mubr.msk.f32.mxu0 %vm13281_vm13, %v13280_v50  ;;  %v14577_v61 = vld [vmem:[%s17371_s25 + $0x10] sm:$0xff] }
 0xa73   :  { %11474 = vmatprep.subr.mxu0 %v13280_v50 }
 0xb31   :  { %v11436_v38 = vpop.f32.mrf.mxu0 }
 0xb32   :  { %v2225_v40 = vmul.f32 %v11436_v38, %v2223_v35  ;;  %vm2222_vm11 = vcmp.ge.f32.partialorder %v11436_v38, 0.0 }
 0xb33   :  { %v2212_v41 = vpop.f32.mrf.mxu0 }
 0xb34   :  { %v2224_v42 = vmul.f32 %v2223_v35, %v2212_v41  ;;  %vm2221_vm14 = vcmp.ge.f32.partialorder %v2212_v41, 0.0  ;;  %v2227_v17 = vsel %vm2222_vm11, %v11436_v38, %v2225_v40  ;;  %v14584_v35 = vld [vmem:[%s17371_s25 + $0x8] sm:$0xff]  ;;  %v14589_v38 = vld [vmem:[%s17371_s25] sm:$0xff] }
 0xb35   :  { %v2615_v40 = vld [vmem:[%s17372_s28] sm:$0x3] }
 0xb36   :  { %v2226_v16 = vsel %vm2221_vm14, %v2212_v41, %v2224_v42  ;;  %v2447_v41 = vpop.permute.xlu0 %2446 }
 0xb37   :  { %11469 = vmatprep.mubr.f32.mxu1 %v2226_v16  ;;  %v2526_v16 = vstv %s9706_s2  ;;  %s9734_s2 = sld [smem:[#allocation5 + $0x13]] }
 0xb38   :  { %11470 = vmatmul.mubr.f32.vlgmr.msra.gmra.mxu1 %v2227_v17 }
 0xb39   :  { %11538 = vmatprep.mubr.msk.f32.mxu1 %vm13281_vm13, %v13280_v50  ;;  %11507 = vmatpush3.msra.mxu1 %v14466_v54 }
 0xb3a   :  { %11508 = vmatprep.subr.mxu1 %v13280_v50 }
 0xb3b   :  { %11509 = vmatpush3.msra.mxu1 %v14471_v57 }
 0xb3c   :  { %11510 = vmatprep.subr.mxu1 %v13280_v50 }
 0xb3d   :  { %11511 = vmatpush3.msra.mxu1 %v14478_v22 }
 0xb3e   :  { %11512 = vmatprep.subr.mxu1 %v13280_v50 }
 0xb3f   :  { %11513 = vmatpush3.msra.mxu1 %v14485_v20 }
 0xb40   :  { %11514 = vmatprep.subr.mxu1 %v13280_v50 }
 0xb41   :  { %11515 = vmatpush3.msra.mxu1 %v14492_v21 }
 0xb42   :  { %11516 = vmatprep.subr.mxu1 %v13280_v50 }
 0xb43   :  { %11517 = vmatpush3.msra.mxu1 %v14499_v23 }
 0xb44   :  { %11518 = vmatprep.subr.mxu1 %v13280_v50 }
 0xb45   :  { %11519 = vmatpush3.msra.mxu1 %v14506_v24 }
 0xb46   :  { %11520 = vmatprep.subr.mxu1 %v13280_v50 }
 0xb47   :  { %11521 = vmatpush3.msra.mxu1 %v14513_v43 }
 0xb48   :  { %11522 = vmatprep.subr.mxu1 %v13280_v50 }
 0xb49   :  { %11523 = vmatpush3.msra.mxu1 %v14520_v44 }
 0xb4a   :  { %11524 = vmatprep.subr.mxu1 %v13280_v50 }
 0xb4b   :  { %11525 = vmatpush3.msra.mxu1 %v14527_v45 }
 0xb4c   :  { %11526 = vmatprep.subr.mxu1 %v13280_v50 }
 0xb4d   :  { %11527 = vmatpush3.msra.mxu1 %v14534_v46 }
 0xb4e   :  { %11528 = vmatprep.subr.mxu1 %v13280_v50 }
 0xb4f   :  { %11529 = vmatpush3.msra.mxu1 %v14541_v47 }
 0xb50   :  { %11530 = vmatprep.subr.mxu1 %v13280_v50 }
 0xb51   :  { %11531 = vmatpush3.msra.mxu1 %v14548_v3 }
 0xb52   :  { %11532 = vmatprep.subr.mxu1 %v13280_v50 }
 0xb53   :  { %11533 = vmatpush3.msra.mxu1 %v14577_v61 }
 0xb54   :  { %11534 = vmatprep.subr.mxu1 %v13280_v50 }
 0xb55   :  { %11535 = vmatpush3.msra.mxu1 %v14584_v35 }
 0xb56   :  { %11536 = vmatprep.subr.mxu1 %v13280_v50 }
 0xb57   :  { %11537 = vmatpush3.msra.mxu1 %v14589_v38 }
 0xb58   :  { %11587 = vmatprep.subr.mxu1 %v13280_v50 }
 0xbf8   :  { %v11471_v18 = vpop.f32.mrf.mxu1 }
 0xbf9   :  { %2323 = vst [vmem:[#allocation2 + $0x30] sm:$0x7f] %v11471_v18 }
 0xbfa   :  { %v2310_v7 = vpop.f32.mrf.mxu1 }
 0xc00   :  { %v2335_v19 = vld [vmem:[#allocation2 + $0x30] sm:$0xff] }
 0xc01   :  { %11475 = vmatpush3.msra.mxu0 %v2335_v19 }
 0xc02   :  { %11476 = vmatprep.subr.mxu0 %v13280_v50 }
 0xc03   :  { %11477 = vmatpush3.msra.mxu0 %v2310_v7 }
 0xc04   :  { %11478 = vmatprep.subr.mxu0 %v13280_v50 }
 0xc05   :  { %11479 = vmatpush3.msra.mxu0 %v14126_v13  ;;  %v9699_v13 = vld [vmem:[%s17337_s20 + $0x20] sm:$0xff] }
 0xc06   :  { %11480 = vmatprep.subr.mxu0 %v13280_v50 }
 0xc07   :  { %11481 = vmatpush3.msra.mxu0 %v14436_v14 }
 0xc08   :  { %11482 = vmatprep.subr.mxu0 %v13280_v50 }
 0xc09   :  { %11483 = vmatpush3.msra.mxu0 %v2331_v15 }
 0xc0a   :  { %11484 = vmatprep.subr.mxu0 %v13280_v50 }
 0xc0b   :  { %11485 = vmatpush3.msra.mxu0 %v14193_v37 }
 0xc0c   :  { %11486 = vmatprep.subr.mxu0 %v13280_v50 }
 0xc0d   :  { %11487 = vmatpush3.msra.mxu0 %v14200_v39 }
 0xc0e   :  { %11489 = vmatmul.mubr.msk.f32.vlgmr.msra.gmra.mxu0 %vm1281_vm10, %v9698_v26  ;;  %11497 = vmatprep.subr.mxu0 %v13280_v50 }
 0xc0f   :  { %11491 = vmatprep.mubr.msk.f32.mxu0 %vm13281_vm13, %v13280_v50 }
 0xc12   :  { %11492 = vmatmul.mubr.msk.f32.gmra.mxu0 %vm1281_vm10, %v9699_v13 }
 0xc13   :  { %11494 = vmatprep.mubr.msk.f32.mxu0 %vm13281_vm13, %v13280_v50 }
 0xc16   :  { %11495 = vmatmul.mubr.msk.f32.gmra.mxu0 %vm1281_vm10, %v9700_v53 }
 0xc17   :  { %11503 = vmatprep.mubr.msk.f32.mxu0 %vm13281_vm13, %v13280_v50 }
 0xcce   :  { %v2412_v4 = vpop.f32.mrf.mxu0 }
 0xccf   :  { %v2430_v29 = vmul.f32 %v2429_v1, %v2412_v4  ;;  %vm2426_vm3 = vcmp.ge.f32.partialorder %v2412_v4, 0.0 }
 0xcd0   :  { %v11490_v5 = vpop.f32.mrf.mxu0 }
 0xcd1   :  { %v14567_v34 = vsel %vm2426_vm3, %v2412_v4, %v2430_v29  ;;  %v2888_v4 = vpop.permute.xlu0 %2887  ;;  %v14717_v29 = vld [vmem:[%s17374_s22 + $0x60] sm:$0xff] }
 0xcd2   :  { %v2417_v6 = vpop.f32.mrf.mxu0 }
 0xcd3   :  { %v2431_v25 = vmul.f32 %v2429_v1, %v2417_v6  ;;  %vm2427_vm2 = vcmp.ge.f32.partialorder %v2417_v6, 0.0 }
 0xcd4   :  { %v11493_v0 = vpop.f32.mrf.mxu0 }
 0xcd5   :  { %v14560_v31 = vsel %vm2427_vm2, %v2417_v6, %v2431_v25  ;;  %v14698_v25 = vld [vmem:[%s17374_s22 + $0x78] sm:$0xff] }
 0xcd6   :  { %v2422_v2 = vpop.f32.mrf.mxu0 }
 0xcd7   :  { %vm2428_vm15 = vcmp.ge.f32.partialorder %v2422_v2, 0.0  ;;  %v2432_v27 = vmul.f32 %v2429_v1, %v2422_v2 }
 0xcd8   :  { %v11496_v28 = vpop.f32.mrf.mxu0 }
 0xcd9   :  { %v14554_v30 = vsel %vm2428_vm15, %v2422_v2, %v2432_v27  ;;  %v9721_v2 = vld [vmem:[%s17336_s19 + $0x20] sm:$0xff]  ;;  %v14703_v27 = vld [vmem:[%s17374_s22 + $0x70] sm:$0xff]  ;;  %v14710_v28 = vld [vmem:[%s17374_s22 + $0x68] sm:$0xff] }
 0xcda   :  { %3180 = vst [vmem:[#allocation2 + $0x10] sm:$0xf] %v14554_v30  ;;  %11498 = vmatpush3.msk.msra.mxu0 %vm734_vm12, %v14554_v30 }
 0xcdb   :  { %11499 = vmatprep.subr.mxu0 %v13280_v50 }
 0xcdc   :  { %11500 = vmatpush3.msra.mxu0 %v14560_v31 }
 0xcdd   :  { %11501 = vmatprep.subr.mxu0 %v13280_v50 }
 0xcde   :  { %11502 = vmatpush3.msra.mxu0 %v14567_v34 }
 0xcdf   :  { %11504 = vmatmul.mubr.msk.f32.vlgmr.msra.gmra.mxu0 %vm730_vm4, %v9708_v33  ;;  %11541 = vmatprep.subr.mxu0 %v13280_v50  ;;  %v14731_v33 = vld [vmem:[%s17374_s22 + $0x50] sm:$0xff] }
 0xce0   :  { %11543 = vmatprep.mubr.msk.f32.mxu0 %vm13281_vm13, %v13280_v50  ;;  %11542 = vmatpush3.msk.msra.mxu0 %vm903_vm5, %v2615_v40  ;;  %v14738_v40 = vld [vmem:[%s17374_s22 + $0x48] sm:$0xff] }
 0xce1   :  { %11546 = vmatprep.subr.mxu0 %v13280_v50 }
 0xd9f   :  { %v2521_v42 = vpop.f32.mrf.mxu0 }
 0xda0   :  { %v2522_v17 = vadd.f32 %v2521_v42, %v2447_v41  ;;  %v14745_v41 = vld [vmem:[%s17374_s22 + $0x40] sm:$0xff]  ;;  %v14752_v42 = vld [vmem:[%s17374_s22 + $0x38] sm:$0xff] }
 0xda1   :  { %v11505_v18 = vpop.f32.mrf.mxu0 }
 0xda2   :  { %vm2525_vm6 = vcmp.ge.f32.partialorder %v2522_v17, 0.0  ;;  %v2527_v19 = vmul.f32 %v2526_v16, %v2522_v17  ;;  %v14759_v16 = vld [vmem:[%s17374_s22 + $0x30] sm:$0xff]  ;;  %v14773_v18 = vld [vmem:[%s17374_s22 + $0x20] sm:$0xff] }
 0xda4   :  { %v2528_v7 = vsel %vm2525_vm6, %v2522_v17, %v2527_v19  ;;  %v14766_v17 = vld [vmem:[%s17374_s22 + $0x28] sm:$0xff]  ;;  %v14780_v19 = vld [vmem:[%s17374_s22 + $0x18] sm:$0xff] }
 0xda5   :  { %11539 = vmatmul.mubr.f32.vlgmr.msra.gmra.mxu1 %v2528_v7 }
 0xda6   :  { %11588 = vmatpush3.msra.mxu1 %v14217_v59  ;;  %11619 = vmatprep.mubr.msk.f32.mxu1 %vm13281_vm13, %v13280_v50 }
 0xda7   :  { %11589 = vmatprep.subr.mxu1 %v13280_v50 }
 0xda8   :  { %11590 = vmatpush3.msra.mxu1 %v14223_v60 }
 0xda9   :  { %11591 = vmatprep.subr.mxu1 %v13280_v50 }
 0xdaa   :  { %11592 = vmatpush3.msra.mxu1 %v14230_v62 }
 0xdab   :  { %11593 = vmatprep.subr.mxu1 %v13280_v50 }
 0xdac   :  { %11594 = vmatpush3.msra.mxu1 %v14237_v63 }
 0xdad   :  { %11595 = vmatprep.subr.mxu1 %v13280_v50 }
 0xdae   :  { %11596 = vmatpush3.msra.mxu1 %v14244_v58 }
 0xdaf   :  { %11597 = vmatprep.subr.mxu1 %v13280_v50 }
 0xdb0   :  { %11598 = vmatpush3.msra.mxu1 %v14251_v48 }
 0xdb1   :  { %11599 = vmatprep.subr.mxu1 %v13280_v50 }
 0xdb2   :  { %11600 = vmatpush3.msra.mxu1 %v14258_v49 }
 0xdb3   :  { %11601 = vmatprep.subr.mxu1 %v13280_v50 }
 0xdb4   :  { %11602 = vmatpush3.msra.mxu1 %v14265_v51 }
 0xdb5   :  { %11603 = vmatprep.subr.mxu1 %v13280_v50 }
 0xdb6   :  { %11604 = vmatpush3.msra.mxu1 %v14272_v52 }
 0xdb7   :  { %11605 = vmatprep.subr.mxu1 %v13280_v50 }
 0xdb8   :  { %11606 = vmatpush3.msra.mxu1 %v14279_v55 }
 0xdb9   :  { %11607 = vmatprep.subr.mxu1 %v13280_v50 }
 0xdba   :  { %11608 = vmatpush3.msra.mxu1 %v14286_v8 }
 0xdbb   :  { %11609 = vmatprep.subr.mxu1 %v13280_v50 }
 0xdbc   :  { %11610 = vmatpush3.msra.mxu1 %v14293_v9 }
 0xdbd   :  { %11611 = vmatprep.subr.mxu1 %v13280_v50 }
 0xdbe   :  { %11612 = vmatpush3.msra.mxu1 %v14301_v10 }
 0xdbf   :  { %11613 = vmatprep.subr.mxu1 %v13280_v50 }
 0xdc0   :  { %11614 = vmatpush3.msra.mxu1 %v14306_v11 }
 0xdc1   :  { %11615 = vmatprep.subr.mxu1 %v13280_v50 }
 0xdc2   :  { %11616 = vmatpush3.msra.mxu1 %v14313_v12 }
 0xdc3   :  { %11617 = vmatprep.subr.mxu1 %v13280_v50 }
 0xdc4   :  { %11618 = vmatpush3.msra.mxu1 %v14376_v56 }
 0xdc5   :  { %11646 = vmatprep.subr.mxu1 %v14698_v25 }
 0xe65   :  { %v2611_v15 = vpop.f32.mrf.mxu1 }
 0xe66   :  { %11544 = vmatmul.mubr.msk.f32.vlgmr.msra.gmra.mxu0 %vm899_vm7, %v2611_v15 }
 0xe67   :  { %11547 = vmatpush3.msra.mxu0 %v14217_v59  ;;  %v11540_v26 = vpop.f32.mrf.mxu1  ;;  %11578 = vmatprep.mubr.msk.f32.mxu0 %vm13281_vm13, %v13280_v50  ;;  %v2881_v59 = vld [vmem:[%s17373_s27] sm:$0x7] }
 0xe68   :  { %11548 = vmatprep.subr.mxu0 %v13280_v50 }
 0xe69   :  { %11549 = vmatpush3.msra.mxu0 %v14223_v60  ;;  %v9714_v60 = vld [vmem:[%s17334_s17 + $0x20] sm:$0xff] }
 0xe6a   :  { %11550 = vmatprep.subr.mxu0 %v13280_v50 }
 0xe6b   :  { %11551 = vmatpush3.msra.mxu0 %v14230_v62  ;;  %v9715_v62 = vld [vmem:[%s17334_s17 + $0x28] sm:$0x7f] }
 0xe6c   :  { %11552 = vmatprep.subr.mxu0 %v13280_v50 }
 0xe6d   :  { %11553 = vmatpush3.msra.mxu0 %v14237_v63 }
 0xe6e   :  { %11554 = vmatprep.subr.mxu0 %v13280_v50 }
 0xe6f   :  { %11555 = vmatpush3.msra.mxu0 %v14244_v58 }
 0xe70   :  { %11556 = vmatprep.subr.mxu0 %v13280_v50 }
 0xe71   :  { %11557 = vmatpush3.msra.mxu0 %v14251_v48 }
 0xe72   :  { %11558 = vmatprep.subr.mxu0 %v13280_v50 }
 0xe73   :  { %11559 = vmatpush3.msra.mxu0 %v14258_v49 }
 0xe74   :  { %11560 = vmatprep.subr.mxu0 %v13280_v50 }
 0xe75   :  { %11561 = vmatpush3.msra.mxu0 %v14265_v51 }
 0xe76   :  { %11562 = vmatprep.subr.mxu0 %v13280_v50 }
 0xe77   :  { %11563 = vmatpush3.msra.mxu0 %v14272_v52 }
 0xe78   :  { %11564 = vmatprep.subr.mxu0 %v13280_v50 }
 0xe79   :  { %11565 = vmatpush3.msra.mxu0 %v14279_v55 }
 0xe7a   :  { %11566 = vmatprep.subr.mxu0 %v13280_v50 }
 0xe7b   :  { %11567 = vmatpush3.msra.mxu0 %v14286_v8 }
 0xe7c   :  { %11568 = vmatprep.subr.mxu0 %v13280_v50 }
 0xe7d   :  { %11569 = vmatpush3.msra.mxu0 %v14293_v9  ;;  %v2893_v9 = vpop.permute.xlu1 %2892 }
 0xe7e   :  { %11570 = vmatprep.subr.mxu0 %v13280_v50 }
 0xe7f   :  { %11571 = vmatpush3.msra.mxu0 %v14301_v10 }
 0xe80   :  { %11572 = vmatprep.subr.mxu0 %v13280_v50 }
 0xe81   :  { %11573 = vmatpush3.msra.mxu0 %v14306_v11  ;;  %v2981_v11 = vstv %s9707_s7  ;;  %s9867_s7 = sld [smem:[#allocation5 + $0x25]] }
 0xe82   :  { %11574 = vmatprep.subr.mxu0 %v13280_v50 }
 0xe83   :  { %11575 = vmatpush3.msra.mxu0 %v14313_v12 }
 0xe84   :  { %11576 = vmatprep.subr.mxu0 %v13280_v50 }
 0xe85   :  { %11577 = vmatpush3.msra.mxu0 %v14376_v56 }
 0xe86   :  { %11579 = vmatmul.mubr.f32.vlgmr.msra.gmra.mxu0 %v14567_v34  ;;  %11622 = vmatprep.subr.msk.mxu0 %vm141_vm0, %v2881_v59 }
 0xe87   :  { %11581 = vmatprep.mubr.msk.f32.mxu0 %vm13281_vm13, %v13280_v50  ;;  %11623 = vmatpush3.msk.msra.mxu0 %vm141_vm0, %v2881_v59  ;;  %v14786_v59 = vld [vmem:[#allocation3 + $0x20] sm:$0xff] }
 0xe8a   :  { %11582 = vmatmul.mubr.f32.gmra.mxu0 %v14560_v31 }
 0xe8b   :  { %11584 = vmatprep.mubr.msk.f32.mxu0 %vm13281_vm13, %v13280_v50 }
 0xe8e   :  { %11585 = vmatmul.mubr.f32.gmra.mxu0 %v14554_v30  ;;  %v14724_v30 = vld [vmem:[%s17374_s22 + $0x58] sm:$0xff] }
 0xe8f   :  { %11624 = vmatprep.mubr.msk.f32.mxu0 %vm128_vm1, %v9714_v60 }
 0xe92   :  { %11625 = vmatmul.mubr.msk.f32.vlgmr.msra.gmra.mxu0 %vm128_vm1, %v9715_v62  ;;  %v9722_v62 = vld [vmem:[%s17336_s19 + $0x28] sm:$0x7f] }
 0xe93   :  { %11643 = vmatprep.mubr.msk.f32.mxu0 %vm1281_vm10, %v9721_v2 }
 0xf26   :  { %v2688_v63 = vpop.f32.mrf.mxu0 }
 0xf27   :  { %3183 = vst [vmem:[#allocation2 + $0x38] sm:$0x7] %v2688_v63  ;;  %11620 = vmatmul.mubr.f32.vlgmr.msra.gmra.mxu1 %v2688_v63  ;;  %v14807_v63 = vld [vmem:[%s17374_s22 + $0x10] sm:$0xff] }
 0xf28   :  { %v11545_v58 = vpop.f32.mrf.mxu0  ;;  %11647 = vmatpush3.msra.mxu1 %v14698_v25 }
 0xf29   :  { %11648 = vmatprep.subr.mxu1 %v14703_v27  ;;  %v14814_v58 = vld [vmem:[%s17374_s22 + $0x8] sm:$0xff] }
 0xf2a   :  { %11649 = vmatpush3.msra.mxu1 %v14703_v27 }
 0xf2b   :  { %11650 = vmatprep.subr.mxu1 %v14710_v28 }
 0xf2c   :  { %11651 = vmatpush3.msra.mxu1 %v14710_v28 }
 0xf2d   :  { %11652 = vmatprep.subr.mxu1 %v14717_v29 }
 0xf2e   :  { %11653 = vmatpush3.msra.mxu1 %v14717_v29 }
 0xf2f   :  { %11654 = vmatprep.subr.mxu1 %v14724_v30 }
 0xf30   :  { %11655 = vmatpush3.msra.mxu1 %v14724_v30 }
 0xf31   :  { %11656 = vmatprep.subr.mxu1 %v14731_v33 }
 0xf32   :  { %11657 = vmatpush3.msra.mxu1 %v14731_v33 }
 0xf33   :  { %11658 = vmatprep.subr.mxu1 %v14738_v40 }
 0xf34   :  { %11659 = vmatpush3.msra.mxu1 %v14738_v40 }
 0xf35   :  { %11660 = vmatprep.subr.mxu1 %v14745_v41 }
 0xf36   :  { %11661 = vmatpush3.msra.mxu1 %v14745_v41 }
 0xf37   :  { %11662 = vmatprep.subr.mxu1 %v14752_v42 }
 0xf38   :  { %11663 = vmatpush3.msra.mxu1 %v14752_v42 }
 0xf39   :  { %11664 = vmatprep.subr.mxu1 %v14759_v16 }
 0xf3a   :  { %11665 = vmatpush3.msra.mxu1 %v14759_v16 }
 0xf3b   :  { %11666 = vmatprep.subr.mxu1 %v14766_v17 }
 0xf3c   :  { %11667 = vmatpush3.msra.mxu1 %v14766_v17 }
 0xf3d   :  { %11668 = vmatprep.subr.mxu1 %v14773_v18 }
 0xf3e   :  { %11669 = vmatpush3.msra.mxu1 %v14773_v18 }
 0xf3f   :  { %11670 = vmatprep.subr.mxu1 %v14780_v19 }
 0xf40   :  { %11671 = vmatpush3.msra.mxu1 %v14780_v19 }
 0xf41   :  { %11672 = vmatprep.subr.mxu1 %v14807_v63 }
 0xf42   :  { %11673 = vmatpush3.msra.mxu1 %v14807_v63 }
 0xf43   :  { %11674 = vmatprep.subr.mxu1 %v14814_v58 }
 0xf44   :  { %11675 = vmatpush3.msra.mxu1 %v14814_v58 }
 0xf46   :  { %v14687_v48 = vpop.f32.mrf.mxu0 }
 0xf48   :  { %v11580_v49 = vpop.f32.mrf.mxu0 }
 0xf49   :  { %v3082_v49 = vstv %s9704_s3 }
 0xf4a   :  { %v14689_v51 = vpop.f32.mrf.mxu0 }
 0xf4c   :  { %v11583_v52 = vpop.f32.mrf.mxu0 }
 0xf4e   :  { %v2784_v55 = vpop.f32.mrf.mxu0 }
 0xf4f   :  { %2790 = vst [vmem:[#allocation3 + $0x10] sm:$0xf] %v2784_v55 }
 0xf50   :  { %v11586_v8 = vpop.f32.mrf.mxu0 }
 0xf52   :  { %v11626_v10 = vpop.f32.mrf.mxu0 }
 0xf53   :  { %v2976_v12 = vadd.f32 %v11626_v10, %v2893_v9 }
 0xf54   :  { %v2970_v13 = vpop.f32.mrf.mxu0 }
 0xf55   :  { %vm2980_vm8 = vcmp.ge.f32.partialorder %v2976_v12, 0.0  ;;  %v2983_v56 = vmul.f32 %v2981_v11, %v2976_v12  ;;  %v2971_v5 = vadd.f32 %v2970_v13, %v2888_v4 }
 0xf56   :  { %v2993_v60 = vld [vmem:[#allocation3 + $0x10] sm:$0xff] }
 0xf57   :  { %v2985_v53 = vsel %vm2980_vm8, %v2976_v12, %v2983_v56  ;;  %v2982_v6 = vmul.f32 %v2981_v11, %v2971_v5  ;;  %vm2979_vm9 = vcmp.ge.f32.partialorder %v2971_v5, 0.0 }
 0xf58   :  { %2987 = vst [vmem:[#allocation3 + $0x38] sm:$0x7f] %v2985_v53 }
 0xf59   :  { %v2984_v1 = vsel %vm2979_vm9, %v2971_v5, %v2982_v6  ;;  %v3388_v5 = vstv %s9733_s14  ;;  %s9761_s14 = sld [smem:[#allocation5 + $0x17]] }
 0xf5f   :  { %v2998_v0 = vld [vmem:[#allocation3 + $0x38] sm:$0xff] }
 0xf60   :  { %11627 = vmatprep.subr.mxu0 %v2998_v0 }
 0xf61   :  { %11628 = vmatpush3.msra.mxu0 %v2998_v0 }
 0xf62   :  { %11629 = vmatprep.subr.mxu0 %v2984_v1 }
 0xf63   :  { %11630 = vmatpush3.msra.mxu0 %v2984_v1 }
 0xfe7   :  { %v2873_v7 = vpop.f32.mrf.mxu1 }
 0xfe8   :  { %2877 = vst [vmem:[#allocation3 + $0x28] sm:$0x7] %v2873_v7  ;;  %v14924_v7 = vld [vmem:[%s17370_s11 + $0x78] sm:$0xff] }
 0xfe9   :  { %v11621_v15 = vpop.f32.mrf.mxu1 }
 0xfea   :  { %v14930_v15 = vld [vmem:[%s17370_s11 + $0x70] sm:$0xff] }
 0xfef   :  { %v2996_v26 = vld [vmem:[#allocation3 + $0x28] sm:$0xff] }
 0xff0   :  { %11631 = vmatprep.subr.mxu0 %v2996_v26 }
 0xff1   :  { %11632 = vmatpush3.msra.mxu0 %v2996_v26  ;;  %v14937_v26 = vld [vmem:[%s17370_s11 + $0x68] sm:$0xff] }
 0xff2   :  { %11633 = vmatprep.subr.mxu0 %v14786_v59 }
 0xff3   :  { %11634 = vmatpush3.msra.mxu0 %v14786_v59 }
 0xff4   :  { %11635 = vmatprep.subr.mxu0 %v14418_v32 }
 0xff5   :  { %11636 = vmatpush3.msra.mxu0 %v14418_v32  ;;  %v3195_v32 = vld [vmem:[#allocation2 + $0x38] sm:$0xff] }
 0xff6   :  { %11637 = vmatprep.subr.mxu0 %v2993_v60 }
 0xff7   :  { %11638 = vmatpush3.msra.mxu0 %v2993_v60  ;;  %v14944_v60 = vld [vmem:[%s17370_s11 + $0x60] sm:$0xff] }
 0xff8   :  { %11639 = vmatprep.subr.mxu0 %v14689_v51 }
 0xff9   :  { %11640 = vmatpush3.msra.mxu0 %v14689_v51 }
 0xffa   :  { %11641 = vmatprep.subr.mxu0 %v14687_v48 }
 0xffb   :  { %11642 = vmatpush3.msra.mxu0 %v14687_v48  ;;  %v14819_v48 = vld [vmem:[%s17374_s22] sm:$0xff] }
 0xffc   :  { %11644 = vmatmul.mubr.msk.f32.vlgmr.msra.gmra.mxu0 %vm1281_vm10, %v9722_v62  ;;  %11681 = vmatprep.subr.mxu0 %v13280_v50  ;;  %v14951_v62 = vld [vmem:[%s17370_s11 + $0x58] sm:$0xff] }
 0xffd   :  { %11682 = vmatpush3.msra.mxu0 %v3195_v32  ;;  %11697 = vmatprep.mubr.msk.f32.mxu0 %vm13281_vm13, %v13280_v50  ;;  %v14958_v32 = vld [vmem:[%s17370_s11 + $0x50] sm:$0xff] }
 0xffe   :  { %11683 = vmatprep.subr.mxu0 %v13280_v50  ;;  %11676 = vmatprep.subr.mxu1 %v14819_v48 }
 0xfff   :  { %11677 = vmatpush3.msra.mxu1 %v14819_v48 }
0x1000   :  { %11715 = vmatprep.subr.mxu1 %v13280_v50 }
0x10bc   :  { %v11645_v51 = vpop.f32.mrf.mxu0 }
0x10bd   :  { %v3084_v52 = vmul.f32 %v11645_v51, %v3082_v49  ;;  %vm3081_vm11 = vcmp.ge.f32.partialorder %v11645_v51, 0.0 }
0x10be   :  { %v3071_v55 = vpop.f32.mrf.mxu0 }
0x10bf   :  { %vm3080_vm14 = vcmp.ge.f32.partialorder %v3071_v55, 0.0  ;;  %v3083_v8 = vmul.f32 %v3082_v49, %v3071_v55  ;;  %v3086_v10 = vsel %vm3081_vm11, %v11645_v51, %v3084_v52  ;;  %v14965_v49 = vld [vmem:[%s17370_s11 + $0x48] sm:$0xff]  ;;  %v14972_v51 = vld [vmem:[%s17370_s11 + $0x40] sm:$0xff]  ;;  %v14979_v52 = vld [vmem:[%s17370_s11 + $0x38] sm:$0xff] }
0x10c1   :  { %v3085_v9 = vsel %vm3080_vm14, %v3071_v55, %v3083_v8  ;;  %v14986_v55 = vld [vmem:[%s17370_s11 + $0x30] sm:$0xff]  ;;  %v14993_v8 = vld [vmem:[%s17370_s11 + $0x28] sm:$0xff] }
0x10c2   :  { %11678 = vmatprep.mubr.f32.mxu1 %v3085_v9  ;;  %v15000_v9 = vld [vmem:[%s17370_s11 + $0x20] sm:$0xff] }
0x10c3   :  { %11679 = vmatmul.mubr.f32.vlgmr.msra.gmra.mxu1 %v3086_v10  ;;  %v15007_v10 = vld [vmem:[%s17370_s11 + $0x18] sm:$0xff] }
0x10c4   :  { %11716 = vmatpush3.msra.mxu1 %v14466_v54  ;;  %11747 = vmatprep.mubr.msk.f32.mxu1 %vm13281_vm13, %v13280_v50 }
0x10c5   :  { %11717 = vmatprep.subr.mxu1 %v13280_v50 }
0x10c6   :  { %11718 = vmatpush3.msra.mxu1 %v14471_v57 }
0x10c7   :  { %11719 = vmatprep.subr.mxu1 %v13280_v50 }
0x10c8   :  { %11720 = vmatpush3.msra.mxu1 %v14478_v22 }
0x10c9   :  { %11721 = vmatprep.subr.mxu1 %v13280_v50 }
0x10ca   :  { %11722 = vmatpush3.msra.mxu1 %v14485_v20  ;;  %v14862_v20 = vld [vmem:[#allocation2 + $0x20] sm:$0xff] }
0x10cb   :  { %11723 = vmatprep.subr.mxu1 %v13280_v50 }
0x10cc   :  { %11724 = vmatpush3.msra.mxu1 %v14492_v21  ;;  %v3190_v21 = vld [vmem:[#allocation2 + $0x10] sm:$0xff] }
0x10cd   :  { %11725 = vmatprep.subr.mxu1 %v13280_v50 }
0x10ce   :  { %11726 = vmatpush3.msra.mxu1 %v14499_v23  ;;  %v9725_v23 = vld [vmem:[%s17337_s20 + $0x30] sm:$0xff] }
0x10cf   :  { %11727 = vmatprep.subr.mxu1 %v13280_v50 }
0x10d0   :  { %11728 = vmatpush3.msra.mxu1 %v14506_v24  ;;  %v9727_v24 = vld [vmem:[%s17337_s20 + $0x40] sm:$0xf] }
0x10d1   :  { %11729 = vmatprep.subr.mxu1 %v13280_v50 }
0x10d2   :  { %11730 = vmatpush3.msra.mxu1 %v14513_v43 }
0x10d3   :  { %11731 = vmatprep.subr.mxu1 %v13280_v50 }
0x10d4   :  { %11732 = vmatpush3.msra.mxu1 %v14520_v44 }
0x10d5   :  { %11733 = vmatprep.subr.mxu1 %v13280_v50 }
0x10d6   :  { %11734 = vmatpush3.msra.mxu1 %v14527_v45 }
0x10d7   :  { %11735 = vmatprep.subr.mxu1 %v13280_v50 }
0x10d8   :  { %11736 = vmatpush3.msra.mxu1 %v14534_v46  ;;  %v3288_v46 = vstv %s9705_s12 }
0x10d9   :  { %11737 = vmatprep.subr.mxu1 %v13280_v50 }
0x10da   :  { %11738 = vmatpush3.msra.mxu1 %v14541_v47 }
0x10db   :  { %11739 = vmatprep.subr.mxu1 %v13280_v50 }
0x10dc   :  { %11740 = vmatpush3.msra.mxu1 %v14548_v3 }
0x10dd   :  { %11741 = vmatprep.subr.mxu1 %v13280_v50 }
0x10de   :  { %11742 = vmatpush3.msra.mxu1 %v14577_v61 }
0x10df   :  { %11743 = vmatprep.subr.mxu1 %v13280_v50 }
0x10e0   :  { %11744 = vmatpush3.msra.mxu1 %v14584_v35 }
0x10e1   :  { %11745 = vmatprep.subr.mxu1 %v13280_v50 }
0x10e2   :  { %11746 = vmatpush3.msra.mxu1 %v14589_v38 }
0x10e3   :  { %11796 = vmatprep.subr.mxu1 %v13280_v50 }
0x1183   :  { %v11680_v54 = vpop.f32.mrf.mxu1 }
0x1184   :  { %3182 = vst [vmem:[#allocation2 + $0x30] sm:$0x7f] %v11680_v54  ;;  %v15014_v54 = vld [vmem:[%s17370_s11 + $0x10] sm:$0xff] }
0x1185   :  { %v3169_v22 = vpop.f32.mrf.mxu1 }
0x118b   :  { %v3194_v57 = vld [vmem:[#allocation2 + $0x30] sm:$0xff] }
0x118c   :  { %11684 = vmatpush3.msra.mxu0 %v3194_v57  ;;  %v15021_v57 = vld [vmem:[%s17370_s11 + $0x8] sm:$0xff] }
0x118d   :  { %11685 = vmatprep.subr.mxu0 %v13280_v50 }
0x118e   :  { %11686 = vmatpush3.msra.mxu0 %v3169_v22  ;;  %v15028_v22 = vld [vmem:[%s17370_s11] sm:$0xff] }
0x118f   :  { %11687 = vmatprep.subr.mxu0 %v13280_v50 }
0x1190   :  { %11688 = vmatpush3.msra.mxu0 %v14862_v20 }
0x1191   :  { %11689 = vmatprep.subr.mxu0 %v13280_v50 }
0x1192   :  { %11690 = vmatpush3.msra.mxu0 %v14436_v14  ;;  %v9726_v14 = vld [vmem:[%s17337_s20 + $0x38] sm:$0xff] }
0x1193   :  { %11691 = vmatprep.subr.mxu0 %v13280_v50 }
0x1194   :  { %11692 = vmatpush3.msra.mxu0 %v3190_v21 }
0x1195   :  { %11693 = vmatprep.subr.mxu0 %v13280_v50 }
0x1196   :  { %11694 = vmatpush3.msra.mxu0 %v14560_v31 }
0x1197   :  { %11695 = vmatprep.subr.mxu0 %v13280_v50 }
0x1198   :  { %11696 = vmatpush3.msra.mxu0 %v14567_v34 }
0x1199   :  { %11698 = vmatmul.mubr.msk.f32.vlgmr.msra.gmra.mxu0 %vm1281_vm10, %v9725_v23  ;;  %11706 = vmatprep.subr.mxu0 %v13280_v50 }
0x119a   :  { %11700 = vmatprep.mubr.msk.f32.mxu0 %vm13281_vm13, %v13280_v50 }
0x119d   :  { %11701 = vmatmul.mubr.msk.f32.gmra.mxu0 %vm1281_vm10, %v9726_v14  ;;  %v3743_v14 = vld [vmem:[%s17373_s27] sm:$0x7] }
0x119e   :  { %11703 = vmatprep.mubr.msk.f32.mxu0 %vm13281_vm13, %v13280_v50 }
0x11a1   :  { %11704 = vmatmul.mubr.msk.f32.gmra.mxu0 %vm1281_vm10, %v9727_v24  ;;  %v9741_v24 = vld [vmem:[%s17334_s17 + $0x30] sm:$0xff] }
0x11a2   :  { %11712 = vmatprep.mubr.msk.f32.mxu0 %vm13281_vm13, %v13280_v50 }
0x1259   :  { %v3271_v43 = vpop.f32.mrf.mxu0 }
0x125a   :  { %v3289_v34 = vmul.f32 %v3288_v46, %v3271_v43  ;;  %vm3285_vm3 = vcmp.ge.f32.partialorder %v3271_v43, 0.0 }
0x125b   :  { %v11699_v44 = vpop.f32.mrf.mxu0 }
0x125c   :  { %v3292_v56 = vsel %vm3285_vm3, %v3271_v43, %v3289_v34  ;;  %v9742_v43 = vld [vmem:[%s17334_s17 + $0x38] sm:$0x7f] }
0x125d   :  { %v3276_v45 = vpop.f32.mrf.mxu0  ;;  %v14902_v53 = vadd.f32 %v3292_v56, %v14200_v39  ;;  %v3309_v39 = vpop.permute.xlu1 %3308 }
0x125e   :  { %v3290_v3 = vmul.f32 %v3288_v46, %v3276_v45  ;;  %vm3286_vm15 = vcmp.ge.f32.partialorder %v3276_v45, 0.0 }
0x125f   :  { %v11702_v47 = vpop.f32.mrf.mxu0 }
0x1260   :  { %v3293_v38 = vsel %vm3286_vm15, %v3276_v45, %v3290_v3  ;;  %v9748_v3 = vld [vmem:[%s17336_s19 + $0x30] sm:$0xff] }
0x1261   :  { %v3281_v31 = vpop.f32.mrf.mxu0  ;;  %v14895_v13 = vadd.f32 %v3293_v38, %v14193_v37  ;;  %v3477_v37 = vld [vmem:[%s17372_s28] sm:$0x3] }
0x1262   :  { %vm3287_vm2 = vcmp.ge.f32.partialorder %v3281_v31, 0.0  ;;  %v3291_v61 = vmul.f32 %v3288_v46, %v3281_v31 }
0x1263   :  { %v11705_v35 = vpop.f32.mrf.mxu0 }
0x1264   :  { %v3294_v11 = vsel %vm3287_vm2, %v3281_v31, %v3291_v61  ;;  %v15125_v35 = vld [vmem:[#allocation3 + $0x18] sm:$0xff] }
0x1265   :  { %v14892_v12 = vadd.f32 %v3294_v11, %v14187_v36  ;;  %v9735_v36 = vld [vmem:[%s17332_s15 + $0xc] sm:$0x7]  ;;  %v9749_v11 = vld [vmem:[%s17336_s19 + $0x38] sm:$0x7f] }
0x1267   :  { %4042 = vst [vmem:[#allocation2 + $0x10] sm:$0xf] %v14892_v12  ;;  %11707 = vmatpush3.msk.msra.mxu0 %vm734_vm12, %v14892_v12 }
0x1268   :  { %11708 = vmatprep.subr.mxu0 %v13280_v50 }
0x1269   :  { %11709 = vmatpush3.msra.mxu0 %v14895_v13 }
0x126a   :  { %11710 = vmatprep.subr.mxu0 %v13280_v50 }
0x126b   :  { %11711 = vmatpush3.msra.mxu0 %v14902_v53 }
0x126c   :  { %11713 = vmatmul.mubr.msk.f32.vlgmr.msra.gmra.mxu0 %vm730_vm4, %v9735_v36  ;;  %11750 = vmatprep.subr.mxu0 %v13280_v50 }
0x126d   :  { %11752 = vmatprep.mubr.msk.f32.mxu0 %vm13281_vm13, %v13280_v50  ;;  %11751 = vmatpush3.msk.msra.mxu0 %vm903_vm5, %v3477_v37 }
0x126e   :  { %11755 = vmatprep.subr.mxu0 %v13280_v50 }
0x132c   :  { %v3383_v4 = vpop.f32.mrf.mxu0 }
0x132d   :  { %v3384_v6 = vadd.f32 %v3383_v4, %v3309_v39 }
0x132e   :  { %v11714_v0 = vpop.f32.mrf.mxu0 }
0x132f   :  { %vm3387_vm6 = vcmp.ge.f32.partialorder %v3384_v6, 0.0  ;;  %v3389_v1 = vmul.f32 %v3388_v5, %v3384_v6 }
0x1331   :  { %v3390_v2 = vsel %vm3387_vm6, %v3384_v6, %v3389_v1 }
0x1332   :  { %11748 = vmatmul.mubr.f32.vlgmr.msra.gmra.mxu1 %v3390_v2  ;;  %v15143_v2 = vld [vmem:[#allocation2 + $0x18] sm:$0xff] }
0x1333   :  { %11828 = vmatprep.mubr.msk.f32.mxu1 %vm13281_vm13, %v13280_v50  ;;  %11797 = vmatpush3.msra.mxu1 %v14924_v7 }
0x1334   :  { %11798 = vmatprep.subr.mxu1 %v13280_v50 }
0x1335   :  { %11799 = vmatpush3.msra.mxu1 %v14930_v15 }
0x1336   :  { %11800 = vmatprep.subr.mxu1 %v13280_v50 }
0x1337   :  { %11801 = vmatpush3.msra.mxu1 %v14937_v26 }
0x1338   :  { %11802 = vmatprep.subr.mxu1 %v13280_v50 }
0x1339   :  { %11803 = vmatpush3.msra.mxu1 %v14944_v60 }
0x133a   :  { %11804 = vmatprep.subr.mxu1 %v13280_v50 }
0x133b   :  { %11805 = vmatpush3.msra.mxu1 %v14951_v62 }
0x133c   :  { %11806 = vmatprep.subr.mxu1 %v13280_v50 }
0x133d   :  { %11807 = vmatpush3.msra.mxu1 %v14958_v32 }
0x133e   :  { %11808 = vmatprep.subr.mxu1 %v13280_v50 }
0x133f   :  { %11809 = vmatpush3.msra.mxu1 %v14965_v49 }
0x1340   :  { %11810 = vmatprep.subr.mxu1 %v13280_v50 }
0x1341   :  { %11811 = vmatpush3.msra.mxu1 %v14972_v51 }
0x1342   :  { %11812 = vmatprep.subr.mxu1 %v13280_v50 }
0x1343   :  { %11813 = vmatpush3.msra.mxu1 %v14979_v52 }
0x1344   :  { %11814 = vmatprep.subr.mxu1 %v13280_v50 }
0x1345   :  { %11815 = vmatpush3.msra.mxu1 %v14986_v55 }
0x1346   :  { %11816 = vmatprep.subr.mxu1 %v13280_v50 }
0x1347   :  { %11817 = vmatpush3.msra.mxu1 %v14993_v8 }
0x1348   :  { %11818 = vmatprep.subr.mxu1 %v13280_v50 }
0x1349   :  { %11819 = vmatpush3.msra.mxu1 %v15000_v9 }
0x134a   :  { %11820 = vmatprep.subr.mxu1 %v13280_v50 }
0x134b   :  { %11821 = vmatpush3.msra.mxu1 %v15007_v10 }
0x134c   :  { %11822 = vmatprep.subr.mxu1 %v13280_v50 }
0x134d   :  { %11823 = vmatpush3.msra.mxu1 %v15014_v54 }
0x134e   :  { %11824 = vmatprep.subr.mxu1 %v13280_v50 }
0x134f   :  { %11825 = vmatpush3.msra.mxu1 %v15021_v57 }
0x1350   :  { %11826 = vmatprep.subr.mxu1 %v13280_v50 }
0x1351   :  { %11827 = vmatpush3.msra.mxu1 %v15028_v22 }
0x1352   :  { %11855 = vmatprep.subr.mxu1 %v14698_v25 }
0x13f2   :  { %v3473_v21 = vpop.f32.mrf.mxu1 }
0x13f3   :  { %11753 = vmatmul.mubr.msk.f32.vlgmr.msra.gmra.mxu0 %vm899_vm7, %v3473_v21  ;;  %v4052_v21 = vld [vmem:[#allocation2 + $0x10] sm:$0xff] }
0x13f4   :  { %11756 = vmatpush3.msra.mxu0 %v14924_v7  ;;  %v11749_v23 = vpop.f32.mrf.mxu1  ;;  %11787 = vmatprep.mubr.msk.f32.mxu0 %vm13281_vm13, %v13280_v50 }
0x13f5   :  { %11757 = vmatprep.subr.mxu0 %v13280_v50  ;;  %v9752_v23 = vld [vmem:[%s17337_s20 + $0x48] sm:$0xff] }
0x13f6   :  { %11758 = vmatpush3.msra.mxu0 %v14930_v15 }
0x13f7   :  { %11759 = vmatprep.subr.mxu0 %v13280_v50 }
0x13f8   :  { %11760 = vmatpush3.msra.mxu0 %v14937_v26 }
0x13f9   :  { %11761 = vmatprep.subr.mxu0 %v13280_v50 }
0x13fa   :  { %11762 = vmatpush3.msra.mxu0 %v14944_v60 }
0x13fb   :  { %11763 = vmatprep.subr.mxu0 %v13280_v50 }
0x13fc   :  { %11764 = vmatpush3.msra.mxu0 %v14951_v62 }
0x13fd   :  { %11765 = vmatprep.subr.mxu0 %v13280_v50 }
0x13fe   :  { %11766 = vmatpush3.msra.mxu0 %v14958_v32 }
0x13ff   :  { %11767 = vmatprep.subr.mxu0 %v13280_v50 }
0x1400   :  { %11768 = vmatpush3.msra.mxu0 %v14965_v49 }
0x1401   :  { %11769 = vmatprep.subr.mxu0 %v13280_v50 }
0x1402   :  { %11770 = vmatpush3.msra.mxu0 %v14972_v51 }
0x1403   :  { %11771 = vmatprep.subr.mxu0 %v13280_v50 }
0x1404   :  { %11772 = vmatpush3.msra.mxu0 %v14979_v52 }
0x1405   :  { %11773 = vmatprep.subr.mxu0 %v13280_v50 }
0x1406   :  { %11774 = vmatpush3.msra.mxu0 %v14986_v55 }
0x1407   :  { %11775 = vmatprep.subr.mxu0 %v13280_v50 }
0x1408   :  { %11776 = vmatpush3.msra.mxu0 %v14993_v8 }
0x1409   :  { %11777 = vmatprep.subr.mxu0 %v13280_v50 }
0x140a   :  { %11778 = vmatpush3.msra.mxu0 %v15000_v9 }
0x140b   :  { %11779 = vmatprep.subr.mxu0 %v13280_v50 }
0x140c   :  { %11780 = vmatpush3.msra.mxu0 %v15007_v10 }
0x140d   :  { %11781 = vmatprep.subr.mxu0 %v13280_v50 }
0x140e   :  { %11782 = vmatpush3.msra.mxu0 %v15014_v54 }
0x140f   :  { %11783 = vmatprep.subr.mxu0 %v13280_v50 }
0x1410   :  { %11784 = vmatpush3.msra.mxu0 %v15021_v57 }
0x1411   :  { %11785 = vmatprep.subr.mxu0 %v13280_v50 }
0x1412   :  { %11786 = vmatpush3.msra.mxu0 %v15028_v22 }
0x1413   :  { %11788 = vmatmul.mubr.f32.vlgmr.msra.gmra.mxu0 %v14902_v53  ;;  %11831 = vmatprep.subr.msk.mxu0 %vm141_vm0, %v3743_v14 }
0x1414   :  { %11790 = vmatprep.mubr.msk.f32.mxu0 %vm13281_vm13, %v13280_v50  ;;  %11832 = vmatpush3.msk.msra.mxu0 %vm141_vm0, %v3743_v14 }
0x1417   :  { %11791 = vmatmul.mubr.f32.gmra.mxu0 %v14895_v13 }
0x1418   :  { %11793 = vmatprep.mubr.msk.f32.mxu0 %vm13281_vm13, %v13280_v50 }
0x141b   :  { %11794 = vmatmul.mubr.f32.gmra.mxu0 %v14892_v12  ;;  %v3944_v12 = vstv %s9731_s1  ;;  %s9759_s1 = sld [smem:[#allocation5 + $0x15]] }
0x141c   :  { %11833 = vmatprep.mubr.msk.f32.mxu0 %vm128_vm1, %v9741_v24 }
0x141f   :  { %11834 = vmatmul.mubr.msk.f32.vlgmr.msra.gmra.mxu0 %vm128_vm1, %v9742_v43 }
0x1420   :  { %11852 = vmatprep.mubr.msk.f32.mxu0 %vm1281_vm10, %v9748_v3  ;;  %v15261_v3 = vld [vmem:[%s17371_s25 + $0x28] sm:$0xff] }
0x14b3   :  { %v3550_v44 = vpop.f32.mrf.mxu0 }
0x14b4   :  { %4045 = vst [vmem:[#allocation2 + $0x38] sm:$0x7] %v3550_v44  ;;  %11829 = vmatmul.mubr.f32.vlgmr.msra.gmra.mxu1 %v3550_v44  ;;  %v4150_v44 = vstv %s9732_s16 }
0x14b5   :  { %v11754_v45 = vpop.f32.mrf.mxu0  ;;  %11856 = vmatpush3.msra.mxu1 %v14698_v25 }
0x14b6   :  { %11857 = vmatprep.subr.mxu1 %v14703_v27 }
0x14b7   :  { %11858 = vmatpush3.msra.mxu1 %v14703_v27 }
0x14b8   :  { %11859 = vmatprep.subr.mxu1 %v14710_v28 }
0x14b9   :  { %11860 = vmatpush3.msra.mxu1 %v14710_v28 }
0x14ba   :  { %11861 = vmatprep.subr.mxu1 %v14717_v29 }
0x14bb   :  { %11862 = vmatpush3.msra.mxu1 %v14717_v29 }
0x14bc   :  { %11863 = vmatprep.subr.mxu1 %v14724_v30 }
0x14bd   :  { %11864 = vmatpush3.msra.mxu1 %v14724_v30 }
0x14be   :  { %11865 = vmatprep.subr.mxu1 %v14731_v33 }
0x14bf   :  { %11866 = vmatpush3.msra.mxu1 %v14731_v33 }
0x14c0   :  { %11867 = vmatprep.subr.mxu1 %v14738_v40 }
0x14c1   :  { %11868 = vmatpush3.msra.mxu1 %v14738_v40  ;;  %v3755_v40 = vpop.permute.xlu0 %3754 }
0x14c2   :  { %11869 = vmatprep.subr.mxu1 %v14745_v41 }
0x14c3   :  { %11870 = vmatpush3.msra.mxu1 %v14745_v41 }
0x14c4   :  { %11871 = vmatprep.subr.mxu1 %v14752_v42 }
0x14c5   :  { %11872 = vmatpush3.msra.mxu1 %v14752_v42  ;;  %v3843_v42 = vstv %s9734_s2 }
0x14c6   :  { %11873 = vmatprep.subr.mxu1 %v14759_v16 }
0x14c7   :  { %11874 = vmatpush3.msra.mxu1 %v14759_v16 }
0x14c8   :  { %11875 = vmatprep.subr.mxu1 %v14766_v17 }
0x14c9   :  { %11876 = vmatpush3.msra.mxu1 %v14766_v17 }
0x14ca   :  { %11877 = vmatprep.subr.mxu1 %v14773_v18 }
0x14cb   :  { %11878 = vmatpush3.msra.mxu1 %v14773_v18 }
0x14cc   :  { %11879 = vmatprep.subr.mxu1 %v14780_v19 }
0x14cd   :  { %11880 = vmatpush3.msra.mxu1 %v14780_v19 }
0x14ce   :  { %11881 = vmatprep.subr.mxu1 %v14807_v63 }
0x14cf   :  { %11882 = vmatpush3.msra.mxu1 %v14807_v63  ;;  %v3750_v63 = vpop.permute.xlu1 %3749 }
0x14d0   :  { %11883 = vmatprep.subr.mxu1 %v14814_v58 }
0x14d1   :  { %11884 = vmatpush3.msra.mxu1 %v14814_v58 }
0x14d2   :  { %11885 = vmatprep.subr.mxu1 %v14819_v48 }
0x14d3   :  { %v3636_v25 = vpop.f32.mrf.mxu0  ;;  %11886 = vmatpush3.msra.mxu1 %v14819_v48 }
0x14d4   :  { %11959 = vmatprep.subr.mxu1 %v13280_v50 }
0x14d5   :  { %v11789_v27 = vpop.f32.mrf.mxu0 }
0x14d7   :  { %v3641_v28 = vpop.f32.mrf.mxu0 }
0x14d9   :  { %v11792_v29 = vpop.f32.mrf.mxu0 }
0x14db   :  { %v3646_v30 = vpop.f32.mrf.mxu0 }
0x14dc   :  { %3652 = vst [vmem:[#allocation3 + $0x10] sm:$0xf] %v3646_v30 }
0x14dd   :  { %v11795_v33 = vpop.f32.mrf.mxu0 }
0x14df   :  { %v11835_v41 = vpop.f32.mrf.mxu0 }
0x14e0   :  { %v3838_v16 = vadd.f32 %v11835_v41, %v3755_v40  ;;  %v9762_v40 = vld [vmem:[%s17332_s15 + $0x10] sm:$0x7] }
0x14e1   :  { %v3832_v18 = vpop.f32.mrf.mxu0 }
0x14e2   :  { %vm3842_vm8 = vcmp.ge.f32.partialorder %v3838_v16, 0.0  ;;  %v3845_v17 = vmul.f32 %v3843_v42, %v3838_v16  ;;  %v3833_v58 = vadd.f32 %v3832_v18, %v3750_v63  ;;  %v15212_v18 = vld [vmem:[%s17371_s25 + $0x60] sm:$0xff]  ;;  %v15226_v63 = vld [vmem:[%s17371_s25 + $0x50] sm:$0xff] }
0x14e3   :  { %v3855_v38 = vld [vmem:[#allocation3 + $0x10] sm:$0xff] }
0x14e4   :  { %v3847_v19 = vsel %vm3842_vm8, %v3838_v16, %v3845_v17  ;;  %v3844_v48 = vmul.f32 %v3843_v42, %v3833_v58  ;;  %vm3841_vm9 = vcmp.ge.f32.partialorder %v3833_v58, 0.0  ;;  %v15188_v42 = vld [vmem:[%s17371_s25 + $0x78] sm:$0xff]  ;;  %v15196_v16 = vld [vmem:[%s17371_s25 + $0x70] sm:$0xff]  ;;  %v15205_v17 = vld [vmem:[%s17371_s25 + $0x68] sm:$0xff] }
0x14e5   :  { %3849 = vst [vmem:[#allocation3 + $0x38] sm:$0x7f] %v3847_v19  ;;  %v15219_v19 = vld [vmem:[%s17371_s25 + $0x58] sm:$0xff] }
0x14e6   :  { %v3846_v47 = vsel %vm3841_vm9, %v3833_v58, %v3844_v48  ;;  %v15233_v58 = vld [vmem:[%s17371_s25 + $0x48] sm:$0xff]  ;;  %v15240_v48 = vld [vmem:[%s17371_s25 + $0x40] sm:$0xff] }
0x14ec   :  { %v3860_v46 = vld [vmem:[#allocation3 + $0x38] sm:$0xff] }
0x14ed   :  { %11836 = vmatprep.subr.mxu0 %v3860_v46 }
0x14ee   :  { %11837 = vmatpush3.msra.mxu0 %v3860_v46  ;;  %v15247_v46 = vld [vmem:[%s17371_s25 + $0x38] sm:$0xff] }
0x14ef   :  { %11838 = vmatprep.subr.mxu0 %v3846_v47 }
0x14f0   :  { %11839 = vmatpush3.msra.mxu0 %v3846_v47  ;;  %v15254_v47 = vld [vmem:[%s17371_s25 + $0x30] sm:$0xff] }
0x1574   :  { %v3735_v31 = vpop.f32.mrf.mxu1 }
0x1575   :  { %3739 = vst [vmem:[#allocation3 + $0x28] sm:$0x7] %v3735_v31  ;;  %v15268_v31 = vld [vmem:[%s17371_s25 + $0x20] sm:$0xff] }
0x1576   :  { %v11830_v34 = vpop.f32.mrf.mxu1 }
0x1577   :  { %v15275_v34 = vld [vmem:[%s17371_s25 + $0x18] sm:$0xff] }
0x157c   :  { %v3858_v61 = vld [vmem:[#allocation3 + $0x28] sm:$0xff] }
0x157d   :  { %11840 = vmatprep.subr.mxu0 %v3858_v61 }
0x157e   :  { %11841 = vmatpush3.msra.mxu0 %v3858_v61  ;;  %v15284_v61 = vld [vmem:[%s17371_s25 + $0x10] sm:$0xff] }
0x157f   :  { %11842 = vmatprep.subr.mxu0 %v14786_v59 }
0x1580   :  { %11843 = vmatpush3.msra.mxu0 %v14786_v59  ;;  %v4057_v59 = vld [vmem:[#allocation2 + $0x38] sm:$0xff] }
0x1581   :  { %11844 = vmatprep.subr.mxu0 %v15125_v35 }
0x1582   :  { %11845 = vmatpush3.msra.mxu0 %v15125_v35 }
0x1583   :  { %11846 = vmatprep.subr.mxu0 %v3855_v38 }
0x1584   :  { %11847 = vmatpush3.msra.mxu0 %v3855_v38  ;;  %v15291_v38 = vld [vmem:[%s17371_s25 + $0x8] sm:$0xff] }
0x1585   :  { %11848 = vmatprep.subr.mxu0 %v3641_v28 }
0x1586   :  { %11849 = vmatpush3.msra.mxu0 %v3641_v28 }
0x1587   :  { %11850 = vmatprep.subr.mxu0 %v3636_v25 }
0x1588   :  { %11851 = vmatpush3.msra.mxu0 %v3636_v25 }
0x1589   :  { %11853 = vmatmul.mubr.msk.f32.vlgmr.msra.gmra.mxu0 %vm1281_vm10, %v9749_v11  ;;  %11890 = vmatprep.subr.mxu0 %v13280_v50  ;;  %v15296_v11 = vld [vmem:[%s17371_s25] sm:$0xff] }
0x158a   :  { %11891 = vmatpush3.msra.mxu0 %v4057_v59  ;;  %11906 = vmatprep.mubr.msk.f32.mxu0 %vm13281_vm13, %v13280_v50  ;;  %v4336_v59 = vld [vmem:[%s17372_s28] sm:$0x3] }
0x158b   :  { %11892 = vmatprep.subr.mxu0 %v13280_v50 }
0x1649   :  { %v11854_v56 = vpop.f32.mrf.mxu0 }
0x164a   :  { %v3946_v36 = vmul.f32 %v11854_v56, %v3944_v12  ;;  %vm3943_vm11 = vcmp.ge.f32.partialorder %v11854_v56, 0.0 }
0x164b   :  { %v3933_v37 = vpop.f32.mrf.mxu0 }
0x164c   :  { %vm3942_vm14 = vcmp.ge.f32.partialorder %v3933_v37, 0.0  ;;  %v3945_v39 = vmul.f32 %v3944_v12, %v3933_v37  ;;  %v3948_v5 = vsel %vm3943_vm11, %v11854_v56, %v3946_v36  ;;  %v4168_v12 = vpop.permute.xlu0 %4167  ;;  %v4247_v36 = vstv %s9760_s0  ;;  %s9788_s0 = sld [smem:[#allocation5 + $0x1b]] }
0x164e   :  { %v3947_v4 = vsel %vm3942_vm14, %v3933_v37, %v3945_v39 }
0x164f   :  { %11887 = vmatprep.mubr.f32.mxu1 %v3947_v4 }
0x1650   :  { %11888 = vmatmul.mubr.f32.vlgmr.msra.gmra.mxu1 %v3948_v5 }
0x1651   :  { %11961 = vmatprep.mubr.msk.f32.mxu1 %vm13281_vm13, %v13280_v50  ;;  %11960 = vmatpush3.msk.msra.mxu1 %vm903_vm5, %v4336_v59  ;;  %v15459_v59 = vld [vmem:[%s17374_s22 + $0x38] sm:$0xff] }
0x1652   :  { %11964 = vmatprep.subr.mxu1 %v13280_v50 }
0x1710   :  { %v11889_v6 = vpop.f32.mrf.mxu1 }
0x1711   :  { %4044 = vst [vmem:[#allocation2 + $0x30] sm:$0x7f] %v11889_v6 }
0x1712   :  { %v4031_v1 = vpop.f32.mrf.mxu1 }
0x1718   :  { %v4056_v0 = vld [vmem:[#allocation2 + $0x30] sm:$0xff] }
0x1719   :  { %11893 = vmatpush3.msra.mxu0 %v4056_v0 }
0x171a   :  { %11894 = vmatprep.subr.mxu0 %v13280_v50 }
0x171b   :  { %11895 = vmatpush3.msra.mxu0 %v4031_v1 }
0x171c   :  { %11896 = vmatprep.subr.mxu0 %v13280_v50 }
0x171d   :  { %11897 = vmatpush3.msra.mxu0 %v14862_v20  ;;  %v9753_v20 = vld [vmem:[%s17337_s20 + $0x50] sm:$0xff] }
0x171e   :  { %11898 = vmatprep.subr.mxu0 %v13280_v50 }
0x171f   :  { %11899 = vmatpush3.msra.mxu0 %v15143_v2 }
0x1720   :  { %11900 = vmatprep.subr.mxu0 %v13280_v50 }
0x1721   :  { %11901 = vmatpush3.msra.mxu0 %v4052_v21 }
0x1722   :  { %11902 = vmatprep.subr.mxu0 %v13280_v50 }
0x1723   :  { %11903 = vmatpush3.msra.mxu0 %v14895_v13  ;;  %v9754_v13 = vld [vmem:[%s17337_s20 + $0x58] sm:$0xf] }
0x1724   :  { %11904 = vmatprep.subr.mxu0 %v13280_v50 }
0x1725   :  { %11905 = vmatpush3.msra.mxu0 %v14902_v53 }
0x1726   :  { %11907 = vmatmul.mubr.msk.f32.vlgmr.msra.gmra.mxu0 %vm1281_vm10, %v9752_v23  ;;  %11915 = vmatprep.subr.mxu0 %v13280_v50  ;;  %v4609_v23 = vpop.permute.xlu0 %4608 }
0x1727   :  { %11909 = vmatprep.mubr.msk.f32.mxu0 %vm13281_vm13, %v13280_v50 }
0x172a   :  { %11910 = vmatmul.mubr.msk.f32.gmra.mxu0 %vm1281_vm10, %v9753_v20 }
0x172b   :  { %11912 = vmatprep.mubr.msk.f32.mxu0 %vm13281_vm13, %v13280_v50 }
0x172e   :  { %11913 = vmatmul.mubr.msk.f32.gmra.mxu0 %vm1281_vm10, %v9754_v13 }
0x172f   :  { %11921 = vmatprep.mubr.msk.f32.mxu0 %vm13281_vm13, %v13280_v50 }
0x17e6   :  { %v4133_v53 = vpop.f32.mrf.mxu0 }
0x17e7   :  { %v4151_v29 = vmul.f32 %v4150_v44, %v4133_v53  ;;  %vm4147_vm3 = vcmp.ge.f32.partialorder %v4133_v53, 0.0 }
0x17e8   :  { %v11908_v14 = vpop.f32.mrf.mxu0 }
0x17e9   :  { %v15183_v41 = vsel %vm4147_vm3, %v4133_v53, %v4151_v29  ;;  %v15445_v29 = vld [vmem:[%s17374_s22 + $0x48] sm:$0xff] }
0x17ea   :  { %v4138_v24 = vpop.f32.mrf.mxu0 }
0x17eb   :  { %v4152_v25 = vmul.f32 %v4150_v44, %v4138_v24  ;;  %vm4148_vm2 = vcmp.ge.f32.partialorder %v4138_v24, 0.0 }
0x17ec   :  { %v11911_v43 = vpop.f32.mrf.mxu0 }
0x17ed   :  { %v15176_v33 = vsel %vm4148_vm2, %v4138_v24, %v4152_v25  ;;  %v9775_v24 = vld [vmem:[%s17336_s19 + $0x40] sm:$0xff]  ;;  %v15405_v43 = vld [vmem:[%s17374_s22 + $0x78] sm:$0xff] }
0x17ee   :  { %v4143_v45 = vpop.f32.mrf.mxu0  ;;  %v15424_v25 = vld [vmem:[%s17374_s22 + $0x60] sm:$0xff] }
0x17ef   :  { %vm4149_vm15 = vcmp.ge.f32.partialorder %v4143_v45, 0.0  ;;  %v4153_v27 = vmul.f32 %v4150_v44, %v4143_v45  ;;  %v15410_v44 = vld [vmem:[%s17374_s22 + $0x70] sm:$0xff] }
0x17f0   :  { %v11914_v28 = vpop.f32.mrf.mxu0 }
0x17f1   :  { %v15170_v30 = vsel %vm4149_vm15, %v4143_v45, %v4153_v27  ;;  %v15417_v45 = vld [vmem:[%s17374_s22 + $0x68] sm:$0xff]  ;;  %v15431_v27 = vld [vmem:[%s17374_s22 + $0x58] sm:$0xff]  ;;  %v15438_v28 = vld [vmem:[%s17374_s22 + $0x50] sm:$0xff] }
0x17f2   :  { %4901 = vst [vmem:[#allocation2 + $0x10] sm:$0xf] %v15170_v30  ;;  %11916 = vmatpush3.msk.msra.mxu0 %vm734_vm12, %v15170_v30 }
0x17f3   :  { %11917 = vmatprep.subr.mxu0 %v13280_v50 }
0x17f4   :  { %11918 = vmatpush3.msra.mxu0 %v15176_v33 }
0x17f5   :  { %11919 = vmatprep.subr.mxu0 %v13280_v50 }
0x17f6   :  { %11920 = vmatpush3.msra.mxu0 %v15183_v41 }
0x17f7   :  { %11922 = vmatmul.mubr.msk.f32.vlgmr.msra.gmra.mxu0 %vm730_vm4, %v9762_v40  ;;  %11924 = vmatprep.subr.mxu0 %v13280_v50  ;;  %v15452_v40 = vld [vmem:[%s17374_s22 + $0x40] sm:$0xff] }
0x17f8   :  { %11925 = vmatpush3.msra.mxu0 %v15188_v42  ;;  %11956 = vmatprep.mubr.msk.f32.mxu0 %vm13281_vm13, %v13280_v50 }
0x17f9   :  { %11926 = vmatprep.subr.mxu0 %v13280_v50 }
0x17fa   :  { %11927 = vmatpush3.msra.mxu0 %v15196_v16 }
0x17fb   :  { %11928 = vmatprep.subr.mxu0 %v13280_v50 }
0x17fc   :  { %11929 = vmatpush3.msra.mxu0 %v15205_v17 }
0x17fd   :  { %11930 = vmatprep.subr.mxu0 %v13280_v50 }
0x17fe   :  { %11931 = vmatpush3.msra.mxu0 %v15212_v18 }
0x17ff   :  { %11932 = vmatprep.subr.mxu0 %v13280_v50 }
0x1800   :  { %11933 = vmatpush3.msra.mxu0 %v15219_v19 }
0x1801   :  { %11934 = vmatprep.subr.mxu0 %v13280_v50 }
0x1802   :  { %11935 = vmatpush3.msra.mxu0 %v15226_v63 }
0x1803   :  { %11936 = vmatprep.subr.mxu0 %v13280_v50 }
0x1804   :  { %11937 = vmatpush3.msra.mxu0 %v15233_v58 }
0x1805   :  { %11938 = vmatprep.subr.mxu0 %v13280_v50 }
0x1806   :  { %11939 = vmatpush3.msra.mxu0 %v15240_v48 }
0x1807   :  { %11940 = vmatprep.subr.mxu0 %v13280_v50 }
0x1808   :  { %11941 = vmatpush3.msra.mxu0 %v15247_v46 }
0x1809   :  { %11942 = vmatprep.subr.mxu0 %v13280_v50 }
0x180a   :  { %11943 = vmatpush3.msra.mxu0 %v15254_v47 }
0x180b   :  { %11944 = vmatprep.subr.mxu0 %v13280_v50 }
0x180c   :  { %11945 = vmatpush3.msra.mxu0 %v15261_v3 }
0x180d   :  { %11946 = vmatprep.subr.mxu0 %v13280_v50 }
0x180e   :  { %11947 = vmatpush3.msra.mxu0 %v15268_v31 }
0x180f   :  { %11948 = vmatprep.subr.mxu0 %v13280_v50 }
0x1810   :  { %11949 = vmatpush3.msra.mxu0 %v15275_v34 }
0x1811   :  { %11950 = vmatprep.subr.mxu0 %v13280_v50 }
0x1812   :  { %11951 = vmatpush3.msra.mxu0 %v15284_v61 }
0x1813   :  { %11952 = vmatprep.subr.mxu0 %v13280_v50 }
0x1814   :  { %11953 = vmatpush3.msra.mxu0 %v15291_v38 }
0x1815   :  { %11954 = vmatprep.subr.mxu0 %v13280_v50 }
0x1816   :  { %11955 = vmatpush3.msra.mxu0 %v15296_v11 }
0x1817   :  { %12005 = vmatprep.subr.mxu0 %v13280_v50 }
0x18b7   :  { %v4242_v56 = vpop.f32.mrf.mxu0 }
0x18b8   :  { %v4243_v37 = vadd.f32 %v4242_v56, %v4168_v12  ;;  %v15466_v12 = vld [vmem:[%s17374_s22 + $0x30] sm:$0xff]  ;;  %v15473_v56 = vld [vmem:[%s17374_s22 + $0x28] sm:$0xff] }
0x18b9   :  { %v11923_v39 = vpop.f32.mrf.mxu0 }
0x18ba   :  { %vm4246_vm6 = vcmp.ge.f32.partialorder %v4243_v37, 0.0  ;;  %v4248_v4 = vmul.f32 %v4247_v36, %v4243_v37  ;;  %v15480_v36 = vld [vmem:[%s17374_s22 + $0x20] sm:$0xff] }
0x18bc   :  { %v4249_v5 = vsel %vm4246_vm6, %v4243_v37, %v4248_v4  ;;  %v15487_v37 = vld [vmem:[%s17374_s22 + $0x18] sm:$0xff] }
0x18bd   :  { %11957 = vmatmul.mubr.f32.vlgmr.msra.gmra.mxu0 %v4249_v5 }
0x18be   :  { %12006 = vmatpush3.msra.mxu0 %v14924_v7  ;;  %12037 = vmatprep.mubr.msk.f32.mxu0 %vm13281_vm13, %v13280_v50 }
0x18bf   :  { %12007 = vmatprep.subr.mxu0 %v13280_v50 }
0x18c0   :  { %12008 = vmatpush3.msra.mxu0 %v14930_v15 }
0x18c1   :  { %12009 = vmatprep.subr.mxu0 %v13280_v50 }
0x18c2   :  { %12010 = vmatpush3.msra.mxu0 %v14937_v26 }
0x18c3   :  { %12011 = vmatprep.subr.mxu0 %v13280_v50 }
0x18c4   :  { %12012 = vmatpush3.msra.mxu0 %v14944_v60 }
0x18c5   :  { %12013 = vmatprep.subr.mxu0 %v13280_v50 }
0x18c6   :  { %12014 = vmatpush3.msra.mxu0 %v14951_v62 }
0x18c7   :  { %12015 = vmatprep.subr.mxu0 %v13280_v50 }
0x18c8   :  { %12016 = vmatpush3.msra.mxu0 %v14958_v32 }
0x18c9   :  { %12017 = vmatprep.subr.mxu0 %v13280_v50 }
0x18ca   :  { %12018 = vmatpush3.msra.mxu0 %v14965_v49 }
0x18cb   :  { %12019 = vmatprep.subr.mxu0 %v13280_v50 }
0x18cc   :  { %12020 = vmatpush3.msra.mxu0 %v14972_v51 }
0x18cd   :  { %12021 = vmatprep.subr.mxu0 %v13280_v50 }
0x18ce   :  { %12022 = vmatpush3.msra.mxu0 %v14979_v52 }
0x18cf   :  { %12023 = vmatprep.subr.mxu0 %v13280_v50 }
0x18d0   :  { %12024 = vmatpush3.msra.mxu0 %v14986_v55 }
0x18d1   :  { %12025 = vmatprep.subr.mxu0 %v13280_v50 }
0x18d2   :  { %12026 = vmatpush3.msra.mxu0 %v14993_v8 }
0x18d3   :  { %12027 = vmatprep.subr.mxu0 %v13280_v50 }
0x18d4   :  { %12028 = vmatpush3.msra.mxu0 %v15000_v9 }
0x18d5   :  { %12029 = vmatprep.subr.mxu0 %v13280_v50 }
0x18d6   :  { %12030 = vmatpush3.msra.mxu0 %v15007_v10 }
0x18d7   :  { %12031 = vmatprep.subr.mxu0 %v13280_v50 }
0x18d8   :  { %12032 = vmatpush3.msra.mxu0 %v15014_v54 }
0x18d9   :  { %12033 = vmatprep.subr.mxu0 %v13280_v50 }
0x18da   :  { %12034 = vmatpush3.msra.mxu0 %v15021_v57 }
0x18db   :  { %12035 = vmatprep.subr.mxu0 %v13280_v50 }
0x18dc   :  { %12036 = vmatpush3.msra.mxu0 %v15028_v22 }
0x18dd   :  { %12064 = vmatprep.subr.mxu0 %v15405_v43 }
0x197d   :  { %v4332_v6 = vpop.f32.mrf.mxu0 }
0x197e   :  { %11962 = vmatmul.mubr.msk.f32.vlgmr.msra.gmra.mxu1 %vm899_vm7, %v4332_v6  ;;  %v15493_v6 = vld [vmem:[#allocation3 + $0x20] sm:$0xff] }
0x197f   :  { %11965 = vmatpush3.msra.mxu1 %v14924_v7  ;;  %v11958_v0 = vpop.f32.mrf.mxu0  ;;  %11996 = vmatprep.mubr.msk.f32.mxu1 %vm13281_vm13, %v13280_v50  ;;  %v4602_v7 = vld [vmem:[%s17373_s27] sm:$0x7] }
0x1980   :  { %11966 = vmatprep.subr.mxu1 %v13280_v50 }
0x1981   :  { %11967 = vmatpush3.msra.mxu1 %v14930_v15  ;;  %v9768_v15 = vld [vmem:[%s17334_s17 + $0x40] sm:$0xff] }
0x1982   :  { %11968 = vmatprep.subr.mxu1 %v13280_v50 }
0x1983   :  { %11969 = vmatpush3.msra.mxu1 %v14937_v26  ;;  %v9769_v26 = vld [vmem:[%s17334_s17 + $0x48] sm:$0x7f] }
0x1984   :  { %11970 = vmatprep.subr.mxu1 %v13280_v50 }
0x1985   :  { %11971 = vmatpush3.msra.mxu1 %v14944_v60 }
0x1986   :  { %11972 = vmatprep.subr.mxu1 %v13280_v50 }
0x1987   :  { %11973 = vmatpush3.msra.mxu1 %v14951_v62 }
0x1988   :  { %11974 = vmatprep.subr.mxu1 %v13280_v50 }
0x1989   :  { %11975 = vmatpush3.msra.mxu1 %v14958_v32 }
0x198a   :  { %11976 = vmatprep.subr.mxu1 %v13280_v50 }
0x198b   :  { %11977 = vmatpush3.msra.mxu1 %v14965_v49 }
0x198c   :  { %11978 = vmatprep.subr.mxu1 %v13280_v50 }
0x198d   :  { %11979 = vmatpush3.msra.mxu1 %v14972_v51 }
0x198e   :  { %11980 = vmatprep.subr.mxu1 %v13280_v50 }
0x198f   :  { %11981 = vmatpush3.msra.mxu1 %v14979_v52 }
0x1990   :  { %11982 = vmatprep.subr.mxu1 %v13280_v50 }
0x1991   :  { %11983 = vmatpush3.msra.mxu1 %v14986_v55 }
0x1992   :  { %11984 = vmatprep.subr.mxu1 %v13280_v50 }
0x1993   :  { %11985 = vmatpush3.msra.mxu1 %v14993_v8 }
0x1994   :  { %11986 = vmatprep.subr.mxu1 %v13280_v50 }
0x1995   :  { %11987 = vmatpush3.msra.mxu1 %v15000_v9  ;;  %v4614_v9 = vpop.permute.xlu1 %4613 }
0x1996   :  { %11988 = vmatprep.subr.mxu1 %v13280_v50 }
0x1997   :  { %11989 = vmatpush3.msra.mxu1 %v15007_v10 }
0x1998   :  { %11990 = vmatprep.subr.mxu1 %v13280_v50 }
0x1999   :  { %11991 = vmatpush3.msra.mxu1 %v15014_v54  ;;  %v4702_v54 = vstv %s9761_s14  ;;  %s9894_s14 = sld [smem:[#allocation5 + $0x29]] }
0x199a   :  { %11992 = vmatprep.subr.mxu1 %v13280_v50 }
0x199b   :  { %11993 = vmatpush3.msra.mxu1 %v15021_v57 }
0x199c   :  { %11994 = vmatprep.subr.mxu1 %v13280_v50 }
0x199d   :  { %11995 = vmatpush3.msra.mxu1 %v15028_v22 }
0x199e   :  { %11997 = vmatmul.mubr.f32.vlgmr.msra.gmra.mxu1 %v15183_v41  ;;  %12040 = vmatprep.subr.msk.mxu1 %vm141_vm0, %v4602_v7 }
0x199f   :  { %11999 = vmatprep.mubr.msk.f32.mxu1 %vm13281_vm13, %v13280_v50  ;;  %12041 = vmatpush3.msk.msra.mxu1 %vm141_vm0, %v4602_v7  ;;  %v9776_v7 = vld [vmem:[%s17336_s19 + $0x48] sm:$0x7f] }
0x19a2   :  { %12000 = vmatmul.mubr.f32.gmra.mxu1 %v15176_v33 }
0x19a3   :  { %12002 = vmatprep.mubr.msk.f32.mxu1 %vm13281_vm13, %v13280_v50 }
0x19a6   :  { %12003 = vmatmul.mubr.f32.gmra.mxu1 %v15170_v30 }
0x19a7   :  { %12042 = vmatprep.mubr.msk.f32.mxu1 %vm128_vm1, %v9768_v15  ;;  %v15514_v15 = vld [vmem:[%s17374_s22 + $0x10] sm:$0xff] }
0x19aa   :  { %12043 = vmatmul.mubr.msk.f32.vlgmr.msra.gmra.mxu1 %vm128_vm1, %v9769_v26  ;;  %v15521_v26 = vld [vmem:[%s17374_s22 + $0x8] sm:$0xff] }
0x19ab   :  { %12061 = vmatprep.mubr.msk.f32.mxu1 %vm1281_vm10, %v9775_v24 }
0x1a3e   :  { %v4409_v60 = vpop.f32.mrf.mxu1 }
0x1a3f   :  { %4904 = vst [vmem:[#allocation2 + $0x38] sm:$0x7] %v4409_v60  ;;  %12038 = vmatmul.mubr.f32.vlgmr.msra.gmra.mxu0 %v4409_v60  ;;  %v15526_v60 = vld [vmem:[%s17374_s22] sm:$0xff] }
0x1a40   :  { %v11963_v62 = vpop.f32.mrf.mxu1  ;;  %12065 = vmatpush3.msra.mxu0 %v15405_v43 }
0x1a41   :  { %12066 = vmatprep.subr.mxu0 %v15410_v44  ;;  %v4803_v62 = vstv %s9758_s9 }
0x1a42   :  { %12067 = vmatpush3.msra.mxu0 %v15410_v44 }
0x1a43   :  { %12068 = vmatprep.subr.mxu0 %v15417_v45 }
0x1a44   :  { %12069 = vmatpush3.msra.mxu0 %v15417_v45 }
0x1a45   :  { %12070 = vmatprep.subr.mxu0 %v15424_v25 }
0x1a46   :  { %12071 = vmatpush3.msra.mxu0 %v15424_v25 }
0x1a47   :  { %12072 = vmatprep.subr.mxu0 %v15431_v27 }
0x1a48   :  { %12073 = vmatpush3.msra.mxu0 %v15431_v27 }
0x1a49   :  { %12074 = vmatprep.subr.mxu0 %v15438_v28 }
0x1a4a   :  { %12075 = vmatpush3.msra.mxu0 %v15438_v28 }
0x1a4b   :  { %12076 = vmatprep.subr.mxu0 %v15445_v29 }
0x1a4c   :  { %12077 = vmatpush3.msra.mxu0 %v15445_v29 }
0x1a4d   :  { %12078 = vmatprep.subr.mxu0 %v15452_v40 }
0x1a4e   :  { %12079 = vmatpush3.msra.mxu0 %v15452_v40 }
0x1a4f   :  { %12080 = vmatprep.subr.mxu0 %v15459_v59 }
0x1a50   :  { %12081 = vmatpush3.msra.mxu0 %v15459_v59 }
0x1a51   :  { %12082 = vmatprep.subr.mxu0 %v15466_v12 }
0x1a52   :  { %12083 = vmatpush3.msra.mxu0 %v15466_v12 }
0x1a53   :  { %12084 = vmatprep.subr.mxu0 %v15473_v56 }
0x1a54   :  { %12085 = vmatpush3.msra.mxu0 %v15473_v56 }
0x1a55   :  { %12086 = vmatprep.subr.mxu0 %v15480_v36 }
0x1a56   :  { %12087 = vmatpush3.msra.mxu0 %v15480_v36 }
0x1a57   :  { %12088 = vmatprep.subr.mxu0 %v15487_v37 }
0x1a58   :  { %12089 = vmatpush3.msra.mxu0 %v15487_v37 }
0x1a59   :  { %12090 = vmatprep.subr.mxu0 %v15514_v15 }
0x1a5a   :  { %12091 = vmatpush3.msra.mxu0 %v15514_v15 }
0x1a5b   :  { %12092 = vmatprep.subr.mxu0 %v15521_v26 }
0x1a5c   :  { %12093 = vmatpush3.msra.mxu0 %v15521_v26 }
0x1a5d   :  { %12094 = vmatprep.subr.mxu0 %v15526_v60 }
0x1a5e   :  { %v15394_v32 = vpop.f32.mrf.mxu1  ;;  %12095 = vmatpush3.msra.mxu0 %v15526_v60 }
0x1a5f   :  { %12168 = vmatprep.subr.mxu0 %v13280_v50 }
0x1a60   :  { %v11998_v49 = vpop.f32.mrf.mxu1 }
0x1a62   :  { %v15396_v51 = vpop.f32.mrf.mxu1 }
0x1a64   :  { %v12001_v52 = vpop.f32.mrf.mxu1 }
0x1a66   :  { %v4505_v55 = vpop.f32.mrf.mxu1 }
0x1a67   :  { %4511 = vst [vmem:[#allocation3 + $0x10] sm:$0xf] %v4505_v55 }
0x1a68   :  { %v12004_v8 = vpop.f32.mrf.mxu1 }
0x1a6a   :  { %v12044_v10 = vpop.f32.mrf.mxu1 }
0x1a6b   :  { %v4697_v57 = vadd.f32 %v12044_v10, %v4614_v9 }
0x1a6c   :  { %v4691_v1 = vpop.f32.mrf.mxu1 }
0x1a6d   :  { %vm4701_vm8 = vcmp.ge.f32.partialorder %v4697_v57, 0.0  ;;  %v4704_v22 = vmul.f32 %v4702_v54, %v4697_v57  ;;  %v4692_v20 = vadd.f32 %v4691_v1, %v4609_v23  ;;  %v9779_v1 = vld [vmem:[%s17337_s20 + $0x60] sm:$0xff] }
0x1a6e   :  { %v4714_v0 = vld [vmem:[#allocation3 + $0x10] sm:$0xff] }
0x1a6f   :  { %v4706_v21 = vsel %vm4701_vm8, %v4697_v57, %v4704_v22  ;;  %v4703_v13 = vmul.f32 %v4702_v54, %v4692_v20  ;;  %vm4700_vm9 = vcmp.ge.f32.partialorder %v4692_v20, 0.0  ;;  %v15537_v57 = vld [vmem:[#allocation2 + $0x20] sm:$0xff]  ;;  %v4911_v22 = vld [vmem:[#allocation2 + $0x10] sm:$0xff] }
0x1a70   :  { %4708 = vst [vmem:[#allocation3 + $0x38] sm:$0x7f] %v4706_v21  ;;  %v9781_v21 = vld [vmem:[%s17337_s20 + $0x70] sm:$0xf] }
0x1a71   :  { %v4705_v14 = vsel %vm4700_vm9, %v4692_v20, %v4703_v13 }
0x1a77   :  { %v4719_v53 = vld [vmem:[#allocation3 + $0x38] sm:$0xff] }
0x1a78   :  { %12045 = vmatprep.subr.mxu1 %v4719_v53 }
0x1a79   :  { %12046 = vmatpush3.msra.mxu1 %v4719_v53 }
0x1a7a   :  { %12047 = vmatprep.subr.mxu1 %v4705_v14 }
0x1a7b   :  { %12048 = vmatpush3.msra.mxu1 %v4705_v14  ;;  %v5009_v14 = vstv %s9759_s1 }
0x1aff   :  { %v4594_v39 = vpop.f32.mrf.mxu0 }
0x1b00   :  { %4598 = vst [vmem:[#allocation3 + $0x28] sm:$0x7] %v4594_v39 }
0x1b01   :  { %v12039_v4 = vpop.f32.mrf.mxu0 }
0x1b07   :  { %v4717_v5 = vld [vmem:[#allocation3 + $0x28] sm:$0xff] }
0x1b08   :  { %12049 = vmatprep.subr.mxu1 %v4717_v5 }
0x1b09   :  { %12050 = vmatpush3.msra.mxu1 %v4717_v5 }
0x1b0a   :  { %12051 = vmatprep.subr.mxu1 %v15493_v6 }
0x1b0b   :  { %12052 = vmatpush3.msra.mxu1 %v15493_v6 }
0x1b0c   :  { %12053 = vmatprep.subr.mxu1 %v15125_v35 }
0x1b0d   :  { %12054 = vmatpush3.msra.mxu1 %v15125_v35  ;;  %v4916_v35 = vld [vmem:[#allocation2 + $0x38] sm:$0xff] }
0x1b0e   :  { %12055 = vmatprep.subr.mxu1 %v4714_v0 }
0x1b0f   :  { %12056 = vmatpush3.msra.mxu1 %v4714_v0 }
0x1b10   :  { %12057 = vmatprep.subr.mxu1 %v15396_v51 }
0x1b11   :  { %12058 = vmatpush3.msra.mxu1 %v15396_v51 }
0x1b12   :  { %12059 = vmatprep.subr.mxu1 %v15394_v32 }
0x1b13   :  { %12060 = vmatpush3.msra.mxu1 %v15394_v32 }
0x1b14   :  { %12062 = vmatmul.mubr.msk.f32.vlgmr.msra.gmra.mxu1 %vm1281_vm10, %v9776_v7  ;;  %12099 = vmatprep.subr.mxu1 %v13280_v50 }
0x1b15   :  { %12100 = vmatpush3.msra.mxu1 %v4916_v35  ;;  %12115 = vmatprep.mubr.msk.f32.mxu1 %vm13281_vm13, %v13280_v50 }
0x1b16   :  { %12101 = vmatprep.subr.mxu1 %v13280_v50 }
0x1bd4   :  { %v12063_v32 = vpop.f32.mrf.mxu1 }
0x1bd5   :  { %v4805_v49 = vmul.f32 %v12063_v32, %v4803_v62  ;;  %vm4802_vm11 = vcmp.ge.f32.partialorder %v12063_v32, 0.0 }
0x1bd6   :  { %v4792_v51 = vpop.f32.mrf.mxu1 }
0x1bd7   :  { %vm4801_vm14 = vcmp.ge.f32.partialorder %v4792_v51, 0.0  ;;  %v4804_v52 = vmul.f32 %v4803_v62, %v4792_v51  ;;  %v4807_v8 = vsel %vm4802_vm11, %v12063_v32, %v4805_v49  ;;  %v9789_v62 = vld [vmem:[%s17332_s15 + $0x14] sm:$0x7]  ;;  %v15683_v49 = vld [vmem:[%s17370_s11 + $0x38] sm:$0xff] }
0x1bd9   :  { %v4806_v55 = vsel %vm4801_vm14, %v4792_v51, %v4804_v52  ;;  %v15690_v51 = vld [vmem:[%s17370_s11 + $0x30] sm:$0xff]  ;;  %v15697_v52 = vld [vmem:[%s17370_s11 + $0x28] sm:$0xff] }
0x1bda   :  { %12096 = vmatprep.mubr.f32.mxu0 %v4806_v55  ;;  %v15704_v55 = vld [vmem:[%s17370_s11 + $0x20] sm:$0xff] }
0x1bdb   :  { %12097 = vmatmul.mubr.f32.vlgmr.msra.gmra.mxu0 %v4807_v8  ;;  %v15711_v8 = vld [vmem:[%s17370_s11 + $0x18] sm:$0xff] }
0x1bdc   :  { %12170 = vmatprep.mubr.msk.f32.mxu0 %vm13281_vm13, %v13280_v50 }
0x1c9b   :  { %v12098_v9 = vpop.f32.mrf.mxu0 }
0x1c9c   :  { %4903 = vst [vmem:[#allocation2 + $0x30] sm:$0x7f] %v12098_v9  ;;  %v15718_v9 = vld [vmem:[%s17370_s11 + $0x10] sm:$0xff] }
0x1c9d   :  { %v4890_v54 = vpop.f32.mrf.mxu0 }
0x1ca3   :  { %v4915_v10 = vld [vmem:[#allocation2 + $0x30] sm:$0xff] }
0x1ca4   :  { %12102 = vmatpush3.msra.mxu1 %v4915_v10  ;;  %v15725_v10 = vld [vmem:[%s17370_s11 + $0x8] sm:$0xff] }
0x1ca5   :  { %12103 = vmatprep.subr.mxu1 %v13280_v50 }
0x1ca6   :  { %12104 = vmatpush3.msra.mxu1 %v4890_v54  ;;  %v15732_v54 = vld [vmem:[%s17370_s11] sm:$0xff] }
0x1ca7   :  { %12105 = vmatprep.subr.mxu1 %v13280_v50 }
0x1ca8   :  { %12106 = vmatpush3.msra.mxu1 %v15537_v57 }
0x1ca9   :  { %12107 = vmatprep.subr.mxu1 %v13280_v50 }
0x1caa   :  { %12108 = vmatpush3.msra.mxu1 %v15143_v2  ;;  %v9780_v2 = vld [vmem:[%s17337_s20 + $0x68] sm:$0xff] }
0x1cab   :  { %12109 = vmatprep.subr.mxu1 %v13280_v50 }
0x1cac   :  { %12110 = vmatpush3.msra.mxu1 %v4911_v22 }
0x1cad   :  { %12111 = vmatprep.subr.mxu1 %v13280_v50 }
0x1cae   :  { %12112 = vmatpush3.msra.mxu1 %v15176_v33 }
0x1caf   :  { %12113 = vmatprep.subr.mxu1 %v13280_v50 }
0x1cb0   :  { %12114 = vmatpush3.msra.mxu1 %v15183_v41 }
0x1cb1   :  { %12116 = vmatmul.mubr.msk.f32.vlgmr.msra.gmra.mxu1 %vm1281_vm10, %v9779_v1  ;;  %12124 = vmatprep.subr.mxu1 %v13280_v50 }
0x1cb2   :  { %12118 = vmatprep.mubr.msk.f32.mxu1 %vm13281_vm13, %v13280_v50 }
0x1cb5   :  { %12119 = vmatmul.mubr.msk.f32.gmra.mxu1 %vm1281_vm10, %v9780_v2  ;;  %v5461_v2 = vld [vmem:[%s17373_s27] sm:$0x7] }
0x1cb6   :  { %12121 = vmatprep.mubr.msk.f32.mxu1 %vm13281_vm13, %v13280_v50 }
0x1cb9   :  { %12122 = vmatmul.mubr.msk.f32.gmra.mxu1 %vm1281_vm10, %v9781_v21  ;;  %v9795_v21 = vld [vmem:[%s17334_s17 + $0x50] sm:$0xff] }
0x1cba   :  { %12130 = vmatprep.mubr.msk.f32.mxu1 %vm13281_vm13, %v13280_v50 }
0x1d71   :  { %v4992_v23 = vpop.f32.mrf.mxu1 }
0x1d72   :  { %v5010_v0 = vmul.f32 %v5009_v14, %v4992_v23  ;;  %vm5006_vm3 = vcmp.ge.f32.partialorder %v4992_v23, 0.0 }
0x1d73   :  { %v12117_v20 = vpop.f32.mrf.mxu1 }
0x1d74   :  { %v15579_v32 = vsel %vm5006_vm3, %v4992_v23, %v5010_v0  ;;  %v9796_v23 = vld [vmem:[%s17334_s17 + $0x58] sm:$0x7f] }
0x1d75   :  { %v4997_v13 = vpop.f32.mrf.mxu1  ;;  %v15829_v0 = vld [vmem:[#allocation3 + $0x18] sm:$0xff] }
0x1d76   :  { %v5011_v39 = vmul.f32 %v5009_v14, %v4997_v13  ;;  %vm5007_vm2 = vcmp.ge.f32.partialorder %v4997_v13, 0.0 }
0x1d77   :  { %v12120_v53 = vpop.f32.mrf.mxu1 }
0x1d78   :  { %v15572_v35 = vsel %vm5007_vm2, %v4997_v13, %v5011_v39 }
0x1d79   :  { %v5002_v24 = vpop.f32.mrf.mxu1 }
0x1d7a   :  { %vm5008_vm15 = vcmp.ge.f32.partialorder %v5002_v24, 0.0  ;;  %v5012_v4 = vmul.f32 %v5009_v14, %v5002_v24 }
0x1d7b   :  { %v12123_v5 = vpop.f32.mrf.mxu1 }
0x1d7c   :  { %v15566_v7 = vsel %vm5008_vm15, %v5002_v24, %v5012_v4  ;;  %v9802_v24 = vld [vmem:[%s17336_s19 + $0x50] sm:$0xff] }
0x1d7d   :  { %5760 = vst [vmem:[#allocation2 + $0x10] sm:$0xf] %v15566_v7  ;;  %12125 = vmatpush3.msk.msra.mxu1 %vm734_vm12, %v15566_v7 }
0x1d7e   :  { %12126 = vmatprep.subr.mxu1 %v13280_v50 }
0x1d7f   :  { %12127 = vmatpush3.msra.mxu1 %v15572_v35 }
0x1d80   :  { %12128 = vmatprep.subr.mxu1 %v13280_v50 }
0x1d81   :  { %12129 = vmatpush3.msra.mxu1 %v15579_v32 }
0x1d82   :  { %12131 = vmatmul.mubr.msk.f32.vlgmr.msra.gmra.mxu1 %vm730_vm4, %v9789_v62  ;;  %12133 = vmatprep.subr.mxu1 %v13280_v50  ;;  %v9803_v62 = vld [vmem:[%s17336_s19 + $0x58] sm:$0x7f] }
0x1d83   :  { %12134 = vmatpush3.msra.mxu1 %v15188_v42  ;;  %12165 = vmatprep.mubr.msk.f32.mxu1 %vm13281_vm13, %v13280_v50  ;;  %v5195_v42 = vld [vmem:[%s17372_s28] sm:$0x3] }
0x1d84   :  { %12135 = vmatprep.subr.mxu1 %v13280_v50  ;;  %12169 = vmatpush3.msk.msra.mxu0 %vm903_vm5, %v5195_v42  ;;  %v5662_v42 = vstv %s9785_s18  ;;  %s9813_s18 = sld [smem:[#allocation5 + $0x1d]] }
0x1d85   :  { %12136 = vmatpush3.msra.mxu1 %v15196_v16  ;;  %12173 = vmatprep.subr.mxu0 %v13280_v50  ;;  %v5027_v16 = vpop.permute.xlu1 %5026 }
0x1d86   :  { %12137 = vmatprep.subr.mxu1 %v13280_v50 }
0x1d87   :  { %12138 = vmatpush3.msra.mxu1 %v15205_v17 }
0x1d88   :  { %12139 = vmatprep.subr.mxu1 %v13280_v50 }
0x1d89   :  { %12140 = vmatpush3.msra.mxu1 %v15212_v18  ;;  %v5106_v18 = vstv %s9787_s24  ;;  %s9815_s24 = sld [smem:[#allocation5 + $0x1f]] }
0x1d8a   :  { %12141 = vmatprep.subr.mxu1 %v13280_v50 }
0x1d8b   :  { %12142 = vmatpush3.msra.mxu1 %v15219_v19 }
0x1d8c   :  { %12143 = vmatprep.subr.mxu1 %v13280_v50 }
0x1d8d   :  { %12144 = vmatpush3.msra.mxu1 %v15226_v63 }
0x1d8e   :  { %12145 = vmatprep.subr.mxu1 %v13280_v50 }
0x1d8f   :  { %12146 = vmatpush3.msra.mxu1 %v15233_v58 }
0x1d90   :  { %12147 = vmatprep.subr.mxu1 %v13280_v50 }
0x1d91   :  { %12148 = vmatpush3.msra.mxu1 %v15240_v48 }
0x1d92   :  { %12149 = vmatprep.subr.mxu1 %v13280_v50 }
0x1d93   :  { %12150 = vmatpush3.msra.mxu1 %v15247_v46  ;;  %v15628_v46 = vld [vmem:[%s17370_s11 + $0x78] sm:$0xff] }
0x1d94   :  { %12151 = vmatprep.subr.mxu1 %v13280_v50 }
0x1d95   :  { %12152 = vmatpush3.msra.mxu1 %v15254_v47  ;;  %v15634_v47 = vld [vmem:[%s17370_s11 + $0x70] sm:$0xff] }
0x1d96   :  { %12153 = vmatprep.subr.mxu1 %v13280_v50 }
0x1d97   :  { %12154 = vmatpush3.msra.mxu1 %v15261_v3  ;;  %v15641_v3 = vld [vmem:[%s17370_s11 + $0x68] sm:$0xff] }
0x1d98   :  { %12155 = vmatprep.subr.mxu1 %v13280_v50 }
0x1d99   :  { %12156 = vmatpush3.msra.mxu1 %v15268_v31  ;;  %v15648_v31 = vld [vmem:[%s17370_s11 + $0x60] sm:$0xff] }
0x1d9a   :  { %12157 = vmatprep.subr.mxu1 %v13280_v50 }
0x1d9b   :  { %12158 = vmatpush3.msra.mxu1 %v15275_v34  ;;  %v15655_v34 = vld [vmem:[%s17370_s11 + $0x58] sm:$0xff] }
0x1d9c   :  { %12159 = vmatprep.subr.mxu1 %v13280_v50 }
0x1d9d   :  { %12160 = vmatpush3.msra.mxu1 %v15284_v61  ;;  %v15662_v61 = vld [vmem:[%s17370_s11 + $0x50] sm:$0xff] }
0x1d9e   :  { %12161 = vmatprep.subr.mxu1 %v13280_v50 }
0x1d9f   :  { %12162 = vmatpush3.msra.mxu1 %v15291_v38  ;;  %v15669_v38 = vld [vmem:[%s17370_s11 + $0x48] sm:$0xff] }
0x1da0   :  { %12163 = vmatprep.subr.mxu1 %v13280_v50 }
0x1da1   :  { %12164 = vmatpush3.msra.mxu1 %v15296_v11  ;;  %v15676_v11 = vld [vmem:[%s17370_s11 + $0x40] sm:$0xff] }
0x1da2   :  { %12214 = vmatprep.subr.mxu1 %v13280_v50 }
0x1e42   :  { %v5101_v17 = vpop.f32.mrf.mxu1 }
0x1e43   :  { %v5102_v19 = vadd.f32 %v5101_v17, %v5027_v16 }
0x1e44   :  { %v12132_v63 = vpop.f32.mrf.mxu1 }
0x1e45   :  { %vm5105_vm6 = vcmp.ge.f32.partialorder %v5102_v19, 0.0  ;;  %v5107_v58 = vmul.f32 %v5106_v18, %v5102_v19 }
0x1e47   :  { %v5108_v48 = vsel %vm5105_vm6, %v5102_v19, %v5107_v58 }
0x1e48   :  { %12166 = vmatmul.mubr.f32.vlgmr.msra.gmra.mxu1 %v5108_v48 }
0x1e49   :  { %12246 = vmatprep.mubr.msk.f32.mxu1 %vm13281_vm13, %v13280_v50  ;;  %12215 = vmatpush3.msra.mxu1 %v15628_v46 }
0x1e4a   :  { %12216 = vmatprep.subr.mxu1 %v13280_v50 }
0x1e4b   :  { %12217 = vmatpush3.msra.mxu1 %v15634_v47 }
0x1e4c   :  { %12218 = vmatprep.subr.mxu1 %v13280_v50 }
0x1e4d   :  { %12219 = vmatpush3.msra.mxu1 %v15641_v3 }
0x1e4e   :  { %12220 = vmatprep.subr.mxu1 %v13280_v50 }
0x1e4f   :  { %12221 = vmatpush3.msra.mxu1 %v15648_v31 }
0x1e50   :  { %12222 = vmatprep.subr.mxu1 %v13280_v50 }
0x1e51   :  { %12223 = vmatpush3.msra.mxu1 %v15655_v34 }
0x1e52   :  { %12224 = vmatprep.subr.mxu1 %v13280_v50 }
0x1e53   :  { %12225 = vmatpush3.msra.mxu1 %v15662_v61 }
0x1e54   :  { %12226 = vmatprep.subr.mxu1 %v13280_v50 }
0x1e55   :  { %12227 = vmatpush3.msra.mxu1 %v15669_v38 }
0x1e56   :  { %12228 = vmatprep.subr.mxu1 %v13280_v50 }
0x1e57   :  { %12229 = vmatpush3.msra.mxu1 %v15676_v11 }
0x1e58   :  { %12230 = vmatprep.subr.mxu1 %v13280_v50 }
0x1e59   :  { %12231 = vmatpush3.msra.mxu1 %v15683_v49 }
0x1e5a   :  { %12232 = vmatprep.subr.mxu1 %v13280_v50 }
0x1e5b   :  { %12233 = vmatpush3.msra.mxu1 %v15690_v51 }
0x1e5c   :  { %12234 = vmatprep.subr.mxu1 %v13280_v50 }
0x1e5d   :  { %12235 = vmatpush3.msra.mxu1 %v15697_v52 }
0x1e5e   :  { %12236 = vmatprep.subr.mxu1 %v13280_v50 }
0x1e5f   :  { %12237 = vmatpush3.msra.mxu1 %v15704_v55 }
0x1e60   :  { %12238 = vmatprep.subr.mxu1 %v13280_v50 }
0x1e61   :  { %12239 = vmatpush3.msra.mxu1 %v15711_v8 }
0x1e62   :  { %12240 = vmatprep.subr.mxu1 %v13280_v50 }
0x1e63   :  { %12241 = vmatpush3.msra.mxu1 %v15718_v9 }
0x1e64   :  { %12242 = vmatprep.subr.mxu1 %v13280_v50 }
0x1e65   :  { %12243 = vmatpush3.msra.mxu1 %v15725_v10 }
0x1e66   :  { %12244 = vmatprep.subr.mxu1 %v13280_v50 }
0x1e67   :  { %12245 = vmatpush3.msra.mxu1 %v15732_v54 }
0x1e68   :  { %12273 = vmatprep.subr.mxu1 %v15405_v43 }
0x1f08   :  { %v5191_v22 = vpop.f32.mrf.mxu1 }
0x1f09   :  { %12171 = vmatmul.mubr.msk.f32.vlgmr.msra.gmra.mxu0 %vm899_vm7, %v5191_v22 }
0x1f0a   :  { %12174 = vmatpush3.msra.mxu0 %v15628_v46  ;;  %v12167_v1 = vpop.f32.mrf.mxu1  ;;  %12205 = vmatprep.mubr.msk.f32.mxu0 %vm13281_vm13, %v13280_v50 }
0x1f0b   :  { %12175 = vmatprep.subr.mxu0 %v13280_v50 }
0x1f0c   :  { %12176 = vmatpush3.msra.mxu0 %v15634_v47 }
0x1f0d   :  { %12177 = vmatprep.subr.mxu0 %v13280_v50 }
0x1f0e   :  { %12178 = vmatpush3.msra.mxu0 %v15641_v3 }
0x1f0f   :  { %12179 = vmatprep.subr.mxu0 %v13280_v50 }
0x1f10   :  { %12180 = vmatpush3.msra.mxu0 %v15648_v31 }
0x1f11   :  { %12181 = vmatprep.subr.mxu0 %v13280_v50 }
0x1f12   :  { %12182 = vmatpush3.msra.mxu0 %v15655_v34 }
0x1f13   :  { %12183 = vmatprep.subr.mxu0 %v13280_v50 }
0x1f14   :  { %12184 = vmatpush3.msra.mxu0 %v15662_v61 }
0x1f15   :  { %12185 = vmatprep.subr.mxu0 %v13280_v50 }
0x1f16   :  { %12186 = vmatpush3.msra.mxu0 %v15669_v38 }
0x1f17   :  { %12187 = vmatprep.subr.mxu0 %v13280_v50 }
0x1f18   :  { %12188 = vmatpush3.msra.mxu0 %v15676_v11 }
0x1f19   :  { %12189 = vmatprep.subr.mxu0 %v13280_v50 }
0x1f1a   :  { %12190 = vmatpush3.msra.mxu0 %v15683_v49 }
0x1f1b   :  { %12191 = vmatprep.subr.mxu0 %v13280_v50 }
0x1f1c   :  { %12192 = vmatpush3.msra.mxu0 %v15690_v51 }
0x1f1d   :  { %12193 = vmatprep.subr.mxu0 %v13280_v50 }
0x1f1e   :  { %12194 = vmatpush3.msra.mxu0 %v15697_v52 }
0x1f1f   :  { %12195 = vmatprep.subr.mxu0 %v13280_v50 }
0x1f20   :  { %12196 = vmatpush3.msra.mxu0 %v15704_v55 }
0x1f21   :  { %12197 = vmatprep.subr.mxu0 %v13280_v50 }
0x1f22   :  { %12198 = vmatpush3.msra.mxu0 %v15711_v8 }
0x1f23   :  { %12199 = vmatprep.subr.mxu0 %v13280_v50 }
0x1f24   :  { %12200 = vmatpush3.msra.mxu0 %v15718_v9 }
0x1f25   :  { %12201 = vmatprep.subr.mxu0 %v13280_v50 }
0x1f26   :  { %12202 = vmatpush3.msra.mxu0 %v15725_v10 }
0x1f27   :  { %12203 = vmatprep.subr.mxu0 %v13280_v50 }
0x1f28   :  { %12204 = vmatpush3.msra.mxu0 %v15732_v54 }
0x1f29   :  { %12206 = vmatmul.mubr.f32.vlgmr.msra.gmra.mxu0 %v15579_v32  ;;  %12249 = vmatprep.subr.msk.mxu0 %vm141_vm0, %v5461_v2 }
0x1f2a   :  { %12208 = vmatprep.mubr.msk.f32.mxu0 %vm13281_vm13, %v13280_v50  ;;  %12250 = vmatpush3.msk.msra.mxu0 %vm141_vm0, %v5461_v2  ;;  %v15847_v2 = vld [vmem:[#allocation2 + $0x18] sm:$0xff] }
0x1f2d   :  { %12209 = vmatmul.mubr.f32.gmra.mxu0 %v15572_v35 }
0x1f2e   :  { %12211 = vmatprep.mubr.msk.f32.mxu0 %vm13281_vm13, %v13280_v50 }
0x1f31   :  { %12212 = vmatmul.mubr.f32.gmra.mxu0 %v15566_v7 }
0x1f32   :  { %12251 = vmatprep.mubr.msk.f32.mxu0 %vm128_vm1, %v9795_v21  ;;  %v5770_v21 = vld [vmem:[#allocation2 + $0x10] sm:$0xff] }
0x1f35   :  { %12252 = vmatmul.mubr.msk.f32.vlgmr.msra.gmra.mxu0 %vm128_vm1, %v9796_v23  ;;  %v9806_v23 = vld [vmem:[%s17337_s20 + $0x78] sm:$0xff] }
0x1f36   :  { %12270 = vmatprep.mubr.msk.f32.mxu0 %vm1281_vm10, %v9802_v24  ;;  %v15947_v24 = vld [vmem:[%s17371_s25 + $0x40] sm:$0xff] }
0x1fc9   :  { %v5268_v20 = vpop.f32.mrf.mxu0 }
0x1fca   :  { %5763 = vst [vmem:[#allocation2 + $0x38] sm:$0x7] %v5268_v20  ;;  %12247 = vmatmul.mubr.f32.vlgmr.msra.gmra.mxu1 %v5268_v20 }
0x1fcb   :  { %v12172_v13 = vpop.f32.mrf.mxu0  ;;  %12274 = vmatpush3.msra.mxu1 %v15405_v43 }
0x1fcc   :  { %12275 = vmatprep.subr.mxu1 %v15410_v44 }
0x1fcd   :  { %12276 = vmatpush3.msra.mxu1 %v15410_v44 }
0x1fce   :  { %12277 = vmatprep.subr.mxu1 %v15417_v45 }
0x1fcf   :  { %12278 = vmatpush3.msra.mxu1 %v15417_v45 }
0x1fd0   :  { %12279 = vmatprep.subr.mxu1 %v15424_v25 }
0x1fd1   :  { %12280 = vmatpush3.msra.mxu1 %v15424_v25 }
0x1fd2   :  { %12281 = vmatprep.subr.mxu1 %v15431_v27 }
0x1fd3   :  { %12282 = vmatpush3.msra.mxu1 %v15431_v27 }
0x1fd4   :  { %12283 = vmatprep.subr.mxu1 %v15438_v28 }
0x1fd5   :  { %12284 = vmatpush3.msra.mxu1 %v15438_v28 }
0x1fd6   :  { %12285 = vmatprep.subr.mxu1 %v15445_v29 }
0x1fd7   :  { %12286 = vmatpush3.msra.mxu1 %v15445_v29  ;;  %v5473_v29 = vpop.permute.xlu0 %5472 }
0x1fd8   :  { %12287 = vmatprep.subr.mxu1 %v15452_v40 }
0x1fd9   :  { %12288 = vmatpush3.msra.mxu1 %v15452_v40 }
0x1fda   :  { %12289 = vmatprep.subr.mxu1 %v15459_v59 }
0x1fdb   :  { %12290 = vmatpush3.msra.mxu1 %v15459_v59  ;;  %v5561_v59 = vstv %s9788_s0  ;;  %s9895_s0 = sld [smem:[#allocation5 + $0x2a]] }
0x1fdc   :  { %12291 = vmatprep.subr.mxu1 %v15466_v12 }
0x1fdd   :  { %12292 = vmatpush3.msra.mxu1 %v15466_v12 }
0x1fde   :  { %12293 = vmatprep.subr.mxu1 %v15473_v56 }
0x1fdf   :  { %12294 = vmatpush3.msra.mxu1 %v15473_v56 }
0x1fe0   :  { %12295 = vmatprep.subr.mxu1 %v15480_v36 }
0x1fe1   :  { %12296 = vmatpush3.msra.mxu1 %v15480_v36 }
0x1fe2   :  { %12297 = vmatprep.subr.mxu1 %v15487_v37 }
0x1fe3   :  { %12298 = vmatpush3.msra.mxu1 %v15487_v37 }
0x1fe4   :  { %12299 = vmatprep.subr.mxu1 %v15514_v15 }
0x1fe5   :  { %12300 = vmatpush3.msra.mxu1 %v15514_v15  ;;  %v5468_v15 = vpop.permute.xlu1 %5467 }
0x1fe6   :  { %12301 = vmatprep.subr.mxu1 %v15521_v26 }
0x1fe7   :  { %12302 = vmatpush3.msra.mxu1 %v15521_v26 }
0x1fe8   :  { %12303 = vmatprep.subr.mxu1 %v15526_v60 }
0x1fe9   :  { %v5354_v43 = vpop.f32.mrf.mxu0  ;;  %12304 = vmatpush3.msra.mxu1 %v15526_v60 }
0x1fea   :  { %12377 = vmatprep.subr.mxu1 %v13280_v50 }
0x1feb   :  { %v12207_v44 = vpop.f32.mrf.mxu0 }
0x1fed   :  { %v5359_v45 = vpop.f32.mrf.mxu0 }
0x1fef   :  { %v12210_v25 = vpop.f32.mrf.mxu0 }
0x1ff1   :  { %v5364_v27 = vpop.f32.mrf.mxu0 }
0x1ff2   :  { %5370 = vst [vmem:[#allocation3 + $0x10] sm:$0xf] %v5364_v27 }
0x1ff3   :  { %v12213_v28 = vpop.f32.mrf.mxu0 }
0x1ff5   :  { %v12253_v40 = vpop.f32.mrf.mxu0 }
0x1ff6   :  { %v5556_v12 = vadd.f32 %v12253_v40, %v5473_v29 }
0x1ff7   :  { %v5550_v36 = vpop.f32.mrf.mxu0 }
0x1ff8   :  { %vm5560_vm8 = vcmp.ge.f32.partialorder %v5556_v12, 0.0  ;;  %v5563_v56 = vmul.f32 %v5561_v59, %v5556_v12  ;;  %v5551_v26 = vadd.f32 %v5550_v36, %v5468_v15  ;;  %v15912_v15 = vld [vmem:[%s17371_s25 + $0x68] sm:$0xff] }
0x1ff9   :  { %v5573_v7 = vld [vmem:[#allocation3 + $0x10] sm:$0xff] }
0x1ffa   :  { %v5565_v37 = vsel %vm5560_vm8, %v5556_v12, %v5563_v56  ;;  %v5562_v60 = vmul.f32 %v5561_v59, %v5551_v26  ;;  %vm5559_vm9 = vcmp.ge.f32.partialorder %v5551_v26, 0.0 }
0x1ffb   :  { %5567 = vst [vmem:[#allocation3 + $0x38] sm:$0x7f] %v5565_v37 }
0x1ffc   :  { %v5564_v14 = vsel %vm5559_vm9, %v5551_v26, %v5562_v60  ;;  %v15919_v26 = vld [vmem:[%s17371_s25 + $0x60] sm:$0xff]  ;;  %v15926_v60 = vld [vmem:[%s17371_s25 + $0x58] sm:$0xff] }
0x2002   :  { %v5578_v53 = vld [vmem:[#allocation3 + $0x38] sm:$0xff] }
0x2003   :  { %12254 = vmatprep.subr.mxu0 %v5578_v53 }
0x2004   :  { %12255 = vmatpush3.msra.mxu0 %v5578_v53  ;;  %v15933_v53 = vld [vmem:[%s17371_s25 + $0x50] sm:$0xff] }
0x2005   :  { %12256 = vmatprep.subr.mxu0 %v5564_v14 }
0x2006   :  { %12257 = vmatpush3.msra.mxu0 %v5564_v14  ;;  %v15940_v14 = vld [vmem:[%s17371_s25 + $0x48] sm:$0xff] }
0x208a   :  { %v5453_v39 = vpop.f32.mrf.mxu1 }
0x208b   :  { %5457 = vst [vmem:[#allocation3 + $0x28] sm:$0x7] %v5453_v39  ;;  %v15954_v39 = vld [vmem:[%s17371_s25 + $0x38] sm:$0xff] }
0x208c   :  { %v12248_v4 = vpop.f32.mrf.mxu1 }
0x208d   :  { %v15961_v4 = vld [vmem:[%s17371_s25 + $0x30] sm:$0xff] }
0x2092   :  { %v5576_v5 = vld [vmem:[#allocation3 + $0x28] sm:$0xff] }
0x2093   :  { %12258 = vmatprep.subr.mxu0 %v5576_v5 }
0x2094   :  { %12259 = vmatpush3.msra.mxu0 %v5576_v5  ;;  %v15968_v5 = vld [vmem:[%s17371_s25 + $0x28] sm:$0xff] }
0x2095   :  { %12260 = vmatprep.subr.mxu0 %v15493_v6 }
0x2096   :  { %12261 = vmatpush3.msra.mxu0 %v15493_v6  ;;  %v5775_v6 = vld [vmem:[#allocation2 + $0x38] sm:$0xff] }
0x2097   :  { %12262 = vmatprep.subr.mxu0 %v15829_v0 }
0x2098   :  { %12263 = vmatpush3.msra.mxu0 %v15829_v0 }
0x2099   :  { %12264 = vmatprep.subr.mxu0 %v5573_v7 }
0x209a   :  { %12265 = vmatpush3.msra.mxu0 %v5573_v7  ;;  %v15975_v7 = vld [vmem:[%s17371_s25 + $0x20] sm:$0xff] }
0x209b   :  { %12266 = vmatprep.subr.mxu0 %v5359_v45 }
0x209c   :  { %12267 = vmatpush3.msra.mxu0 %v5359_v45 }
0x209d   :  { %12268 = vmatprep.subr.mxu0 %v5354_v43 }
0x209e   :  { %12269 = vmatpush3.msra.mxu0 %v5354_v43  ;;  %v5868_v43 = vstv %s9786_s6 }
0x209f   :  { %12271 = vmatmul.mubr.msk.f32.vlgmr.msra.gmra.mxu0 %vm1281_vm10, %v9803_v62  ;;  %12308 = vmatprep.subr.mxu0 %v13280_v50  ;;  %v15982_v62 = vld [vmem:[%s17371_s25 + $0x18] sm:$0xff] }
0x20a0   :  { %12309 = vmatpush3.msra.mxu0 %v5775_v6  ;;  %12324 = vmatprep.mubr.msk.f32.mxu0 %vm13281_vm13, %v13280_v50  ;;  %v15991_v6 = vld [vmem:[%s17371_s25 + $0x10] sm:$0xff] }
0x20a1   :  { %12310 = vmatprep.subr.mxu0 %v13280_v50 }
0x215f   :  { %v12272_v16 = vpop.f32.mrf.mxu0 }
0x2160   :  { %v5664_v17 = vmul.f32 %v12272_v16, %v5662_v42  ;;  %vm5661_vm11 = vcmp.ge.f32.partialorder %v12272_v16, 0.0 }
0x2161   :  { %v5651_v18 = vpop.f32.mrf.mxu0 }
0x2162   :  { %vm5660_vm14 = vcmp.ge.f32.partialorder %v5651_v18, 0.0  ;;  %v5663_v19 = vmul.f32 %v5662_v42, %v5651_v18  ;;  %v5666_v58 = vsel %vm5661_vm11, %v12272_v16, %v5664_v17  ;;  %v15998_v42 = vld [vmem:[%s17371_s25 + $0x8] sm:$0xff]  ;;  %v16003_v16 = vld [vmem:[%s17371_s25] sm:$0xff] }
0x2163   :  { %v6057_v17 = vld [vmem:[%s17372_s28] sm:$0x3] }
0x2164   :  { %v5665_v63 = vsel %vm5660_vm14, %v5651_v18, %v5663_v19  ;;  %v5889_v18 = vpop.permute.xlu0 %5888 }
0x2165   :  { %12305 = vmatprep.mubr.f32.mxu1 %v5665_v63  ;;  %v5968_v63 = vstv %s9814_s10  ;;  %s9842_s10 = sld [smem:[#allocation5 + $0x23]] }
0x2166   :  { %12306 = vmatmul.mubr.f32.vlgmr.msra.gmra.mxu1 %v5666_v58 }
0x2167   :  { %12379 = vmatprep.mubr.msk.f32.mxu1 %vm13281_vm13, %v13280_v50  ;;  %12378 = vmatpush3.msk.msra.mxu1 %vm903_vm5, %v6057_v17  ;;  %v16173_v17 = vld [vmem:[%s17374_s22 + $0x30] sm:$0xff] }
0x2168   :  { %12382 = vmatprep.subr.mxu1 %v13280_v50 }
0x2226   :  { %v12307_v48 = vpop.f32.mrf.mxu1 }
0x2227   :  { %5762 = vst [vmem:[#allocation2 + $0x30] sm:$0x7f] %v12307_v48 }
0x2228   :  { %v5749_v1 = vpop.f32.mrf.mxu1 }
0x222e   :  { %v5774_v22 = vld [vmem:[#allocation2 + $0x30] sm:$0xff] }
0x222f   :  { %12311 = vmatpush3.msra.mxu0 %v5774_v22 }
0x2230   :  { %12312 = vmatprep.subr.mxu0 %v13280_v50 }
0x2231   :  { %12313 = vmatpush3.msra.mxu0 %v5749_v1 }
0x2232   :  { %12314 = vmatprep.subr.mxu0 %v13280_v50 }
0x2233   :  { %12315 = vmatpush3.msra.mxu0 %v15537_v57  ;;  %v9807_v57 = vld [vmem:[%s17337_s20 + $0x80] sm:$0xff] }
0x2234   :  { %12316 = vmatprep.subr.mxu0 %v13280_v50 }
0x2235   :  { %12317 = vmatpush3.msra.mxu0 %v15847_v2 }
0x2236   :  { %12318 = vmatprep.subr.mxu0 %v13280_v50 }
0x2237   :  { %12319 = vmatpush3.msra.mxu0 %v5770_v21 }
0x2238   :  { %12320 = vmatprep.subr.mxu0 %v13280_v50 }
0x2239   :  { %12321 = vmatpush3.msra.mxu0 %v15572_v35  ;;  %v9808_v35 = vld [vmem:[%s17337_s20 + $0x88] sm:$0xf] }
0x223a   :  { %12322 = vmatprep.subr.mxu0 %v13280_v50 }
0x223b   :  { %12323 = vmatpush3.msra.mxu0 %v15579_v32 }
0x223c   :  { %12325 = vmatmul.mubr.msk.f32.vlgmr.msra.gmra.mxu0 %vm1281_vm10, %v9806_v23  ;;  %12333 = vmatprep.subr.mxu0 %v13280_v50 }
0x223d   :  { %12327 = vmatprep.mubr.msk.f32.mxu0 %vm13281_vm13, %v13280_v50 }
0x2240   :  { %12328 = vmatmul.mubr.msk.f32.gmra.mxu0 %vm1281_vm10, %v9807_v57 }
0x2241   :  { %12330 = vmatprep.mubr.msk.f32.mxu0 %vm13281_vm13, %v13280_v50 }
0x2244   :  { %12331 = vmatmul.mubr.msk.f32.gmra.mxu0 %vm1281_vm10, %v9808_v35 }
0x2245   :  { %12339 = vmatprep.mubr.msk.f32.mxu0 %vm13281_vm13, %v13280_v50 }
0x22fc   :  { %v5851_v32 = vpop.f32.mrf.mxu0 }
0x22fd   :  { %v5869_v27 = vmul.f32 %v5868_v43, %v5851_v32  ;;  %vm5865_vm3 = vcmp.ge.f32.partialorder %v5851_v32, 0.0 }
0x22fe   :  { %v12326_v20 = vpop.f32.mrf.mxu0 }
0x22ff   :  { %v5872_v56 = vsel %vm5865_vm3, %v5851_v32, %v5869_v27  ;;  %v6330_v32 = vpop.permute.xlu0 %6329  ;;  %v16117_v27 = vld [vmem:[%s17374_s22 + $0x70] sm:$0xff] }
0x2300   :  { %v5856_v13 = vpop.f32.mrf.mxu0  ;;  %v15885_v37 = vadd.f32 %v5872_v56, %v15183_v41  ;;  %v15903_v41 = vld [vmem:[%s17371_s25 + $0x70] sm:$0xff]  ;;  %v16159_v56 = vld [vmem:[%s17374_s22 + $0x40] sm:$0xff] }
0x2301   :  { %v5870_v45 = vmul.f32 %v5868_v43, %v5856_v13  ;;  %vm5866_vm15 = vcmp.ge.f32.partialorder %v5856_v13, 0.0 }
0x2302   :  { %v12329_v44 = vpop.f32.mrf.mxu0 }
0x2303   :  { %v5873_v40 = vsel %vm5866_vm15, %v5856_v13, %v5870_v45  ;;  %v9829_v45 = vld [vmem:[%s17336_s19 + $0x60] sm:$0xff] }
0x2304   :  { %v5861_v25 = vpop.f32.mrf.mxu0  ;;  %v15878_v36 = vadd.f32 %v5873_v40, %v15176_v33  ;;  %v15895_v33 = vld [vmem:[%s17371_s25 + $0x78] sm:$0xff] }
0x2305   :  { %vm5867_vm2 = vcmp.ge.f32.partialorder %v5861_v25, 0.0  ;;  %v5871_v28 = vmul.f32 %v5868_v43, %v5861_v25  ;;  %v16138_v40 = vld [vmem:[%s17374_s22 + $0x58] sm:$0xff] }
0x2306   :  { %v12332_v29 = vpop.f32.mrf.mxu0 }
0x2307   :  { %v5874_v59 = vsel %vm5867_vm2, %v5861_v25, %v5871_v28  ;;  %v16112_v25 = vld [vmem:[%s17374_s22 + $0x78] sm:$0xff]  ;;  %v16124_v28 = vld [vmem:[%s17374_s22 + $0x68] sm:$0xff]  ;;  %v16131_v29 = vld [vmem:[%s17374_s22 + $0x60] sm:$0xff] }
0x2308   :  { %v15875_v12 = vadd.f32 %v5874_v59, %v15170_v30  ;;  %v9816_v30 = vld [vmem:[%s17332_s15 + $0x18] sm:$0x7]  ;;  %v16145_v59 = vld [vmem:[%s17374_s22 + $0x50] sm:$0xff] }
0x230a   :  { %6622 = vst [vmem:[#allocation2 + $0x10] sm:$0xf] %v15875_v12  ;;  %12334 = vmatpush3.msk.msra.mxu0 %vm734_vm12, %v15875_v12 }
0x230b   :  { %12335 = vmatprep.subr.mxu0 %v13280_v50 }
0x230c   :  { %12336 = vmatpush3.msra.mxu0 %v15878_v36 }
0x230d   :  { %12337 = vmatprep.subr.mxu0 %v13280_v50 }
0x230e   :  { %12338 = vmatpush3.msra.mxu0 %v15885_v37 }
0x230f   :  { %12340 = vmatmul.mubr.msk.f32.vlgmr.msra.gmra.mxu0 %vm730_vm4, %v9816_v30  ;;  %12342 = vmatprep.subr.mxu0 %v13280_v50  ;;  %v16166_v30 = vld [vmem:[%s17374_s22 + $0x38] sm:$0xff] }
0x2310   :  { %12343 = vmatpush3.msra.mxu0 %v15895_v33  ;;  %12374 = vmatprep.mubr.msk.f32.mxu0 %vm13281_vm13, %v13280_v50 }
0x2311   :  { %12344 = vmatprep.subr.mxu0 %v13280_v50 }
0x2312   :  { %12345 = vmatpush3.msra.mxu0 %v15903_v41 }
0x2313   :  { %12346 = vmatprep.subr.mxu0 %v13280_v50 }
0x2314   :  { %12347 = vmatpush3.msra.mxu0 %v15912_v15 }
0x2315   :  { %12348 = vmatprep.subr.mxu0 %v13280_v50 }
0x2316   :  { %12349 = vmatpush3.msra.mxu0 %v15919_v26 }
0x2317   :  { %12350 = vmatprep.subr.mxu0 %v13280_v50 }
0x2318   :  { %12351 = vmatpush3.msra.mxu0 %v15926_v60 }
0x2319   :  { %12352 = vmatprep.subr.mxu0 %v13280_v50 }
0x231a   :  { %12353 = vmatpush3.msra.mxu0 %v15933_v53 }
0x231b   :  { %12354 = vmatprep.subr.mxu0 %v13280_v50 }
0x231c   :  { %12355 = vmatpush3.msra.mxu0 %v15940_v14 }
0x231d   :  { %12356 = vmatprep.subr.mxu0 %v13280_v50 }
0x231e   :  { %12357 = vmatpush3.msra.mxu0 %v15947_v24 }
0x231f   :  { %12358 = vmatprep.subr.mxu0 %v13280_v50 }
0x2320   :  { %12359 = vmatpush3.msra.mxu0 %v15954_v39 }
0x2321   :  { %12360 = vmatprep.subr.mxu0 %v13280_v50 }
0x2322   :  { %12361 = vmatpush3.msra.mxu0 %v15961_v4 }
0x2323   :  { %12362 = vmatprep.subr.mxu0 %v13280_v50 }
0x2324   :  { %12363 = vmatpush3.msra.mxu0 %v15968_v5 }
0x2325   :  { %12364 = vmatprep.subr.mxu0 %v13280_v50 }
0x2326   :  { %12365 = vmatpush3.msra.mxu0 %v15975_v7 }
0x2327   :  { %12366 = vmatprep.subr.mxu0 %v13280_v50 }
0x2328   :  { %12367 = vmatpush3.msra.mxu0 %v15982_v62 }
0x2329   :  { %12368 = vmatprep.subr.mxu0 %v13280_v50 }
0x232a   :  { %12369 = vmatpush3.msra.mxu0 %v15991_v6 }
0x232b   :  { %12370 = vmatprep.subr.mxu0 %v13280_v50 }
0x232c   :  { %12371 = vmatpush3.msra.mxu0 %v15998_v42 }
0x232d   :  { %12372 = vmatprep.subr.mxu0 %v13280_v50 }
0x232e   :  { %12373 = vmatpush3.msra.mxu0 %v16003_v16 }
0x232f   :  { %12423 = vmatprep.subr.mxu0 %v13280_v50 }
0x23cf   :  { %v5963_v19 = vpop.f32.mrf.mxu0 }
0x23d0   :  { %v5964_v58 = vadd.f32 %v5963_v19, %v5889_v18  ;;  %v16180_v18 = vld [vmem:[%s17374_s22 + $0x28] sm:$0xff]  ;;  %v16187_v19 = vld [vmem:[%s17374_s22 + $0x20] sm:$0xff] }
0x23d1   :  { %v12341_v48 = vpop.f32.mrf.mxu0 }
0x23d2   :  { %vm5967_vm6 = vcmp.ge.f32.partialorder %v5964_v58, 0.0  ;;  %v5969_v22 = vmul.f32 %v5968_v63, %v5964_v58  ;;  %v16194_v63 = vld [vmem:[%s17374_s22 + $0x18] sm:$0xff] }
0x23d4   :  { %v5970_v1 = vsel %vm5967_vm6, %v5964_v58, %v5969_v22 }
0x23d5   :  { %12375 = vmatmul.mubr.f32.vlgmr.msra.gmra.mxu0 %v5970_v1  ;;  %v16200_v1 = vld [vmem:[#allocation3 + $0x20] sm:$0xff] }
0x23d6   :  { %12424 = vmatpush3.msra.mxu0 %v15628_v46  ;;  %12455 = vmatprep.mubr.msk.f32.mxu0 %vm13281_vm13, %v13280_v50 }
0x23d7   :  { %12425 = vmatprep.subr.mxu0 %v13280_v50 }
0x23d8   :  { %12426 = vmatpush3.msra.mxu0 %v15634_v47 }
0x23d9   :  { %12427 = vmatprep.subr.mxu0 %v13280_v50 }
0x23da   :  { %12428 = vmatpush3.msra.mxu0 %v15641_v3 }
0x23db   :  { %12429 = vmatprep.subr.mxu0 %v13280_v50 }
0x23dc   :  { %12430 = vmatpush3.msra.mxu0 %v15648_v31 }
0x23dd   :  { %12431 = vmatprep.subr.mxu0 %v13280_v50 }
0x23de   :  { %12432 = vmatpush3.msra.mxu0 %v15655_v34 }
0x23df   :  { %12433 = vmatprep.subr.mxu0 %v13280_v50 }
0x23e0   :  { %12434 = vmatpush3.msra.mxu0 %v15662_v61 }
0x23e1   :  { %12435 = vmatprep.subr.mxu0 %v13280_v50 }
0x23e2   :  { %12436 = vmatpush3.msra.mxu0 %v15669_v38 }
0x23e3   :  { %12437 = vmatprep.subr.mxu0 %v13280_v50 }
0x23e4   :  { %12438 = vmatpush3.msra.mxu0 %v15676_v11 }
0x23e5   :  { %12439 = vmatprep.subr.mxu0 %v13280_v50 }
0x23e6   :  { %12440 = vmatpush3.msra.mxu0 %v15683_v49 }
0x23e7   :  { %12441 = vmatprep.subr.mxu0 %v13280_v50 }
0x23e8   :  { %12442 = vmatpush3.msra.mxu0 %v15690_v51 }
0x23e9   :  { %12443 = vmatprep.subr.mxu0 %v13280_v50 }
0x23ea   :  { %12444 = vmatpush3.msra.mxu0 %v15697_v52 }
0x23eb   :  { %12445 = vmatprep.subr.mxu0 %v13280_v50 }
0x23ec   :  { %12446 = vmatpush3.msra.mxu0 %v15704_v55 }
0x23ed   :  { %12447 = vmatprep.subr.mxu0 %v13280_v50 }
0x23ee   :  { %12448 = vmatpush3.msra.mxu0 %v15711_v8 }
0x23ef   :  { %12449 = vmatprep.subr.mxu0 %v13280_v50 }
0x23f0   :  { %12450 = vmatpush3.msra.mxu0 %v15718_v9 }
0x23f1   :  { %12451 = vmatprep.subr.mxu0 %v13280_v50 }
0x23f2   :  { %12452 = vmatpush3.msra.mxu0 %v15725_v10 }
0x23f3   :  { %12453 = vmatprep.subr.mxu0 %v13280_v50 }
0x23f4   :  { %12454 = vmatpush3.msra.mxu0 %v15732_v54 }
0x23f5   :  { %12482 = vmatprep.subr.mxu0 %v16112_v25 }
0x2495   :  { %v6053_v21 = vpop.f32.mrf.mxu0 }
0x2496   :  { %12380 = vmatmul.mubr.msk.f32.vlgmr.msra.gmra.mxu1 %vm899_vm7, %v6053_v21 }
0x2497   :  { %12383 = vmatpush3.msra.mxu1 %v15628_v46  ;;  %v12376_v23 = vpop.f32.mrf.mxu0  ;;  %12414 = vmatprep.mubr.msk.f32.mxu1 %vm13281_vm13, %v13280_v50  ;;  %v6323_v46 = vld [vmem:[%s17373_s27] sm:$0x7] }
0x2498   :  { %12384 = vmatprep.subr.mxu1 %v13280_v50  ;;  %v9830_v23 = vld [vmem:[%s17336_s19 + $0x68] sm:$0x7f] }
0x2499   :  { %12385 = vmatpush3.msra.mxu1 %v15634_v47  ;;  %v9822_v47 = vld [vmem:[%s17334_s17 + $0x60] sm:$0xff] }
0x249a   :  { %12386 = vmatprep.subr.mxu1 %v13280_v50 }
0x249b   :  { %12387 = vmatpush3.msra.mxu1 %v15641_v3  ;;  %v9823_v3 = vld [vmem:[%s17334_s17 + $0x68] sm:$0x7f] }
0x249c   :  { %12388 = vmatprep.subr.mxu1 %v13280_v50 }
0x249d   :  { %12389 = vmatpush3.msra.mxu1 %v15648_v31 }
0x249e   :  { %12390 = vmatprep.subr.mxu1 %v13280_v50 }
0x249f   :  { %12391 = vmatpush3.msra.mxu1 %v15655_v34 }
0x24a0   :  { %12392 = vmatprep.subr.mxu1 %v13280_v50 }
0x24a1   :  { %12393 = vmatpush3.msra.mxu1 %v15662_v61 }
0x24a2   :  { %12394 = vmatprep.subr.mxu1 %v13280_v50 }
0x24a3   :  { %12395 = vmatpush3.msra.mxu1 %v15669_v38 }
0x24a4   :  { %12396 = vmatprep.subr.mxu1 %v13280_v50 }
0x24a5   :  { %12397 = vmatpush3.msra.mxu1 %v15676_v11 }
0x24a6   :  { %12398 = vmatprep.subr.mxu1 %v13280_v50 }
0x24a7   :  { %12399 = vmatpush3.msra.mxu1 %v15683_v49 }
0x24a8   :  { %12400 = vmatprep.subr.mxu1 %v13280_v50 }
0x24a9   :  { %12401 = vmatpush3.msra.mxu1 %v15690_v51 }
0x24aa   :  { %12402 = vmatprep.subr.mxu1 %v13280_v50 }
0x24ab   :  { %12403 = vmatpush3.msra.mxu1 %v15697_v52 }
0x24ac   :  { %12404 = vmatprep.subr.mxu1 %v13280_v50 }
0x24ad   :  { %12405 = vmatpush3.msra.mxu1 %v15704_v55  ;;  %v6335_v55 = vpop.permute.xlu1 %6334 }
0x24ae   :  { %12406 = vmatprep.subr.mxu1 %v13280_v50 }
0x24af   :  { %12407 = vmatpush3.msra.mxu1 %v15711_v8 }
0x24b0   :  { %12408 = vmatprep.subr.mxu1 %v13280_v50 }
0x24b1   :  { %12409 = vmatpush3.msra.mxu1 %v15718_v9  ;;  %v6423_v9 = vstv %s9815_s24 }
0x24b2   :  { %12410 = vmatprep.subr.mxu1 %v13280_v50 }
0x24b3   :  { %12411 = vmatpush3.msra.mxu1 %v15725_v10 }
0x24b4   :  { %12412 = vmatprep.subr.mxu1 %v13280_v50 }
0x24b5   :  { %12413 = vmatpush3.msra.mxu1 %v15732_v54 }
0x24b6   :  { %12415 = vmatmul.mubr.f32.vlgmr.msra.gmra.mxu1 %v15885_v37  ;;  %12458 = vmatprep.subr.msk.mxu1 %vm141_vm0, %v6323_v46 }
0x24b7   :  { %12417 = vmatprep.mubr.msk.f32.mxu1 %vm13281_vm13, %v13280_v50  ;;  %12459 = vmatpush3.msk.msra.mxu1 %vm141_vm0, %v6323_v46  ;;  %v16221_v46 = vld [vmem:[%s17374_s22 + $0x10] sm:$0xff] }
0x24ba   :  { %12418 = vmatmul.mubr.f32.gmra.mxu1 %v15878_v36 }
0x24bb   :  { %12420 = vmatprep.mubr.msk.f32.mxu1 %vm13281_vm13, %v13280_v50 }
0x24be   :  { %12421 = vmatmul.mubr.f32.gmra.mxu1 %v15875_v12  ;;  %v16152_v12 = vld [vmem:[%s17374_s22 + $0x48] sm:$0xff] }
0x24bf   :  { %12460 = vmatprep.mubr.msk.f32.mxu1 %vm128_vm1, %v9822_v47  ;;  %v16228_v47 = vld [vmem:[%s17374_s22 + $0x8] sm:$0xff] }
0x24c2   :  { %12461 = vmatmul.mubr.msk.f32.vlgmr.msra.gmra.mxu1 %vm128_vm1, %v9823_v3  ;;  %v16233_v3 = vld [vmem:[%s17374_s22] sm:$0xff] }
0x24c3   :  { %12479 = vmatprep.mubr.msk.f32.mxu1 %vm1281_vm10, %v9829_v45 }
0x2556   :  { %v6130_v31 = vpop.f32.mrf.mxu1 }
0x2557   :  { %6625 = vst [vmem:[#allocation2 + $0x38] sm:$0x7] %v6130_v31  ;;  %12456 = vmatmul.mubr.f32.vlgmr.msra.gmra.mxu0 %v6130_v31  ;;  %v6524_v31 = vstv %s9812_s29  ;;  %s9893_s29 = sld [smem:[#allocation5 + $0x28]] }
0x2558   :  { %v12381_v34 = vpop.f32.mrf.mxu1  ;;  %12483 = vmatpush3.msra.mxu0 %v16112_v25 }
0x2559   :  { %12484 = vmatprep.subr.mxu0 %v16117_v27 }
0x255a   :  { %12485 = vmatpush3.msra.mxu0 %v16117_v27 }
0x255b   :  { %12486 = vmatprep.subr.mxu0 %v16124_v28 }
0x255c   :  { %12487 = vmatpush3.msra.mxu0 %v16124_v28 }
0x255d   :  { %12488 = vmatprep.subr.mxu0 %v16131_v29 }
0x255e   :  { %12489 = vmatpush3.msra.mxu0 %v16131_v29 }
0x255f   :  { %12490 = vmatprep.subr.mxu0 %v16138_v40 }
0x2560   :  { %12491 = vmatpush3.msra.mxu0 %v16138_v40 }
0x2561   :  { %12492 = vmatprep.subr.mxu0 %v16145_v59 }
0x2562   :  { %12493 = vmatpush3.msra.mxu0 %v16145_v59 }
0x2563   :  { %12494 = vmatprep.subr.mxu0 %v16152_v12 }
0x2564   :  { %12495 = vmatpush3.msra.mxu0 %v16152_v12 }
0x2565   :  { %12496 = vmatprep.subr.mxu0 %v16159_v56 }
0x2566   :  { %12497 = vmatpush3.msra.mxu0 %v16159_v56 }
0x2567   :  { %12498 = vmatprep.subr.mxu0 %v16166_v30 }
0x2568   :  { %12499 = vmatpush3.msra.mxu0 %v16166_v30 }
0x2569   :  { %12500 = vmatprep.subr.mxu0 %v16173_v17 }
0x256a   :  { %12501 = vmatpush3.msra.mxu0 %v16173_v17 }
0x256b   :  { %12502 = vmatprep.subr.mxu0 %v16180_v18 }
0x256c   :  { %12503 = vmatpush3.msra.mxu0 %v16180_v18 }
0x256d   :  { %12504 = vmatprep.subr.mxu0 %v16187_v19 }
0x256e   :  { %12505 = vmatpush3.msra.mxu0 %v16187_v19 }
0x256f   :  { %12506 = vmatprep.subr.mxu0 %v16194_v63 }
0x2570   :  { %12507 = vmatpush3.msra.mxu0 %v16194_v63 }
0x2571   :  { %12508 = vmatprep.subr.mxu0 %v16221_v46 }
0x2572   :  { %12509 = vmatpush3.msra.mxu0 %v16221_v46 }
0x2573   :  { %12510 = vmatprep.subr.mxu0 %v16228_v47 }
0x2574   :  { %12511 = vmatpush3.msra.mxu0 %v16228_v47 }
0x2575   :  { %12512 = vmatprep.subr.mxu0 %v16233_v3 }
0x2576   :  { %v16101_v61 = vpop.f32.mrf.mxu1  ;;  %12513 = vmatpush3.msra.mxu0 %v16233_v3 }
0x2577   :  { %12586 = vmatprep.subr.mxu0 %v13280_v50 }
0x2578   :  { %v12416_v38 = vpop.f32.mrf.mxu1 }
0x257a   :  { %v16103_v11 = vpop.f32.mrf.mxu1 }
0x257c   :  { %v12419_v49 = vpop.f32.mrf.mxu1 }
0x257e   :  { %v6226_v51 = vpop.f32.mrf.mxu1 }
0x257f   :  { %6232 = vst [vmem:[#allocation3 + $0x10] sm:$0xf] %v6226_v51 }
0x2580   :  { %v12422_v52 = vpop.f32.mrf.mxu1 }
0x2582   :  { %v12462_v8 = vpop.f32.mrf.mxu1 }
0x2583   :  { %v6418_v10 = vadd.f32 %v12462_v8, %v6335_v55 }
0x2584   :  { %v6412_v57 = vpop.f32.mrf.mxu1 }
0x2585   :  { %vm6422_vm8 = vcmp.ge.f32.partialorder %v6418_v10, 0.0  ;;  %v6425_v54 = vmul.f32 %v6423_v9, %v6418_v10  ;;  %v6413_v20 = vadd.f32 %v6412_v57, %v6330_v32 }
0x2586   :  { %v6435_v21 = vld [vmem:[#allocation3 + $0x10] sm:$0xff] }
0x2587   :  { %v6427_v35 = vsel %vm6422_vm8, %v6418_v10, %v6425_v54  ;;  %v6424_v13 = vmul.f32 %v6423_v9, %v6413_v20  ;;  %vm6421_vm9 = vcmp.ge.f32.partialorder %v6413_v20, 0.0  ;;  %v16244_v9 = vld [vmem:[#allocation2 + $0x20] sm:$0xff]  ;;  %v6632_v10 = vld [vmem:[#allocation2 + $0x10] sm:$0xff] }
0x2588   :  { %6429 = vst [vmem:[#allocation3 + $0x38] sm:$0x7f] %v6427_v35  ;;  %v9833_v54 = vld [vmem:[%s17337_s20 + $0x90] sm:$0xff] }
0x2589   :  { %v6426_v44 = vsel %vm6421_vm9, %v6413_v20, %v6424_v13  ;;  %v6730_v20 = vstv %s9813_s18 }
0x258f   :  { %v6440_v43 = vld [vmem:[#allocation3 + $0x38] sm:$0xff] }
0x2590   :  { %12463 = vmatprep.subr.mxu1 %v6440_v43 }
0x2591   :  { %12464 = vmatpush3.msra.mxu1 %v6440_v43 }
0x2592   :  { %12465 = vmatprep.subr.mxu1 %v6426_v44 }
0x2593   :  { %12466 = vmatpush3.msra.mxu1 %v6426_v44 }
0x2617   :  { %v6315_v58 = vpop.f32.mrf.mxu0 }
0x2618   :  { %6319 = vst [vmem:[#allocation3 + $0x28] sm:$0x7] %v6315_v58 }
0x2619   :  { %v12457_v48 = vpop.f32.mrf.mxu0 }
0x261f   :  { %v6438_v22 = vld [vmem:[#allocation3 + $0x28] sm:$0xff] }
0x2620   :  { %12467 = vmatprep.subr.mxu1 %v6438_v22 }
0x2621   :  { %12468 = vmatpush3.msra.mxu1 %v6438_v22 }
0x2622   :  { %12469 = vmatprep.subr.mxu1 %v16200_v1 }
0x2623   :  { %12470 = vmatpush3.msra.mxu1 %v16200_v1 }
0x2624   :  { %12471 = vmatprep.subr.mxu1 %v15829_v0 }
0x2625   :  { %12472 = vmatpush3.msra.mxu1 %v15829_v0  ;;  %v6637_v0 = vld [vmem:[#allocation2 + $0x38] sm:$0xff] }
0x2626   :  { %12473 = vmatprep.subr.mxu1 %v6435_v21 }
0x2627   :  { %12474 = vmatpush3.msra.mxu1 %v6435_v21  ;;  %v9843_v21 = vld [vmem:[%s17332_s15 + $0x1c] sm:$0x7] }
0x2628   :  { %12475 = vmatprep.subr.mxu1 %v16103_v11 }
0x2629   :  { %12476 = vmatpush3.msra.mxu1 %v16103_v11 }
0x262a   :  { %12477 = vmatprep.subr.mxu1 %v16101_v61 }
0x262b   :  { %12478 = vmatpush3.msra.mxu1 %v16101_v61 }
0x262c   :  { %12480 = vmatmul.mubr.msk.f32.vlgmr.msra.gmra.mxu1 %vm1281_vm10, %v9830_v23  ;;  %12517 = vmatprep.subr.mxu1 %v13280_v50 }
0x262d   :  { %12518 = vmatpush3.msra.mxu1 %v6637_v0  ;;  %12533 = vmatprep.mubr.msk.f32.mxu1 %vm13281_vm13, %v13280_v50  ;;  %v16390_v0 = vld [vmem:[%s17370_s11 + $0x38] sm:$0xff] }
0x262e   :  { %12519 = vmatprep.subr.mxu1 %v13280_v50 }
0x26ec   :  { %v12481_v34 = vpop.f32.mrf.mxu1 }
0x26ed   :  { %v6526_v61 = vmul.f32 %v12481_v34, %v6524_v31  ;;  %vm6523_vm11 = vcmp.ge.f32.partialorder %v12481_v34, 0.0 }
0x26ee   :  { %v6513_v38 = vpop.f32.mrf.mxu1 }
0x26ef   :  { %vm6522_vm14 = vcmp.ge.f32.partialorder %v6513_v38, 0.0  ;;  %v6525_v11 = vmul.f32 %v6524_v31, %v6513_v38  ;;  %v6528_v51 = vsel %vm6523_vm11, %v12481_v34, %v6526_v61  ;;  %v16397_v31 = vld [vmem:[%s17370_s11 + $0x30] sm:$0xff]  ;;  %v16404_v34 = vld [vmem:[%s17370_s11 + $0x28] sm:$0xff]  ;;  %v16411_v61 = vld [vmem:[%s17370_s11 + $0x20] sm:$0xff] }
0x26f1   :  { %v6527_v49 = vsel %vm6522_vm14, %v6513_v38, %v6525_v11  ;;  %v16418_v38 = vld [vmem:[%s17370_s11 + $0x18] sm:$0xff]  ;;  %v16425_v11 = vld [vmem:[%s17370_s11 + $0x10] sm:$0xff] }
0x26f2   :  { %12514 = vmatprep.mubr.f32.mxu0 %v6527_v49  ;;  %v16432_v49 = vld [vmem:[%s17370_s11 + $0x8] sm:$0xff] }
0x26f3   :  { %12515 = vmatmul.mubr.f32.vlgmr.msra.gmra.mxu0 %v6528_v51  ;;  %v16439_v51 = vld [vmem:[%s17370_s11] sm:$0xff] }
0x26f4   :  { %12588 = vmatprep.mubr.msk.f32.mxu0 %vm13281_vm13, %v13280_v50 }
0x27b3   :  { %v12516_v52 = vpop.f32.mrf.mxu0 }
0x27b4   :  { %6624 = vst [vmem:[#allocation2 + $0x30] sm:$0x7f] %v12516_v52 }
0x27b5   :  { %v6611_v8 = vpop.f32.mrf.mxu0 }
0x27bb   :  { %v6636_v55 = vld [vmem:[#allocation2 + $0x30] sm:$0xff] }
0x27bc   :  { %12520 = vmatpush3.msra.mxu1 %v6636_v55 }
0x27bd   :  { %12521 = vmatprep.subr.mxu1 %v13280_v50 }
0x27be   :  { %12522 = vmatpush3.msra.mxu1 %v6611_v8  ;;  %v7182_v8 = vld [vmem:[%s17373_s27] sm:$0x7] }
0x27bf   :  { %12523 = vmatprep.subr.mxu1 %v13280_v50 }
0x27c0   :  { %12524 = vmatpush3.msra.mxu1 %v16244_v9 }
0x27c1   :  { %12525 = vmatprep.subr.mxu1 %v13280_v50 }
0x27c2   :  { %12526 = vmatpush3.msra.mxu1 %v15847_v2  ;;  %v9834_v2 = vld [vmem:[%s17337_s20 + $0x98] sm:$0xff] }
0x27c3   :  { %12527 = vmatprep.subr.mxu1 %v13280_v50 }
0x27c4   :  { %12528 = vmatpush3.msra.mxu1 %v6632_v10  ;;  %v9849_v10 = vld [vmem:[%s17334_s17 + $0x70] sm:$0xff] }
0x27c5   :  { %12529 = vmatprep.subr.mxu1 %v13280_v50 }
0x27c6   :  { %12530 = vmatpush3.msra.mxu1 %v15878_v36  ;;  %v9835_v36 = vld [vmem:[%s17337_s20 + $0xa0] sm:$0xf] }
0x27c7   :  { %12531 = vmatprep.subr.mxu1 %v13280_v50 }
0x27c8   :  { %12532 = vmatpush3.msra.mxu1 %v15885_v37 }
0x27c9   :  { %12534 = vmatmul.mubr.msk.f32.vlgmr.msra.gmra.mxu1 %vm1281_vm10, %v9833_v54  ;;  %12542 = vmatprep.subr.mxu1 %v13280_v50  ;;  %v9850_v54 = vld [vmem:[%s17334_s17 + $0x78] sm:$0x7f] }
0x27ca   :  { %12536 = vmatprep.mubr.msk.f32.mxu1 %vm13281_vm13, %v13280_v50 }
0x27cd   :  { %12537 = vmatmul.mubr.msk.f32.gmra.mxu1 %vm1281_vm10, %v9834_v2 }
0x27ce   :  { %12539 = vmatprep.mubr.msk.f32.mxu1 %vm13281_vm13, %v13280_v50 }
0x27d1   :  { %12540 = vmatmul.mubr.msk.f32.gmra.mxu1 %vm1281_vm10, %v9835_v36 }
0x27d2   :  { %12548 = vmatprep.mubr.msk.f32.mxu1 %vm13281_vm13, %v13280_v50 }
0x2889   :  { %v6713_v37 = vpop.f32.mrf.mxu1 }
0x288a   :  { %v6731_v58 = vmul.f32 %v6730_v20, %v6713_v37  ;;  %vm6727_vm3 = vcmp.ge.f32.partialorder %v6713_v37, 0.0 }
0x288b   :  { %v12535_v57 = vpop.f32.mrf.mxu1 }
0x288c   :  { %v16286_v23 = vsel %vm6727_vm3, %v6713_v37, %v6731_v58  ;;  %v7383_v58 = vstv %s9839_s8 }
0x288d   :  { %v6718_v35 = vpop.f32.mrf.mxu1 }
0x288e   :  { %v6732_v43 = vmul.f32 %v6730_v20, %v6718_v35  ;;  %vm6728_vm2 = vcmp.ge.f32.partialorder %v6718_v35, 0.0 }
0x288f   :  { %v12538_v32 = vpop.f32.mrf.mxu1 }
0x2890   :  { %v16279_v22 = vsel %vm6728_vm2, %v6718_v35, %v6732_v43  ;;  %v9856_v35 = vld [vmem:[%s17336_s19 + $0x70] sm:$0xff]  ;;  %v16536_v43 = vld [vmem:[#allocation3 + $0x18] sm:$0xff] }
0x2891   :  { %v6723_v13 = vpop.f32.mrf.mxu1 }
0x2892   :  { %vm6729_vm15 = vcmp.ge.f32.partialorder %v6723_v13, 0.0  ;;  %v6733_v44 = vmul.f32 %v6730_v20, %v6723_v13 }
0x2893   :  { %v12541_v45 = vpop.f32.mrf.mxu1 }
0x2894   :  { %v16273_v48 = vsel %vm6729_vm15, %v6723_v13, %v6733_v44  ;;  %v9857_v45 = vld [vmem:[%s17336_s19 + $0x78] sm:$0x7f] }
0x2895   :  { %7481 = vst [vmem:[#allocation2 + $0x10] sm:$0xf] %v16273_v48  ;;  %12543 = vmatpush3.msk.msra.mxu1 %vm734_vm12, %v16273_v48 }
0x2896   :  { %12544 = vmatprep.subr.mxu1 %v13280_v50 }
0x2897   :  { %12545 = vmatpush3.msra.mxu1 %v16279_v22 }
0x2898   :  { %12546 = vmatprep.subr.mxu1 %v13280_v50 }
0x2899   :  { %12547 = vmatpush3.msra.mxu1 %v16286_v23 }
0x289a   :  { %12549 = vmatmul.mubr.msk.f32.vlgmr.msra.gmra.mxu1 %vm730_vm4, %v9843_v21  ;;  %12551 = vmatprep.subr.mxu1 %v13280_v50 }
0x289b   :  { %12552 = vmatpush3.msra.mxu1 %v15895_v33  ;;  %12583 = vmatprep.mubr.msk.f32.mxu1 %vm13281_vm13, %v13280_v50  ;;  %v6916_v33 = vld [vmem:[%s17372_s28] sm:$0x3] }
0x289c   :  { %12553 = vmatprep.subr.mxu1 %v13280_v50  ;;  %12587 = vmatpush3.msk.msra.mxu0 %vm903_vm5, %v6916_v33 }
0x289d   :  { %12554 = vmatpush3.msra.mxu1 %v15903_v41  ;;  %12591 = vmatprep.subr.mxu0 %v13280_v50  ;;  %v6748_v41 = vpop.permute.xlu1 %6747 }
0x289e   :  { %12555 = vmatprep.subr.mxu1 %v13280_v50 }
0x289f   :  { %12556 = vmatpush3.msra.mxu1 %v15912_v15 }
0x28a0   :  { %12557 = vmatprep.subr.mxu1 %v13280_v50 }
0x28a1   :  { %12558 = vmatpush3.msra.mxu1 %v15919_v26  ;;  %v6827_v26 = vstv %s9841_s13  ;;  %s9869_s13 = sld [smem:[#allocation5 + $0x27]] }
0x28a2   :  { %12559 = vmatprep.subr.mxu1 %v13280_v50 }
0x28a3   :  { %12560 = vmatpush3.msra.mxu1 %v15926_v60 }
0x28a4   :  { %12561 = vmatprep.subr.mxu1 %v13280_v50 }
0x28a5   :  { %12562 = vmatpush3.msra.mxu1 %v15933_v53 }
0x28a6   :  { %12563 = vmatprep.subr.mxu1 %v13280_v50 }
0x28a7   :  { %12564 = vmatpush3.msra.mxu1 %v15940_v14 }
0x28a8   :  { %12565 = vmatprep.subr.mxu1 %v13280_v50 }
0x28a9   :  { %12566 = vmatpush3.msra.mxu1 %v15947_v24 }
0x28aa   :  { %12567 = vmatprep.subr.mxu1 %v13280_v50 }
0x28ab   :  { %12568 = vmatpush3.msra.mxu1 %v15954_v39  ;;  %v16335_v39 = vld [vmem:[%s17370_s11 + $0x78] sm:$0xff] }
0x28ac   :  { %12569 = vmatprep.subr.mxu1 %v13280_v50 }
0x28ad   :  { %12570 = vmatpush3.msra.mxu1 %v15961_v4  ;;  %v16341_v4 = vld [vmem:[%s17370_s11 + $0x70] sm:$0xff] }
0x28ae   :  { %12571 = vmatprep.subr.mxu1 %v13280_v50 }
0x28af   :  { %12572 = vmatpush3.msra.mxu1 %v15968_v5  ;;  %v16348_v5 = vld [vmem:[%s17370_s11 + $0x68] sm:$0xff] }
0x28b0   :  { %12573 = vmatprep.subr.mxu1 %v13280_v50 }
0x28b1   :  { %12574 = vmatpush3.msra.mxu1 %v15975_v7  ;;  %v16355_v7 = vld [vmem:[%s17370_s11 + $0x60] sm:$0xff] }
0x28b2   :  { %12575 = vmatprep.subr.mxu1 %v13280_v50 }
0x28b3   :  { %12576 = vmatpush3.msra.mxu1 %v15982_v62  ;;  %v16362_v62 = vld [vmem:[%s17370_s11 + $0x58] sm:$0xff] }
0x28b4   :  { %12577 = vmatprep.subr.mxu1 %v13280_v50 }
0x28b5   :  { %12578 = vmatpush3.msra.mxu1 %v15991_v6  ;;  %v16369_v6 = vld [vmem:[%s17370_s11 + $0x50] sm:$0xff] }
0x28b6   :  { %12579 = vmatprep.subr.mxu1 %v13280_v50 }
0x28b7   :  { %12580 = vmatpush3.msra.mxu1 %v15998_v42  ;;  %v16376_v42 = vld [vmem:[%s17370_s11 + $0x48] sm:$0xff] }
0x28b8   :  { %12581 = vmatprep.subr.mxu1 %v13280_v50 }
0x28b9   :  { %12582 = vmatpush3.msra.mxu1 %v16003_v16  ;;  %v16383_v16 = vld [vmem:[%s17370_s11 + $0x40] sm:$0xff] }
0x28ba   :  { %12632 = vmatprep.subr.mxu1 %v13280_v50 }
0x295a   :  { %v6822_v15 = vpop.f32.mrf.mxu1 }
0x295b   :  { %v6823_v60 = vadd.f32 %v6822_v15, %v6748_v41 }
0x295c   :  { %v12550_v53 = vpop.f32.mrf.mxu1 }
0x295d   :  { %vm6826_vm6 = vcmp.ge.f32.partialorder %v6823_v60, 0.0  ;;  %v6828_v14 = vmul.f32 %v6827_v26, %v6823_v60 }
0x295f   :  { %v6829_v24 = vsel %vm6826_vm6, %v6823_v60, %v6828_v14 }
0x2960   :  { %12584 = vmatmul.mubr.f32.vlgmr.msra.gmra.mxu1 %v6829_v24 }
0x2961   :  { %12664 = vmatprep.mubr.msk.f32.mxu1 %vm13281_vm13, %v13280_v50  ;;  %12633 = vmatpush3.msra.mxu1 %v16335_v39 }
0x2962   :  { %12634 = vmatprep.subr.mxu1 %v13280_v50 }
0x2963   :  { %12635 = vmatpush3.msra.mxu1 %v16341_v4 }
0x2964   :  { %12636 = vmatprep.subr.mxu1 %v13280_v50 }
0x2965   :  { %12637 = vmatpush3.msra.mxu1 %v16348_v5 }
0x2966   :  { %12638 = vmatprep.subr.mxu1 %v13280_v50 }
0x2967   :  { %12639 = vmatpush3.msra.mxu1 %v16355_v7 }
0x2968   :  { %12640 = vmatprep.subr.mxu1 %v13280_v50 }
0x2969   :  { %12641 = vmatpush3.msra.mxu1 %v16362_v62 }
0x296a   :  { %12642 = vmatprep.subr.mxu1 %v13280_v50 }
0x296b   :  { %12643 = vmatpush3.msra.mxu1 %v16369_v6 }
0x296c   :  { %12644 = vmatprep.subr.mxu1 %v13280_v50 }
0x296d   :  { %12645 = vmatpush3.msra.mxu1 %v16376_v42 }
0x296e   :  { %12646 = vmatprep.subr.mxu1 %v13280_v50 }
0x296f   :  { %12647 = vmatpush3.msra.mxu1 %v16383_v16 }
0x2970   :  { %12648 = vmatprep.subr.mxu1 %v13280_v50 }
0x2971   :  { %12649 = vmatpush3.msra.mxu1 %v16390_v0 }
0x2972   :  { %12650 = vmatprep.subr.mxu1 %v13280_v50 }
0x2973   :  { %12651 = vmatpush3.msra.mxu1 %v16397_v31 }
0x2974   :  { %12652 = vmatprep.subr.mxu1 %v13280_v50 }
0x2975   :  { %12653 = vmatpush3.msra.mxu1 %v16404_v34 }
0x2976   :  { %12654 = vmatprep.subr.mxu1 %v13280_v50 }
0x2977   :  { %12655 = vmatpush3.msra.mxu1 %v16411_v61 }
0x2978   :  { %12656 = vmatprep.subr.mxu1 %v13280_v50 }
0x2979   :  { %12657 = vmatpush3.msra.mxu1 %v16418_v38 }
0x297a   :  { %12658 = vmatprep.subr.mxu1 %v13280_v50 }
0x297b   :  { %12659 = vmatpush3.msra.mxu1 %v16425_v11 }
0x297c   :  { %12660 = vmatprep.subr.mxu1 %v13280_v50 }
0x297d   :  { %12661 = vmatpush3.msra.mxu1 %v16432_v49 }
0x297e   :  { %12662 = vmatprep.subr.mxu1 %v13280_v50 }
0x297f   :  { %12663 = vmatpush3.msra.mxu1 %v16439_v51 }
0x2980   :  { %12691 = vmatprep.subr.mxu1 %v16112_v25 }
0x2a20   :  { %v6912_v52 = vpop.f32.mrf.mxu1 }
0x2a21   :  { %12589 = vmatmul.mubr.msk.f32.vlgmr.msra.gmra.mxu0 %vm899_vm7, %v6912_v52  ;;  %v16554_v52 = vld [vmem:[#allocation2 + $0x18] sm:$0xff] }
0x2a22   :  { %12592 = vmatpush3.msra.mxu0 %v16335_v39  ;;  %v12585_v55 = vpop.f32.mrf.mxu1  ;;  %12623 = vmatprep.mubr.msk.f32.mxu0 %vm13281_vm13, %v13280_v50 }
0x2a23   :  { %12593 = vmatprep.subr.mxu0 %v13280_v50  ;;  %v7491_v55 = vld [vmem:[#allocation2 + $0x10] sm:$0xff] }
0x2a24   :  { %12594 = vmatpush3.msra.mxu0 %v16341_v4 }
0x2a25   :  { %12595 = vmatprep.subr.mxu0 %v13280_v50 }
0x2a26   :  { %12596 = vmatpush3.msra.mxu0 %v16348_v5 }
0x2a27   :  { %12597 = vmatprep.subr.mxu0 %v13280_v50 }
0x2a28   :  { %12598 = vmatpush3.msra.mxu0 %v16355_v7 }
0x2a29   :  { %12599 = vmatprep.subr.mxu0 %v13280_v50 }
0x2a2a   :  { %12600 = vmatpush3.msra.mxu0 %v16362_v62 }
0x2a2b   :  { %12601 = vmatprep.subr.mxu0 %v13280_v50 }
0x2a2c   :  { %12602 = vmatpush3.msra.mxu0 %v16369_v6 }
0x2a2d   :  { %12603 = vmatprep.subr.mxu0 %v13280_v50 }
0x2a2e   :  { %12604 = vmatpush3.msra.mxu0 %v16376_v42 }
0x2a2f   :  { %12605 = vmatprep.subr.mxu0 %v13280_v50 }
0x2a30   :  { %12606 = vmatpush3.msra.mxu0 %v16383_v16 }
0x2a31   :  { %12607 = vmatprep.subr.mxu0 %v13280_v50 }
0x2a32   :  { %12608 = vmatpush3.msra.mxu0 %v16390_v0 }
0x2a33   :  { %12609 = vmatprep.subr.mxu0 %v13280_v50 }
0x2a34   :  { %12610 = vmatpush3.msra.mxu0 %v16397_v31 }
0x2a35   :  { %12611 = vmatprep.subr.mxu0 %v13280_v50 }
0x2a36   :  { %12612 = vmatpush3.msra.mxu0 %v16404_v34 }
0x2a37   :  { %12613 = vmatprep.subr.mxu0 %v13280_v50 }
0x2a38   :  { %12614 = vmatpush3.msra.mxu0 %v16411_v61 }
0x2a39   :  { %12615 = vmatprep.subr.mxu0 %v13280_v50 }
0x2a3a   :  { %12616 = vmatpush3.msra.mxu0 %v16418_v38 }
0x2a3b   :  { %12617 = vmatprep.subr.mxu0 %v13280_v50 }
0x2a3c   :  { %12618 = vmatpush3.msra.mxu0 %v16425_v11 }
0x2a3d   :  { %12619 = vmatprep.subr.mxu0 %v13280_v50 }
0x2a3e   :  { %12620 = vmatpush3.msra.mxu0 %v16432_v49 }
0x2a3f   :  { %12621 = vmatprep.subr.mxu0 %v13280_v50 }
0x2a40   :  { %12622 = vmatpush3.msra.mxu0 %v16439_v51 }
0x2a41   :  { %12624 = vmatmul.mubr.f32.vlgmr.msra.gmra.mxu0 %v16286_v23  ;;  %12667 = vmatprep.subr.msk.mxu0 %vm141_vm0, %v7182_v8 }
0x2a42   :  { %12626 = vmatprep.mubr.msk.f32.mxu0 %vm13281_vm13, %v13280_v50  ;;  %12668 = vmatpush3.msk.msra.mxu0 %vm141_vm0, %v7182_v8  ;;  %v9860_v8 = vld [vmem:[%s17337_s20 + $0xa8] sm:$0xff] }
0x2a45   :  { %12627 = vmatmul.mubr.f32.gmra.mxu0 %v16279_v22 }
0x2a46   :  { %12629 = vmatprep.mubr.msk.f32.mxu0 %vm13281_vm13, %v13280_v50 }
0x2a49   :  { %12630 = vmatmul.mubr.f32.gmra.mxu0 %v16273_v48 }
0x2a4a   :  { %12669 = vmatprep.mubr.msk.f32.mxu0 %vm128_vm1, %v9849_v10  ;;  %v9862_v10 = vld [vmem:[%s17337_s20 + $0xb8] sm:$0xf] }
0x2a4d   :  { %12670 = vmatmul.mubr.msk.f32.vlgmr.msra.gmra.mxu0 %vm128_vm1, %v9850_v54 }
0x2a4e   :  { %12688 = vmatprep.mubr.msk.f32.mxu0 %vm1281_vm10, %v9856_v35  ;;  %v16651_v35 = vld [vmem:[%s17371_s25 + $0x40] sm:$0xff] }
0x2ae1   :  { %v6989_v2 = vpop.f32.mrf.mxu0 }
0x2ae2   :  { %7484 = vst [vmem:[#allocation2 + $0x38] sm:$0x7] %v6989_v2  ;;  %12665 = vmatmul.mubr.f32.vlgmr.msra.gmra.mxu1 %v6989_v2 }
0x2ae3   :  { %v12590_v36 = vpop.f32.mrf.mxu0  ;;  %12692 = vmatpush3.msra.mxu1 %v16112_v25 }
0x2ae4   :  { %12693 = vmatprep.subr.mxu1 %v16117_v27 }
0x2ae5   :  { %12694 = vmatpush3.msra.mxu1 %v16117_v27 }
0x2ae6   :  { %12695 = vmatprep.subr.mxu1 %v16124_v28 }
0x2ae7   :  { %12696 = vmatpush3.msra.mxu1 %v16124_v28 }
0x2ae8   :  { %12697 = vmatprep.subr.mxu1 %v16131_v29 }
0x2ae9   :  { %12698 = vmatpush3.msra.mxu1 %v16131_v29 }
0x2aea   :  { %12699 = vmatprep.subr.mxu1 %v16138_v40 }
0x2aeb   :  { %12700 = vmatpush3.msra.mxu1 %v16138_v40 }
0x2aec   :  { %12701 = vmatprep.subr.mxu1 %v16145_v59 }
0x2aed   :  { %12702 = vmatpush3.msra.mxu1 %v16145_v59 }
0x2aee   :  { %12703 = vmatprep.subr.mxu1 %v16152_v12 }
0x2aef   :  { %12704 = vmatpush3.msra.mxu1 %v16152_v12  ;;  %v7194_v12 = vpop.permute.xlu0 %7193 }
0x2af0   :  { %12705 = vmatprep.subr.mxu1 %v16159_v56 }
0x2af1   :  { %12706 = vmatpush3.msra.mxu1 %v16159_v56 }
0x2af2   :  { %12707 = vmatprep.subr.mxu1 %v16166_v30 }
0x2af3   :  { %12708 = vmatpush3.msra.mxu1 %v16166_v30  ;;  %v7282_v30 = vstv %s9842_s10  ;;  %s9924_s10 = sld [smem:[#allocation5 + $0x2c]] }
0x2af4   :  { %12709 = vmatprep.subr.mxu1 %v16173_v17 }
0x2af5   :  { %12710 = vmatpush3.msra.mxu1 %v16173_v17 }
0x2af6   :  { %12711 = vmatprep.subr.mxu1 %v16180_v18 }
0x2af7   :  { %12712 = vmatpush3.msra.mxu1 %v16180_v18 }
0x2af8   :  { %12713 = vmatprep.subr.mxu1 %v16187_v19 }
0x2af9   :  { %12714 = vmatpush3.msra.mxu1 %v16187_v19 }
0x2afa   :  { %12715 = vmatprep.subr.mxu1 %v16194_v63 }
0x2afb   :  { %12716 = vmatpush3.msra.mxu1 %v16194_v63 }
0x2afc   :  { %12717 = vmatprep.subr.mxu1 %v16221_v46 }
0x2afd   :  { %12718 = vmatpush3.msra.mxu1 %v16221_v46  ;;  %v7189_v46 = vpop.permute.xlu1 %7188 }
0x2afe   :  { %12719 = vmatprep.subr.mxu1 %v16228_v47 }
0x2aff   :  { %12720 = vmatpush3.msra.mxu1 %v16228_v47 }
0x2b00   :  { %12721 = vmatprep.subr.mxu1 %v16233_v3 }
0x2b01   :  { %v7075_v25 = vpop.f32.mrf.mxu0  ;;  %12722 = vmatpush3.msra.mxu1 %v16233_v3 }
0x2b02   :  { %12795 = vmatprep.subr.mxu1 %v13280_v50 }
0x2b03   :  { %v12625_v27 = vpop.f32.mrf.mxu0 }
0x2b04   :  { %v7589_v27 = vstv %s9840_s30 }
0x2b05   :  { %v7080_v28 = vpop.f32.mrf.mxu0 }
0x2b07   :  { %v12628_v29 = vpop.f32.mrf.mxu0 }
0x2b09   :  { %v7085_v40 = vpop.f32.mrf.mxu0 }
0x2b0a   :  { %7091 = vst [vmem:[#allocation3 + $0x10] sm:$0xf] %v7085_v40 }
0x2b0b   :  { %v12631_v59 = vpop.f32.mrf.mxu0 }
0x2b0d   :  { %v12671_v56 = vpop.f32.mrf.mxu0 }
0x2b0e   :  { %v7277_v17 = vadd.f32 %v12671_v56, %v7194_v12 }
0x2b0f   :  { %v7271_v19 = vpop.f32.mrf.mxu0 }
0x2b10   :  { %vm7281_vm8 = vcmp.ge.f32.partialorder %v7277_v17, 0.0  ;;  %v7284_v18 = vmul.f32 %v7282_v30, %v7277_v17  ;;  %v7272_v47 = vadd.f32 %v7271_v19, %v7189_v46  ;;  %v16599_v19 = vld [vmem:[%s17371_s25 + $0x78] sm:$0xff]  ;;  %v16616_v46 = vld [vmem:[%s17371_s25 + $0x68] sm:$0xff] }
0x2b11   :  { %v7294_v44 = vld [vmem:[#allocation3 + $0x10] sm:$0xff] }
0x2b12   :  { %v7286_v63 = vsel %vm7281_vm8, %v7277_v17, %v7284_v18  ;;  %v7283_v3 = vmul.f32 %v7282_v30, %v7272_v47  ;;  %vm7280_vm9 = vcmp.ge.f32.partialorder %v7272_v47, 0.0  ;;  %v9870_v17 = vld [vmem:[%s17332_s15 + $0x20] sm:$0x7] }
0x2b13   :  { %7288 = vst [vmem:[#allocation3 + $0x38] sm:$0x7f] %v7286_v63  ;;  %v16607_v63 = vld [vmem:[%s17371_s25 + $0x70] sm:$0xff] }
0x2b14   :  { %v7285_v57 = vsel %vm7280_vm9, %v7272_v47, %v7283_v3  ;;  %v16623_v47 = vld [vmem:[%s17371_s25 + $0x60] sm:$0xff]  ;;  %v16630_v3 = vld [vmem:[%s17371_s25 + $0x58] sm:$0xff] }
0x2b1a   :  { %v7299_v37 = vld [vmem:[#allocation3 + $0x38] sm:$0xff] }
0x2b1b   :  { %12672 = vmatprep.subr.mxu0 %v7299_v37 }
0x2b1c   :  { %12673 = vmatpush3.msra.mxu0 %v7299_v37  ;;  %v16637_v37 = vld [vmem:[%s17371_s25 + $0x50] sm:$0xff] }
0x2b1d   :  { %12674 = vmatprep.subr.mxu0 %v7285_v57 }
0x2b1e   :  { %12675 = vmatpush3.msra.mxu0 %v7285_v57  ;;  %v16644_v57 = vld [vmem:[%s17371_s25 + $0x48] sm:$0xff] }
0x2ba2   :  { %v7174_v32 = vpop.f32.mrf.mxu1 }
0x2ba3   :  { %7178 = vst [vmem:[#allocation3 + $0x28] sm:$0x7] %v7174_v32  ;;  %v16658_v32 = vld [vmem:[%s17371_s25 + $0x38] sm:$0xff] }
0x2ba4   :  { %v12666_v20 = vpop.f32.mrf.mxu1 }
0x2ba5   :  { %v16665_v20 = vld [vmem:[%s17371_s25 + $0x30] sm:$0xff] }
0x2baa   :  { %v7297_v13 = vld [vmem:[#allocation3 + $0x28] sm:$0xff] }
0x2bab   :  { %12676 = vmatprep.subr.mxu0 %v7297_v13 }
0x2bac   :  { %12677 = vmatpush3.msra.mxu0 %v7297_v13  ;;  %v16672_v13 = vld [vmem:[%s17371_s25 + $0x28] sm:$0xff] }
0x2bad   :  { %12678 = vmatprep.subr.mxu0 %v16200_v1 }
0x2bae   :  { %12679 = vmatpush3.msra.mxu0 %v16200_v1  ;;  %v7496_v1 = vld [vmem:[#allocation2 + $0x38] sm:$0xff] }
0x2baf   :  { %12680 = vmatprep.subr.mxu0 %v16536_v43 }
0x2bb0   :  { %12681 = vmatpush3.msra.mxu0 %v16536_v43 }
0x2bb1   :  { %12682 = vmatprep.subr.mxu0 %v7294_v44 }
0x2bb2   :  { %12683 = vmatpush3.msra.mxu0 %v7294_v44  ;;  %v16679_v44 = vld [vmem:[%s17371_s25 + $0x20] sm:$0xff] }
0x2bb3   :  { %12684 = vmatprep.subr.mxu0 %v7080_v28 }
0x2bb4   :  { %12685 = vmatpush3.msra.mxu0 %v7080_v28 }
0x2bb5   :  { %12686 = vmatprep.subr.mxu0 %v7075_v25 }
0x2bb6   :  { %12687 = vmatpush3.msra.mxu0 %v7075_v25 }
0x2bb7   :  { %12689 = vmatmul.mubr.msk.f32.vlgmr.msra.gmra.mxu0 %vm1281_vm10, %v9857_v45  ;;  %12726 = vmatprep.subr.mxu0 %v13280_v50  ;;  %v16686_v45 = vld [vmem:[%s17371_s25 + $0x18] sm:$0xff] }
0x2bb8   :  { %12727 = vmatpush3.msra.mxu0 %v7496_v1  ;;  %12742 = vmatprep.mubr.msk.f32.mxu0 %vm13281_vm13, %v13280_v50  ;;  %v16695_v1 = vld [vmem:[%s17371_s25 + $0x10] sm:$0xff] }
0x2bb9   :  { %12728 = vmatprep.subr.mxu0 %v13280_v50 }
0x2c77   :  { %v12690_v21 = vpop.f32.mrf.mxu0 }
0x2c78   :  { %v7385_v33 = vmul.f32 %v12690_v21, %v7383_v58  ;;  %vm7382_vm11 = vcmp.ge.f32.partialorder %v12690_v21, 0.0 }
0x2c79   :  { %v7372_v41 = vpop.f32.mrf.mxu0 }
0x2c7a   :  { %vm7381_vm14 = vcmp.ge.f32.partialorder %v7372_v41, 0.0  ;;  %v7384_v15 = vmul.f32 %v7383_v58, %v7372_v41  ;;  %v7387_v60 = vsel %vm7382_vm11, %v12690_v21, %v7385_v33  ;;  %v16702_v58 = vld [vmem:[%s17371_s25 + $0x8] sm:$0xff]  ;;  %v16709_v21 = vld [vmem:[%s17371_s25] sm:$0xff] }
0x2c7b   :  { %v7775_v33 = vld [vmem:[%s17372_s28] sm:$0x3] }
0x2c7c   :  { %v7386_v26 = vsel %vm7381_vm14, %v7372_v41, %v7384_v15  ;;  %v7607_v41 = vpop.permute.xlu0 %7606 }
0x2c7d   :  { %12723 = vmatprep.mubr.f32.mxu1 %v7386_v26  ;;  %v7686_v26 = vstv %s9868_s4 }
0x2c7e   :  { %12724 = vmatmul.mubr.f32.vlgmr.msra.gmra.mxu1 %v7387_v60 }
0x2c7f   :  { %12797 = vmatprep.mubr.msk.f32.mxu1 %vm13281_vm13, %v13280_v50  ;;  %12796 = vmatpush3.msk.msra.mxu1 %vm903_vm5, %v7775_v33  ;;  %v16856_v33 = vld [vmem:[%s17374_s22 + $0x48] sm:$0xff] }
0x2c80   :  { %12800 = vmatprep.subr.mxu1 %v13280_v50 }
0x2d3e   :  { %v12725_v53 = vpop.f32.mrf.mxu1 }
0x2d3f   :  { %7483 = vst [vmem:[#allocation2 + $0x30] sm:$0x7f] %v12725_v53 }
0x2d40   :  { %v7470_v24 = vpop.f32.mrf.mxu1 }
0x2d46   :  { %v7495_v14 = vld [vmem:[#allocation2 + $0x30] sm:$0xff] }
0x2d47   :  { %12729 = vmatpush3.msra.mxu0 %v7495_v14 }
0x2d48   :  { %12730 = vmatprep.subr.mxu0 %v13280_v50 }
0x2d49   :  { %12731 = vmatpush3.msra.mxu0 %v7470_v24 }
0x2d4a   :  { %12732 = vmatprep.subr.mxu0 %v13280_v50 }
0x2d4b   :  { %12733 = vmatpush3.msra.mxu0 %v16244_v9  ;;  %v9861_v9 = vld [vmem:[%s17337_s20 + $0xb0] sm:$0xff] }
0x2d4c   :  { %12734 = vmatprep.subr.mxu0 %v13280_v50 }
0x2d4d   :  { %12735 = vmatpush3.msra.mxu0 %v16554_v52 }
0x2d4e   :  { %12736 = vmatprep.subr.mxu0 %v13280_v50 }
0x2d4f   :  { %12737 = vmatpush3.msra.mxu0 %v7491_v55 }
0x2d50   :  { %12738 = vmatprep.subr.mxu0 %v13280_v50 }
0x2d51   :  { %12739 = vmatpush3.msra.mxu0 %v16279_v22 }
0x2d52   :  { %12740 = vmatprep.subr.mxu0 %v13280_v50 }
0x2d53   :  { %12741 = vmatpush3.msra.mxu0 %v16286_v23 }
0x2d54   :  { %12743 = vmatmul.mubr.msk.f32.vlgmr.msra.gmra.mxu0 %vm1281_vm10, %v9860_v8  ;;  %12751 = vmatprep.subr.mxu0 %v13280_v50 }
0x2d55   :  { %12745 = vmatprep.mubr.msk.f32.mxu0 %vm13281_vm13, %v13280_v50 }
0x2d58   :  { %12746 = vmatmul.mubr.msk.f32.gmra.mxu0 %vm1281_vm10, %v9861_v9 }
0x2d59   :  { %12748 = vmatprep.mubr.msk.f32.mxu0 %vm13281_vm13, %v13280_v50 }
0x2d5c   :  { %12749 = vmatmul.mubr.msk.f32.gmra.mxu0 %vm1281_vm10, %v9862_v10 }
0x2d5d   :  { %12757 = vmatprep.mubr.msk.f32.mxu0 %vm13281_vm13, %v13280_v50 }
0x2e14   :  { %v7572_v54 = vpop.f32.mrf.mxu0 }
0x2e15   :  { %v7590_v12 = vmul.f32 %v7589_v27, %v7572_v54  ;;  %vm7586_vm3 = vcmp.ge.f32.partialorder %v7572_v54, 0.0 }
0x2e16   :  { %v12744_v2 = vpop.f32.mrf.mxu0 }
0x2e17   :  { %v16594_v18 = vsel %vm7586_vm3, %v7572_v54, %v7590_v12  ;;  %v8048_v54 = vpop.permute.xlu0 %8047  ;;  %v16835_v12 = vld [vmem:[%s17374_s22 + $0x60] sm:$0xff] }
0x2e18   :  { %v7577_v36 = vpop.f32.mrf.mxu0 }
0x2e19   :  { %v7591_v29 = vmul.f32 %v7589_v27, %v7577_v36  ;;  %vm7587_vm2 = vcmp.ge.f32.partialorder %v7577_v36, 0.0 }
0x2e1a   :  { %v12747_v25 = vpop.f32.mrf.mxu0 }
0x2e1b   :  { %v16587_v30 = vsel %vm7587_vm2, %v7577_v36, %v7591_v29  ;;  %v16816_v29 = vld [vmem:[%s17374_s22 + $0x78] sm:$0xff] }
0x2e1c   :  { %v7582_v28 = vpop.f32.mrf.mxu0 }
0x2e1d   :  { %vm7588_vm15 = vcmp.ge.f32.partialorder %v7582_v28, 0.0  ;;  %v7592_v40 = vmul.f32 %v7589_v27, %v7582_v28 }
0x2e1e   :  { %v12750_v59 = vpop.f32.mrf.mxu0 }
0x2e1f   :  { %v16581_v56 = vsel %vm7588_vm15, %v7582_v28, %v7592_v40  ;;  %v9883_v28 = vld [vmem:[%s17336_s19 + $0x80] sm:$0xff]  ;;  %v16821_v40 = vld [vmem:[%s17374_s22 + $0x70] sm:$0xff]  ;;  %v16828_v59 = vld [vmem:[%s17374_s22 + $0x68] sm:$0xff] }
0x2e20   :  { %8340 = vst [vmem:[#allocation2 + $0x10] sm:$0xf] %v16581_v56  ;;  %12752 = vmatpush3.msk.msra.mxu0 %vm734_vm12, %v16581_v56 }
0x2e21   :  { %12753 = vmatprep.subr.mxu0 %v13280_v50 }
0x2e22   :  { %12754 = vmatpush3.msra.mxu0 %v16587_v30 }
0x2e23   :  { %12755 = vmatprep.subr.mxu0 %v13280_v50 }
0x2e24   :  { %12756 = vmatpush3.msra.mxu0 %v16594_v18 }
0x2e25   :  { %12758 = vmatmul.mubr.msk.f32.vlgmr.msra.gmra.mxu0 %vm730_vm4, %v9870_v17  ;;  %12760 = vmatprep.subr.mxu0 %v13280_v50  ;;  %v16849_v17 = vld [vmem:[%s17374_s22 + $0x50] sm:$0xff] }
0x2e26   :  { %12761 = vmatpush3.msra.mxu0 %v16599_v19  ;;  %12792 = vmatprep.mubr.msk.f32.mxu0 %vm13281_vm13, %v13280_v50 }
0x2e27   :  { %12762 = vmatprep.subr.mxu0 %v13280_v50 }
0x2e28   :  { %12763 = vmatpush3.msra.mxu0 %v16607_v63 }
0x2e29   :  { %12764 = vmatprep.subr.mxu0 %v13280_v50 }
0x2e2a   :  { %12765 = vmatpush3.msra.mxu0 %v16616_v46 }
0x2e2b   :  { %12766 = vmatprep.subr.mxu0 %v13280_v50 }
0x2e2c   :  { %12767 = vmatpush3.msra.mxu0 %v16623_v47 }
0x2e2d   :  { %12768 = vmatprep.subr.mxu0 %v13280_v50 }
0x2e2e   :  { %12769 = vmatpush3.msra.mxu0 %v16630_v3 }
0x2e2f   :  { %12770 = vmatprep.subr.mxu0 %v13280_v50 }
0x2e30   :  { %12771 = vmatpush3.msra.mxu0 %v16637_v37 }
0x2e31   :  { %12772 = vmatprep.subr.mxu0 %v13280_v50 }
0x2e32   :  { %12773 = vmatpush3.msra.mxu0 %v16644_v57 }
0x2e33   :  { %12774 = vmatprep.subr.mxu0 %v13280_v50 }
0x2e34   :  { %12775 = vmatpush3.msra.mxu0 %v16651_v35 }
0x2e35   :  { %12776 = vmatprep.subr.mxu0 %v13280_v50 }
0x2e36   :  { %12777 = vmatpush3.msra.mxu0 %v16658_v32 }
0x2e37   :  { %12778 = vmatprep.subr.mxu0 %v13280_v50 }
0x2e38   :  { %12779 = vmatpush3.msra.mxu0 %v16665_v20 }
0x2e39   :  { %12780 = vmatprep.subr.mxu0 %v13280_v50 }
0x2e3a   :  { %12781 = vmatpush3.msra.mxu0 %v16672_v13 }
0x2e3b   :  { %12782 = vmatprep.subr.mxu0 %v13280_v50 }
0x2e3c   :  { %12783 = vmatpush3.msra.mxu0 %v16679_v44 }
0x2e3d   :  { %12784 = vmatprep.subr.mxu0 %v13280_v50 }
0x2e3e   :  { %12785 = vmatpush3.msra.mxu0 %v16686_v45 }
0x2e3f   :  { %12786 = vmatprep.subr.mxu0 %v13280_v50 }
0x2e40   :  { %12787 = vmatpush3.msra.mxu0 %v16695_v1 }
0x2e41   :  { %12788 = vmatprep.subr.mxu0 %v13280_v50 }
0x2e42   :  { %12789 = vmatpush3.msra.mxu0 %v16702_v58 }
0x2e43   :  { %12790 = vmatprep.subr.mxu0 %v13280_v50 }
0x2e44   :  { %12791 = vmatpush3.msra.mxu0 %v16709_v21 }
0x2e45   :  { %12841 = vmatprep.subr.mxu0 %v13280_v50 }
0x2ee5   :  { %v7681_v15 = vpop.f32.mrf.mxu0 }
0x2ee6   :  { %v7682_v60 = vadd.f32 %v7681_v15, %v7607_v41  ;;  %v16863_v41 = vld [vmem:[%s17374_s22 + $0x40] sm:$0xff]  ;;  %v16870_v15 = vld [vmem:[%s17374_s22 + $0x38] sm:$0xff] }
0x2ee7   :  { %v12759_v53 = vpop.f32.mrf.mxu0 }
0x2ee8   :  { %vm7685_vm6 = vcmp.ge.f32.partialorder %v7682_v60, 0.0  ;;  %v7687_v14 = vmul.f32 %v7686_v26, %v7682_v60  ;;  %v16877_v26 = vld [vmem:[%s17374_s22 + $0x30] sm:$0xff]  ;;  %v16891_v53 = vld [vmem:[%s17374_s22 + $0x20] sm:$0xff] }
0x2eea   :  { %v7688_v24 = vsel %vm7685_vm6, %v7682_v60, %v7687_v14  ;;  %v16884_v60 = vld [vmem:[%s17374_s22 + $0x28] sm:$0xff]  ;;  %v16898_v14 = vld [vmem:[%s17374_s22 + $0x18] sm:$0xff] }
0x2eeb   :  { %12793 = vmatmul.mubr.f32.vlgmr.msra.gmra.mxu0 %v7688_v24 }
0x2eec   :  { %12842 = vmatpush3.msra.mxu0 %v16335_v39  ;;  %12873 = vmatprep.mubr.msk.f32.mxu0 %vm13281_vm13, %v13280_v50 }
0x2eed   :  { %12843 = vmatprep.subr.mxu0 %v13280_v50 }
0x2eee   :  { %12844 = vmatpush3.msra.mxu0 %v16341_v4 }
0x2eef   :  { %12845 = vmatprep.subr.mxu0 %v13280_v50 }
0x2ef0   :  { %12846 = vmatpush3.msra.mxu0 %v16348_v5 }
0x2ef1   :  { %12847 = vmatprep.subr.mxu0 %v13280_v50 }
0x2ef2   :  { %12848 = vmatpush3.msra.mxu0 %v16355_v7 }
0x2ef3   :  { %12849 = vmatprep.subr.mxu0 %v13280_v50 }
0x2ef4   :  { %12850 = vmatpush3.msra.mxu0 %v16362_v62 }
0x2ef5   :  { %12851 = vmatprep.subr.mxu0 %v13280_v50 }
0x2ef6   :  { %12852 = vmatpush3.msra.mxu0 %v16369_v6 }
0x2ef7   :  { %12853 = vmatprep.subr.mxu0 %v13280_v50 }
0x2ef8   :  { %12854 = vmatpush3.msra.mxu0 %v16376_v42 }
0x2ef9   :  { %12855 = vmatprep.subr.mxu0 %v13280_v50 }
0x2efa   :  { %12856 = vmatpush3.msra.mxu0 %v16383_v16 }
0x2efb   :  { %12857 = vmatprep.subr.mxu0 %v13280_v50 }
0x2efc   :  { %12858 = vmatpush3.msra.mxu0 %v16390_v0 }
0x2efd   :  { %12859 = vmatprep.subr.mxu0 %v13280_v50 }
0x2efe   :  { %12860 = vmatpush3.msra.mxu0 %v16397_v31 }
0x2eff   :  { %12861 = vmatprep.subr.mxu0 %v13280_v50 }
0x2f00   :  { %12862 = vmatpush3.msra.mxu0 %v16404_v34 }
0x2f01   :  { %12863 = vmatprep.subr.mxu0 %v13280_v50 }
0x2f02   :  { %12864 = vmatpush3.msra.mxu0 %v16411_v61 }
0x2f03   :  { %12865 = vmatprep.subr.mxu0 %v13280_v50 }
0x2f04   :  { %12866 = vmatpush3.msra.mxu0 %v16418_v38 }
0x2f05   :  { %12867 = vmatprep.subr.mxu0 %v13280_v50 }
0x2f06   :  { %12868 = vmatpush3.msra.mxu0 %v16425_v11 }
0x2f07   :  { %12869 = vmatprep.subr.mxu0 %v13280_v50 }
0x2f08   :  { %12870 = vmatpush3.msra.mxu0 %v16432_v49 }
0x2f09   :  { %12871 = vmatprep.subr.mxu0 %v13280_v50 }
0x2f0a   :  { %12872 = vmatpush3.msra.mxu0 %v16439_v51 }
0x2f0b   :  { %12900 = vmatprep.subr.mxu0 %v16816_v29 }
0x2fab   :  { %v7771_v55 = vpop.f32.mrf.mxu0 }
0x2fac   :  { %12798 = vmatmul.mubr.msk.f32.vlgmr.msra.gmra.mxu1 %vm899_vm7, %v7771_v55 }
0x2fad   :  { %12801 = vmatpush3.msra.mxu1 %v16335_v39  ;;  %v12794_v8 = vpop.f32.mrf.mxu0  ;;  %12832 = vmatprep.mubr.msk.f32.mxu1 %vm13281_vm13, %v13280_v50  ;;  %v8041_v39 = vld [vmem:[%s17373_s27] sm:$0x7] }
0x2fae   :  { %12802 = vmatprep.subr.mxu1 %v13280_v50 }
0x2faf   :  { %12803 = vmatpush3.msra.mxu1 %v16341_v4  ;;  %v9876_v4 = vld [vmem:[%s17334_s17 + $0x80] sm:$0xff] }
0x2fb0   :  { %12804 = vmatprep.subr.mxu1 %v13280_v50 }
0x2fb1   :  { %12805 = vmatpush3.msra.mxu1 %v16348_v5  ;;  %v9877_v5 = vld [vmem:[%s17334_s17 + $0x88] sm:$0x7f] }
0x2fb2   :  { %12806 = vmatprep.subr.mxu1 %v13280_v50 }
0x2fb3   :  { %12807 = vmatpush3.msra.mxu1 %v16355_v7 }
0x2fb4   :  { %12808 = vmatprep.subr.mxu1 %v13280_v50 }
0x2fb5   :  { %12809 = vmatpush3.msra.mxu1 %v16362_v62 }
0x2fb6   :  { %12810 = vmatprep.subr.mxu1 %v13280_v50 }
0x2fb7   :  { %12811 = vmatpush3.msra.mxu1 %v16369_v6 }
0x2fb8   :  { %12812 = vmatprep.subr.mxu1 %v13280_v50 }
0x2fb9   :  { %12813 = vmatpush3.msra.mxu1 %v16376_v42 }
0x2fba   :  { %12814 = vmatprep.subr.mxu1 %v13280_v50 }
0x2fbb   :  { %12815 = vmatpush3.msra.mxu1 %v16383_v16 }
0x2fbc   :  { %12816 = vmatprep.subr.mxu1 %v13280_v50 }
0x2fbd   :  { %12817 = vmatpush3.msra.mxu1 %v16390_v0 }
0x2fbe   :  { %12818 = vmatprep.subr.mxu1 %v13280_v50 }
0x2fbf   :  { %12819 = vmatpush3.msra.mxu1 %v16397_v31 }
0x2fc0   :  { %12820 = vmatprep.subr.mxu1 %v13280_v50 }
0x2fc1   :  { %12821 = vmatpush3.msra.mxu1 %v16404_v34 }
0x2fc2   :  { %12822 = vmatprep.subr.mxu1 %v13280_v50 }
0x2fc3   :  { %12823 = vmatpush3.msra.mxu1 %v16411_v61  ;;  %v8053_v61 = vpop.permute.xlu1 %8052 }
0x2fc4   :  { %12824 = vmatprep.subr.mxu1 %v13280_v50 }
0x2fc5   :  { %12825 = vmatpush3.msra.mxu1 %v16418_v38 }
0x2fc6   :  { %12826 = vmatprep.subr.mxu1 %v13280_v50 }
0x2fc7   :  { %12827 = vmatpush3.msra.mxu1 %v16425_v11  ;;  %v8141_v11 = vstv %s9869_s13 }
0x2fc8   :  { %12828 = vmatprep.subr.mxu1 %v13280_v50 }
0x2fc9   :  { %12829 = vmatpush3.msra.mxu1 %v16432_v49 }
0x2fca   :  { %12830 = vmatprep.subr.mxu1 %v13280_v50 }
0x2fcb   :  { %12831 = vmatpush3.msra.mxu1 %v16439_v51 }
0x2fcc   :  { %12833 = vmatmul.mubr.f32.vlgmr.msra.gmra.mxu1 %v16594_v18  ;;  %12876 = vmatprep.subr.msk.mxu1 %vm141_vm0, %v8041_v39 }
0x2fcd   :  { %12835 = vmatprep.mubr.msk.f32.mxu1 %vm13281_vm13, %v13280_v50  ;;  %12877 = vmatpush3.msk.msra.mxu1 %vm141_vm0, %v8041_v39  ;;  %v16904_v39 = vld [vmem:[#allocation3 + $0x20] sm:$0xff] }
0x2fd0   :  { %12836 = vmatmul.mubr.f32.gmra.mxu1 %v16587_v30 }
0x2fd1   :  { %12838 = vmatprep.mubr.msk.f32.mxu1 %vm13281_vm13, %v13280_v50 }
0x2fd4   :  { %12839 = vmatmul.mubr.f32.gmra.mxu1 %v16581_v56  ;;  %v16842_v56 = vld [vmem:[%s17374_s22 + $0x58] sm:$0xff] }
0x2fd5   :  { %12878 = vmatprep.mubr.msk.f32.mxu1 %vm128_vm1, %v9876_v4 }
0x2fd8   :  { %12879 = vmatmul.mubr.msk.f32.vlgmr.msra.gmra.mxu1 %vm128_vm1, %v9877_v5  ;;  %v9884_v5 = vld [vmem:[%s17336_s19 + $0x88] sm:$0x7f] }
0x2fd9   :  { %12897 = vmatprep.mubr.msk.f32.mxu1 %vm1281_vm10, %v9883_v28 }
0x306c   :  { %v7848_v7 = vpop.f32.mrf.mxu1 }
0x306d   :  { %8343 = vst [vmem:[#allocation2 + $0x38] sm:$0x7] %v7848_v7  ;;  %12874 = vmatmul.mubr.f32.vlgmr.msra.gmra.mxu0 %v7848_v7  ;;  %v16925_v7 = vld [vmem:[%s17374_s22 + $0x10] sm:$0xff] }
0x306e   :  { %v12799_v62 = vpop.f32.mrf.mxu1  ;;  %12901 = vmatpush3.msra.mxu0 %v16816_v29 }
0x306f   :  { %12902 = vmatprep.subr.mxu0 %v16821_v40  ;;  %v16932_v62 = vld [vmem:[%s17374_s22 + $0x8] sm:$0xff] }
0x3070   :  { %12903 = vmatpush3.msra.mxu0 %v16821_v40 }
0x3071   :  { %12904 = vmatprep.subr.mxu0 %v16828_v59 }
0x3072   :  { %12905 = vmatpush3.msra.mxu0 %v16828_v59 }
0x3073   :  { %12906 = vmatprep.subr.mxu0 %v16835_v12 }
0x3074   :  { %12907 = vmatpush3.msra.mxu0 %v16835_v12 }
0x3075   :  { %12908 = vmatprep.subr.mxu0 %v16842_v56 }
0x3076   :  { %12909 = vmatpush3.msra.mxu0 %v16842_v56 }
0x3077   :  { %12910 = vmatprep.subr.mxu0 %v16849_v17 }
0x3078   :  { %12911 = vmatpush3.msra.mxu0 %v16849_v17 }
0x3079   :  { %12912 = vmatprep.subr.mxu0 %v16856_v33 }
0x307a   :  { %12913 = vmatpush3.msra.mxu0 %v16856_v33 }
0x307b   :  { %12914 = vmatprep.subr.mxu0 %v16863_v41 }
0x307c   :  { %12915 = vmatpush3.msra.mxu0 %v16863_v41 }
0x307d   :  { %12916 = vmatprep.subr.mxu0 %v16870_v15 }
0x307e   :  { %12917 = vmatpush3.msra.mxu0 %v16870_v15 }
0x307f   :  { %12918 = vmatprep.subr.mxu0 %v16877_v26 }
0x3080   :  { %12919 = vmatpush3.msra.mxu0 %v16877_v26 }
0x3081   :  { %12920 = vmatprep.subr.mxu0 %v16884_v60 }
0x3082   :  { %12921 = vmatpush3.msra.mxu0 %v16884_v60 }
0x3083   :  { %12922 = vmatprep.subr.mxu0 %v16891_v53 }
0x3084   :  { %12923 = vmatpush3.msra.mxu0 %v16891_v53 }
0x3085   :  { %12924 = vmatprep.subr.mxu0 %v16898_v14 }
0x3086   :  { %12925 = vmatpush3.msra.mxu0 %v16898_v14 }
0x3087   :  { %12926 = vmatprep.subr.mxu0 %v16925_v7 }
0x3088   :  { %12927 = vmatpush3.msra.mxu0 %v16925_v7 }
0x3089   :  { %12928 = vmatprep.subr.mxu0 %v16932_v62 }
0x308a   :  { %12929 = vmatpush3.msra.mxu0 %v16932_v62 }
0x308c   :  { %v16805_v6 = vpop.f32.mrf.mxu1 }
0x308e   :  { %v12834_v42 = vpop.f32.mrf.mxu1 }
0x308f   :  { %v8242_v42 = vstv %s9866_s5 }
0x3090   :  { %v16807_v16 = vpop.f32.mrf.mxu1 }
0x3092   :  { %v12837_v0 = vpop.f32.mrf.mxu1 }
0x3094   :  { %v7944_v31 = vpop.f32.mrf.mxu1 }
0x3095   :  { %7950 = vst [vmem:[#allocation3 + $0x10] sm:$0xf] %v7944_v31 }
0x3096   :  { %v12840_v34 = vpop.f32.mrf.mxu1 }
0x3098   :  { %v12880_v38 = vpop.f32.mrf.mxu1 }
0x3099   :  { %v8136_v49 = vadd.f32 %v12880_v38, %v8053_v61 }
0x309a   :  { %v8130_v9 = vpop.f32.mrf.mxu1 }
0x309b   :  { %vm8140_vm8 = vcmp.ge.f32.partialorder %v8136_v49, 0.0  ;;  %v8143_v51 = vmul.f32 %v8141_v11, %v8136_v49  ;;  %v8131_v2 = vadd.f32 %v8130_v9, %v8048_v54  ;;  %v16948_v9 = vld [vmem:[#allocation2 + $0x20] sm:$0xff] }
0x309c   :  { %v8153_v4 = vld [vmem:[#allocation3 + $0x10] sm:$0xff]  ;;  %v9887_v54 = vld [vmem:[%s17337_s20 + $0xc0] sm:$0xff] }
0x309d   :  { %v8145_v10 = vsel %vm8140_vm8, %v8136_v49, %v8143_v51  ;;  %v8142_v36 = vmul.f32 %v8141_v11, %v8131_v2  ;;  %vm8139_vm9 = vcmp.ge.f32.partialorder %v8131_v2, 0.0 }
0x309e   :  { %8147 = vst [vmem:[#allocation3 + $0x38] sm:$0x7f] %v8145_v10  ;;  %v8350_v10 = vld [vmem:[#allocation2 + $0x10] sm:$0xff] }
0x309f   :  { %v8144_v27 = vsel %vm8139_vm9, %v8131_v2, %v8142_v36 }
0x30a5   :  { %v8158_v25 = vld [vmem:[#allocation3 + $0x38] sm:$0xff] }
0x30a6   :  { %12881 = vmatprep.subr.mxu1 %v8158_v25 }
0x30a7   :  { %12882 = vmatpush3.msra.mxu1 %v8158_v25 }
0x30a8   :  { %12883 = vmatprep.subr.mxu1 %v8144_v27 }
0x30a9   :  { %12884 = vmatpush3.msra.mxu1 %v8144_v27 }
0x312d   :  { %v8033_v24 = vpop.f32.mrf.mxu0 }
0x312e   :  { %8037 = vst [vmem:[#allocation3 + $0x28] sm:$0x7] %v8033_v24 }
0x312f   :  { %v12875_v55 = vpop.f32.mrf.mxu0 }
0x3135   :  { %v8156_v8 = vld [vmem:[#allocation3 + $0x28] sm:$0xff] }
0x3136   :  { %12885 = vmatprep.subr.mxu1 %v8156_v8 }
0x3137   :  { %12886 = vmatpush3.msra.mxu1 %v8156_v8 }
0x3138   :  { %12887 = vmatprep.subr.mxu1 %v16904_v39 }
0x3139   :  { %12888 = vmatpush3.msra.mxu1 %v16904_v39 }
0x313a   :  { %12889 = vmatprep.subr.mxu1 %v16536_v43 }
0x313b   :  { %12890 = vmatpush3.msra.mxu1 %v16536_v43  ;;  %v8355_v43 = vld [vmem:[#allocation2 + $0x38] sm:$0xff] }
0x313c   :  { %12891 = vmatprep.subr.mxu1 %v8153_v4 }
0x313d   :  { %12892 = vmatpush3.msra.mxu1 %v8153_v4 }
0x313e   :  { %12893 = vmatprep.subr.mxu1 %v16807_v16 }
0x313f   :  { %12894 = vmatpush3.msra.mxu1 %v16807_v16 }
0x3140   :  { %12895 = vmatprep.subr.mxu1 %v16805_v6 }
0x3141   :  { %12896 = vmatpush3.msra.mxu1 %v16805_v6  ;;  %v16937_v6 = vld [vmem:[%s17374_s22] sm:$0xff] }
0x3142   :  { %12898 = vmatmul.mubr.msk.f32.vlgmr.msra.gmra.mxu1 %vm1281_vm10, %v9884_v5  ;;  %12935 = vmatprep.subr.mxu1 %v13280_v50 }
0x3143   :  { %12936 = vmatpush3.msra.mxu1 %v8355_v43  ;;  %12951 = vmatprep.mubr.msk.f32.mxu1 %vm13281_vm13, %v13280_v50 }
0x3144   :  { %12937 = vmatprep.subr.mxu1 %v13280_v50  ;;  %12930 = vmatprep.subr.mxu0 %v16937_v6 }
0x3145   :  { %12931 = vmatpush3.msra.mxu0 %v16937_v6 }
0x3146   :  { %13004 = vmatprep.subr.mxu0 %v13280_v50 }
0x3202   :  { %v12899_v16 = vpop.f32.mrf.mxu1 }
0x3203   :  { %v8244_v0 = vmul.f32 %v12899_v16, %v8242_v42  ;;  %vm8241_vm11 = vcmp.ge.f32.partialorder %v12899_v16, 0.0 }
0x3204   :  { %v8231_v31 = vpop.f32.mrf.mxu1 }
0x3205   :  { %vm8240_vm14 = vcmp.ge.f32.partialorder %v8231_v31, 0.0  ;;  %v8243_v34 = vmul.f32 %v8242_v42, %v8231_v31  ;;  %v8246_v38 = vsel %vm8241_vm11, %v12899_v16, %v8244_v0 }
0x3207   :  { %v8245_v61 = vsel %vm8240_vm14, %v8231_v31, %v8243_v34  ;;  %v8719_v34 = vld [vmem:[%s17370_s11 + $0x28] sm:$0xff] }
0x3208   :  { %12932 = vmatprep.mubr.f32.mxu0 %v8245_v61  ;;  %v8718_v61 = vld [vmem:[%s17370_s11 + $0x20] sm:$0xff] }
0x3209   :  { %12933 = vmatmul.mubr.f32.vlgmr.msra.gmra.mxu0 %v8246_v38  ;;  %v8717_v38 = vld [vmem:[%s17370_s11 + $0x18] sm:$0xff] }
0x320a   :  { %13006 = vmatprep.mubr.msk.f32.mxu0 %vm13281_vm13, %v13280_v50 }
0x32c9   :  { %v12934_v11 = vpop.f32.mrf.mxu0 }
0x32ca   :  { %8342 = vst [vmem:[#allocation2 + $0x30] sm:$0x7f] %v12934_v11  ;;  %v8716_v11 = vld [vmem:[%s17370_s11 + $0x10] sm:$0xff] }
0x32cb   :  { %v8329_v51 = vpop.f32.mrf.mxu0 }
0x32d1   :  { %v8354_v49 = vld [vmem:[#allocation2 + $0x30] sm:$0xff] }
0x32d2   :  { %12938 = vmatpush3.msra.mxu1 %v8354_v49  ;;  %v8715_v49 = vld [vmem:[%s17370_s11 + $0x8] sm:$0xff] }
0x32d3   :  { %12939 = vmatprep.subr.mxu1 %v13280_v50 }
0x32d4   :  { %12940 = vmatpush3.msra.mxu1 %v8329_v51  ;;  %v8714_v51 = vld [vmem:[%s17370_s11] sm:$0xff] }
0x32d5   :  { %12941 = vmatprep.subr.mxu1 %v13280_v50 }
0x32d6   :  { %12942 = vmatpush3.msra.mxu1 %v16948_v9 }
0x32d7   :  { %12943 = vmatprep.subr.mxu1 %v13280_v50 }
0x32d8   :  { %12944 = vmatpush3.msra.mxu1 %v16554_v52  ;;  %v9888_v52 = vld [vmem:[%s17337_s20 + $0xc8] sm:$0xff] }
0x32d9   :  { %12945 = vmatprep.subr.mxu1 %v13280_v50 }
0x32da   :  { %12946 = vmatpush3.msra.mxu1 %v8350_v10 }
0x32db   :  { %12947 = vmatprep.subr.mxu1 %v13280_v50 }
0x32dc   :  { %12948 = vmatpush3.msra.mxu1 %v16587_v30  ;;  %v9889_v30 = vld [vmem:[%s17337_s20 + $0xd0] sm:$0xf] }
0x32dd   :  { %12949 = vmatprep.subr.mxu1 %v13280_v50 }
0x32de   :  { %12950 = vmatpush3.msra.mxu1 %v16594_v18  ;;  %v8448_v18 = vstv %s9867_s7 }
0x32df   :  { %12952 = vmatmul.mubr.msk.f32.vlgmr.msra.gmra.mxu1 %vm1281_vm10, %v9887_v54  ;;  %12960 = vmatprep.subr.mxu1 %v13280_v50 }
0x32e0   :  { %12954 = vmatprep.mubr.msk.f32.mxu1 %vm13281_vm13, %v13280_v50 }
0x32e3   :  { %12955 = vmatmul.mubr.msk.f32.gmra.mxu1 %vm1281_vm10, %v9888_v52  ;;  %v8903_v52 = vld [vmem:[%s17373_s27] sm:$0x7]  ;;  %s13283_s27 = smov [#allocation8]  }
0x32e4   :  { %12957 = vmatprep.mubr.msk.f32.mxu1 %vm13281_vm13, %v13280_v50  ;;  %s9633_s6 = sshll.u32 %s13283_s27, 4  ;;  %s9634_s6 = int_to_ptr.vmem [resolvable:$true] %s9633_s6 }
0x32e5   :  { %p13259_p6 = scmp.lt.s32.totalorder %s9634_s6, %s9634_s6 }
0x32e7   :  { %12958 = vmatmul.mubr.msk.f32.gmra.mxu1 %vm1281_vm10, %v9889_v30  ;;  %v9903_v30 = vld [vmem:[%s17334_s17 + $0x90] sm:$0xff] }
0x32e8   :  { %12966 = vmatprep.mubr.msk.f32.mxu1 %vm13281_vm13, %v13280_v50 }
0x339f   :  { %v8431_v2 = vpop.f32.mrf.mxu1 }
0x33a0   :  { %vm8445_vm15 = vcmp.ge.f32.partialorder %v8431_v2, 0.0  ;;  %v8449_v36 = vmul.f32 %v8448_v18, %v8431_v2 }
0x33a1   :  { %v12953_v25 = vpop.f32.mrf.mxu1 }
0x33a2   :  { %v8452_v27 = vsel %vm8445_vm15, %v8431_v2, %v8449_v36 }
0x33a3   :  { %v16978_v28 = vadd.f32 %v8452_v27, %v16286_v23  ;;  %v8436_v24 = vpop.f32.mrf.mxu1  ;;  %v8469_v23 = vpop.permute.xlu1 %8468 }
0x33a4   :  { %vm8446_vm2 = vcmp.ge.f32.partialorder %v8436_v24, 0.0  ;;  %v8450_v55 = vmul.f32 %v8448_v18, %v8436_v24 }
0x33a5   :  { %v12956_v8 = vpop.f32.mrf.mxu1 }
0x33a6   :  { %v8453_v4 = vsel %vm8446_vm2, %v8436_v24, %v8450_v55  ;;  %v9910_v24 = vld [vmem:[%s17336_s19 + $0x90] sm:$0xff] }
0x33a7   :  { %v16981_v5 = vadd.f32 %v8453_v4, %v16279_v22  ;;  %v8441_v43 = vpop.f32.mrf.mxu1  ;;  %v9897_v22 = vld [vmem:[%s17332_s15 + $0x24] sm:$0x7] }
0x33a8   :  { %vm8447_vm3 = vcmp.ge.f32.partialorder %v8441_v43, 0.0  ;;  %v8451_v42 = vmul.f32 %v8448_v18, %v8441_v43  ;;  %v9904_v18 = vld [vmem:[%s17334_s17 + $0x98] sm:$0x7f]  ;;  %s9896_s17 = sld [smem:[#allocation5 + $0x2b]] }
0x33a9   :  { %9201 = vst [vmem:[#allocation2 + $0x8] sm:$0xff] %v16981_v5  ;;  %v12959_v16 = vpop.f32.mrf.mxu1 }
0x33aa   :  { %v8454_v0 = vsel %vm8447_vm3, %v8441_v43, %v8451_v42  ;;  %v9016_v43 = vld [vmem:[#allocation3 + $0x18] sm:$0xff] }
0x33ab   :  { %v16985_v31 = vadd.f32 %v8454_v0, %v16273_v48  ;;  %v8637_v48 = vld [vmem:[%s17372_s28] sm:$0x3]  ;;  %v9911_v16 = vld [vmem:[%s17336_s19 + $0x98] sm:$0x7f] }
0x33ac   :  { %13005 = vmatpush3.msk.msra.mxu0 %vm903_vm5, %v8637_v48 }
0x33ad   :  { %9202 = vst [vmem:[#allocation2 + $0x10] sm:$0xf] %v16985_v31  ;;  %12961 = vmatpush3.msk.msra.mxu1 %vm734_vm12, %v16985_v31  ;;  %13009 = vmatprep.subr.mxu0 %v13280_v50 }
0x33ae   :  { %12962 = vmatprep.subr.mxu1 %v13280_v50 }
0x33af   :  { %12963 = vmatpush3.msra.mxu1 %v16981_v5 }
0x33b0   :  { %12964 = vmatprep.subr.mxu1 %v13280_v50 }
0x33b1   :  { %12965 = vmatpush3.msra.mxu1 %v16978_v28 }
0x33b2   :  { %12967 = vmatmul.mubr.msk.f32.vlgmr.msra.gmra.mxu1 %vm730_vm4, %v9897_v22  ;;  %12969 = vmatprep.subr.mxu1 %v13280_v50 }
0x33b3   :  { %12970 = vmatpush3.msra.mxu1 %v16599_v19  ;;  %13001 = vmatprep.mubr.msk.f32.mxu1 %vm13281_vm13, %v13280_v50 }
0x33b4   :  { %12971 = vmatprep.subr.mxu1 %v13280_v50 }
0x33b5   :  { %12972 = vmatpush3.msra.mxu1 %v16607_v63  ;;  %v8548_v63 = vstv %s9895_s0 }
0x33b6   :  { %12973 = vmatprep.subr.mxu1 %v13280_v50 }
0x33b7   :  { %12974 = vmatpush3.msra.mxu1 %v16616_v46 }
0x33b8   :  { %12975 = vmatprep.subr.mxu1 %v13280_v50 }
0x33b9   :  { %12976 = vmatpush3.msra.mxu1 %v16623_v47 }
0x33ba   :  { %12977 = vmatprep.subr.mxu1 %v13280_v50 }
0x33bb   :  { %12978 = vmatpush3.msra.mxu1 %v16630_v3 }
0x33bc   :  { %12979 = vmatprep.subr.mxu1 %v13280_v50 }
0x33bd   :  { %12980 = vmatpush3.msra.mxu1 %v16637_v37 }
0x33be   :  { %12981 = vmatprep.subr.mxu1 %v13280_v50 }
0x33bf   :  { %12982 = vmatpush3.msra.mxu1 %v16644_v57  ;;  %v8729_v57 = vld [vmem:[%s17370_s11 + $0x78] sm:$0xff] }
0x33c0   :  { %12983 = vmatprep.subr.mxu1 %v13280_v50 }
0x33c1   :  { %12984 = vmatpush3.msra.mxu1 %v16651_v35  ;;  %v8728_v35 = vld [vmem:[%s17370_s11 + $0x70] sm:$0xff] }
0x33c2   :  { %12985 = vmatprep.subr.mxu1 %v13280_v50 }
0x33c3   :  { %12986 = vmatpush3.msra.mxu1 %v16658_v32  ;;  %v8727_v32 = vld [vmem:[%s17370_s11 + $0x68] sm:$0xff] }
0x33c4   :  { %12987 = vmatprep.subr.mxu1 %v13280_v50 }
0x33c5   :  { %12988 = vmatpush3.msra.mxu1 %v16665_v20  ;;  %v8726_v20 = vld [vmem:[%s17370_s11 + $0x60] sm:$0xff] }
0x33c6   :  { %12989 = vmatprep.subr.mxu1 %v13280_v50 }
0x33c7   :  { %12990 = vmatpush3.msra.mxu1 %v16672_v13  ;;  %v8725_v13 = vld [vmem:[%s17370_s11 + $0x58] sm:$0xff] }
0x33c8   :  { %12991 = vmatprep.subr.mxu1 %v13280_v50 }
0x33c9   :  { %12992 = vmatpush3.msra.mxu1 %v16679_v44  ;;  %v8724_v44 = vld [vmem:[%s17370_s11 + $0x50] sm:$0xff] }
0x33ca   :  { %12993 = vmatprep.subr.mxu1 %v13280_v50 }
0x33cb   :  { %12994 = vmatpush3.msra.mxu1 %v16686_v45  ;;  %v8723_v45 = vld [vmem:[%s17370_s11 + $0x48] sm:$0xff] }
0x33cc   :  { %12995 = vmatprep.subr.mxu1 %v13280_v50 }
0x33cd   :  { %12996 = vmatpush3.msra.mxu1 %v16695_v1  ;;  %v8722_v1 = vld [vmem:[%s17370_s11 + $0x40] sm:$0xff] }
0x33ce   :  { %12997 = vmatprep.subr.mxu1 %v13280_v50 }
0x33cf   :  { %12998 = vmatpush3.msra.mxu1 %v16702_v58  ;;  %v8721_v58 = vld [vmem:[%s17370_s11 + $0x38] sm:$0xff] }
0x33d0   :  { %12999 = vmatprep.subr.mxu1 %v13280_v50 }
0x33d1   :  { %13000 = vmatpush3.msra.mxu1 %v16709_v21  ;;  %v8720_v21 = vld [vmem:[%s17370_s11 + $0x30] sm:$0xff] }
0x33d2   :  { %13050 = vmatprep.subr.mxu1 %v13280_v50 }
0x3472   :  { %v8543_v19 = vpop.f32.mrf.mxu1 }
0x3473   :  { %v8544_v46 = vadd.f32 %v8543_v19, %v8469_v23 }
0x3474   :  { %v12968_v47 = vpop.f32.mrf.mxu1 }
0x3475   :  { %vm8547_vm6 = vcmp.ge.f32.partialorder %v8544_v46, 0.0  ;;  %v8549_v3 = vmul.f32 %v8548_v63, %v8544_v46 }
0x3477   :  { %v8550_v37 = vsel %vm8547_vm6, %v8544_v46, %v8549_v3 }
0x3478   :  { %13002 = vmatmul.mubr.f32.vlgmr.msra.gmra.mxu1 %v8550_v37  ;;  %v9213_v37 = vld [vmem:[#allocation2 + $0x18] sm:$0xff] }
0x3479   :  { %13082 = vmatprep.mubr.msk.f32.mxu1 %vm13281_vm13, %v13280_v50  ;;  %13051 = vmatpush3.msra.mxu1 %v8729_v57 }
0x347a   :  { %13052 = vmatprep.subr.mxu1 %v13280_v50 }
0x347b   :  { %13053 = vmatpush3.msra.mxu1 %v8728_v35 }
0x347c   :  { %13054 = vmatprep.subr.mxu1 %v13280_v50 }
0x347d   :  { %13055 = vmatpush3.msra.mxu1 %v8727_v32 }
0x347e   :  { %13056 = vmatprep.subr.mxu1 %v13280_v50 }
0x347f   :  { %13057 = vmatpush3.msra.mxu1 %v8726_v20 }
0x3480   :  { %13058 = vmatprep.subr.mxu1 %v13280_v50 }
0x3481   :  { %13059 = vmatpush3.msra.mxu1 %v8725_v13 }
0x3482   :  { %13060 = vmatprep.subr.mxu1 %v13280_v50 }
0x3483   :  { %13061 = vmatpush3.msra.mxu1 %v8724_v44 }
0x3484   :  { %13062 = vmatprep.subr.mxu1 %v13280_v50 }
0x3485   :  { %13063 = vmatpush3.msra.mxu1 %v8723_v45 }
0x3486   :  { %13064 = vmatprep.subr.mxu1 %v13280_v50 }
0x3487   :  { %13065 = vmatpush3.msra.mxu1 %v8722_v1 }
0x3488   :  { %13066 = vmatprep.subr.mxu1 %v13280_v50 }
0x3489   :  { %13067 = vmatpush3.msra.mxu1 %v8721_v58 }
0x348a   :  { %13068 = vmatprep.subr.mxu1 %v13280_v50 }
0x348b   :  { %13069 = vmatpush3.msra.mxu1 %v8720_v21 }
0x348c   :  { %13070 = vmatprep.subr.mxu1 %v13280_v50 }
0x348d   :  { %13071 = vmatpush3.msra.mxu1 %v8719_v34 }
0x348e   :  { %13072 = vmatprep.subr.mxu1 %v13280_v50 }
0x348f   :  { %13073 = vmatpush3.msra.mxu1 %v8718_v61 }
0x3490   :  { %13074 = vmatprep.subr.mxu1 %v13280_v50 }
0x3491   :  { %13075 = vmatpush3.msra.mxu1 %v8717_v38 }
0x3492   :  { %13076 = vmatprep.subr.mxu1 %v13280_v50 }
0x3493   :  { %13077 = vmatpush3.msra.mxu1 %v8716_v11 }
0x3494   :  { %13078 = vmatprep.subr.mxu1 %v13280_v50 }
0x3495   :  { %13079 = vmatpush3.msra.mxu1 %v8715_v49 }
0x3496   :  { %13080 = vmatprep.subr.mxu1 %v13280_v50 }
0x3497   :  { %13081 = vmatpush3.msra.mxu1 %v8714_v51 }
0x3498   :  { %13109 = vmatprep.subr.mxu1 %v16816_v29 }
0x3538   :  { %v8633_v10 = vpop.f32.mrf.mxu1 }
0x3539   :  { %13007 = vmatmul.mubr.msk.f32.vlgmr.msra.gmra.mxu0 %vm899_vm7, %v8633_v10  ;;  %v9317_v10 = vld [vmem:[%s17371_s25] sm:$0xff] }
0x353a   :  { %13010 = vmatpush3.msra.mxu0 %v8729_v57  ;;  %v13003_v54 = vpop.f32.mrf.mxu1  ;;  %13041 = vmatprep.mubr.msk.f32.mxu0 %vm13281_vm13, %v13280_v50  ;;  %v9212_v57 = vld [vmem:[#allocation2 + $0x10] sm:$0xff] }
0x353b   :  { %13011 = vmatprep.subr.mxu0 %v13280_v50  ;;  %v9310_v54 = vstv %s9894_s14 }
0x353c   :  { %13012 = vmatpush3.msra.mxu0 %v8728_v35  ;;  %v9914_v35 = vld [vmem:[%s17337_s20 + $0xd8] sm:$0xff] }
0x353d   :  { %13013 = vmatprep.subr.mxu0 %v13280_v50 }
0x353e   :  { %13014 = vmatpush3.msra.mxu0 %v8727_v32  ;;  %v9915_v32 = vld [vmem:[%s17337_s20 + $0xe0] sm:$0xff] }
0x353f   :  { %13015 = vmatprep.subr.mxu0 %v13280_v50 }
0x3540   :  { %13016 = vmatpush3.msra.mxu0 %v8726_v20  ;;  %v9329_v20 = vld [vmem:[%s17371_s25 + $0x60] sm:$0xff] }
0x3541   :  { %13017 = vmatprep.subr.mxu0 %v13280_v50 }
0x3542   :  { %13018 = vmatpush3.msra.mxu0 %v8725_v13  ;;  %v9916_v13 = vld [vmem:[%s17337_s20 + $0xe8] sm:$0xf] }
0x3543   :  { %13019 = vmatprep.subr.mxu0 %v13280_v50 }
0x3544   :  { %13020 = vmatpush3.msra.mxu0 %v8724_v44  ;;  %v9328_v44 = vld [vmem:[%s17371_s25 + $0x58] sm:$0xff] }
0x3545   :  { %13021 = vmatprep.subr.mxu0 %v13280_v50 }
0x3546   :  { %13022 = vmatpush3.msra.mxu0 %v8723_v45  ;;  %v9327_v45 = vld [vmem:[%s17371_s25 + $0x50] sm:$0xff] }
0x3547   :  { %13023 = vmatprep.subr.mxu0 %v13280_v50 }
0x3548   :  { %13024 = vmatpush3.msra.mxu0 %v8722_v1  ;;  %v9326_v1 = vld [vmem:[%s17371_s25 + $0x48] sm:$0xff] }
0x3549   :  { %13025 = vmatprep.subr.mxu0 %v13280_v50 }
0x354a   :  { %13026 = vmatpush3.msra.mxu0 %v8721_v58  ;;  %v9325_v58 = vld [vmem:[%s17371_s25 + $0x40] sm:$0xff] }
0x354b   :  { %13027 = vmatprep.subr.mxu0 %v13280_v50 }
0x354c   :  { %13028 = vmatpush3.msra.mxu0 %v8720_v21  ;;  %v9324_v21 = vld [vmem:[%s17371_s25 + $0x38] sm:$0xff] }
0x354d   :  { %13029 = vmatprep.subr.mxu0 %v13280_v50 }
0x354e   :  { %13030 = vmatpush3.msra.mxu0 %v8719_v34  ;;  %v9323_v34 = vld [vmem:[%s17371_s25 + $0x30] sm:$0xff] }
0x354f   :  { %13031 = vmatprep.subr.mxu0 %v13280_v50 }
0x3550   :  { %13032 = vmatpush3.msra.mxu0 %v8718_v61  ;;  %v9322_v61 = vld [vmem:[%s17371_s25 + $0x28] sm:$0xff] }
0x3551   :  { %13033 = vmatprep.subr.mxu0 %v13280_v50 }
0x3552   :  { %13034 = vmatpush3.msra.mxu0 %v8717_v38  ;;  %v9321_v38 = vld [vmem:[%s17371_s25 + $0x20] sm:$0xff] }
0x3553   :  { %13035 = vmatprep.subr.mxu0 %v13280_v50 }
0x3554   :  { %13036 = vmatpush3.msra.mxu0 %v8716_v11  ;;  %v9320_v11 = vld [vmem:[%s17371_s25 + $0x18] sm:$0xff] }
0x3555   :  { %13037 = vmatprep.subr.mxu0 %v13280_v50 }
0x3556   :  { %13038 = vmatpush3.msra.mxu0 %v8715_v49  ;;  %v9319_v49 = vld [vmem:[%s17371_s25 + $0x10] sm:$0xff] }
0x3557   :  { %13039 = vmatprep.subr.mxu0 %v13280_v50 }
0x3558   :  { %13040 = vmatpush3.msra.mxu0 %v8714_v51  ;;  %v9318_v51 = vld [vmem:[%s17371_s25 + $0x8] sm:$0xff] }
0x3559   :  { %13042 = vmatmul.mubr.f32.vlgmr.msra.gmra.mxu0 %v16978_v28  ;;  %13085 = vmatprep.subr.msk.mxu0 %vm141_vm0, %v8903_v52 }
0x355a   :  { %13044 = vmatprep.mubr.msk.f32.mxu0 %vm13281_vm13, %v13280_v50  ;;  %13086 = vmatpush3.msk.msra.mxu0 %vm141_vm0, %v8903_v52 }
0x355d   :  { %13045 = vmatmul.mubr.f32.gmra.mxu0 %v16981_v5 }
0x355e   :  { %13047 = vmatprep.mubr.msk.f32.mxu0 %vm13281_vm13, %v13280_v50 }
0x3561   :  { %13048 = vmatmul.mubr.f32.gmra.mxu0 %v16985_v31 }
0x3562   :  { %13087 = vmatprep.mubr.msk.f32.mxu0 %vm128_vm1, %v9903_v30 }
0x3565   :  { %13088 = vmatmul.mubr.msk.f32.vlgmr.msra.gmra.mxu0 %vm128_vm1, %v9904_v18 }
0x3566   :  { %13106 = vmatprep.mubr.msk.f32.mxu0 %vm1281_vm10, %v9910_v24 }
0x35f9   :  { %v8710_v2 = vpop.f32.mrf.mxu0 }
0x35fa   :  { %9205 = vst [vmem:[#allocation2 + $0x38] sm:$0x7] %v8710_v2  ;;  %13083 = vmatmul.mubr.f32.vlgmr.msra.gmra.mxu1 %v8710_v2 }
0x35fb   :  { %v13008_v36 = vpop.f32.mrf.mxu0  ;;  %13110 = vmatpush3.msra.mxu1 %v16816_v29 }
0x35fc   :  { %13111 = vmatprep.subr.mxu1 %v16821_v40 }
0x35fd   :  { %13112 = vmatpush3.msra.mxu1 %v16821_v40 }
0x35fe   :  { %13113 = vmatprep.subr.mxu1 %v16828_v59 }
0x35ff   :  { %13114 = vmatpush3.msra.mxu1 %v16828_v59 }
0x3600   :  { %13115 = vmatprep.subr.mxu1 %v16835_v12 }
0x3601   :  { %13116 = vmatpush3.msra.mxu1 %v16835_v12  ;;  %v9217_v0 = vld [vmem:[#allocation2 + $0x38] sm:$0xff] }
0x3602   :  { %13117 = vmatprep.subr.mxu1 %v16842_v56 }
0x3603   :  { %13118 = vmatpush3.msra.mxu1 %v16842_v56 }
0x3604   :  { %13119 = vmatprep.subr.mxu1 %v16849_v17 }
0x3605   :  { %13120 = vmatpush3.msra.mxu1 %v16849_v17 }
0x3606   :  { %13121 = vmatprep.subr.mxu1 %v16856_v33 }
0x3607   :  { %13122 = vmatpush3.msra.mxu1 %v16856_v33  ;;  %v8915_v33 = vpop.permute.xlu0 %8914 }
0x3608   :  { %13123 = vmatprep.subr.mxu1 %v16863_v41 }
0x3609   :  { %13124 = vmatpush3.msra.mxu1 %v16863_v41 }
0x360a   :  { %13125 = vmatprep.subr.mxu1 %v16870_v15 }
0x360b   :  { %13126 = vmatpush3.msra.mxu1 %v16870_v15  ;;  %v9003_v15 = vstv %s9896_s17  ;;  %s13258_s17 = scalar_lea.vmem %s9634_s6, 32 }
0x360c   :  { %13127 = vmatprep.subr.mxu1 %v16877_v26 }
0x360d   :  { %13128 = vmatpush3.msra.mxu1 %v16877_v26 }
0x360e   :  { %13129 = vmatprep.subr.mxu1 %v16884_v60 }
0x360f   :  { %13130 = vmatpush3.msra.mxu1 %v16884_v60  ;;  %v8910_v60 = vpop.permute.xlu1 %8909 }
0x3610   :  { %13131 = vmatprep.subr.mxu1 %v16891_v53 }
0x3611   :  { %13132 = vmatpush3.msra.mxu1 %v16891_v53 }
0x3612   :  { %13133 = vmatprep.subr.mxu1 %v16898_v14 }
0x3613   :  { %13134 = vmatpush3.msra.mxu1 %v16898_v14 }
0x3614   :  { %13135 = vmatprep.subr.mxu1 %v16925_v7 }
0x3615   :  { %13136 = vmatpush3.msra.mxu1 %v16925_v7 }
0x3616   :  { %13137 = vmatprep.subr.mxu1 %v16932_v62 }
0x3617   :  { %13138 = vmatpush3.msra.mxu1 %v16932_v62 }
0x3618   :  { %13139 = vmatprep.subr.mxu1 %v16937_v6 }
0x3619   :  { %v8796_v29 = vpop.f32.mrf.mxu0  ;;  %13140 = vmatpush3.msra.mxu1 %v16937_v6 }
0x361a   :  { %13210 = vmatprep.subr.mxu1 %v13280_v50 }
0x361b   :  { %v13043_v40 = vpop.f32.mrf.mxu0 }
0x361d   :  { %v8801_v59 = vpop.f32.mrf.mxu0 }
0x361f   :  { %v13046_v12 = vpop.f32.mrf.mxu0 }
0x3621   :  { %v8806_v56 = vpop.f32.mrf.mxu0 }
0x3622   :  { %8812 = vst [vmem:[#allocation3 + $0x10] sm:$0xf] %v8806_v56 }
0x3623   :  { %v13049_v17 = vpop.f32.mrf.mxu0 }
0x3625   :  { %v13089_v41 = vpop.f32.mrf.mxu0 }
0x3626   :  { %v8998_v26 = vadd.f32 %v13089_v41, %v8915_v33 }
0x3627   :  { %v8992_v53 = vpop.f32.mrf.mxu0 }
0x3628   :  { %vm9002_vm0 = vcmp.ge.f32.partialorder %v8998_v26, 0.0  ;;  %v9005_v14 = vmul.f32 %v9003_v15, %v8998_v26  ;;  %v8993_v7 = vadd.f32 %v8992_v53, %v8910_v60 }
0x3629   :  { %v9015_v42 = vld [vmem:[#allocation3 + $0x10] sm:$0xff] }
0x362a   :  { %v9007_v62 = vsel %vm9002_vm0, %v8998_v26, %v9005_v14  ;;  %vm9001_vm1 = vcmp.ge.f32.partialorder %v8993_v7, 0.0  ;;  %v9004_v6 = vmul.f32 %v9003_v15, %v8993_v7 }
0x362b   :  { %9009 = vst [vmem:[#allocation3 + $0x38] sm:$0x7f] %v9007_v62  ;;  %v9414_v62 = vld [vmem:[%s17338_s21 + $0x8] sm:$0xff] }
0x362c   :  { %v9006_v25 = vsel %vm9001_vm1, %v8993_v7, %v9004_v6  ;;  %v9413_v7 = vld [vmem:[%s17338_s21] sm:$0xff]  ;;  %v9415_v6 = vld [vmem:[%s17338_s21 + $0x10] sm:$0xf] }
0x3632   :  { %v9020_v27 = vld [vmem:[#allocation3 + $0x38] sm:$0xff] }
0x3633   :  { %13090 = vmatprep.subr.mxu0 %v9020_v27 }
0x3634   :  { %13091 = vmatpush3.msra.mxu0 %v9020_v27  ;;  %v9432_v27 = vpop.permute.xlu0 %9431 }
0x3635   :  { %13092 = vmatprep.subr.mxu0 %v9006_v25 }
0x3636   :  { %13093 = vmatpush3.msra.mxu0 %v9006_v25 }
0x36ba   :  { %v8895_v55 = vpop.f32.mrf.mxu1 }
0x36bb   :  { %8899 = vst [vmem:[#allocation3 + $0x28] sm:$0x7] %v8895_v55 }
0x36bc   :  { %v13084_v8 = vpop.f32.mrf.mxu1 }
0x36bd   :  { %v9427_v8 = vpop.permute.xlu1 %9426 }
0x36c2   :  { %v9018_v4 = vld [vmem:[#allocation3 + $0x28] sm:$0xff] }
0x36c3   :  { %13094 = vmatprep.subr.mxu0 %v9018_v4 }
0x36c4   :  { %13095 = vmatpush3.msra.mxu0 %v9018_v4 }
0x36c5   :  { %13096 = vmatprep.subr.mxu0 %v16904_v39 }
0x36c6   :  { %13097 = vmatpush3.msra.mxu0 %v16904_v39  ;;  %v9104_v39 = vstv %s9893_s29 }
0x36c7   :  { %13098 = vmatprep.subr.mxu0 %v9016_v43 }
0x36c8   :  { %13099 = vmatpush3.msra.mxu0 %v9016_v43 }
0x36c9   :  { %13100 = vmatprep.subr.mxu0 %v9015_v42 }
0x36ca   :  { %13101 = vmatpush3.msra.mxu0 %v9015_v42  ;;  %v9422_v42 = vpop.permute.xlu0 %9421 }
0x36cb   :  { %13102 = vmatprep.subr.mxu0 %v8801_v59 }
0x36cc   :  { %13103 = vmatpush3.msra.mxu0 %v8801_v59 }
0x36cd   :  { %13104 = vmatprep.subr.mxu0 %v8796_v29 }
0x36ce   :  { %13105 = vmatpush3.msra.mxu0 %v8796_v29 }
0x36cf   :  { %13107 = vmatmul.mubr.msk.f32.vlgmr.msra.gmra.mxu0 %vm1281_vm10, %v9911_v16  ;;  %13144 = vmatprep.subr.mxu0 %v13280_v50 }
0x36d0   :  { %13145 = vmatpush3.msra.mxu0 %v9217_v0  ;;  %13160 = vmatprep.mubr.msk.f32.mxu0 %vm13281_vm13, %v13280_v50 }
0x36d1   :  { %13146 = vmatprep.subr.mxu0 %v13280_v50 }
0x378f   :  { %v13108_v31 = vpop.f32.mrf.mxu0 }
0x3790   :  { %v9106_v22 = vmul.f32 %v13108_v31, %v9104_v39  ;;  %vm9103_vm5 = vcmp.ge.f32.partialorder %v13108_v31, 0.0 }
0x3791   :  { %v9093_v48 = vpop.f32.mrf.mxu0 }
0x3792   :  { %vm9102_vm7 = vcmp.ge.f32.partialorder %v9093_v48, 0.0  ;;  %v9105_v23 = vmul.f32 %v9104_v39, %v9093_v48  ;;  %v9108_v63 = vsel %vm9103_vm5, %v13108_v31, %v9106_v22  ;;  %v9530_v31 = vstv %s9924_s10 }
0x3794   :  { %v9107_v19 = vsel %vm9102_vm7, %v9093_v48, %v9105_v23 }
0x3795   :  { %13141 = vmatprep.mubr.f32.mxu1 %v9107_v19 }
0x3796   :  { %13142 = vmatmul.mubr.f32.vlgmr.msra.gmra.mxu1 %v9108_v63 }
0x3797   :  { %13216 = vmatprep.mubr.msk.f32.mxu1 %vm13281_vm13, %v13280_v50 }
0x3856   :  { %v13143_v46 = vpop.f32.mrf.mxu1 }
0x3857   :  { %9204 = vst [vmem:[#allocation2 + $0x30] sm:$0x7f] %v13143_v46 }
0x3858   :  { %v9191_v47 = vpop.f32.mrf.mxu1 }
0x385e   :  { %v9216_v3 = vld [vmem:[#allocation2 + $0x30] sm:$0xff] }
0x385f   :  { %13147 = vmatpush3.msra.mxu0 %v9216_v3 }
0x3860   :  { %13148 = vmatprep.subr.mxu0 %v13280_v50 }
0x3861   :  { %13149 = vmatpush3.msra.mxu0 %v9191_v47  ;;  %v9537_v47 = vld [vmem:[%s17340_s23] sm:$0x1]  ;;  %s13254_s23 = scalar_lea.vmem %s9634_s6, 16 }
0x3862   :  { %13150 = vmatprep.subr.mxu0 %v13280_v50  ;;  %p13255_p5 = scmp.ne.s32.totalorder %s9634_s6, %s13254_s23  ;;  %p13260_p7 = scmp.lt.s32.totalorder %s13258_s17, %s13254_s23 }
0x3863   :  { %13151 = vmatpush3.msra.mxu0 %v16948_v9  ;;  %v9332_v9 = vld [vmem:[%s17371_s25 + $0x78] sm:$0xff] }
0x3864   :  { %13152 = vmatprep.subr.mxu0 %v13280_v50  ;;  %p13261_p8 = por %p13260_p7, %p13259_p6 }
0x3865   :  { %13153 = vmatpush3.msra.mxu0 %v9213_v37  ;;  %v9544_v37 = vlaneseq }
0x3866   :  { %13154 = vmatprep.subr.mxu0 %v13280_v50  ;;  %p13262_p9 = pnand %p13261_p8, %p13255_p5 }
0x3867   :  { %13155 = vmatpush3.msra.mxu0 %v9212_v57  ;;  %v9545_v57 = vshrl.u32 %v9544_v37, 7 }
0x3868   :  { %13156 = vmatprep.subr.mxu0 %v13280_v50 }
0x3869   :  { %13157 = vmatpush3.msra.mxu0 %v16981_v5  ;;  %v9331_v5 = vld [vmem:[%s17371_s25 + $0x70] sm:$0xff] }
0x386a   :  { %13158 = vmatprep.subr.mxu0 %v13280_v50 }
0x386b   :  { %13159 = vmatpush3.msra.mxu0 %v16978_v28  ;;  %v9330_v28 = vld [vmem:[%s17371_s25 + $0x68] sm:$0xff] }
0x386c   :  { %13161 = vmatmul.mubr.msk.f32.vlgmr.msra.gmra.mxu0 %vm1281_vm10, %v9914_v35  ;;  %13169 = vmatprep.subr.mxu0 %v13280_v50  ;;  %v9546_v35 = vsub.s32 0, %v9545_v57 }
0x386d   :  { %13163 = vmatprep.mubr.msk.f32.mxu0 %vm13281_vm13, %v13280_v50  ;;  %13170 = vmatpush3.msra.mxu0 %v9332_v9  ;;  %v9542_v9 = vpop.permute.xlu1 %9541 }
0x386e   :  { %13171 = vmatprep.subr.mxu0 %v13280_v50 }
0x386f   :  { %13172 = vmatpush3.msra.mxu0 %v9331_v5  ;;  %v9547_v5 = vrot.slane %v9542_v9, %v9546_v35 }
0x3870   :  { %13164 = vmatmul.mubr.msk.f32.gmra.mxu0 %vm1281_vm10, %v9915_v32  ;;  %13173 = vmatprep.subr.mxu0 %v13280_v50 }
0x3871   :  { %13166 = vmatprep.mubr.msk.f32.mxu0 %vm13281_vm13, %v13280_v50  ;;  %13174 = vmatpush3.msra.mxu0 %v9330_v28 }
0x3872   :  { %13175 = vmatprep.subr.mxu0 %v13280_v50 }
0x3873   :  { %13176 = vmatpush3.msra.mxu0 %v9329_v20 }
0x3874   :  { %13167 = vmatmul.mubr.msk.f32.gmra.mxu0 %vm1281_vm10, %v9916_v13  ;;  %13177 = vmatprep.subr.mxu0 %v13280_v50 }
0x3875   :  { %13178 = vmatpush3.msra.mxu0 %v9328_v44  ;;  %13201 = vmatprep.mubr.msk.f32.mxu0 %vm13281_vm13, %v13280_v50 }
0x3876   :  { %13179 = vmatprep.subr.mxu0 %v13280_v50 }
0x3877   :  { %13180 = vmatpush3.msra.mxu0 %v9327_v45 }
0x3878   :  { %13181 = vmatprep.subr.mxu0 %v13280_v50 }
0x3879   :  { %13182 = vmatpush3.msra.mxu0 %v9326_v1 }
0x387a   :  { %13183 = vmatprep.subr.mxu0 %v13280_v50 }
0x387b   :  { %13184 = vmatpush3.msra.mxu0 %v9325_v58 }
0x387c   :  { %13185 = vmatprep.subr.mxu0 %v13280_v50 }
0x387d   :  { %13186 = vmatpush3.msra.mxu0 %v9324_v21 }
0x387e   :  { %13187 = vmatprep.subr.mxu0 %v13280_v50 }
0x387f   :  { %13188 = vmatpush3.msra.mxu0 %v9323_v34 }
0x3880   :  { %13189 = vmatprep.subr.mxu0 %v13280_v50 }
0x3881   :  { %13190 = vmatpush3.msra.mxu0 %v9322_v61 }
0x3882   :  { %13191 = vmatprep.subr.mxu0 %v13280_v50 }
0x3883   :  { %13192 = vmatpush3.msra.mxu0 %v9321_v38 }
0x3884   :  { %13193 = vmatprep.subr.mxu0 %v13280_v50 }
0x3885   :  { %13194 = vmatpush3.msra.mxu0 %v9320_v11 }
0x3886   :  { %13195 = vmatprep.subr.mxu0 %v13280_v50 }
0x3887   :  { %13196 = vmatpush3.msra.mxu0 %v9319_v49 }
0x3888   :  { %13197 = vmatprep.subr.mxu0 %v13280_v50 }
0x3889   :  { %13198 = vmatpush3.msra.mxu0 %v9318_v51 }
0x388a   :  { %13199 = vmatprep.subr.mxu0 %v13280_v50 }
0x388b   :  { %13200 = vmatpush3.msra.mxu0 %v9317_v10 }
0x392c   :  { %v9293_v52 = vpop.f32.mrf.mxu0 }
0x392d   :  { %vm9307_vm10 = vcmp.ge.f32.partialorder %v9293_v52, 0.0  ;;  %v9311_v30 = vmul.f32 %v9310_v54, %v9293_v52 }
0x392e   :  { %v13162_v18 = vpop.f32.mrf.mxu0 }
0x392f   :  { %v9314_v2 = vsel %vm9307_vm10, %v9293_v52, %v9311_v30 }
0x3930   :  { %v9298_v36 = vpop.f32.mrf.mxu0  ;;  %13202 = vmatmul.mubr.f32.vlgmr.msra.gmra.mxu0 %v9314_v2 }
0x3931   :  { %vm9308_vm8 = vcmp.ge.f32.partialorder %v9298_v36, 0.0  ;;  %v9312_v29 = vmul.f32 %v9310_v54, %v9298_v36  ;;  %13204 = vmatprep.mubr.msk.f32.mxu0 %vm13281_vm13, %v13280_v50 }
0x3932   :  { %v13165_v40 = vpop.f32.mrf.mxu0 }
0x3933   :  { %v9315_v59 = vsel %vm9308_vm8, %v9298_v36, %v9312_v29 }
0x3934   :  { %v9303_v12 = vpop.f32.mrf.mxu0  ;;  %13205 = vmatmul.mubr.f32.gmra.mxu0 %v9315_v59 }
0x3935   :  { %vm9309_vm9 = vcmp.ge.f32.partialorder %v9303_v12, 0.0  ;;  %v9313_v56 = vmul.f32 %v9310_v54, %v9303_v12  ;;  %13207 = vmatprep.mubr.msk.f32.mxu0 %vm13281_vm13, %v13280_v50 }
0x3936   :  { %v13168_v17 = vpop.f32.mrf.mxu0 }
0x3937   :  { %v9316_v33 = vsel %vm9309_vm9, %v9303_v12, %v9313_v56 }
0x3938   :  { %13208 = vmatmul.mubr.f32.gmra.mxu0 %v9316_v33 }
0x39f0   :  { %v9399_v41 = vpop.f32.mrf.mxu0 }
0x39f2   :  { %v13203_v15 = vpop.f32.mrf.mxu0 }
0x39f4   :  { %v9404_v26 = vpop.f32.mrf.mxu0 }
0x39f6   :  { %v13206_v60 = vpop.f32.mrf.mxu0 }
0x39f8   :  { %v9409_v53 = vpop.f32.mrf.mxu0 }
0x39f9   :  { %13211 = vmatpush3.msk.msra.mxu1 %vm734_vm12, %v9409_v53 }
0x39fa   :  { %v13209_v14 = vpop.f32.mrf.mxu0  ;;  %13212 = vmatprep.subr.mxu1 %v13280_v50 }
0x39fb   :  { %13213 = vmatpush3.msra.mxu1 %v9404_v26 }
0x39fc   :  { %13214 = vmatprep.subr.mxu1 %v13280_v50 }
0x39fd   :  { %13215 = vmatpush3.msra.mxu1 %v9399_v41 }
0x39fe   :  { %13217 = vmatmul.mubr.msk.f32.vlgmr.msra.gmra.mxu1 %vm730_vm4, %v9413_v7  ;;  %13225 = vmatprep.subr.mxu1 %v13280_v50 }
0x39ff   :  { %13219 = vmatprep.mubr.msk.f32.mxu1 %vm13281_vm13, %v13280_v50 }
0x3a02   :  { %13220 = vmatmul.mubr.msk.f32.gmra.mxu1 %vm730_vm4, %v9414_v62 }
0x3a03   :  { %13222 = vmatprep.mubr.msk.f32.mxu1 %vm13281_vm13, %v13280_v50 }
0x3a06   :  { %13223 = vmatmul.mubr.msk.f32.gmra.mxu1 %vm730_vm4, %v9415_v6 }
0x3a07   :  { %13231 = vmatprep.mubr.msk.f32.mxu1 %vm13281_vm13, %v13280_v50 }
0x3abe   :  { %v9512_v25 = vpop.f32.mrf.mxu1 }
0x3abf   :  { %v9513_v0 = vadd.f32 %v9512_v25, %v9422_v42 }
0x3ac0   :  { %v13218_v24 = vpop.f32.mrf.mxu1 }
0x3ac1   :  { %v9531_v19 = vmul.f32 %v9530_v31, %v9513_v0  ;;  %vm9527_vm13 = vcmp.ge.f32.partialorder %v9513_v0, 0.0 }
0x3ac2   :  { %v9517_v55 = vpop.f32.mrf.mxu1 }
0x3ac3   :  { %v9518_v43 = vadd.f32 %v9517_v55, %v9427_v8  ;;  %v9534_v3 = vsel %vm9527_vm13, %v9513_v0, %v9531_v19 }
0x3ac4   :  { %v13221_v4 = vpop.f32.mrf.mxu1 }
0x3ac5   :  { %v9532_v48 = vmul.f32 %v9530_v31, %v9518_v43  ;;  %vm9528_vm14 = vcmp.ge.f32.partialorder %v9518_v43, 0.0 }
0x3ac6   :  { %v9522_v16 = vpop.f32.mrf.mxu1 }
0x3ac7   :  { %v9523_v39 = vadd.f32 %v9522_v16, %v9432_v27  ;;  %v9535_v46 = vsel %vm9528_vm14, %v9518_v43, %v9532_v48 }
0x3ac8   :  { %v13224_v22 = vpop.f32.mrf.mxu1 }
0x3ac9   :  { %vm9529_vm11 = vcmp.ge.f32.partialorder %v9523_v39, 0.0  ;;  %v9533_v23 = vmul.f32 %v9530_v31, %v9523_v39 }
0x3acb   :  { %v9536_v63 = vsel %vm9529_vm11, %v9523_v39, %v9533_v23 }
0x3acc   :  { %13226 = vmatpush3.msk.msra.mxu1 %vm734_vm12, %v9536_v63  ;;  %vm9625_vm12 = vcmask 8192  }
0x3acd   :  { %13227 = vmatprep.subr.mxu1 %v13280_v50 }
0x3ace   :  { %13228 = vmatpush3.msra.mxu1 %v9535_v46 }
0x3acf   :  { %13229 = vmatprep.subr.mxu1 %v13280_v50 }
0x3ad0   :  { %13230 = vmatpush3.msra.mxu1 %v9534_v3 }
0x3ad1   :  { %13232 = vmatmul.mubr.msk.f32.vlgmr.msra.gmra.mxu1 %vm730_vm4, %v9537_v47 }
0x3b91   :  { %v9620_v32 = vpop.f32.mrf.mxu1 }
0x3b92   :  { %v9621_v28 = vadd.f32 %v9620_v32, %v9547_v5 }
0x3b93   :  { %v13233_v20 = vpop.f32.mrf.mxu1 }
0x3b94   :  { %v9624_v13 = vmul.f32 5.0, %v9621_v28 }
0x3b96   :  { %9626 = vst.msk [vmem:[#allocation8] sm:$0x1] %vm9625_vm12, %v9624_v13 }
0x3b97   :  { %13265 = shalt.err (!%p13262_p9)
}
0x3b98   :  { %9636 = dma.vmem_to_hbm [thread:$0]  %s9634_s6, 16, %s17343_s26, [#allocation6]  }
0x3b99   :  { %13276 = dma.done.wait [#allocation6], 16  }
0x3b9a   :  { %13277 = vsyncadd [#allocation6], 4294967280 }
0x3b9b   :  { %9640 = vsyncpa [#allocation6], 1 }
0x3b9c   :  { %9641 = vsyncpa [#allocation7], 1 }

</bundles_post_ra>
